<compile_context>
chip_gen: v7x
topology: tpu7x:2x2x1
jax: 0.10.0
libtpu: 0.0.40
codegen_flags: <defaults>
</compile_context>

<pallas_src>
import functools

import jax
import jax.numpy as jnp
from jax.experimental import pallas as pl
from jax.experimental.pallas import tpu as pltpu


# ----------------------------------------------------------------------------
# Kernel
# ----------------------------------------------------------------------------
def _conv_bn_kernel(x_ref, w1_ref, b1_ref, w2_ref, b2_ref, w3_ref, b3_ref,
                    out_ref, pad1_ref, pad2_ref, *, K):
    """One (batch image, H-strip) per grid step.

    x_ref    : (1, Himg + 6P, W + 2P, 3)   padded image (resident across strips)
    w*_ref   : (K*K*Cin, Cout) im2col weights with BN scale (+ /255, *255) folded
    b*_ref   : (1, 1, Cout) folded biases; b3's last element is the alpha constant
    out_ref  : (1, TH, W, Cout3 + 1)
    pad1_ref : (TH + 4P, W + 2P, c1) VMEM scratch (y1 strip + halo rows)
    pad2_ref : (TH + 2P, W + 2P, c2) VMEM scratch (y2 strip + halo rows)
    """
    P = (K - 1) // 2
    ext1, Wp, c1 = pad1_ref.shape
    ext2, _, c2 = pad2_ref.shape
    TH, W = out_ref.shape[1], out_ref.shape[2]
    f32 = jnp.float32

    s = pl.program_id(1)
    ns = pl.num_programs(1)
    r0 = s * TH                       # first output row of this strip

    def conv(taps, w_ref, b_ref):
        # im2col: one MXU matmul per layer, contraction depth K*K*Cin.
        im = jnp.concatenate(taps, axis=-1)
        return jax.lax.dot_general(
            im, w_ref[...],
            dimension_numbers=(((2,), (0,)), ((), ())),
            preferred_element_type=jnp.float32) + b_ref[...]

    # Zero only the P-wide halo columns of the scratch pads (interiors are fully
    # overwritten every step; halo rows handled for edge strips below).
    pad1_ref[:, :P, :] = jnp.zeros((ext1, P, c1), f32)
    pad1_ref[:, P + W:, :] = jnp.zeros((ext1, P, c1), f32)
    pad2_ref[:, :P, :] = jnp.zeros((ext2, P, c2), f32)
    pad2_ref[:, P + W:, :] = jnp.zeros((ext2, P, c2), f32)

    # ---- conv1 + BN1 + ReLU over extended rows [r0-2P, r0+TH+2P) ------------
    xwin = x_ref[0, pl.ds(r0, ext1 + 2 * P), :, :]          # (ext1+2P, Wp, 3)
    taps1 = [xwin[kh:kh + ext1, kw:kw + W, :]
             for kh in range(K) for kw in range(K)]
    y1 = jnp.maximum(conv(taps1, w1_ref, b1_ref), 0.0)      # (ext1, W, c1)
    pad1_ref[:, P:P + W, :] = y1

    # Halo rows outside the image must behave as conv2's zero padding.
    @pl.when(s == 0)
    def _():
        pad1_ref[:2 * P, :, :] = jnp.zeros((2 * P, Wp, c1), f32)

    @pl.when(s == ns - 1)
    def _():
        pad1_ref[ext1 - 2 * P:, :, :] = jnp.zeros((2 * P, Wp, c1), f32)

    # ---- conv2 + BN2 + ReLU over rows [r0-P, r0+TH+P) ------------------------
    p1 = pad1_ref[...]
    taps2 = [p1[kh:kh + ext2, kw:kw + W, :]
             for kh in range(K) for kw in range(K)]
    y2 = jnp.maximum(conv(taps2, w2_ref, b2_ref), 0.0)      # (ext2, W, c2)
    pad2_ref[:, P:P + W, :] = y2

    @pl.when(s == 0)
    def _():
        pad2_ref[:P, :, :] = jnp.zeros((P, Wp, c2), f32)

    @pl.when(s == ns - 1)
    def _():
        pad2_ref[ext2 - P:, :, :] = jnp.zeros((P, Wp, c2), f32)

    # ---- conv3 + BN3 (+*255) with alpha=255 coming from the augmented bias ---
    p2 = pad2_ref[...]
    taps3 = [p2[kh:kh + TH, kw:kw + W, :]
             for kh in range(K) for kw in range(K)]
    out_ref[0] = conv(taps3, w3_ref, b3_ref)                # (TH, W, Cout3 + 1)


# ----------------------------------------------------------------------------
# Parameter construction / folding
# ----------------------------------------------------------------------------
def _fold_bn(gamma, beta, mean, var, eps=1e-5):
    scale = gamma / jnp.sqrt(var + eps)
    bias = beta - mean * scale
    return scale, bias


def make_params(key, initial_out_channels=32, mid_out_channels=64,
                final_out_channels=3, kernel_size=3):
    """Deterministic synthetic parameters: conv weights (HWIO) + folded BN."""
    c0, c1, c2, c3, k = 3, initial_out_channels, mid_out_channels, final_out_channels, kernel_size
    ks = jax.random.split(key, 12)

    def conv_w(kk, cin, cout):
        return (jax.random.normal(kk, (k, k, cin, cout), jnp.float32)
                * (0.1 / jnp.sqrt(cin)))

    def bn(k_a, k_b, k_c, c):
        gamma = 1.0 + 0.1 * jax.random.normal(k_a, (c,), jnp.float32)
        beta = 0.05 * jax.random.normal(k_b, (c,), jnp.float32)
        mean = 0.02 * jax.random.normal(k_c, (c,), jnp.float32)
        var = jnp.ones((c,), jnp.float32)
        return _fold_bn(gamma, beta, mean, var)

    s1, b1 = bn(ks[3], ks[4], ks[5], c1)
    s2, b2 = bn(ks[6], ks[7], ks[8], c2)
    s3, b3 = bn(ks[9], ks[10], ks[11], c3)
    return {
        "w1": conv_w(ks[0], c0, c1),
        "w2": conv_w(ks[1], c1, c2),
        "w3": conv_w(ks[2], c2, c3),
        "s1": s1.reshape(1, 1, c1), "b1": b1.reshape(1, 1, c1),
        "s2": s2.reshape(1, 1, c2), "b2": b2.reshape(1, 1, c2),
        "s3": s3.reshape(1, 1, c3), "b3": b3.reshape(1, 1, c3),
    }


def _prep_kernel_params(params):
    """Fold BN scale, 1/255 input scale, *255 output scale and the constant
    alpha channel into im2col matmul weights / biases."""
    w1, w2, w3 = params["w1"], params["w2"], params["w3"]
    K = w1.shape[0]
    c1, c2, c3 = w1.shape[-1], w2.shape[-1], w3.shape[-1]
    s1 = params["s1"].reshape(1, 1, 1, c1)
    s2 = params["s2"].reshape(1, 1, 1, c2)
    s3 = params["s3"].reshape(1, 1, 1, c3)

    W1 = (w1 * s1 * (1.0 / 255.0)).reshape(K * K * w1.shape[2], c1)
    W2 = (w2 * s2).reshape(K * K * w2.shape[2], c2)
    W3 = (w3 * s3 * 255.0).reshape(K * K * w3.shape[2], c3)
    W3a = jnp.concatenate([W3, jnp.zeros((W3.shape[0], 1), jnp.float32)], axis=1)

    B1 = params["b1"].reshape(1, 1, c1)
    B2 = params["b2"].reshape(1, 1, c2)
    B3a = jnp.concatenate(
        [params["b3"].reshape(1, 1, c3) * 255.0,
         jnp.full((1, 1, 1), 255.0, jnp.float32)], axis=-1)
    return W1, B1, W2, B2, W3a, B3a


# ----------------------------------------------------------------------------
# Strip-height / VMEM budgeting
# ----------------------------------------------------------------------------
def _vmem_bytes_estimate(H, W, TH, K, c1, c2, c_out):
    P = (K - 1) // 2
    Wp = W + 2 * P
    ext1, ext2 = TH + 4 * P, TH + 2 * P
    f = 4
    n = 0
    n += 2 * (H + 6 * P) * Wp * 3 * f              # padded input block (dbl buf)
    n += 2 * TH * W * c_out * f                    # output block (dbl buf)
    n += ext1 * Wp * c1 * f + ext2 * Wp * c2 * f   # scratch pads
    n += ext1 * W * (K * K * 3 + c1) * f           # conv1 im2col + result
    n += ext2 * W * (K * K * c1 + c2) * f          # conv2 im2col + result
    n += TH * W * (K * K * c2 + c_out) * f         # conv3 im2col + result
    n += 2 * K * K * (3 * c1 + c1 * c2 + c2 * c_out) * f
    return n


def _pick_strip_height(H, W, K, c1, c2, c_out, budget=40 * 1024 * 1024):
    cands = [t for t in (H, 256, 128, 64, 32, 16, 8, 4, 2, 1)
             if t <= H and H % t == 0]
    for th in cands:
        if _vmem_bytes_estimate(H, W, th, K, c1, c2, c_out) <= budget:
            return th
    return cands[-1]


# ----------------------------------------------------------------------------
# Forward wrappers
# ----------------------------------------------------------------------------
@jax.jit
def model_forward(x_rgba_u8, params):
    """uint8 NCHW RGBA in -> float32 NCHW RGBA (scaled to [0, 255]) out."""
    if x_rgba_u8.dtype != jnp.uint8 or x_rgba_u8.shape[1] != 4:
        raise ValueError("Input tensor must be uint8 with 4 channels (RGBA)")
    B, _, H, W = x_rgba_u8.shape
    K = params["w1"].shape[0]
    P = (K - 1) // 2
    c1 = params["w1"].shape[-1]
    c2 = params["w2"].shape[-1]
    c3 = params["w3"].shape[-1]
    c_out = c3 + 1

    W1, B1, W2, B2, W3a, B3a = _prep_kernel_params(params)

    # NHWC float input; the /255 normalisation is folded into W1.
    x_nhwc = jnp.transpose(x_rgba_u8[:, :3, :, :].astype(jnp.float32), (0, 2, 3, 1))
    # Pad rows by 3P (halo for three KxK convs) and cols by P.
    x_pad = jnp.pad(x_nhwc, ((0, 0), (3 * P, 3 * P), (P, P), (0, 0)))
    Hx, Wp = H + 6 * P, W + 2 * P

    TH = _pick_strip_height(H, W, K, c1, c2, c_out)
    ns = H // TH
    ext1, ext2 = TH + 4 * P, TH + 2 * P

    vmem_limit = int(min(60 * 1024 * 1024,
                         max(32 * 1024 * 1024,
                             int(1.5 * _vmem_bytes_estimate(
                                 H, W, TH, K, c1, c2, c_out)))))

    def full_spec(a):
        nd = a.ndim
        return pl.BlockSpec(a.shape, lambda b, s: (0,) * nd)

    out_nhwc = pl.pallas_call(
        functools.partial(_conv_bn_kernel, K=K),
        out_shape=jax.ShapeDtypeStruct((B, H, W, c_out), jnp.float32),
        grid=(B, ns),
        in_specs=[
            pl.BlockSpec((1, Hx, Wp, 3), lambda b, s: (b, 0, 0, 0)),
            full_spec(W1), full_spec(B1),
            full_spec(W2), full_spec(B2),
            full_spec(W3a), full_spec(B3a),
        ],
        out_specs=pl.BlockSpec((1, TH, W, c_out), lambda b, s: (b, s, 0, 0)),
        scratch_shapes=[
            pltpu.VMEM((ext1, Wp, c1), jnp.float32),
            pltpu.VMEM((ext2, Wp, c2), jnp.float32),
        ],
        compiler_params=pltpu.CompilerParams(
            dimension_semantics=("parallel", "parallel"),
            vmem_limit_bytes=vmem_limit),
    )(x_pad, W1, B1, W2, B2, W3a, B3a)

    return jnp.transpose(out_nhwc, (0, 3, 1, 2))            # NCHW


def reference_forward(x_rgba_u8, params):
    """Pure-JAX reference (lax.conv) mirroring the PyTorch forward."""
    rgb = x_rgba_u8[:, :3, :, :].astype(jnp.float32) / 255.0
    x = jnp.transpose(rgb, (0, 2, 3, 1))

    def conv(x, w):
        return jax.lax.conv_general_dilated(
            x, w, window_strides=(1, 1), padding="SAME",
            dimension_numbers=("NHWC", "HWIO", "NHWC"))

    y = jnp.maximum(conv(x, params["w1"]) * params["s1"] + params["b1"], 0.0)
    y = jnp.maximum(conv(y, params["w2"]) * params["s2"] + params["b2"], 0.0)
    y = (conv(y, params["w3"]) * params["s3"] + params["b3"]) * 255.0
    alpha = jnp.full(y.shape[:3] + (1,), 255.0, jnp.float32)
    out = jnp.concatenate([y, alpha], axis=-1)
    return jnp.transpose(out, (0, 3, 1, 2))


if __name__ == "__main__":
    key = jax.random.PRNGKey(0)
    k_param, k_data = jax.random.split(key)

    B, H, W = 2, 16, 16
    x = jax.random.randint(k_data, (B, 4, H, W), 0, 256,
                           dtype=jnp.int32).astype(jnp.uint8)
    params = make_params(k_param)

    out = jax.block_until_ready(model_forward(x, params))
    ref = reference_forward(x, params)

    assert out.shape == (B, 4, H, W) and out.dtype == jnp.float32
    max_err = float(jnp.max(jnp.abs(out - ref)))
    assert max_err < 0.2, f"max abs diff {max_err}"

    print("KERNEL_OK")
</pallas_src>

<mosaic_0001>
module attributes {stable_mosaic.version = 11 : i64} {
  func.func @_conv_bn_kernel(%arg0: i32, %arg1: i32, %arg2: memref<1x22x18x3xf32, #tpu.memory_space<vmem>>, %arg3: memref<27x32xf32, #tpu.memory_space<vmem>>, %arg4: memref<1x1x32xf32, #tpu.memory_space<vmem>>, %arg5: memref<288x64xf32, #tpu.memory_space<vmem>>, %arg6: memref<1x1x64xf32, #tpu.memory_space<vmem>>, %arg7: memref<576x4xf32, #tpu.memory_space<vmem>>, %arg8: memref<1x1x4xf32, #tpu.memory_space<vmem>>, %arg9: memref<1x16x16x4xf32, #tpu.memory_space<vmem>>, %arg10: memref<20x18x32xf32, #tpu.memory_space<vmem>>, %arg11: memref<18x18x64xf32, #tpu.memory_space<vmem>>) attributes {dimension_semantics = [#tpu.dimension_semantics<parallel>, #tpu.dimension_semantics<parallel>], iteration_bounds = array<i64: 2, 1>, scalar_prefetch = 0 : i64, scratch_operands = 2 : i64, tpu.core_type = #tpu.core_type<tc>, window_params = [{transform_indices = @transform_0, window_bounds = array<i64: 1, 22, 18, 3>}, {pipeline_mode = #tpu.pipeline_mode<synchronous>, transform_indices = @transform_1, window_bounds = array<i64: 27, 32>}, {pipeline_mode = #tpu.pipeline_mode<synchronous>, transform_indices = @transform_2, window_bounds = array<i64: 1, 1, 32>}, {pipeline_mode = #tpu.pipeline_mode<synchronous>, transform_indices = @transform_3, window_bounds = array<i64: 288, 64>}, {pipeline_mode = #tpu.pipeline_mode<synchronous>, transform_indices = @transform_4, window_bounds = array<i64: 1, 1, 64>}, {pipeline_mode = #tpu.pipeline_mode<synchronous>, transform_indices = @transform_5, window_bounds = array<i64: 576, 4>}, {pipeline_mode = #tpu.pipeline_mode<synchronous>, transform_indices = @transform_6, window_bounds = array<i64: 1, 1, 4>}, {transform_indices = @transform_7, window_bounds = array<i64: 1, 16, 16, 4>}]} {
    %c16_i32 = arith.constant 16 : i32
    %0 = arith.muli %arg1, %c16_i32 : i32
    %cst = arith.constant 0.000000e+00 : f32
    %1 = vector.broadcast %cst : f32 to vector<20x1x32xf32>
    %c0 = arith.constant 0 : index
    %c0_0 = arith.constant 0 : index
    %c0_1 = arith.constant 0 : index
    %2 = vector.load %arg10[%c0, %c0_0, %c0_1] : memref<20x18x32xf32, #tpu.memory_space<vmem>>, vector<20x1x32xf32>
    tpu.vector_store %arg10[%c0, %c0_0, %c0_1], %1 {strides = array<i32>} : memref<20x18x32xf32, #tpu.memory_space<vmem>>, vector<20x1x32xf32>,
    %cst_2 = arith.constant 0.000000e+00 : f32
    %3 = vector.broadcast %cst_2 : f32 to vector<20x1x32xf32>
    %c0_3 = arith.constant 0 : index
    %c17 = arith.constant 17 : index
    %c0_4 = arith.constant 0 : index
    %4 = vector.load %arg10[%c0_3, %c17, %c0_4] : memref<20x18x32xf32, #tpu.memory_space<vmem>>, vector<20x1x32xf32>
    tpu.vector_store %arg10[%c0_3, %c17, %c0_4], %3 {strides = array<i32>} : memref<20x18x32xf32, #tpu.memory_space<vmem>>, vector<20x1x32xf32>,
    %cst_5 = arith.constant 0.000000e+00 : f32
    %5 = vector.broadcast %cst_5 : f32 to vector<18x1x64xf32>
    %c0_6 = arith.constant 0 : index
    %c0_7 = arith.constant 0 : index
    %c0_8 = arith.constant 0 : index
    %6 = vector.load %arg11[%c0_6, %c0_7, %c0_8] : memref<18x18x64xf32, #tpu.memory_space<vmem>>, vector<18x1x64xf32>
    tpu.vector_store %arg11[%c0_6, %c0_7, %c0_8], %5 {strides = array<i32>} : memref<18x18x64xf32, #tpu.memory_space<vmem>>, vector<18x1x64xf32>,
    %cst_9 = arith.constant 0.000000e+00 : f32
    %7 = vector.broadcast %cst_9 : f32 to vector<18x1x64xf32>
    %c0_10 = arith.constant 0 : index
    %c17_11 = arith.constant 17 : index
    %c0_12 = arith.constant 0 : index
    %8 = vector.load %arg11[%c0_10, %c17_11, %c0_12] : memref<18x18x64xf32, #tpu.memory_space<vmem>>, vector<18x1x64xf32>
    tpu.vector_store %arg11[%c0_10, %c17_11, %c0_12], %7 {strides = array<i32>} : memref<18x18x64xf32, #tpu.memory_space<vmem>>, vector<18x1x64xf32>,
    %c0_13 = arith.constant 0 : index
    %9 = arith.index_cast %0 : i32 to index
    %c0_14 = arith.constant 0 : index
    %c0_15 = arith.constant 0 : index
    %10 = vector.load %arg2[%c0_13, %9, %c0_14, %c0_15] : memref<1x22x18x3xf32, #tpu.memory_space<vmem>>, vector<1x22x18x3xf32>
    %11 = vector.shape_cast %10 : vector<1x22x18x3xf32> to vector<22x18x3xf32>
    %12 = vector.extract_strided_slice %11 {offsets = [0, 0, 0], sizes = [20, 16, 3], strides = [1, 1, 1]} : vector<22x18x3xf32> to vector<20x16x3xf32>
    %13 = vector.extract_strided_slice %11 {offsets = [0, 1, 0], sizes = [20, 16, 3], strides = [1, 1, 1]} : vector<22x18x3xf32> to vector<20x16x3xf32>
    %14 = vector.extract_strided_slice %11 {offsets = [0, 2, 0], sizes = [20, 16, 3], strides = [1, 1, 1]} : vector<22x18x3xf32> to vector<20x16x3xf32>
    %15 = vector.extract_strided_slice %11 {offsets = [1, 0, 0], sizes = [20, 16, 3], strides = [1, 1, 1]} : vector<22x18x3xf32> to vector<20x16x3xf32>
    %16 = vector.extract_strided_slice %11 {offsets = [1, 1, 0], sizes = [20, 16, 3], strides = [1, 1, 1]} : vector<22x18x3xf32> to vector<20x16x3xf32>
    %17 = vector.extract_strided_slice %11 {offsets = [1, 2, 0], sizes = [20, 16, 3], strides = [1, 1, 1]} : vector<22x18x3xf32> to vector<20x16x3xf32>
    %18 = vector.extract_strided_slice %11 {offsets = [2, 0, 0], sizes = [20, 16, 3], strides = [1, 1, 1]} : vector<22x18x3xf32> to vector<20x16x3xf32>
    %19 = vector.extract_strided_slice %11 {offsets = [2, 1, 0], sizes = [20, 16, 3], strides = [1, 1, 1]} : vector<22x18x3xf32> to vector<20x16x3xf32>
    %20 = vector.extract_strided_slice %11 {offsets = [2, 2, 0], sizes = [20, 16, 3], strides = [1, 1, 1]} : vector<22x18x3xf32> to vector<20x16x3xf32>
    %21 = tpu.concatenate %12, %13, %14, %15, %16, %17, %18, %19, %20 in 2 : vector<20x16x3xf32>, vector<20x16x3xf32>, vector<20x16x3xf32>, vector<20x16x3xf32>, vector<20x16x3xf32>, vector<20x16x3xf32>, vector<20x16x3xf32>, vector<20x16x3xf32>, vector<20x16x3xf32> -> vector<20x16x27xf32>
    %c0_16 = arith.constant 0 : index
    %c0_17 = arith.constant 0 : index
    %22 = vector.load %arg3[%c0_16, %c0_17] : memref<27x32xf32, #tpu.memory_space<vmem>>, vector<27x32xf32>
    %cst_18 = arith.constant dense<0.000000e+00> : vector<20x16x32xf32>
    %23 = tpu.matmul %21, %22, %cst_18 {dimension_numbers = #tpu.dot_dimension_numbers<[2], [0], [0, 1], [1], [0, 0, 0, 1, 1, 1], [], []>} : vector<20x16x27xf32>, vector<27x32xf32>, vector<20x16x32xf32> -> vector<20x16x32xf32>
    %c0_19 = arith.constant 0 : index
    %c0_20 = arith.constant 0 : index
    %c0_21 = arith.constant 0 : index
    %24 = vector.load %arg4[%c0_19, %c0_20, %c0_21] : memref<1x1x32xf32, #tpu.memory_space<vmem>>, vector<1x1x32xf32>
    %25 = vector.broadcast %24 : vector<1x1x32xf32> to vector<20x16x32xf32>
    %26 = arith.addf %23, %25 : vector<20x16x32xf32>
    %cst_22 = arith.constant 0.000000e+00 : f32
    %27 = vector.broadcast %cst_22 : f32 to vector<20x16x32xf32>
    %28 = arith.maximumf %26, %27 : vector<20x16x32xf32>
    %c0_23 = arith.constant 0 : index
    %c1 = arith.constant 1 : index
    %c0_24 = arith.constant 0 : index
    %29 = vector.load %arg10[%c0_23, %c1, %c0_24] : memref<20x18x32xf32, #tpu.memory_space<vmem>>, vector<20x16x32xf32>
    tpu.vector_store %arg10[%c0_23, %c1, %c0_24], %28 {strides = array<i32>} : memref<20x18x32xf32, #tpu.memory_space<vmem>>, vector<20x16x32xf32>,
    %c0_i32 = arith.constant 0 : i32
    %30 = arith.cmpi eq, %arg1, %c0_i32 : i32
    %31 = arith.extui %30 : i1 to i32
    %c0_i32_25 = arith.constant 0 : i32
    %32 = arith.cmpi ne, %31, %c0_i32_25 : i32
    scf.if %32 {
      %cst_58 = arith.constant 0.000000e+00 : f32
      %80 = vector.broadcast %cst_58 : f32 to vector<2x18x32xf32>
      %c0_59 = arith.constant 0 : index
      %c0_60 = arith.constant 0 : index
      %c0_61 = arith.constant 0 : index
      %81 = vector.load %arg10[%c0_59, %c0_60, %c0_61] : memref<20x18x32xf32, #tpu.memory_space<vmem>>, vector<2x18x32xf32>
      tpu.vector_store %arg10[%c0_59, %c0_60, %c0_61], %80 {strides = array<i32>} : memref<20x18x32xf32, #tpu.memory_space<vmem>>, vector<2x18x32xf32>,
    } else {
    }
    %c0_i32_26 = arith.constant 0 : i32
    %33 = arith.cmpi eq, %arg1, %c0_i32_26 : i32
    %34 = arith.extui %33 : i1 to i32
    %c0_i32_27 = arith.constant 0 : i32
    %35 = arith.cmpi ne, %34, %c0_i32_27 : i32
    scf.if %35 {
      %cst_58 = arith.constant 0.000000e+00 : f32
      %80 = vector.broadcast %cst_58 : f32 to vector<2x18x32xf32>
      %c18 = arith.constant 18 : index
      %c0_59 = arith.constant 0 : index
      %c0_60 = arith.constant 0 : index
      %81 = vector.load %arg10[%c18, %c0_59, %c0_60] : memref<20x18x32xf32, #tpu.memory_space<vmem>>, vector<2x18x32xf32>
      tpu.vector_store %arg10[%c18, %c0_59, %c0_60], %80 {strides = array<i32>} : memref<20x18x32xf32, #tpu.memory_space<vmem>>, vector<2x18x32xf32>,
    } else {
    }
    %c0_28 = arith.constant 0 : index
    %c0_29 = arith.constant 0 : index
    %c0_30 = arith.constant 0 : index
    %36 = vector.load %arg10[%c0_28, %c0_29, %c0_30] : memref<20x18x32xf32, #tpu.memory_space<vmem>>, vector<20x18x32xf32>
    %37 = vector.extract_strided_slice %36 {offsets = [0, 0, 0], sizes = [18, 16, 32], strides = [1, 1, 1]} : vector<20x18x32xf32> to vector<18x16x32xf32>
    %38 = vector.extract_strided_slice %36 {offsets = [0, 1, 0], sizes = [18, 16, 32], strides = [1, 1, 1]} : vector<20x18x32xf32> to vector<18x16x32xf32>
    %39 = vector.extract_strided_slice %36 {offsets = [0, 2, 0], sizes = [18, 16, 32], strides = [1, 1, 1]} : vector<20x18x32xf32> to vector<18x16x32xf32>
    %40 = vector.extract_strided_slice %36 {offsets = [1, 0, 0], sizes = [18, 16, 32], strides = [1, 1, 1]} : vector<20x18x32xf32> to vector<18x16x32xf32>
    %41 = vector.extract_strided_slice %36 {offsets = [1, 1, 0], sizes = [18, 16, 32], strides = [1, 1, 1]} : vector<20x18x32xf32> to vector<18x16x32xf32>
    %42 = vector.extract_strided_slice %36 {offsets = [1, 2, 0], sizes = [18, 16, 32], strides = [1, 1, 1]} : vector<20x18x32xf32> to vector<18x16x32xf32>
    %43 = vector.extract_strided_slice %36 {offsets = [2, 0, 0], sizes = [18, 16, 32], strides = [1, 1, 1]} : vector<20x18x32xf32> to vector<18x16x32xf32>
    %44 = vector.extract_strided_slice %36 {offsets = [2, 1, 0], sizes = [18, 16, 32], strides = [1, 1, 1]} : vector<20x18x32xf32> to vector<18x16x32xf32>
    %45 = vector.extract_strided_slice %36 {offsets = [2, 2, 0], sizes = [18, 16, 32], strides = [1, 1, 1]} : vector<20x18x32xf32> to vector<18x16x32xf32>
    %46 = tpu.concatenate %37, %38, %39, %40, %41, %42, %43, %44, %45 in 2 : vector<18x16x32xf32>, vector<18x16x32xf32>, vector<18x16x32xf32>, vector<18x16x32xf32>, vector<18x16x32xf32>, vector<18x16x32xf32>, vector<18x16x32xf32>, vector<18x16x32xf32>, vector<18x16x32xf32> -> vector<18x16x288xf32>
    %c0_31 = arith.constant 0 : index
    %c0_32 = arith.constant 0 : index
    %47 = vector.load %arg5[%c0_31, %c0_32] : memref<288x64xf32, #tpu.memory_space<vmem>>, vector<288x64xf32>
    %cst_33 = arith.constant dense<0.000000e+00> : vector<18x16x64xf32>
    %48 = tpu.matmul %46, %47, %cst_33 {dimension_numbers = #tpu.dot_dimension_numbers<[2], [0], [0, 1], [1], [0, 0, 0, 1, 1, 1], [], []>} : vector<18x16x288xf32>, vector<288x64xf32>, vector<18x16x64xf32> -> vector<18x16x64xf32>
    %c0_34 = arith.constant 0 : index
    %c0_35 = arith.constant 0 : index
    %c0_36 = arith.constant 0 : index
    %49 = vector.load %arg6[%c0_34, %c0_35, %c0_36] : memref<1x1x64xf32, #tpu.memory_space<vmem>>, vector<1x1x64xf32>
    %50 = vector.broadcast %49 : vector<1x1x64xf32> to vector<18x16x64xf32>
    %51 = arith.addf %48, %50 : vector<18x16x64xf32>
    %cst_37 = arith.constant 0.000000e+00 : f32
    %52 = vector.broadcast %cst_37 : f32 to vector<18x16x64xf32>
    %53 = arith.maximumf %51, %52 : vector<18x16x64xf32>
    %c0_38 = arith.constant 0 : index
    %c1_39 = arith.constant 1 : index
    %c0_40 = arith.constant 0 : index
    %54 = vector.load %arg11[%c0_38, %c1_39, %c0_40] : memref<18x18x64xf32, #tpu.memory_space<vmem>>, vector<18x16x64xf32>
    tpu.vector_store %arg11[%c0_38, %c1_39, %c0_40], %53 {strides = array<i32>} : memref<18x18x64xf32, #tpu.memory_space<vmem>>, vector<18x16x64xf32>,
    %c0_i32_41 = arith.constant 0 : i32
    %55 = arith.cmpi eq, %arg1, %c0_i32_41 : i32
    %56 = arith.extui %55 : i1 to i32
    %c0_i32_42 = arith.constant 0 : i32
    %57 = arith.cmpi ne, %56, %c0_i32_42 : i32
    scf.if %57 {
      %cst_58 = arith.constant 0.000000e+00 : f32
      %80 = vector.broadcast %cst_58 : f32 to vector<1x18x64xf32>
      %c0_59 = arith.constant 0 : index
      %c0_60 = arith.constant 0 : index
      %c0_61 = arith.constant 0 : index
      %81 = vector.load %arg11[%c0_59, %c0_60, %c0_61] : memref<18x18x64xf32, #tpu.memory_space<vmem>>, vector<1x18x64xf32>
      tpu.vector_store %arg11[%c0_59, %c0_60, %c0_61], %80 {strides = array<i32>} : memref<18x18x64xf32, #tpu.memory_space<vmem>>, vector<1x18x64xf32>,
    } else {
    }
    %c0_i32_43 = arith.constant 0 : i32
    %58 = arith.cmpi eq, %arg1, %c0_i32_43 : i32
    %59 = arith.extui %58 : i1 to i32
    %c0_i32_44 = arith.constant 0 : i32
    %60 = arith.cmpi ne, %59, %c0_i32_44 : i32
    scf.if %60 {
      %cst_58 = arith.constant 0.000000e+00 : f32
      %80 = vector.broadcast %cst_58 : f32 to vector<1x18x64xf32>
      %c17_59 = arith.constant 17 : index
      %c0_60 = arith.constant 0 : index
      %c0_61 = arith.constant 0 : index
      %81 = vector.load %arg11[%c17_59, %c0_60, %c0_61] : memref<18x18x64xf32, #tpu.memory_space<vmem>>, vector<1x18x64xf32>
      tpu.vector_store %arg11[%c17_59, %c0_60, %c0_61], %80 {strides = array<i32>} : memref<18x18x64xf32, #tpu.memory_space<vmem>>, vector<1x18x64xf32>,
    } else {
    }
    %c0_45 = arith.constant 0 : index
    %c0_46 = arith.constant 0 : index
    %c0_47 = arith.constant 0 : index
    %61 = vector.load %arg11[%c0_45, %c0_46, %c0_47] : memref<18x18x64xf32, #tpu.memory_space<vmem>>, vector<18x18x64xf32>
    %62 = vector.extract_strided_slice %61 {offsets = [0, 0, 0], sizes = [16, 16, 64], strides = [1, 1, 1]} : vector<18x18x64xf32> to vector<16x16x64xf32>
    %63 = vector.extract_strided_slice %61 {offsets = [0, 1, 0], sizes = [16, 16, 64], strides = [1, 1, 1]} : vector<18x18x64xf32> to vector<16x16x64xf32>
    %64 = vector.extract_strided_slice %61 {offsets = [0, 2, 0], sizes = [16, 16, 64], strides = [1, 1, 1]} : vector<18x18x64xf32> to vector<16x16x64xf32>
    %65 = vector.extract_strided_slice %61 {offsets = [1, 0, 0], sizes = [16, 16, 64], strides = [1, 1, 1]} : vector<18x18x64xf32> to vector<16x16x64xf32>
    %66 = vector.extract_strided_slice %61 {offsets = [1, 1, 0], sizes = [16, 16, 64], strides = [1, 1, 1]} : vector<18x18x64xf32> to vector<16x16x64xf32>
    %67 = vector.extract_strided_slice %61 {offsets = [1, 2, 0], sizes = [16, 16, 64], strides = [1, 1, 1]} : vector<18x18x64xf32> to vector<16x16x64xf32>
    %68 = vector.extract_strided_slice %61 {offsets = [2, 0, 0], sizes = [16, 16, 64], strides = [1, 1, 1]} : vector<18x18x64xf32> to vector<16x16x64xf32>
    %69 = vector.extract_strided_slice %61 {offsets = [2, 1, 0], sizes = [16, 16, 64], strides = [1, 1, 1]} : vector<18x18x64xf32> to vector<16x16x64xf32>
    %70 = vector.extract_strided_slice %61 {offsets = [2, 2, 0], sizes = [16, 16, 64], strides = [1, 1, 1]} : vector<18x18x64xf32> to vector<16x16x64xf32>
    %71 = tpu.concatenate %62, %63, %64, %65, %66, %67, %68, %69, %70 in 2 : vector<16x16x64xf32>, vector<16x16x64xf32>, vector<16x16x64xf32>, vector<16x16x64xf32>, vector<16x16x64xf32>, vector<16x16x64xf32>, vector<16x16x64xf32>, vector<16x16x64xf32>, vector<16x16x64xf32> -> vector<16x16x576xf32>
    %c0_48 = arith.constant 0 : index
    %c0_49 = arith.constant 0 : index
    %72 = vector.load %arg7[%c0_48, %c0_49] : memref<576x4xf32, #tpu.memory_space<vmem>>, vector<576x4xf32>
    %cst_50 = arith.constant dense<0.000000e+00> : vector<16x16x4xf32>
    %73 = tpu.matmul %71, %72, %cst_50 {dimension_numbers = #tpu.dot_dimension_numbers<[2], [0], [0, 1], [1], [0, 0, 0, 1, 1, 1], [], []>} : vector<16x16x576xf32>, vector<576x4xf32>, vector<16x16x4xf32> -> vector<16x16x4xf32>
    %c0_51 = arith.constant 0 : index
    %c0_52 = arith.constant 0 : index
    %c0_53 = arith.constant 0 : index
    %74 = vector.load %arg8[%c0_51, %c0_52, %c0_53] : memref<1x1x4xf32, #tpu.memory_space<vmem>>, vector<1x1x4xf32>
    %75 = vector.broadcast %74 : vector<1x1x4xf32> to vector<16x16x4xf32>
    %76 = arith.addf %73, %75 : vector<16x16x4xf32>
    %c0_54 = arith.constant 0 : index
    %c0_55 = arith.constant 0 : index
    %c0_56 = arith.constant 0 : index
    %c0_57 = arith.constant 0 : index
    %77 = vector.load %arg9[%c0_54, %c0_55, %c0_56, %c0_57] : memref<1x16x16x4xf32, #tpu.memory_space<vmem>>, vector<1x16x16x4xf32>
    %78 = vector.shape_cast %77 : vector<1x16x16x4xf32> to vector<16x16x4xf32>
    %79 = vector.shape_cast %76 : vector<16x16x4xf32> to vector<1x16x16x4xf32>
    tpu.vector_store %arg9[%c0_54, %c0_55, %c0_56, %c0_57], %79 {strides = array<i32>} : memref<1x16x16x4xf32, #tpu.memory_space<vmem>>, vector<1x16x16x4xf32>,
    return
  }
  func.func @transform_0(%arg0: i32, %arg1: i32) -> (i32, i32, i32, i32) {
    %c0_i32 = arith.constant 0 : i32
    %c0_i32_0 = arith.constant 0 : i32
    %c0_i32_1 = arith.constant 0 : i32
    %c0_i32_2 = arith.constant 0 : i32
    return %arg0, %c0_i32, %c0_i32_0, %c0_i32_1 : i32, i32, i32, i32
  }
  func.func @transform_1(%arg0: i32, %arg1: i32) -> (i32, i32) {
    %c0_i32 = arith.constant 0 : i32
    %c0_i32_0 = arith.constant 0 : i32
    %c0_i32_1 = arith.constant 0 : i32
    return %c0_i32, %c0_i32_0 : i32, i32
  }
  func.func @transform_2(%arg0: i32, %arg1: i32) -> (i32, i32, i32) {
    %c0_i32 = arith.constant 0 : i32
    %c0_i32_0 = arith.constant 0 : i32
    %c0_i32_1 = arith.constant 0 : i32
    %c0_i32_2 = arith.constant 0 : i32
    return %c0_i32, %c0_i32_0, %c0_i32_1 : i32, i32, i32
  }
  func.func @transform_3(%arg0: i32, %arg1: i32) -> (i32, i32) {
    %c0_i32 = arith.constant 0 : i32
    %c0_i32_0 = arith.constant 0 : i32
    %c0_i32_1 = arith.constant 0 : i32
    return %c0_i32, %c0_i32_0 : i32, i32
  }
  func.func @transform_4(%arg0: i32, %arg1: i32) -> (i32, i32, i32) {
    %c0_i32 = arith.constant 0 : i32
    %c0_i32_0 = arith.constant 0 : i32
    %c0_i32_1 = arith.constant 0 : i32
    %c0_i32_2 = arith.constant 0 : i32
    return %c0_i32, %c0_i32_0, %c0_i32_1 : i32, i32, i32
  }
  func.func @transform_5(%arg0: i32, %arg1: i32) -> (i32, i32) {
    %c0_i32 = arith.constant 0 : i32
    %c0_i32_0 = arith.constant 0 : i32
    %c0_i32_1 = arith.constant 0 : i32
    return %c0_i32, %c0_i32_0 : i32, i32
  }
  func.func @transform_6(%arg0: i32, %arg1: i32) -> (i32, i32, i32) {
    %c0_i32 = arith.constant 0 : i32
    %c0_i32_0 = arith.constant 0 : i32
    %c0_i32_1 = arith.constant 0 : i32
    %c0_i32_2 = arith.constant 0 : i32
    return %c0_i32, %c0_i32_0, %c0_i32_1 : i32, i32, i32
  }
  func.func @transform_7(%arg0: i32, %arg1: i32) -> (i32, i32, i32, i32) {
    %c0_i32 = arith.constant 0 : i32
    %c0_i32_0 = arith.constant 0 : i32
    %c0_i32_1 = arith.constant 0 : i32
    return %arg0, %arg1, %c0_i32, %c0_i32_0 : i32, i32, i32, i32
  }
}

</mosaic_0001>

<bundles_post_ra>
// kernel: model_forward.1
= control target key start
LH: loop header
LB: loop body
LE: loop exit
PB: predicated region body
PF: predicated region fallthrough
CT: control target
= control target key end

     0   :  { %s7820_s24 = smov 0   ;;  %s7822_s25 = smov 0   ;;  %s12777_s0 = inlined_call_operand.vmem [shape: f32[2,22,18,3], index: 0, kind: input, shape index: {}]   ;;  %s12778_s1 = inlined_call_operand.vmem [shape: f32[27,32], index: 1, kind: input, shape index: {}]   ;;  %s12779_s2 = inlined_call_operand.vmem [shape: f32[1,1,32], index: 2, kind: input, shape index: {}]   ;;  %s12780_s3 = inlined_call_operand.vmem [shape: f32[288,64], index: 3, kind: input, shape index: {}]   ;;  %s12781_s4 = inlined_call_operand.vmem [shape: f32[1,1,64], index: 4, kind: input, shape index: {}]   ;;  %s12782_s5 = inlined_call_operand.vmem [shape: f32[576,4], index: 5, kind: input, shape index: {}]   ;;  %s12783_s6 = inlined_call_operand.vmem [shape: f32[1,1,4], index: 6, kind: input, shape index: {}]   ;;  %s12784_s7 = inlined_call_operand.vmem [shape: f32[2,16,16,4], index: 7, kind: output, shape index: {}]  }
   0x1   :  { %s7824_s26 = smov 0  }
   0x2 LB: > { %s29_s27 = sadd.s32 1, %s7760_s25  ;;  %p6133_p0 = scmp.ge.s32.totalorder %s7764_s26, 1  ;;  %s7764_s26 = sphi %s7824_s26, %s17_s26   ;;  %s7760_s25 = sphi %s7822_s25, %s13277_s25   ;;  %s7756_s24 = sphi %s7820_s24, %s13276_s24  }
   0x3   : > { %p31_p1 = scmp.ge.s32.totalorder %s29_s27, 2  ;;  %p251_p2 = scmp.lt.s32.totalorder %s7764_s26, 3 }
   0x5   : > { %s13279_s27 = smov (%p31_p1, %s29_s27), 0  ;;  %p252_p3 = pnand %p6133_p0, %p251_p2 }
   0x7   : > { %255 = sbr.rel (%p252_p3) target bundleno = 1749 (0x6d5), region = 48 }
   0xe   : > { %p288_p4 = scmp.lt.s32.totalorder %s7756_s24, 1  ;;  %vm511_vm0 = vcmask 1046528   ;;  %s7766_s9 = smov 3   ;;  %vm732_vm1 = vcmask 1045504   ;;  %vm2159_vm2 = vcmask 1042432   ;;  %vm7772_vm3 = vmmov 1  }
   0xf   : > { %s7767_s10 = smov 6   ;;  %s7768_s11 = smov 9   ;;  %vm6575_vm4 = vmpackc.low %vm2159_vm2, %vm7772_vm3  ;;  %vm1699_vm5 = vcmask 23552   ;;  %vm1740_vm6 = vcmask 48128   ;;  %vm1781_vm7 = vcmask 72704   ;;  %vm1822_vm8 = vcmask 97280  }
  0x10   : > { %s13281_s24 = smov (!%p288_p4, %s7756_s24), 1  ;;  %s7769_s12 = smov 12   ;;  %vm1863_vm9 = vcmask 121856   ;;  %vm1904_vm10 = vcmask 146432   ;;  %vm1945_vm11 = vcmask 171008   ;;  %vm1986_vm12 = vcmask 195584  }
  0x11   : > { %s6871_s28 = smul.u32 528, %s13281_s24  ;;  %s7770_s17 = smov 15   ;;  %vm2038_vm13 = vcmask 220160   ;;  %vm305_vm14 = vcmask 253952   ;;  %vm2468_vm15 = vcmask 261120   ;;  %vm2515_vm2 = vcmask 254976  }
  0x12   : > { %s7771_s22 = smov 18   ;;  %s7773_s23 = smov 21   ;;  %vm3567_vm3 = vcmask 523264  }
  0x13   : > { %s7844_s8 = scalar_lea.vmem %s12777_s0, %s6871_s28  ;;  %s7774_s28 = smov 24  }
  0x14   : > { %v7847_v0 = vld [vmem:[%s7844_s8 + $0x18] sm:$0xff]  ;;  %v7850_v1 = vld [vmem:[%s7844_s8 + $0x20] sm:$0xff]  ;;  %v7858_v5 = vld [vmem:[%s7844_s8 + $0x8] sm:$0xff]  ;;  %s6251_s20 = sshll.u32 %s13281_s24, 8 }
  0x15   : > { %v7853_v2 = vld [vmem:[%s7844_s8] sm:$0xff]  ;;  %v517_v3 = vrot.slane %v7847_v0, 1  ;;  %v518_v4 = vrot.slane %v7850_v1, 1  ;;  %v7862_v7 = vld [vmem:[%s7844_s8 + $0x28] sm:$0x3]  ;;  %v513_v8 = vrot.slane %v7858_v5, 1 }
  0x16   : > { %v512_v6 = vrot.slane %v7853_v2, 1  ;;  %v520_v9 = vrot.slane %v7862_v7, 1  ;;  %v7867_v10 = vld [vmem:[%s7844_s8 + $0x10] sm:$0x3]  ;;  %v7870_v11 = vld [vmem:[%s7844_s8 + $0x38] sm:$0xff]  ;;  %v7900_v24 = vld [vmem:[%s7844_s8 + $0x48] sm:$0xff] }
  0x17   : > { %v7873_v12 = vsel %vm511_vm0, %v517_v3, %v518_v4  ;;  %v515_v13 = vrot.slane %v7867_v10, 1  ;;  %v7877_v14 = vld [vmem:[%s7844_s8 + $0x40] sm:$0x3]  ;;  %v7880_v15 = vld [vmem:[%s7844_s8 + $0x30] sm:$0xff]  ;;  %v523_v18 = vrot.slane %v7870_v11, 1  ;;  %v527_v29 = vrot.slane %v7900_v24, 1 }
  0x18   : > { %12956 = vst [vmem:[#allocation4_spill] sm:$0xff] %v7873_v12  ;;  %616 = vrot.lane.b32.xlu1 %v7873_v12, %s7766_s9  ;;  %v514_v16 = vsel %vm511_vm0, %v512_v6, %v513_v8  ;;  %v7887_v17 = vsel %vm511_vm0, %v518_v4, %v520_v9  ;;  %v525_v19 = vrot.slane %v7877_v14, 1  ;;  %v522_v21 = vrot.slane %v7880_v15, 1  ;;  %v7894_v22 = vld [vmem:[%s7844_s8 + $0x50] sm:$0xff]  ;;  %v7897_v23 = vld [vmem:[%s7844_s8 + $0x58] sm:$0x3] }
  0x19   : > { %612 = vrot.lane.b32.xlu0 %v514_v16, %s7766_s9  ;;  %12957 = vst [vmem:[#allocation5_spill] sm:$0xff] %v7887_v17  ;;  %v516_v20 = vsel %vm511_vm0, %v513_v8, %v515_v13  ;;  %v528_v26 = vrot.slane %v7894_v22, 1  ;;  %v530_v27 = vrot.slane %v7897_v23, 1  ;;  %v7915_v30 = vld [vmem:[%s7844_s8 + $0x68] sm:$0xff]  ;;  %v7918_v31 = vld [vmem:[%s7844_s8 + $0x70] sm:$0x3] }
  0x1a   : > { %v7906_v25 = vsel %vm511_vm0, %v523_v18, %v525_v19  ;;  %v7911_v28 = vsel %vm511_vm0, %v522_v21, %v523_v18  ;;  %v7921_v32 = vld [vmem:[%s7844_s8 + $0x60] sm:$0xff]  ;;  %v533_v34 = vrot.slane %v7915_v30, 1  ;;  %v535_v35 = vrot.slane %v7918_v31, 1  ;;  %v7940_v39 = vld [vmem:[%s7844_s8 + $0x88] sm:$0x3]  ;;  %v7943_v40 = vld [vmem:[%s7844_s8 + $0x78] sm:$0xff] }
  0x1b   : > { %12958 = vst [vmem:[#allocation6_spill] sm:$0xff] %v7906_v25  ;;  %12959 = vst [vmem:[#allocation7_spill] sm:$0xff] %v7911_v28  ;;  %v7928_v33 = vsel %vm511_vm0, %v528_v26, %v530_v27  ;;  %v7933_v36 = vsel %vm511_vm0, %v527_v29, %v528_v26  ;;  %v532_v37 = vrot.slane %v7921_v32, 1  ;;  %v7937_v38 = vld [vmem:[%s7844_s8 + $0x80] sm:$0xff]  ;;  %v540_v43 = vrot.slane %v7940_v39, 1  ;;  %v7959_v46 = vld [vmem:[%s7844_s8 + $0x98] sm:$0xff] }
  0x1c   : > { %618 = vrot.lane.b32.xlu1 %v7887_v17, %s7766_s9  ;;  %12960 = vst [vmem:[#allocation8_spill] sm:$0xff] %v7928_v33  ;;  %12961 = vst [vmem:[#allocation9_spill] sm:$0xff] %v7933_v36  ;;  %v7950_v41 = vsel %vm511_vm0, %v533_v34, %v535_v35  ;;  %v538_v42 = vrot.slane %v7937_v38, 1  ;;  %v537_v45 = vrot.slane %v7943_v40, 1  ;;  %v7962_v47 = vld [vmem:[%s7844_s8 + $0xa0] sm:$0x3] }
  0x1d   : > { %614 = vrot.lane.b32.xlu0 %v516_v20, %s7766_s9  ;;  %12962 = vst [vmem:[#allocation10_spill] sm:$0xff] %v7950_v41  ;;  %v7955_v44 = vsel %vm511_vm0, %v532_v37, %v533_v34  ;;  %v7965_v48 = vld [vmem:[%s7844_s8 + $0x90] sm:$0xff]  ;;  %v543_v50 = vrot.slane %v7959_v46, 1  ;;  %v545_v51 = vrot.slane %v7962_v47, 1  ;;  %v7984_v55 = vld [vmem:[%s7844_s8 + $0xb8] sm:$0x3] }
  0x1e   : > { %12963 = vst [vmem:[#allocation11_spill] sm:$0xff] %v7955_v44  ;;  %v7972_v49 = vsel %vm511_vm0, %v538_v42, %v540_v43  ;;  %v7977_v52 = vsel %vm511_vm0, %v537_v45, %v538_v42  ;;  %v542_v53 = vrot.slane %v7965_v48, 1  ;;  %v7981_v54 = vld [vmem:[%s7844_s8 + $0xb0] sm:$0xff]  ;;  %v7987_v56 = vld [vmem:[%s7844_s8 + $0xa8] sm:$0xff]  ;;  %v550_v59 = vrot.slane %v7984_v55, 1  ;;  %v8009_v3 = vld [vmem:[%s7844_s8 + $0xc0] sm:$0xff] }
  0x1f   : > { %12964 = vst [vmem:[#allocation12_spill] sm:$0xff] %v7972_v49  ;;  %12965 = vst [vmem:[#allocation13_spill] sm:$0xff] %v7977_v52  ;;  %v7994_v57 = vsel %vm511_vm0, %v543_v50, %v545_v51  ;;  %v548_v58 = vrot.slane %v7981_v54, 1  ;;  %v547_v61 = vrot.slane %v7987_v56, 1  ;;  %v8003_v62 = vld [vmem:[%s7844_s8 + $0xc8] sm:$0xff]  ;;  %v552_v13 = vrot.slane %v8009_v3, 1 }
  0x20   : > { %622 = vrot.lane.b32.xlu1 %v7906_v25, %s7766_s9  ;;  %12966 = vst [vmem:[#allocation14_spill] sm:$0xff] %v7994_v57  ;;  %v7999_v60 = vsel %vm511_vm0, %v542_v53, %v543_v50  ;;  %12968 = vst [vmem:[#allocation16_spill] sm:$0xff] %v8003_v62  ;;  %v8006_v63 = vld [vmem:[%s7844_s8 + $0xd0] sm:$0x3]  ;;  %v553_v6 = vrot.slane %v8003_v62, 1  ;;  %v8025_v16 = vld [vmem:[%s7844_s8 + $0xe0] sm:$0xff] }
  0x21   : > { %620 = vrot.lane.b32.xlu0 %v7911_v28, %s7766_s9  ;;  %12967 = vst [vmem:[#allocation15_spill] sm:$0xff] %v7999_v60  ;;  %12969 = vst [vmem:[#allocation17_spill] sm:$0xff] %v8009_v3  ;;  %v8016_v4 = vsel %vm511_vm0, %v548_v58, %v550_v59  ;;  %v555_v8 = vrot.slane %v8006_v63, 1  ;;  %v8021_v9 = vsel %vm511_vm0, %v547_v61, %v548_v58  ;;  %v8028_v18 = vld [vmem:[%s7844_s8 + $0xe8] sm:$0x3]  ;;  %v8031_v19 = vld [vmem:[%s7844_s8 + $0xd8] sm:$0xff] }
  0x22   : > { %12970 = vst [vmem:[#allocation18_spill] sm:$0xff] %v8016_v4  ;;  %12971 = vst [vmem:[#allocation19_spill] sm:$0xff] %v8021_v9  ;;  %v558_v21 = vrot.slane %v8025_v16, 1  ;;  %v560_v26 = vrot.slane %v8028_v18, 1  ;;  %v8043_v27 = vsel %vm511_vm0, %v552_v13, %v553_v6  ;;  %v557_v29 = vrot.slane %v8031_v19, 1  ;;  %v8047_v34 = vld [vmem:[%s7844_s8 + $0xf8] sm:$0xff] }
  0x23   : > { %v8038_v20 = vsel %vm511_vm0, %v553_v6, %v555_v8  ;;  %12973 = vst [vmem:[#allocation21_spill] sm:$0xff] %v8043_v27  ;;  %v8050_v35 = vld [vmem:[%s7844_s8 + $0x100] sm:$0x3]  ;;  %v8053_v37 = vld [vmem:[%s7844_s8 + $0xf0] sm:$0xff]  ;;  %v563_v43 = vrot.slane %v8047_v34, 1  ;;  %v8075_v59 = vld [vmem:[%s7844_s8 + $0x108] sm:$0xff] }
  0x24   : > { %626 = vrot.lane.b32.xlu1 %v7928_v33, %s7766_s9  ;;  %12972 = vst [vmem:[#allocation20_spill] sm:$0xff] %v8038_v20  ;;  %v8060_v42 = vsel %vm511_vm0, %v558_v21, %v560_v26  ;;  %v565_v45 = vrot.slane %v8050_v35, 1  ;;  %v8065_v50 = vsel %vm511_vm0, %v557_v29, %v558_v21  ;;  %v562_v51 = vrot.slane %v8053_v37, 1  ;;  %v8069_v53 = vld [vmem:[%s7844_s8 + $0x110] sm:$0xff]  ;;  %v8072_v58 = vld [vmem:[%s7844_s8 + $0x118] sm:$0x3] }
  0x25   : > { %624 = vrot.lane.b32.xlu0 %v7933_v36, %s7766_s9  ;;  %12974 = vst [vmem:[#allocation22_spill] sm:$0xff] %v8060_v42  ;;  %12975 = vst [vmem:[#allocation23_spill] sm:$0xff] %v8065_v50  ;;  %v568_v6 = vrot.slane %v8069_v53, 1  ;;  %v570_v8 = vrot.slane %v8072_v58, 1  ;;  %v567_v21 = vrot.slane %v8075_v59, 1  ;;  %v8091_v26 = vld [vmem:[%s7844_s8 + $0x128] sm:$0xff] }
  0x26   : > { %v8082_v61 = vsel %vm511_vm0, %v563_v43, %v565_v45  ;;  %v8087_v13 = vsel %vm511_vm0, %v562_v51, %v563_v43  ;;  %v8094_v29 = vld [vmem:[%s7844_s8 + $0x130] sm:$0x3]  ;;  %v573_v43 = vrot.slane %v8091_v26, 1  ;;  %v8179_v33 = vld [vmem:[%s7844_s8 + $0x188] sm:$0xff]  ;;  %v8201_v28 = vld [vmem:[%s7844_s8 + $0x1a0] sm:$0xff] }
  0x27   : > { %12976 = vst [vmem:[#allocation24_spill] sm:$0xff] %v8082_v61  ;;  %12977 = vst [vmem:[#allocation25_spill] sm:$0xff] %v8087_v13  ;;  %v8104_v45 = vsel %vm511_vm0, %v568_v6, %v570_v8  ;;  %v575_v51 = vrot.slane %v8094_v29, 1 }
  0x28   : > { %630 = vrot.lane.b32.xlu1 %v7950_v41, %s7766_s9  ;;  %12978 = vst [vmem:[#allocation26_spill] sm:$0xff] %v8104_v45  ;;  %12990 = vst [vmem:[#allocation38_spill] sm:$0xff] %v8201_v28 }
  0x29   : > { %628 = vrot.lane.b32.xlu0 %v7955_v44, %s7766_s9  ;;  %v8126_v8 = vsel %vm511_vm0, %v573_v43, %v575_v51 }
  0x2a   : > { %12980 = vst [vmem:[#allocation28_spill] sm:$0xff] %v8126_v8 }
  0x2c   : > { %634 = vrot.lane.b32.xlu1 %v7972_v49, %s7766_s9  ;;  %v8157_v49 = vld [vmem:[%s7844_s8 + $0x170] sm:$0xff] }
  0x2d   : > { %632 = vrot.lane.b32.xlu0 %v7977_v52, %s7766_s9 }
  0x30   : > { %638 = vrot.lane.b32.xlu1 %v7994_v57, %s7766_s9 }
  0x31   : > { %636 = vrot.lane.b32.xlu0 %v7999_v60, %s7766_s9  ;;  %v8135_v60 = vld [vmem:[%s7844_s8 + $0x158] sm:$0xff] }
  0x34   : > { %642 = vrot.lane.b32.xlu1 %v8016_v4, %s7766_s9 }
  0x35   : > { %640 = vrot.lane.b32.xlu0 %v8021_v9, %s7766_s9 }
  0x38   : > { %646 = vrot.lane.b32.xlu1 %v8038_v20, %s7766_s9  ;;  %v8113_v20 = vld [vmem:[%s7844_s8 + $0x140] sm:$0xff] }
  0x39   : > { %644 = vrot.lane.b32.xlu0 %v8043_v27, %s7766_s9 }
  0x3c   : > { %650 = vrot.lane.b32.xlu1 %v8060_v42, %s7766_s9  ;;  %v8109_v42 = vsel %vm511_vm0, %v567_v21, %v568_v6  ;;  %v578_v6 = vrot.slane %v8113_v20, 1 }
  0x3d   : > { %648 = vrot.lane.b32.xlu0 %v8065_v50, %s7766_s9  ;;  %v8097_v50 = vld [vmem:[%s7844_s8 + $0x120] sm:$0xff]  ;;  %12979 = vst [vmem:[#allocation27_spill] sm:$0xff] %v8109_v42 }
  0x3e   : > { %v572_v27 = vrot.slane %v8097_v50, 1 }
  0x40   : > { %654 = vrot.lane.b32.xlu1 %v8082_v61, %s7766_s9  ;;  %v8116_v61 = vld [vmem:[%s7844_s8 + $0x148] sm:$0x3]  ;;  %v8131_v9 = vsel %vm511_vm0, %v572_v27, %v573_v43  ;;  %v583_v27 = vrot.slane %v8135_v60, 1 }
  0x41   : > { %652 = vrot.lane.b32.xlu0 %v8087_v13, %s7766_s9  ;;  %v8119_v13 = vld [vmem:[%s7844_s8 + $0x138] sm:$0xff]  ;;  %v580_v21 = vrot.slane %v8116_v61, 1  ;;  %12981 = vst [vmem:[#allocation29_spill] sm:$0xff] %v8131_v9 }
  0x42   : > { %v577_v4 = vrot.slane %v8119_v13, 1 }
  0x43   : > { %v8148_v51 = vsel %vm511_vm0, %v578_v6, %v580_v21 }
  0x44   : > { %658 = vrot.lane.b32.xlu1 %v8104_v45, %s7766_s9  ;;  %v8138_v45 = vld [vmem:[%s7844_s8 + $0x160] sm:$0x3]  ;;  %12982 = vst [vmem:[#allocation30_spill] sm:$0xff] %v8148_v51  ;;  %v8153_v57 = vsel %vm511_vm0, %v577_v4, %v578_v6  ;;  %v588_v4 = vrot.slane %v8157_v49, 1 }
  0x45   : > { %656 = vrot.lane.b32.xlu0 %v8109_v42, %s7766_s9  ;;  %v8141_v42 = vld [vmem:[%s7844_s8 + $0x150] sm:$0xff]  ;;  %v585_v43 = vrot.slane %v8138_v45, 1  ;;  %12983 = vst [vmem:[#allocation31_spill] sm:$0xff] %v8153_v57 }
  0x46   : > { %v582_v52 = vrot.slane %v8141_v42, 1 }
  0x47   : > { %v8170_v21 = vsel %vm511_vm0, %v583_v27, %v585_v43 }
  0x48   : > { %662 = vrot.lane.b32.xlu1 %v8126_v8, %s7766_s9  ;;  %v8160_v8 = vld [vmem:[%s7844_s8 + $0x178] sm:$0x3]  ;;  %12984 = vst [vmem:[#allocation32_spill] sm:$0xff] %v8170_v21  ;;  %v8175_v44 = vsel %vm511_vm0, %v582_v52, %v583_v27  ;;  %v593_v52 = vrot.slane %v8179_v33, 1 }
  0x49   : > { %660 = vrot.lane.b32.xlu0 %v8131_v9, %s7766_s9  ;;  %v8163_v9 = vld [vmem:[%s7844_s8 + $0x168] sm:$0xff]  ;;  %v590_v6 = vrot.slane %v8160_v8, 1  ;;  %12985 = vst [vmem:[#allocation33_spill] sm:$0xff] %v8175_v44 }
  0x4a   : > { %v587_v41 = vrot.slane %v8163_v9, 1 }
  0x4b   : > { %v8192_v43 = vsel %vm511_vm0, %v588_v4, %v590_v6 }
  0x4c   : > { %666 = vrot.lane.b32.xlu1 %v8148_v51, %s7766_s9  ;;  %v8182_v51 = vld [vmem:[%s7844_s8 + $0x190] sm:$0x3]  ;;  %12988 = vst [vmem:[#allocation36_spill] sm:$0xff] %v8192_v43  ;;  %v8197_v36 = vsel %vm511_vm0, %v587_v41, %v588_v4  ;;  %v598_v41 = vrot.slane %v8201_v28, 1 }
  0x4d   : > { %664 = vrot.lane.b32.xlu0 %v8153_v57, %s7766_s9  ;;  %12986 = vst [vmem:[#allocation34_spill] sm:$0xff] %v8182_v51  ;;  %v8185_v57 = vld [vmem:[%s7844_s8 + $0x180] sm:$0xff]  ;;  %v595_v27 = vrot.slane %v8182_v51, 1  ;;  %12989 = vst [vmem:[#allocation37_spill] sm:$0xff] %v8197_v36  ;;  %v8245_v28 = vld [vmem:[%s7844_s8 + $0x1d0] sm:$0xff] }
  0x4e   : > { %12987 = vst [vmem:[#allocation35_spill] sm:$0xff] %v8185_v57  ;;  %v592_v25 = vrot.slane %v8185_v57, 1  ;;  %v8223_v57 = vld [vmem:[%s7844_s8 + $0x1b8] sm:$0xff] }
  0x4f   : > { %v8214_v6 = vsel %vm511_vm0, %v593_v52, %v595_v27  ;;  %v8248_v51 = vld [vmem:[%s7844_s8 + $0x1d8] sm:$0x3] }
  0x50   : > { %670 = vrot.lane.b32.xlu1 %v8170_v21, %s7766_s9  ;;  %v8204_v21 = vld [vmem:[%s7844_s8 + $0x1a8] sm:$0x3]  ;;  %12993 = vst [vmem:[#allocation41_spill] sm:$0xff] %v8214_v6  ;;  %v8219_v17 = vsel %vm511_vm0, %v592_v25, %v593_v52  ;;  %v603_v25 = vrot.slane %v8223_v57, 1  ;;  %12998 = vst [vmem:[#allocation46_spill] sm:$0xff] %v8248_v51 }
  0x51   : > { %668 = vrot.lane.b32.xlu0 %v8175_v44, %s7766_s9  ;;  %12991 = vst [vmem:[#allocation39_spill] sm:$0xff] %v8204_v21  ;;  %v8207_v44 = vld [vmem:[%s7844_s8 + $0x198] sm:$0xff]  ;;  %v600_v4 = vrot.slane %v8204_v21, 1  ;;  %12994 = vst [vmem:[#allocation42_spill] sm:$0xff] %v8219_v17 }
  0x52   : > { %12992 = vst [vmem:[#allocation40_spill] sm:$0xff] %v8207_v44  ;;  %v597_v12 = vrot.slane %v8207_v44, 1 }
  0x53   : > { %v8236_v27 = vsel %vm511_vm0, %v598_v41, %v600_v4 }
  0x54   : > { %674 = vrot.lane.b32.xlu1 %v8192_v43, %s7766_s9  ;;  %v8226_v43 = vld [vmem:[%s7844_s8 + $0x1c0] sm:$0x3]  ;;  %12996 = vst [vmem:[#allocation44_spill] sm:$0xff] %v8236_v27  ;;  %v8241_v44 = vsel %vm511_vm0, %v597_v12, %v598_v41  ;;  %v608_v12 = vrot.slane %v8245_v28, 1  ;;  %v610_v41 = vrot.slane %v8248_v51, 1 }
  0x55   : > { %672 = vrot.lane.b32.xlu0 %v8197_v36, %s7766_s9  ;;  %v8229_v36 = vld [vmem:[%s7844_s8 + $0x1b0] sm:$0xff]  ;;  %v605_v52 = vrot.slane %v8226_v43, 1  ;;  %12997 = vst [vmem:[#allocation45_spill] sm:$0xff] %v8241_v44 }
  0x56   : > { %12995 = vst [vmem:[#allocation43_spill] sm:$0xff] %v8229_v36  ;;  %v602_v21 = vrot.slane %v8229_v36, 1 }
  0x57   : > { %v8258_v4 = vsel %vm511_vm0, %v603_v25, %v605_v52  ;;  %v734_v52 = vrot.slane %v7858_v5, 2  ;;  %v741_v5 = vrot.slane %v7862_v7, 2  ;;  %v743_v7 = vrot.slane %v7880_v15, 2 }
  0x58   : > { %678 = vrot.lane.b32.xlu1 %v8214_v6, %s7766_s9  ;;  %v8251_v6 = vld [vmem:[%s7844_s8 + $0x1c8] sm:$0xff]  ;;  %12999 = vst [vmem:[#allocation47_spill] sm:$0xff] %v8258_v4 }
  0x59   : > { %676 = vrot.lane.b32.xlu0 %v8219_v17, %s7766_s9  ;;  %v8263_v17 = vsel %vm511_vm0, %v602_v21, %v603_v25  ;;  %v607_v36 = vrot.slane %v8251_v6, 1  ;;  %v733_v21 = vrot.slane %v7853_v2, 2 }
  0x5a   : > { %13000 = vst [vmem:[#allocation48_spill] sm:$0xff] %v8263_v17 }
  0x5b   : > { %v8276_v51 = vsel %vm511_vm0, %v607_v36, %v608_v12  ;;  %v738_v36 = vrot.slane %v7847_v0, 2 }
  0x5c   : > { %682 = vrot.lane.b32.xlu1 %v8236_v27, %s7766_s9  ;;  %v736_v27 = vrot.slane %v7867_v10, 2  ;;  %13002 = vst [vmem:[#allocation50_spill] sm:$0xff] %v8276_v51  ;;  %v735_v10 = vsel %vm732_vm1, %v733_v21, %v734_v52  ;;  %v749_v21 = vrot.slane %v7894_v22, 2 }
  0x5d   : > { %680 = vrot.lane.b32.xlu0 %v8241_v44, %s7766_s9  ;;  %v8271_v44 = vsel %vm511_vm0, %v608_v12, %v610_v41  ;;  %v739_v41 = vrot.slane %v7850_v1, 2  ;;  %v744_v12 = vrot.slane %v7870_v11, 2 }
  0x5e   : > { %13001 = vst [vmem:[#allocation49_spill] sm:$0xff] %v8271_v44  ;;  %v737_v25 = vsel %vm732_vm1, %v734_v52, %v736_v27  ;;  %v746_v27 = vrot.slane %v7877_v14, 2 }
  0x5f   : > { %v8291_v2 = vsel %vm732_vm1, %v739_v41, %v741_v5  ;;  %v8309_v14 = vsel %vm732_vm1, %v743_v7, %v744_v12  ;;  %v759_v7 = vrot.slane %v7937_v38, 2 }
  0x60   : > { %686 = vrot.lane.b32.xlu1 %v8258_v4, %s7766_s9  ;;  %v8304_v52 = vsel %vm732_vm1, %v744_v12, %v746_v27  ;;  %v753_v12 = vrot.slane %v7921_v32, 2  ;;  %v776_v4 = vrot.slane %v8006_v63, 2 }
  0x61   : > { %684 = vrot.lane.b32.xlu0 %v8263_v17, %s7766_s9  ;;  %v771_v17 = vrot.slane %v7984_v55, 2 }
  0x64   : > { %690 = vrot.lane.b32.xlu1 %v8271_v44, %s7766_s9  ;;  %v766_v44 = vrot.slane %v7962_v47, 2 }
  0x65   : > { %688 = vrot.lane.b32.xlu0 %v8276_v51, %s7766_s9  ;;  %v8296_v51 = vsel %vm732_vm1, %v738_v36, %v739_v41  ;;  %v748_v41 = vrot.slane %v7900_v24, 2  ;;  %v756_v36 = vrot.slane %v7918_v31, 2 }
  0x68   : > { %835 = vrot.lane.b32.xlu1 %v737_v25, %s7767_s10  ;;  %v751_v25 = vrot.slane %v7897_v23, 2  ;;  %v8322_v23 = vsel %vm732_vm1, %v748_v41, %v749_v21 }
  0x69   : > { %833 = vrot.lane.b32.xlu0 %v735_v10, %s7767_s10  ;;  %v754_v10 = vrot.slane %v7915_v30, 2 }
  0x6a   : > { %v8317_v5 = vsel %vm732_vm1, %v749_v21, %v751_v25  ;;  %v761_v25 = vrot.slane %v7940_v39, 2  ;;  %v758_v21 = vrot.slane %v7943_v40, 2 }
  0x6b   : > { %v8330_v27 = vsel %vm732_vm1, %v754_v10, %v756_v36  ;;  %v8335_v31 = vsel %vm732_vm1, %v753_v12, %v754_v10  ;;  %v764_v36 = vrot.slane %v7959_v46, 2  ;;  %v763_v10 = vrot.slane %v7965_v48, 2 }
  0x6c   : > { %839 = vrot.lane.b32.xlu1 %v8291_v2, %s7767_s10  ;;  %v8343_v41 = vsel %vm732_vm1, %v759_v7, %v761_v25  ;;  %v8348_v39 = vsel %vm732_vm1, %v758_v21, %v759_v7  ;;  %v769_v25 = vrot.slane %v7981_v54, 2  ;;  %v768_v7 = vrot.slane %v7987_v56, 2 }
  0x6d   : > { %837 = vrot.lane.b32.xlu0 %v8296_v51, %s7767_s10  ;;  %v8356_v12 = vsel %vm732_vm1, %v764_v36, %v766_v44  ;;  %v8361_v47 = vsel %vm732_vm1, %v763_v10, %v764_v36  ;;  %v774_v44 = vrot.slane %v8003_v62, 2  ;;  %v773_v36 = vrot.slane %v8009_v3, 2 }
  0x6e   : > { %v8369_v21 = vsel %vm732_vm1, %v769_v25, %v771_v17  ;;  %v8374_v55 = vsel %vm732_vm1, %v768_v7, %v769_v25  ;;  %v779_v17 = vrot.slane %v8025_v16, 2  ;;  %v781_v62 = vrot.slane %v8028_v18, 2 }
  0x6f   : > { %v8382_v10 = vsel %vm732_vm1, %v774_v44, %v776_v4  ;;  %v8387_v63 = vsel %vm732_vm1, %v773_v36, %v774_v44  ;;  %v778_v25 = vrot.slane %v8031_v19, 2  ;;  %v784_v4 = vrot.slane %v8047_v34, 2 }
  0x70   : > { %843 = vrot.lane.b32.xlu1 %v8304_v52, %s7767_s10  ;;  %v8395_v7 = vsel %vm732_vm1, %v779_v17, %v781_v62  ;;  %v786_v16 = vrot.slane %v8050_v35, 2  ;;  %v783_v19 = vrot.slane %v8053_v37, 2  ;;  %v789_v34 = vrot.slane %v8069_v53, 2 }
  0x71   : > { %841 = vrot.lane.b32.xlu0 %v8309_v14, %s7767_s10  ;;  %v8402_v18 = vsel %vm732_vm1, %v778_v25, %v779_v17  ;;  %v791_v35 = vrot.slane %v8072_v58, 2  ;;  %v788_v37 = vrot.slane %v8075_v59, 2  ;;  %v794_v53 = vrot.slane %v8091_v26, 2 }
  0x72   : > { %13003 = vst [vmem:[#allocation51_spill] sm:$0xff] %v8402_v18  ;;  %v8412_v62 = vsel %vm732_vm1, %v784_v4, %v786_v16  ;;  %v8419_v17 = vsel %vm732_vm1, %v783_v19, %v784_v4  ;;  %v796_v58 = vrot.slane %v8094_v29, 2  ;;  %v793_v59 = vrot.slane %v8097_v50, 2 }
  0x73   : > { %13004 = vst [vmem:[#allocation52_spill] sm:$0xff] %v8419_v17  ;;  %v8429_v16 = vsel %vm732_vm1, %v789_v34, %v791_v35  ;;  %v8436_v4 = vsel %vm732_vm1, %v788_v37, %v789_v34  ;;  %v799_v26 = vrot.slane %v8113_v20, 2  ;;  %v801_v29 = vrot.slane %v8116_v61, 2 }
  0x74   : > { %847 = vrot.lane.b32.xlu1 %v8317_v5, %s7767_s10  ;;  %13005 = vst [vmem:[#allocation53_spill] sm:$0xff] %v8436_v4  ;;  %v8446_v35 = vsel %vm732_vm1, %v794_v53, %v796_v58  ;;  %v8453_v34 = vsel %vm732_vm1, %v793_v59, %v794_v53  ;;  %v798_v50 = vrot.slane %v8119_v13, 2  ;;  %v804_v20 = vrot.slane %v8135_v60, 2 }
  0x75   : > { %845 = vrot.lane.b32.xlu0 %v8322_v23, %s7767_s10  ;;  %13006 = vst [vmem:[#allocation54_spill] sm:$0xff] %v8446_v35  ;;  %13007 = vst [vmem:[#allocation55_spill] sm:$0xff] %v8453_v34  ;;  %v8463_v58 = vsel %vm732_vm1, %v799_v26, %v801_v29  ;;  %v806_v61 = vrot.slane %v8138_v45, 2  ;;  %v803_v13 = vrot.slane %v8141_v42, 2  ;;  %v809_v60 = vrot.slane %v8157_v49, 2 }
  0x76   : > { %13008 = vst [vmem:[#allocation56_spill] sm:$0xff] %v8463_v58  ;;  %v8470_v53 = vsel %vm732_vm1, %v798_v50, %v799_v26  ;;  %v811_v45 = vrot.slane %v8160_v8, 2  ;;  %v808_v42 = vrot.slane %v8163_v9, 2  ;;  %v814_v49 = vrot.slane %v8179_v33, 2  ;;  %v13013_v8 = vld [vmem:[#allocation34_spill] sm:$0xff]  ;;  %v13016_v9 = vld [vmem:[#allocation35_spill] sm:$0xff] }
  0x77   : > { %13009 = vst [vmem:[#allocation57_spill] sm:$0xff] %v8470_v53  ;;  %v8480_v29 = vsel %vm732_vm1, %v804_v20, %v806_v61  ;;  %v8487_v26 = vsel %vm732_vm1, %v803_v13, %v804_v20  ;;  %v813_v13 = vrot.slane %v13016_v9, 2  ;;  %v13019_v33 = vld [vmem:[#allocation38_spill] sm:$0xff] }
  0x78   : > { %851 = vrot.lane.b32.xlu1 %v8330_v27, %s7767_s10  ;;  %13010 = vst [vmem:[#allocation58_spill] sm:$0xff] %v8480_v29  ;;  %13011 = vst [vmem:[#allocation59_spill] sm:$0xff] %v8487_v26  ;;  %v8497_v61 = vsel %vm732_vm1, %v809_v60, %v811_v45  ;;  %v8504_v20 = vsel %vm732_vm1, %v808_v42, %v809_v60  ;;  %v13022_v42 = vld [vmem:[#allocation40_spill] sm:$0xff] }
  0x79   : > { %849 = vrot.lane.b32.xlu0 %v8335_v31, %s7767_s10  ;;  %13012 = vst [vmem:[#allocation60_spill] sm:$0xff] %v8497_v61  ;;  %13015 = vst [vmem:[#allocation61_spill] sm:$0xff] %v8504_v20  ;;  %v8521_v60 = vsel %vm732_vm1, %v813_v13, %v814_v49  ;;  %v818_v9 = vrot.slane %v13022_v42, 2  ;;  %v13025_v13 = vld [vmem:[#allocation43_spill] sm:$0xff] }
  0x7a   : > { %13021 = vst [vmem:[#allocation38_spill] sm:$0xff] %v8521_v60  ;;  %v823_v42 = vrot.slane %v13025_v13, 2 }
  0x7c   : > { %855 = vrot.lane.b32.xlu1 %v8343_v41, %s7767_s10 }
  0x7d   : > { %853 = vrot.lane.b32.xlu0 %v8348_v39, %s7767_s10 }
  0x80   : > { %859 = vrot.lane.b32.xlu1 %v8356_v12, %s7767_s10 }
  0x81   : > { %857 = vrot.lane.b32.xlu0 %v8361_v47, %s7767_s10 }
  0x84   : > { %863 = vrot.lane.b32.xlu1 %v8369_v21, %s7767_s10 }
  0x85   : > { %861 = vrot.lane.b32.xlu0 %v8374_v55, %s7767_s10 }
  0x88   : > { %867 = vrot.lane.b32.xlu1 %v8382_v10, %s7767_s10 }
  0x89   : > { %865 = vrot.lane.b32.xlu0 %v8387_v63, %s7767_s10 }
  0x8a   : > { %v8399_v3 = vpop.permute.xlu1 %616 }
  0x8b   : > { %v8405_v44 = vpop.permute.xlu0 %612 }
  0x8c   : > { %871 = vrot.lane.b32.xlu1 %v8395_v7, %s7767_s10 }
  0x8d   : > { %869 = vrot.lane.b32.xlu0 %v8402_v18, %s7767_s10 }
  0x8e   : > { %v8416_v36 = vpop.permute.xlu1 %618 }
  0x8f   : > { %v8422_v25 = vpop.permute.xlu0 %614 }
  0x90   : > { %875 = vrot.lane.b32.xlu1 %v8412_v62, %s7767_s10 }
  0x91   : > { %873 = vrot.lane.b32.xlu0 %v8419_v17, %s7767_s10 }
  0x92   : > { %v8433_v18 = vpop.permute.xlu1 %622 }
  0x93   : > { %v8439_v19 = vpop.permute.xlu0 %620 }
  0x94   : > { %879 = vrot.lane.b32.xlu1 %v8429_v16, %s7767_s10 }
  0x95   : > { %877 = vrot.lane.b32.xlu0 %v8436_v4, %s7767_s10 }
  0x96   : > { %v8450_v17 = vpop.permute.xlu1 %626 }
  0x97   : > { %v8456_v37 = vpop.permute.xlu0 %624 }
  0x98   : > { %883 = vrot.lane.b32.xlu1 %v8446_v35, %s7767_s10 }
  0x99   : > { %881 = vrot.lane.b32.xlu0 %v8453_v34, %s7767_s10 }
  0x9a   : > { %v8467_v4 = vpop.permute.xlu1 %630 }
  0x9b   : > { %v8473_v59 = vpop.permute.xlu0 %628 }
  0x9c   : > { %887 = vrot.lane.b32.xlu1 %v8463_v58, %s7767_s10 }
  0x9d   : > { %885 = vrot.lane.b32.xlu0 %v8470_v53, %s7767_s10  ;;  %v816_v53 = vrot.slane %v13013_v8, 2  ;;  %v819_v8 = vrot.slane %v13019_v33, 2  ;;  %v826_v33 = vrot.slane %v8226_v43, 2  ;;  %v13027_v43 = vld [vmem:[#allocation46_spill] sm:$0xff] }
  0x9e   : > { %v8484_v34 = vpop.permute.xlu1 %634 }
  0x9f   : > { %v8490_v50 = vpop.permute.xlu0 %632  ;;  %v8514_v45 = vsel %vm732_vm1, %v814_v49, %v816_v53  ;;  %v8538_v49 = vsel %vm732_vm1, %v818_v9, %v819_v8  ;;  %v828_v9 = vrot.slane %v8251_v6, 2 }
  0xa0   : > { %891 = vrot.lane.b32.xlu1 %v8480_v29, %s7767_s10  ;;  %13018 = vst [vmem:[#allocation62_spill] sm:$0xff] %v8514_v45  ;;  %13024 = vst [vmem:[#allocation40_spill] sm:$0xff] %v8538_v49 }
  0xa1   : > { %889 = vrot.lane.b32.xlu0 %v8487_v26, %s7767_s10  ;;  %v13020_v26 = vld [vmem:[#allocation39_spill] sm:$0xff] }
  0xa2   : > { %v8501_v58 = vpop.permute.xlu1 %638  ;;  %v821_v29 = vrot.slane %v13020_v26, 2  ;;  %v824_v26 = vrot.slane %v8223_v57, 2  ;;  %v829_v57 = vrot.slane %v8245_v28, 2 }
  0xa3   : > { %13014 = vst [vmem:[#allocation34_spill] sm:$0xff] %v8501_v58  ;;  %v8507_v35 = vpop.permute.xlu0 %636 }
  0xa4   : > { %13017 = vst [vmem:[#allocation35_spill] sm:$0xff] %v8507_v35  ;;  %895 = vrot.lane.b32.xlu1 %v8497_v61, %s7767_s10  ;;  %v8531_v53 = vsel %vm732_vm1, %v819_v8, %v821_v29  ;;  %v8548_v29 = vsel %vm732_vm1, %v824_v26, %v826_v33  ;;  %v8555_v8 = vsel %vm732_vm1, %v823_v42, %v824_v26 }
  0xa5   : > { %893 = vrot.lane.b32.xlu0 %v8504_v20, %s7767_s10  ;;  %13023 = vst [vmem:[#allocation39_spill] sm:$0xff] %v8531_v53  ;;  %13026 = vst [vmem:[#allocation43_spill] sm:$0xff] %v8548_v29 }
  0xa6   : > { %v8518_v58 = vpop.permute.xlu1 %642  ;;  %13029 = vst [vmem:[#allocation63_spill] sm:$0xff] %v8555_v8 }
  0xa7   : > { %v8524_v35 = vpop.permute.xlu0 %640 }
  0xa8   : > { %899 = vrot.lane.b32.xlu1 %v8514_v45, %s7767_s10 }
  0xa9   : > { %897 = vrot.lane.b32.xlu0 %v8521_v60, %s7767_s10  ;;  %v831_v60 = vrot.slane %v13027_v43, 2  ;;  %v8570_v43 = vsel %vm732_vm1, %v828_v9, %v829_v57 }
  0xaa   : > { %v8535_v20 = vpop.permute.xlu1 %646  ;;  %13033 = vst [vmem:[#allocation67_spill] sm:$0xff] %v8570_v43 }
  0xab   : > { %v8541_v61 = vpop.permute.xlu0 %644  ;;  %v8565_v33 = vsel %vm732_vm1, %v829_v57, %v831_v60 }
  0xac   : > { %903 = vrot.lane.b32.xlu1 %v8531_v53, %s7767_s10  ;;  %13031 = vst [vmem:[#allocation65_spill] sm:$0xff] %v8565_v33 }
  0xad   : > { %901 = vrot.lane.b32.xlu0 %v8538_v49, %s7767_s10 }
  0xae   : > { %v8552_v45 = vpop.permute.xlu1 %650 }
  0xaf   : > { %13028 = vst [vmem:[#allocation46_spill] sm:$0xff] %v8552_v45  ;;  %v8558_v13 = vpop.permute.xlu0 %648  ;;  %v7656_v45 = vld [vmem:[%s7844_s8 + $0x8] sm:$0xff] }
  0xb0   : > { %13030 = vst [vmem:[#allocation64_spill] sm:$0xff] %v8558_v13  ;;  %907 = vrot.lane.b32.xlu1 %v8548_v29, %s7767_s10  ;;  %v13060_v29 = vld [vmem:[#allocation11_spill] sm:$0xff] }
  0xb1   : > { %905 = vrot.lane.b32.xlu0 %v8555_v8, %s7767_s10  ;;  %v13059_v8 = vld [vmem:[#allocation10_spill] sm:$0xff] }
  0xb2   : > { %v8567_v28 = vpop.permute.xlu1 %654 }
  0xb3   : > { %13032 = vst [vmem:[#allocation66_spill] sm:$0xff] %v8567_v28  ;;  %v8572_v26 = vpop.permute.xlu0 %652 }
  0xb4   : > { %13034 = vst [vmem:[#allocation68_spill] sm:$0xff] %v8572_v26  ;;  %911 = vrot.lane.b32.xlu1 %v8565_v33, %s7767_s10  ;;  %v2027_v33 = vld [vmem:[%s12778_s1] sm:$0xff] }
  0xb5   : > { %909 = vrot.lane.b32.xlu0 %v8570_v43, %s7767_s10 }
  0xb6   : > { %v8578_v6 = vpop.permute.xlu1 %658 }
  0xb7   : > { %13035 = vst [vmem:[#allocation69_spill] sm:$0xff] %v8578_v6  ;;  %v8580_v42 = vpop.permute.xlu0 %656 }
  0xb8   : > { %13036 = vst [vmem:[#allocation70_spill] sm:$0xff] %v8580_v42  ;;  %957 = vrot.lane.b32.xlu1 %v7850_v1, %s7768_s11  ;;  %v13041_v1 = vld [vmem:[#allocation4_spill] sm:$0xff] }
  0xb9   : > { %955 = vrot.lane.b32.xlu0 %v7847_v0, %s7768_s11 }
  0xba   : > { %v8586_v60 = vpop.permute.xlu1 %662 }
  0xbb   : > { %13037 = vst [vmem:[#allocation71_spill] sm:$0xff] %v8586_v60  ;;  %v8588_v57 = vpop.permute.xlu0 %660  ;;  %v2029_v60 = vld [vmem:[%s12778_s1 + $0x10] sm:$0xff] }
  0xbc   : > { %13038 = vst [vmem:[#allocation72_spill] sm:$0xff] %v8588_v57  ;;  %961 = vrot.lane.b32.xlu1 %v7870_v11, %s7768_s11  ;;  %v2028_v57 = vld [vmem:[%s12778_s1 + $0x8] sm:$0xff] }
  0xbd   : > { %959 = vrot.lane.b32.xlu0 %v7880_v15, %s7768_s11 }
  0xbe   : > { %v8594_v9 = vpop.permute.xlu1 %666 }
  0xbf   : > { %13039 = vst [vmem:[#allocation73_spill] sm:$0xff] %v8594_v9  ;;  %v8596_v43 = vpop.permute.xlu0 %664 }
  0xc0   : > { %13040 = vst [vmem:[#allocation74_spill] sm:$0xff] %v8596_v43  ;;  %1081 = vrot.lane.b32.xlu1 %v13041_v1, %s7769_s12  ;;  %v6570_v43 = vpack.c.bf16 %v2028_v57, %v2027_v33  ;;  %v13044_v1 = vld [vmem:[#allocation5_spill] sm:$0xff] }
  0xc1   : > { %963 = vrot.lane.b32.xlu0 %v7900_v24, %s7768_s11 }
  0xc2   : > { %v8602_v0 = vpop.permute.xlu1 %670  ;;  %6571 = vmatprep.subr.bf16.mxu1 %v6570_v43 }
  0xc3   : > { %13042 = vst [vmem:[#allocation4_spill] sm:$0xff] %v8602_v0  ;;  %v8610_v9 = vpop.permute.xlu0 %668  ;;  %6573 = vmatpush3.bf16.msra.mxu1 %v6570_v43 }
  0xc4   : > { %13043 = vst [vmem:[#allocation75_spill] sm:$0xff] %v8610_v9  ;;  %1206 = vrot.lane.b32.xlu1 %v8296_v51, %s7770_s17  ;;  %v2030_v9 = vld [vmem:[%s12778_s1 + $0x18] sm:$0x7] }
  0xc5   : > { %1083 = vrot.lane.b32.xlu0 %v13044_v1, %s7769_s12  ;;  %v6574_v57 = vpack.c.bf16 %v2030_v9, %v2029_v60  ;;  %v13049_v1 = vld [vmem:[#allocation7_spill] sm:$0xff]  ;;  %v13052_v9 = vld [vmem:[#allocation6_spill] sm:$0xff] }
  0xc6   : > { %v8616_v0 = vpop.permute.xlu1 %674 }
  0xc7   : > { %13045 = vst [vmem:[#allocation5_spill] sm:$0xff] %v8616_v0  ;;  %v8624_v33 = vpop.permute.xlu0 %672  ;;  %6576 = vmatprep.subr.msk.bf16.mxu1 %vm6575_vm4, %v6574_v57 }
  0xc8   : > { %13046 = vst [vmem:[#allocation76_spill] sm:$0xff] %v8624_v33  ;;  %1328 = vrot.lane.b32.xlu1 %v7880_v15, %s7771_s22  ;;  %6579 = vmatpush3.bf16.msk.msra.mxu1 %vm6575_vm4, %v6574_v57  ;;  %vm3604_vm4 = vcmask 785408  }
  0xc9   : > { %1208 = vrot.lane.b32.xlu0 %v8291_v2, %s7770_s17 }
  0xca   : > { %v8630_v51 = vpop.permute.xlu1 %678 }
  0xcb   : > { %13047 = vst [vmem:[#allocation77_spill] sm:$0xff] %v8630_v51  ;;  %v8632_v43 = vpop.permute.xlu0 %676 }
  0xcc   : > { %13048 = vst [vmem:[#allocation78_spill] sm:$0xff] %v8632_v43  ;;  %1454 = vrot.lane.b32.xlu1 %v13049_v1, %s7773_s23 }
  0xcd   : > { %1330 = vrot.lane.b32.xlu0 %v7870_v11, %s7771_s22 }
  0xce   : > { %v8638_v60 = vpop.permute.xlu1 %682 }
  0xcf   : > { %13050 = vst [vmem:[#allocation7_spill] sm:$0xff] %v8638_v60  ;;  %v8640_v15 = vpop.permute.xlu0 %680  ;;  %v13058_v60 = vld [vmem:[#allocation8_spill] sm:$0xff] }
  0xd0   : > { %13051 = vst [vmem:[#allocation79_spill] sm:$0xff] %v8640_v15  ;;  %1456 = vrot.lane.b32.xlu1 %v13052_v9, %s7773_s23 }
  0xd1   : > { %1085 = vrot.lane.b32.xlu0 %v13049_v1, %s7769_s12 }
  0xd2   : > { %v8646_v2 = vpop.permute.xlu1 %686 }
  0xd3   : > { %13053 = vst [vmem:[#allocation6_spill] sm:$0xff] %v8646_v2  ;;  %v8648_v57 = vpop.permute.xlu0 %684 }
  0xd4   : > { %13054 = vst [vmem:[#allocation80_spill] sm:$0xff] %v8648_v57  ;;  %1087 = vrot.lane.b32.xlu1 %v13052_v9, %s7769_s12 }
  0xd5   : > { %1579 = vrot.lane.b32.xlu0 %v8309_v14, %s7774_s28 }
  0xd6   : > { %v8654_v11 = vpop.permute.xlu1 %690 }
  0xd7   : > { %13055 = vst [vmem:[#allocation81_spill] sm:$0xff] %v8654_v11  ;;  %v8656_v15 = vpop.permute.xlu0 %688 }
  0xd8   : > { %13056 = vst [vmem:[#allocation82_spill] sm:$0xff] %v8656_v15  ;;  %1581 = vrot.lane.b32.xlu1 %v8304_v52, %s7774_s28  ;;  %v13057_v15 = vld [vmem:[#allocation9_spill] sm:$0xff] }
  0xd9   : > { %1210 = vrot.lane.b32.xlu0 %v8309_v14, %s7770_s17 }
  0xda   : > { %v8662_v1 = vpop.permute.xlu1 %835 }
  0xdb   : > { %v8664_v57 = vpop.permute.xlu0 %833 }
  0xdc   : > { %1332 = vrot.lane.b32.xlu1 %v7900_v24, %s7771_s22 }
  0xdd   : > { %1212 = vrot.lane.b32.xlu0 %v8304_v52, %s7770_s17 }
  0xde   : > { %v8670_v9 = vpop.permute.xlu1 %839 }
  0xdf   : > { %v8672_v11 = vpop.permute.xlu0 %837 }
  0xe0   : > { %1458 = vrot.lane.b32.xlu1 %v13057_v15, %s7773_s23 }
  0xe1   : > { %1334 = vrot.lane.b32.xlu0 %v7894_v22, %s7771_s22 }
  0xe2   : > { %v8678_v14 = vpop.permute.xlu1 %843 }
  0xe3   : > { %v8680_v2 = vpop.permute.xlu0 %841 }
  0xe4   : > { %1089 = vrot.lane.b32.xlu1 %v13057_v15, %s7769_s12 }
  0xe5   : > { %965 = vrot.lane.b32.xlu0 %v7894_v22, %s7768_s11 }
  0xe6   : > { %v8686_v24 = vpop.permute.xlu1 %847 }
  0xe7   : > { %v8688_v52 = vpop.permute.xlu0 %845 }
  0xe8   : > { %1583 = vrot.lane.b32.xlu1 %v8322_v23, %s7774_s28 }
  0xe9   : > { %1460 = vrot.lane.b32.xlu0 %v13058_v60, %s7773_s23 }
  0xea   : > { %v8694_v43 = vpop.permute.xlu1 %851 }
  0xeb   : > { %v8696_v51 = vpop.permute.xlu0 %849 }
  0xec   : > { %1214 = vrot.lane.b32.xlu1 %v8322_v23, %s7770_s17 }
  0xed   : > { %1091 = vrot.lane.b32.xlu0 %v13058_v60, %s7769_s12 }
  0xee   : > { %v8702_v22 = vpop.permute.xlu1 %855 }
  0xef   : > { %v8704_v15 = vpop.permute.xlu0 %853 }
  0xf0   : > { %1216 = vrot.lane.b32.xlu1 %v8317_v5, %s7770_s17 }
  0xf1   : > { %1585 = vrot.lane.b32.xlu0 %v8317_v5, %s7774_s28 }
  0xf2   : > { %v8710_v33 = vpop.permute.xlu1 %859 }
  0xf3   : > { %v8712_v0 = vpop.permute.xlu0 %857 }
  0xf4   : > { %1338 = vrot.lane.b32.xlu1 %v7915_v30, %s7771_s22 }
  0xf5   : > { %1336 = vrot.lane.b32.xlu0 %v7921_v32, %s7771_s22 }
  0xf6   : > { %v8718_v23 = vpop.permute.xlu1 %863 }
  0xf7   : > { %v8720_v60 = vpop.permute.xlu0 %861 }
  0xf8   : > { %1464 = vrot.lane.b32.xlu1 %v13059_v8, %s7773_s23 }
  0xf9   : > { %1462 = vrot.lane.b32.xlu0 %v13060_v29, %s7773_s23 }
  0xfa   : > { %v8726_v5 = vpop.permute.xlu1 %867 }
  0xfb   : > { %13061 = vst [vmem:[#allocation9_spill] sm:$0xff] %v8726_v5  ;;  %v8728_v42 = vpop.permute.xlu0 %865 }
  0xfc   : > { %13062 = vst [vmem:[#allocation8_spill] sm:$0xff] %v8728_v42  ;;  %1589 = vrot.lane.b32.xlu1 %v8330_v27, %s7774_s28  ;;  %v1701_v42 = vsel %vm1699_vm5, %v7656_v45, %v8422_v25 }
  0xfd   : > { %1587 = vrot.lane.b32.xlu0 %v8335_v31, %s7774_s28 }
  0xfe   : > { %v8734_v6 = vpop.permute.xlu1 %871 }
  0xff   : > { %13063 = vst [vmem:[#allocation10_spill] sm:$0xff] %v8734_v6  ;;  %v8736_v49 = vpop.permute.xlu0 %869 }
 0x100   : > { %13064 = vst [vmem:[#allocation11_spill] sm:$0xff] %v8736_v49  ;;  %969 = vrot.lane.b32.xlu1 %v7915_v30, %s7768_s11 }
 0x101   : > { %967 = vrot.lane.b32.xlu0 %v7921_v32, %s7768_s11 }
 0x102   : > { %v8742_v53 = vpop.permute.xlu1 %875 }
 0x103   : > { %13065 = vst [vmem:[#allocation83_spill] sm:$0xff] %v8742_v53  ;;  %v8744_v26 = vpop.permute.xlu0 %873 }
 0x104   : > { %13066 = vst [vmem:[#allocation84_spill] sm:$0xff] %v8744_v26  ;;  %1095 = vrot.lane.b32.xlu1 %v13059_v8, %s7769_s12 }
 0x105   : > { %1093 = vrot.lane.b32.xlu0 %v13060_v29, %s7769_s12 }
 0x106   : > { %v8750_v28 = vpop.permute.xlu1 %879 }
 0x107   : > { %13067 = vst [vmem:[#allocation85_spill] sm:$0xff] %v8750_v28  ;;  %v8752_v6 = vpop.permute.xlu0 %877  ;;  %v13090_v28 = vld [vmem:[#allocation19_spill] sm:$0xff] }
 0x108   : > { %13068 = vst [vmem:[#allocation86_spill] sm:$0xff] %v8752_v6  ;;  %1220 = vrot.lane.b32.xlu1 %v8330_v27, %s7770_s17  ;;  %v13073_v6 = vld [vmem:[#allocation12_spill] sm:$0xff]  ;;  %v13074_v27 = vld [vmem:[#allocation13_spill] sm:$0xff] }
 0x109   : > { %1218 = vrot.lane.b32.xlu0 %v8335_v31, %s7770_s17 }
 0x10a   : > { %v8758_v30 = vpop.permute.xlu1 %883 }
 0x10b   : > { %13069 = vst [vmem:[#allocation87_spill] sm:$0xff] %v8758_v30  ;;  %v8760_v32 = vpop.permute.xlu0 %881 }
 0x10c   : > { %13070 = vst [vmem:[#allocation88_spill] sm:$0xff] %v8760_v32  ;;  %1342 = vrot.lane.b32.xlu1 %v7937_v38, %s7771_s22 }
 0x10d   : > { %1340 = vrot.lane.b32.xlu0 %v7943_v40, %s7771_s22 }
 0x10e   : > { %v8766_v29 = vpop.permute.xlu1 %887 }
 0x10f   : > { %13071 = vst [vmem:[#allocation89_spill] sm:$0xff] %v8766_v29  ;;  %v8768_v8 = vpop.permute.xlu0 %885 }
 0x110   : > { %13072 = vst [vmem:[#allocation90_spill] sm:$0xff] %v8768_v8  ;;  %1468 = vrot.lane.b32.xlu1 %v13073_v6, %s7773_s23 }
 0x111   : > { %1466 = vrot.lane.b32.xlu0 %v13074_v27, %s7773_s23 }
 0x112   : > { %v8774_v31 = vpop.permute.xlu1 %891 }
 0x113   : > { %13075 = vst [vmem:[#allocation12_spill] sm:$0xff] %v8774_v31  ;;  %v8776_v30 = vpop.permute.xlu0 %889 }
 0x114   : > { %13076 = vst [vmem:[#allocation13_spill] sm:$0xff] %v8776_v30  ;;  %1593 = vrot.lane.b32.xlu1 %v8343_v41, %s7774_s28 }
 0x115   : > { %1591 = vrot.lane.b32.xlu0 %v8348_v39, %s7774_s28 }
 0x116   : > { %v8782_v32 = vpop.permute.xlu1 %895 }
 0x117   : > { %13077 = vst [vmem:[#allocation91_spill] sm:$0xff] %v8782_v32  ;;  %v8784_v29 = vpop.permute.xlu0 %893 }
 0x118   : > { %13078 = vst [vmem:[#allocation92_spill] sm:$0xff] %v8784_v29  ;;  %973 = vrot.lane.b32.xlu1 %v7937_v38, %s7768_s11  ;;  %v13089_v29 = vld [vmem:[#allocation18_spill] sm:$0xff] }
 0x119   : > { %971 = vrot.lane.b32.xlu0 %v7943_v40, %s7768_s11 }
 0x11a   : > { %v8790_v8 = vpop.permute.xlu1 %899 }
 0x11b   : > { %13079 = vst [vmem:[#allocation93_spill] sm:$0xff] %v8790_v8  ;;  %v8792_v31 = vpop.permute.xlu0 %897 }
 0x11c   : > { %13080 = vst [vmem:[#allocation94_spill] sm:$0xff] %v8792_v31  ;;  %1099 = vrot.lane.b32.xlu1 %v13073_v6, %s7769_s12 }
 0x11d   : > { %1097 = vrot.lane.b32.xlu0 %v13074_v27, %s7769_s12 }
 0x11e   : > { %v8798_v30 = vpop.permute.xlu1 %903 }
 0x11f   : > { %13081 = vst [vmem:[#allocation95_spill] sm:$0xff] %v8798_v30  ;;  %v8800_v32 = vpop.permute.xlu0 %901 }
 0x120   : > { %13082 = vst [vmem:[#allocation96_spill] sm:$0xff] %v8800_v32  ;;  %1224 = vrot.lane.b32.xlu1 %v8343_v41, %s7770_s17  ;;  %v13087_v32 = vld [vmem:[#allocation14_spill] sm:$0xff]  ;;  %v13088_v41 = vld [vmem:[#allocation15_spill] sm:$0xff] }
 0x121   : > { %1222 = vrot.lane.b32.xlu0 %v8348_v39, %s7770_s17 }
 0x122   : > { %v8806_v38 = vpop.permute.xlu1 %907 }
 0x123   : > { %13083 = vst [vmem:[#allocation97_spill] sm:$0xff] %v8806_v38  ;;  %v8808_v40 = vpop.permute.xlu0 %905 }
 0x124   : > { %13084 = vst [vmem:[#allocation98_spill] sm:$0xff] %v8808_v40  ;;  %1346 = vrot.lane.b32.xlu1 %v7959_v46, %s7771_s22 }
 0x125   : > { %1344 = vrot.lane.b32.xlu0 %v7965_v48, %s7771_s22 }
 0x126   : > { %v8814_v6 = vpop.permute.xlu1 %911 }
 0x127   : > { %13085 = vst [vmem:[#allocation99_spill] sm:$0xff] %v8814_v6  ;;  %v8816_v27 = vpop.permute.xlu0 %909 }
 0x128   : > { %13086 = vst [vmem:[#allocation100_spill] sm:$0xff] %v8816_v27  ;;  %1472 = vrot.lane.b32.xlu1 %v13087_v32, %s7773_s23 }
 0x129   : > { %1470 = vrot.lane.b32.xlu0 %v13088_v41, %s7773_s23 }
 0x12a   : > { %v958_v39 = vpop.permute.xlu1 %957 }
 0x12b   : > { %v956_v38 = vpop.permute.xlu0 %955 }
 0x12c   : > { %1597 = vrot.lane.b32.xlu1 %v8356_v12, %s7774_s28 }
 0x12d   : > { %1595 = vrot.lane.b32.xlu0 %v8361_v47, %s7774_s28 }
 0x12e   : > { %v8826_v40 = vpop.permute.xlu1 %961 }
 0x12f   : > { %v8828_v30 = vpop.permute.xlu0 %959 }
 0x130   : > { %977 = vrot.lane.b32.xlu1 %v7959_v46, %s7768_s11 }
 0x131   : > { %975 = vrot.lane.b32.xlu0 %v7965_v48, %s7768_s11 }
 0x132   : > { %v1082_v27 = vpop.permute.xlu1 %1081 }
 0x133   : > { %v8834_v6 = vpop.permute.xlu0 %963 }
 0x134   : > { %1103 = vrot.lane.b32.xlu1 %v13087_v32, %s7769_s12 }
 0x135   : > { %1101 = vrot.lane.b32.xlu0 %v13088_v41, %s7769_s12 }
 0x136   : > { %v1207_v31 = vpop.permute.xlu1 %1206 }
 0x137   : > { %v1084_v8 = vpop.permute.xlu0 %1083 }
 0x138   : > { %1228 = vrot.lane.b32.xlu1 %v8356_v12, %s7770_s17  ;;  %v7655_v12 = vld [vmem:[%s7844_s8] sm:$0xff] }
 0x139   : > { %1226 = vrot.lane.b32.xlu0 %v8361_v47, %s7770_s17  ;;  %v1700_v47 = vsel %vm1699_vm5, %v7655_v12, %v8405_v44  ;;  %v1742_v44 = vsel %vm1740_vm6, %v1701_v42, %v8662_v1 }
 0x13a   : > { %v1329_v46 = vpop.permute.xlu1 %1328  ;;  %v1741_v26 = vsel %vm1740_vm6, %v1700_v47, %v8664_v57 }
 0x13b   : > { %v1209_v48 = vpop.permute.xlu0 %1208  ;;  %v1782_v49 = vsel %vm1781_vm7, %v1741_v26, %v956_v38  ;;  %v1783_v26 = vsel %vm1781_vm7, %v1742_v44, %v958_v39 }
 0x13c   : > { %1350 = vrot.lane.b32.xlu1 %v7981_v54, %s7771_s22  ;;  %v1823_v5 = vsel %vm1822_vm8, %v1782_v49, %v1082_v27  ;;  %v1824_v45 = vsel %vm1822_vm8, %v1783_v26, %v1084_v8 }
 0x13d   : > { %1348 = vrot.lane.b32.xlu0 %v7987_v56, %s7771_s22  ;;  %v1864_v57 = vsel %vm1863_vm9, %v1823_v5, %v1207_v31  ;;  %v1865_v12 = vsel %vm1863_vm9, %v1824_v45, %v1209_v48  ;;  %v7657_v48 = vld [vmem:[%s7844_s8 + $0x18] sm:$0xff] }
 0x13e   : > { %v1455_v32 = vpop.permute.xlu1 %1454  ;;  %v1905_v38 = vsel %vm1904_vm10, %v1864_v57, %v1329_v46 }
 0x13f   : > { %v1331_v41 = vpop.permute.xlu0 %1330  ;;  %v1946_v49 = vsel %vm1945_vm11, %v1905_v38, %v1455_v32  ;;  %v1702_v32 = vsel %vm1699_vm5, %v7657_v48, %v8399_v3  ;;  %v13093_v3 = vld [vmem:[#allocation20_spill] sm:$0xff] }
 0x140   : > { %1476 = vrot.lane.b32.xlu1 %v13089_v29, %s7773_s23  ;;  %v1906_v1 = vsel %vm1904_vm10, %v1865_v12, %v1331_v41  ;;  %v13092_v41 = vld [vmem:[#allocation17_spill] sm:$0xff] }
 0x141   : > { %1474 = vrot.lane.b32.xlu0 %v13090_v28, %s7773_s23 }
 0x142   : > { %v1457_v53 = vpop.permute.xlu1 %1456 }
 0x143   : > { %v1086_v13 = vpop.permute.xlu0 %1085  ;;  %v1947_v5 = vsel %vm1945_vm11, %v1906_v1, %v1457_v53 }
 0x144   : > { %1601 = vrot.lane.b32.xlu1 %v8369_v21, %s7774_s28 }
 0x145   : > { %1599 = vrot.lane.b32.xlu0 %v8374_v55, %s7774_s28 }
 0x146   : > { %v1088_v25 = vpop.permute.xlu1 %1087 }
 0x147   : > { %v1580_v27 = vpop.permute.xlu0 %1579 }
 0x148   : > { %981 = vrot.lane.b32.xlu1 %v7981_v54, %s7768_s11  ;;  %v1987_v42 = vsel %vm1986_vm12, %v1946_v49, %v1580_v27 }
 0x149   : > { %979 = vrot.lane.b32.xlu0 %v7987_v56, %s7768_s11  ;;  %6384 = vmatprep.mubr.msk.f32.mxu1 %vm2038_vm13, %v1987_v42 }
 0x14a   : > { %v1582_v8 = vpop.permute.xlu1 %1581 }
 0x14b   : > { %v1988_v31 = vsel %vm1986_vm12, %v1947_v5, %v1582_v8  ;;  %v1211_v39 = vpop.permute.xlu0 %1210 }
 0x14c   : > { %1107 = vrot.lane.b32.xlu1 %v13089_v29, %s7769_s12  ;;  %6385 = vmatmul.mubr.msk.f32.vlgmr.msra.gmra.mrb[0].mxu1 %vm2038_vm13, %v1988_v31  ;;  %v13091_v29 = vld [vmem:[#allocation16_spill] sm:$0xff]  ;;  %v8926_v31 = vld [vmem:[%s7844_s8 + $0xc8] sm:$0xff] }
 0x14d   : > { %1105 = vrot.lane.b32.xlu0 %v13090_v28, %s7769_s12  ;;  %v1743_v28 = vsel %vm1740_vm6, %v1702_v32, %v8672_v11  ;;  %v13094_v11 = vld [vmem:[#allocation21_spill] sm:$0xff] }
 0x14e   : > { %v1333_v54 = vpop.permute.xlu1 %1332  ;;  %v7661_v32 = vld [vmem:[%s7844_s8 + $0x38] sm:$0xff] }
 0x14f   : > { %v1213_v46 = vpop.permute.xlu0 %1212 }
 0x150   : > { %1232 = vrot.lane.b32.xlu1 %v8369_v21, %s7770_s17  ;;  %v1784_v21 = vsel %vm1781_vm7, %v1743_v28, %v8828_v30 }
 0x151   : > { %1230 = vrot.lane.b32.xlu0 %v8374_v55, %s7770_s17  ;;  %v1825_v47 = vsel %vm1822_vm8, %v1784_v21, %v1086_v13  ;;  %v7658_v13 = vld [vmem:[%s7844_s8 + $0x20] sm:$0xff] }
 0x152   : > { %v1459_v56 = vpop.permute.xlu1 %1458  ;;  %v1866_v57 = vsel %vm1863_vm9, %v1825_v47, %v1211_v39  ;;  %v1703_v27 = vsel %vm1699_vm5, %v7658_v13, %v8416_v36  ;;  %v8932_v39 = vld [vmem:[%s7844_s8 + $0xc0] sm:$0xff] }
 0x153   : > { %v1335_v53 = vpop.permute.xlu0 %1334  ;;  %v1907_v26 = vsel %vm1904_vm10, %v1866_v57, %v1333_v54  ;;  %v1744_v12 = vsel %vm1740_vm6, %v1703_v27, %v8670_v9  ;;  %v13095_v13 = vld [vmem:[#allocation22_spill] sm:$0xff]  ;;  %v13096_v27 = vld [vmem:[#allocation23_spill] sm:$0xff] }
 0x154   : > { %1354 = vrot.lane.b32.xlu1 %v13091_v29, %s7771_s22  ;;  %v1948_v38 = vsel %vm1945_vm11, %v1907_v26, %v1459_v56  ;;  %v1785_v1 = vsel %vm1781_vm7, %v1744_v12, %v8826_v40  ;;  %v7662_v29 = vld [vmem:[%s7844_s8 + $0x30] sm:$0xff] }
 0x155   : > { %1352 = vrot.lane.b32.xlu0 %v13092_v41, %s7771_s22  ;;  %v1826_v8 = vsel %vm1822_vm8, %v1785_v1, %v1088_v25  ;;  %v1704_v28 = vsel %vm1699_vm5, %v7662_v29, %v8439_v19  ;;  %v13097_v1 = vld [vmem:[#allocation51_spill] sm:$0xff] }
 0x156   : > { %v1090_v55 = vpop.permute.xlu1 %1089  ;;  %v1867_v36 = vsel %vm1863_vm9, %v1826_v8, %v1213_v46  ;;  %v1745_v21 = vsel %vm1740_vm6, %v1704_v28, %v8680_v2 }
 0x157   : > { %v966_v44 = vpop.permute.xlu0 %965  ;;  %v1908_v9 = vsel %vm1904_vm10, %v1867_v36, %v1335_v53  ;;  %v1705_v53 = vsel %vm1699_vm5, %v7661_v32, %v8433_v18 }
 0x158   : > { %1480 = vrot.lane.b32.xlu1 %v13093_v3, %s7773_s23  ;;  %v1746_v41 = vsel %vm1740_vm6, %v1705_v53, %v8678_v14  ;;  %v8965_v14 = vld [vmem:[%s7844_s8 + $0xe0] sm:$0xff] }
 0x159   : > { %1478 = vrot.lane.b32.xlu0 %v13094_v11, %s7773_s23  ;;  %v1787_v47 = vsel %vm1781_vm7, %v1746_v41, %v966_v44  ;;  %v8972_v44 = vld [vmem:[%s7844_s8 + $0xd8] sm:$0xff] }
 0x15a   : > { %v1584_v45 = vpop.permute.xlu1 %1583 }
 0x15b   : > { %v1989_v30 = vsel %vm1986_vm12, %v1948_v38, %v1584_v45  ;;  %v1461_v49 = vpop.permute.xlu0 %1460 }
 0x15c   : > { %1605 = vrot.lane.b32.xlu1 %v8382_v10, %s7774_s28  ;;  %6387 = vmatprep.mubr.msk.f32.mxu1 %vm2038_vm13, %v1989_v30  ;;  %v1949_v54 = vsel %vm1945_vm11, %v1908_v9, %v1461_v49 }
 0x15d   : > { %1603 = vrot.lane.b32.xlu0 %v8387_v63, %s7774_s28 }
 0x15e   : > { %v1215_v42 = vpop.permute.xlu1 %1214 }
 0x15f   : > { %v1092_v5 = vpop.permute.xlu0 %1091 }
 0x160   : > { %985 = vrot.lane.b32.xlu1 %v8926_v31, %s7768_s11  ;;  %v1828_v57 = vsel %vm1822_vm8, %v1787_v47, %v1092_v5  ;;  %v9019_v47 = vld [vmem:[%s7844_s8 + $0xf8] sm:$0xff] }
 0x161   : > { %983 = vrot.lane.b32.xlu0 %v8932_v39, %s7768_s11 }
 0x162   : > { %v1217_v40 = vpop.permute.xlu1 %1216 }
 0x163   : > { %v1586_v25 = vpop.permute.xlu0 %1585  ;;  %v1869_v26 = vsel %vm1863_vm9, %v1828_v57, %v1217_v40 }
 0x164   : > { %v1990_v56 = vsel %vm1986_vm12, %v1949_v54, %v1586_v25  ;;  %1111 = vrot.lane.b32.xlu1 %v13093_v3, %s7769_s12  ;;  %v7665_v25 = vld [vmem:[%s7844_s8 + $0x50] sm:$0xff] }
 0x165   : > { %1109 = vrot.lane.b32.xlu0 %v13094_v11, %s7769_s12  ;;  %6388 = vmatmul.mubr.msk.f32.gmra.mrb[2].mxu1 %vm2038_vm13, %v1990_v56  ;;  %v1707_v56 = vsel %vm1699_vm5, %v7665_v25, %v8450_v17 }
 0x166   : > { %v1339_v46 = vpop.permute.xlu1 %1338  ;;  %v1748_v32 = vsel %vm1740_vm6, %v1707_v56, %v8686_v24 }
 0x167   : > { %v1337_v48 = vpop.permute.xlu0 %1336  ;;  %v1910_v2 = vsel %vm1904_vm10, %v1869_v26, %v1339_v46  ;;  %v7666_v46 = vld [vmem:[%s7844_s8 + $0x48] sm:$0xff] }
 0x168   : > { %1236 = vrot.lane.b32.xlu1 %v8382_v10, %s7770_s17  ;;  %v1786_v10 = vsel %vm1781_vm7, %v1745_v21, %v8834_v6 }
 0x169   : > { %1234 = vrot.lane.b32.xlu0 %v8387_v63, %s7770_s17  ;;  %v1827_v19 = vsel %vm1822_vm8, %v1786_v10, %v1090_v55 }
 0x16a   : > { %v1465_v18 = vpop.permute.xlu1 %1464  ;;  %v1868_v63 = vsel %vm1863_vm9, %v1827_v19, %v1215_v42 }
 0x16b   : > { %v1463_v3 = vpop.permute.xlu0 %1462  ;;  %v1909_v6 = vsel %vm1904_vm10, %v1868_v63, %v1337_v48  ;;  %v1951_v55 = vsel %vm1945_vm11, %v1910_v2, %v1465_v18  ;;  %v1706_v48 = vsel %vm1699_vm5, %v7666_v46, %v8456_v37  ;;  %v9026_v18 = vld [vmem:[%s7844_s8 + $0xf0] sm:$0xff] }
 0x16c   : > { %1358 = vrot.lane.b32.xlu1 %v8965_v14, %s7771_s22  ;;  %v1950_v38 = vsel %vm1945_vm11, %v1909_v6, %v1463_v3  ;;  %v1747_v53 = vsel %vm1740_vm6, %v1706_v48, %v8688_v52  ;;  %v13098_v6 = vld [vmem:[#allocation24_spill] sm:$0xff] }
 0x16d   : > { %1356 = vrot.lane.b32.xlu0 %v8972_v44, %s7771_s22  ;;  %v9073_v48 = vld [vmem:[%s7844_s8 + $0x110] sm:$0xff] }
 0x16e   : > { %v1590_v11 = vpop.permute.xlu1 %1589 }
 0x16f   : > { %v1992_v45 = vsel %vm1986_vm12, %v1951_v55, %v1590_v11  ;;  %v1588_v30 = vpop.permute.xlu0 %1587  ;;  %v13099_v55 = vld [vmem:[#allocation25_spill] sm:$0xff] }
 0x170   : > { %v1991_v49 = vsel %vm1986_vm12, %v1950_v38, %v1588_v30  ;;  %1484 = vrot.lane.b32.xlu1 %v13095_v13, %s7773_s23 }
 0x171   : > { %1482 = vrot.lane.b32.xlu0 %v13096_v27, %s7773_s23  ;;  %6390 = vmatprep.mubr.msk.f32.mxu1 %vm2038_vm13, %v1991_v49 }
 0x172   : > { %6391 = vmatmul.mubr.msk.f32.gmra.mrb[4].mxu1 %vm2038_vm13, %v1992_v45  ;;  %v970_v12 = vpop.permute.xlu1 %969  ;;  %v13100_v45 = vld [vmem:[#allocation52_spill] sm:$0xff] }
 0x173   : > { %v968_v42 = vpop.permute.xlu0 %967  ;;  %v1789_v29 = vsel %vm1781_vm7, %v1748_v32, %v970_v12  ;;  %v9080_v32 = vld [vmem:[%s7844_s8 + $0x108] sm:$0xff] }
 0x174   : > { %1609 = vrot.lane.b32.xlu1 %v8395_v7, %s7774_s28  ;;  %v1788_v28 = vsel %vm1781_vm7, %v1747_v53, %v968_v42 }
 0x175   : > { %1607 = vrot.lane.b32.xlu0 %v13097_v1, %s7774_s28 }
 0x176   : > { %v1096_v5 = vpop.permute.xlu1 %1095 }
 0x177   : > { %v1094_v8 = vpop.permute.xlu0 %1093 }
 0x178   : > { %989 = vrot.lane.b32.xlu1 %v8965_v14, %s7768_s11  ;;  %v1829_v21 = vsel %vm1822_vm8, %v1788_v28, %v1094_v8  ;;  %v7670_v8 = vld [vmem:[%s7844_s8 + $0x60] sm:$0xff] }
 0x179   : > { %987 = vrot.lane.b32.xlu0 %v8972_v44, %s7768_s11 }
 0x17a   : > { %v1221_v36 = vpop.permute.xlu1 %1220 }
 0x17b   : > { %v1219_v9 = vpop.permute.xlu0 %1218 }
 0x17c   : > { %1115 = vrot.lane.b32.xlu1 %v13095_v13, %s7769_s12  ;;  %v1870_v24 = vsel %vm1863_vm9, %v1829_v21, %v1219_v9 }
 0x17d   : > { %1113 = vrot.lane.b32.xlu0 %v13096_v27, %s7769_s12 }
 0x17e   : > { %v1343_v40 = vpop.permute.xlu1 %1342 }
 0x17f   : > { %v1341_v54 = vpop.permute.xlu0 %1340 }
 0x180   : > { %1240 = vrot.lane.b32.xlu1 %v8395_v7, %s7770_s17  ;;  %v1830_v7 = vsel %vm1822_vm8, %v1789_v29, %v1096_v5  ;;  %v1911_v10 = vsel %vm1904_vm10, %v1870_v24, %v1341_v54  ;;  %v13102_v24 = vld [vmem:[#allocation27_spill] sm:$0xff] }
 0x181   : > { %1238 = vrot.lane.b32.xlu0 %v13097_v1, %s7770_s17  ;;  %v1871_v37 = vsel %vm1863_vm9, %v1830_v7, %v1221_v36  ;;  %v7669_v1 = vld [vmem:[%s7844_s8 + $0x68] sm:$0xff]  ;;  %v1708_v36 = vsel %vm1699_vm5, %v7670_v8, %v8473_v59  ;;  %v9214_v8 = vld [vmem:[%s7844_s8 + $0x120] sm:$0xff] }
 0x182   : > { %v1469_v17 = vpop.permute.xlu1 %1468  ;;  %v1912_v52 = vsel %vm1904_vm10, %v1871_v37, %v1343_v40  ;;  %v1709_v5 = vsel %vm1699_vm5, %v7669_v1, %v8467_v4  ;;  %v1749_v40 = vsel %vm1740_vm6, %v1708_v36, %v8696_v51  ;;  %v13101_v37 = vld [vmem:[#allocation26_spill] sm:$0xff] }
 0x183   : > { %v1467_v41 = vpop.permute.xlu0 %1466  ;;  %v1953_v57 = vsel %vm1945_vm11, %v1912_v52, %v1469_v17  ;;  %v1750_v9 = vsel %vm1740_vm6, %v1709_v5, %v8694_v43  ;;  %v12906_v52 = vmov 0.0   ;;  %v9207_v5 = vld [vmem:[%s7844_s8 + $0x128] sm:$0xff] }
 0x184   : > { %1362 = vrot.lane.b32.xlu1 %v9019_v47, %s7771_s22  ;;  %v1952_v19 = vsel %vm1945_vm11, %v1911_v10, %v1467_v41  ;;  %326 = vst.msk [vmem:[#allocation2 + $0x11] sm:$0x1] %vm305_vm14, %v12906_v52  ;;  %306 = vst.msk [vmem:[#allocation2] sm:$0x1] %vm305_vm14, %v12906_v52 }
 0x185   : > { %1360 = vrot.lane.b32.xlu0 %v9026_v18, %s7771_s22  ;;  %307 = vst.msk [vmem:[#allocation2 + $0x18] sm:$0x1] %vm305_vm14, %v12906_v52  ;;  %308 = vst.msk [vmem:[#allocation2 + $0x30] sm:$0x1] %vm305_vm14, %v12906_v52 }
 0x186   : > { %v1594_v3 = vpop.permute.xlu1 %1593  ;;  %309 = vst.msk [vmem:[#allocation2 + $0x48] sm:$0x1] %vm305_vm14, %v12906_v52  ;;  %310 = vst.msk [vmem:[#allocation2 + $0x60] sm:$0x1] %vm305_vm14, %v12906_v52 }
 0x187   : > { %v1994_v26 = vsel %vm1986_vm12, %v1953_v57, %v1594_v3  ;;  %v1592_v63 = vpop.permute.xlu0 %1591  ;;  %311 = vst.msk [vmem:[#allocation2 + $0x78] sm:$0x1] %vm305_vm14, %v12906_v52  ;;  %312 = vst.msk [vmem:[#allocation2 + $0x90] sm:$0x1] %vm305_vm14, %v12906_v52  ;;  %v13103_v3 = vld [vmem:[#allocation53_spill] sm:$0xff] }
 0x188   : > { %v1993_v2 = vsel %vm1986_vm12, %v1952_v19, %v1592_v63  ;;  %1488 = vrot.lane.b32.xlu1 %v13098_v6, %s7773_s23  ;;  %313 = vst.msk [vmem:[#allocation2 + $0xa8] sm:$0x1] %vm305_vm14, %v12906_v52  ;;  %314 = vst.msk [vmem:[#allocation2 + $0xc0] sm:$0x1] %vm305_vm14, %v12906_v52 }
 0x189   : > { %1486 = vrot.lane.b32.xlu0 %v13099_v55, %s7773_s23  ;;  %6393 = vmatprep.mubr.msk.f32.mxu1 %vm2038_vm13, %v1993_v2  ;;  %315 = vst.msk [vmem:[#allocation2 + $0xd8] sm:$0x1] %vm305_vm14, %v12906_v52  ;;  %316 = vst.msk [vmem:[#allocation2 + $0xf0] sm:$0x1] %vm305_vm14, %v12906_v52 }
 0x18a   : > { %6394 = vmatmul.mubr.msk.f32.gmra.mrb[6].mxu1 %vm2038_vm13, %v1994_v26  ;;  %v974_v11 = vpop.permute.xlu1 %973  ;;  %317 = vst.msk [vmem:[#allocation2 + $0x108] sm:$0x1] %vm305_vm14, %v12906_v52  ;;  %318 = vst.msk [vmem:[#allocation2 + $0x120] sm:$0x1] %vm305_vm14, %v12906_v52 }
 0x18b   : > { %v972_v38 = vpop.permute.xlu0 %971  ;;  %v1791_v54 = vsel %vm1781_vm7, %v1750_v9, %v974_v11  ;;  %319 = vst.msk [vmem:[#allocation2 + $0x138] sm:$0x1] %vm305_vm14, %v12906_v52  ;;  %320 = vst.msk [vmem:[#allocation2 + $0x150] sm:$0x1] %vm305_vm14, %v12906_v52  ;;  %v7673_v11 = vld [vmem:[%s7844_s8 + $0x80] sm:$0xff] }
 0x18c   : > { %1613 = vrot.lane.b32.xlu1 %v8412_v62, %s7774_s28  ;;  %v1790_v25 = vsel %vm1781_vm7, %v1749_v40, %v972_v38  ;;  %321 = vst.msk [vmem:[#allocation2 + $0x168] sm:$0x1] %vm305_vm14, %v12906_v52  ;;  %322 = vst.msk [vmem:[#allocation2 + $0x180] sm:$0x1] %vm305_vm14, %v12906_v52  ;;  %v1711_v38 = vsel %vm1699_vm5, %v7673_v11, %v8484_v34 }
 0x18d   : > { %1611 = vrot.lane.b32.xlu0 %v13100_v45, %s7774_s28  ;;  %323 = vst.msk [vmem:[#allocation2 + $0x198] sm:$0x1] %vm305_vm14, %v12906_v52  ;;  %324 = vst.msk [vmem:[#allocation2 + $0x1b0] sm:$0x1] %vm305_vm14, %v12906_v52 }
 0x18e   : > { %v1100_v30 = vpop.permute.xlu1 %1099  ;;  %325 = vst.msk [vmem:[#allocation2 + $0x1c8] sm:$0x1] %vm305_vm14, %v12906_v52  ;;  %327 = vst.msk [vmem:[#allocation2 + $0x29] sm:$0x1] %vm305_vm14, %v12906_v52 }
 0x18f   : > { %v1098_v49 = vpop.permute.xlu0 %1097  ;;  %328 = vst.msk [vmem:[#allocation2 + $0x41] sm:$0x1] %vm305_vm14, %v12906_v52  ;;  %329 = vst.msk [vmem:[#allocation2 + $0x59] sm:$0x1] %vm305_vm14, %v12906_v52 }
 0x190   : > { %993 = vrot.lane.b32.xlu1 %v9019_v47, %s7768_s11  ;;  %v1831_v46 = vsel %vm1822_vm8, %v1790_v25, %v1098_v49  ;;  %330 = vst.msk [vmem:[#allocation2 + $0x71] sm:$0x1] %vm305_vm14, %v12906_v52  ;;  %331 = vst.msk [vmem:[#allocation2 + $0x89] sm:$0x1] %vm305_vm14, %v12906_v52  ;;  %v1752_v49 = vsel %vm1740_vm6, %v1711_v38, %v8702_v22 }
 0x191   : > { %991 = vrot.lane.b32.xlu0 %v9026_v18, %s7768_s11  ;;  %332 = vst.msk [vmem:[#allocation2 + $0xa1] sm:$0x1] %vm305_vm14, %v12906_v52  ;;  %333 = vst.msk [vmem:[#allocation2 + $0xb9] sm:$0x1] %vm305_vm14, %v12906_v52 }
 0x192   : > { %v1225_v13 = vpop.permute.xlu1 %1224  ;;  %334 = vst.msk [vmem:[#allocation2 + $0xd1] sm:$0x1] %vm305_vm14, %v12906_v52  ;;  %335 = vst.msk [vmem:[#allocation2 + $0xe9] sm:$0x1] %vm305_vm14, %v12906_v52 }
 0x193   : > { %v1223_v27 = vpop.permute.xlu0 %1222  ;;  %336 = vst.msk [vmem:[#allocation2 + $0x101] sm:$0x1] %vm305_vm14, %v12906_v52  ;;  %337 = vst.msk [vmem:[#allocation2 + $0x119] sm:$0x1] %vm305_vm14, %v12906_v52 }
 0x194   : > { %1119 = vrot.lane.b32.xlu1 %v13098_v6, %s7769_s12  ;;  %v1872_v43 = vsel %vm1863_vm9, %v1831_v46, %v1223_v27  ;;  %338 = vst.msk [vmem:[#allocation2 + $0x131] sm:$0x1] %vm305_vm14, %v12906_v52  ;;  %339 = vst.msk [vmem:[#allocation2 + $0x149] sm:$0x1] %vm305_vm14, %v12906_v52  ;;  %v13105_v46 = vld [vmem:[#allocation29_spill] sm:$0xff] }
 0x195   : > { %1117 = vrot.lane.b32.xlu0 %v13099_v55, %s7769_s12  ;;  %340 = vst.msk [vmem:[#allocation2 + $0x161] sm:$0x1] %vm305_vm14, %v12906_v52  ;;  %341 = vst.msk [vmem:[#allocation2 + $0x179] sm:$0x1] %vm305_vm14, %v12906_v52 }
 0x196   : > { %v1347_v12 = vpop.permute.xlu1 %1346  ;;  %342 = vst.msk [vmem:[#allocation2 + $0x191] sm:$0x1] %vm305_vm14, %v12906_v52  ;;  %343 = vst.msk [vmem:[#allocation2 + $0x1a9] sm:$0x1] %vm305_vm14, %v12906_v52 }
 0x197   : > { %v1345_v42 = vpop.permute.xlu0 %1344  ;;  %344 = vst.msk [vmem:[#allocation2 + $0x1c1] sm:$0x1] %vm305_vm14, %v12906_v52  ;;  %345 = vst.msk [vmem:[#allocation2 + $0x1d9] sm:$0x1] %vm305_vm14, %v12906_v52 }
 0x198   : > { %1244 = vrot.lane.b32.xlu1 %v8412_v62, %s7770_s17  ;;  %v1832_v62 = vsel %vm1822_vm8, %v1791_v54, %v1100_v30  ;;  %v1913_v53 = vsel %vm1904_vm10, %v1872_v43, %v1345_v42 }
 0x199   : > { %1242 = vrot.lane.b32.xlu0 %v13100_v45, %s7770_s17  ;;  %v1873_v59 = vsel %vm1863_vm9, %v1832_v62, %v1225_v13  ;;  %v7674_v45 = vld [vmem:[%s7844_s8 + $0x78] sm:$0xff] }
 0x19a   : > { %v1473_v4 = vpop.permute.xlu1 %1472  ;;  %v1914_v51 = vsel %vm1904_vm10, %v1873_v59, %v1347_v12  ;;  %v1710_v30 = vsel %vm1699_vm5, %v7674_v45, %v8490_v50 }
 0x19b   : > { %v1471_v56 = vpop.permute.xlu0 %1470  ;;  %v1955_v29 = vsel %vm1945_vm11, %v1914_v51, %v1473_v4  ;;  %v1751_v13 = vsel %vm1740_vm6, %v1710_v30, %v8704_v15  ;;  %v13106_v51 = vld [vmem:[#allocation54_spill] sm:$0xff] }
 0x19c   : > { %1366 = vrot.lane.b32.xlu1 %v9073_v48, %s7771_s22  ;;  %v1954_v28 = vsel %vm1945_vm11, %v1913_v53, %v1471_v56  ;;  %v13104_v56 = vld [vmem:[#allocation28_spill] sm:$0xff]  ;;  %v13107_v53 = vld [vmem:[#allocation55_spill] sm:$0xff] }
 0x19d   : > { %1364 = vrot.lane.b32.xlu0 %v9080_v32, %s7771_s22 }
 0x19e   : > { %v1598_v17 = vpop.permute.xlu1 %1597 }
 0x19f   : > { %v1996_v7 = vsel %vm1986_vm12, %v1955_v29, %v1598_v17  ;;  %v1596_v41 = vpop.permute.xlu0 %1595 }
 0x1a0   : > { %v1995_v21 = vsel %vm1986_vm12, %v1954_v28, %v1596_v41  ;;  %1492 = vrot.lane.b32.xlu1 %v13101_v37, %s7773_s23 }
 0x1a1   : > { %1490 = vrot.lane.b32.xlu0 %v13102_v24, %s7773_s23  ;;  %6396 = vmatprep.mubr.msk.f32.mxu1 %vm2038_vm13, %v1995_v21 }
 0x1a2   : > { %6397 = vmatmul.mubr.msk.f32.gmra.mrb[8].mxu1 %vm2038_vm13, %v1996_v7  ;;  %v978_v10 = vpop.permute.xlu1 %977 }
 0x1a3   : > { %v976_v57 = vpop.permute.xlu0 %975  ;;  %v1793_v27 = vsel %vm1781_vm7, %v1752_v49, %v978_v10  ;;  %v3782_v49 = vld [vmem:[%s12780_s3 + $0x108] sm:$0xff] }
 0x1a4   : > { %1617 = vrot.lane.b32.xlu1 %v8429_v16, %s7774_s28  ;;  %v1792_v12 = vsel %vm1781_vm7, %v1751_v13, %v976_v57  ;;  %v7678_v57 = vld [vmem:[%s7844_s8 + $0x90] sm:$0xff] }
 0x1a5   : > { %1615 = vrot.lane.b32.xlu0 %v13103_v3, %s7774_s28 }
 0x1a6   : > { %v1104_v19 = vpop.permute.xlu1 %1103 }
 0x1a7   : > { %v1102_v26 = vpop.permute.xlu0 %1101 }
 0x1a8   : > { %997 = vrot.lane.b32.xlu1 %v9073_v48, %s7768_s11  ;;  %v1833_v1 = vsel %vm1822_vm8, %v1792_v12, %v1102_v26 }
 0x1a9   : > { %995 = vrot.lane.b32.xlu0 %v9080_v32, %s7768_s11 }
 0x1aa   : > { %v1229_v63 = vpop.permute.xlu1 %1228 }
 0x1ab   : > { %v1227_v2 = vpop.permute.xlu0 %1226 }
 0x1ac   : > { %1123 = vrot.lane.b32.xlu1 %v13101_v37, %s7769_s12  ;;  %v1874_v22 = vsel %vm1863_vm9, %v1833_v1, %v1227_v2  ;;  %v7677_v37 = vld [vmem:[%s7844_s8 + $0x98] sm:$0xff] }
 0x1ad   : > { %1121 = vrot.lane.b32.xlu0 %v13102_v24, %s7769_s12  ;;  %v13108_v24 = vld [vmem:[#allocation34_spill] sm:$0xff] }
 0x1ae   : > { %v1351_v6 = vpop.permute.xlu1 %1350  ;;  %v1713_v10 = vsel %vm1699_vm5, %v7677_v37, %v13108_v24 }
 0x1af   : > { %v1349_v55 = vpop.permute.xlu0 %1348  ;;  %v1754_v26 = vsel %vm1740_vm6, %v1713_v10, %v8710_v33  ;;  %v9261_v33 = vld [vmem:[%s7844_s8 + $0x140] sm:$0xff] }
 0x1b0   : > { %1248 = vrot.lane.b32.xlu1 %v8429_v16, %s7770_s17  ;;  %v1834_v16 = vsel %vm1822_vm8, %v1793_v27, %v1104_v19  ;;  %v1915_v36 = vsel %vm1904_vm10, %v1874_v22, %v1349_v55 }
 0x1b1   : > { %1246 = vrot.lane.b32.xlu0 %v13103_v3, %s7770_s17  ;;  %v1875_v50 = vsel %vm1863_vm9, %v1834_v16, %v1229_v63  ;;  %v13109_v3 = vld [vmem:[#allocation35_spill] sm:$0xff] }
 0x1b2   : > { %v1477_v34 = vpop.permute.xlu1 %1476  ;;  %v1916_v15 = vsel %vm1904_vm10, %v1875_v50, %v1351_v6  ;;  %v1712_v19 = vsel %vm1699_vm5, %v7678_v57, %v13109_v3 }
 0x1b3   : > { %v1475_v42 = vpop.permute.xlu0 %1474  ;;  %v1957_v9 = vsel %vm1945_vm11, %v1916_v15, %v1477_v34  ;;  %v1753_v63 = vsel %vm1740_vm6, %v1712_v19, %v8712_v0  ;;  %v3781_v0 = vld [vmem:[%s12780_s3 + $0x100] sm:$0xff]  ;;  %v9274_v34 = vld [vmem:[%s7844_s8 + $0x138] sm:$0xff] }
 0x1b4   : > { %1370 = vrot.lane.b32.xlu1 %v9207_v5, %s7771_s22  ;;  %v1956_v54 = vsel %vm1945_vm11, %v1915_v36, %v1475_v42  ;;  %v6628_v12 = vpack.c.bf16 %v3782_v49, %v3781_v0 }
 0x1b5   : > { %1368 = vrot.lane.b32.xlu0 %v9214_v8, %s7771_s22 }
 0x1b6   : > { %v1602_v40 = vpop.permute.xlu1 %1601  ;;  %6629 = vmatprep.subr.bf16.mxu0 %v6628_v12 }
 0x1b7   : > { %v1998_v4 = vsel %vm1986_vm12, %v1957_v9, %v1602_v40  ;;  %v1600_v25 = vpop.permute.xlu0 %1599  ;;  %v13110_v9 = vld [vmem:[#allocation30_spill] sm:$0xff]  ;;  %6631 = vmatpush3.bf16.msra.mxu0 %v6628_v12  ;;  %v3783_v40 = vld [vmem:[%s12780_s3 + $0x110] sm:$0xff] }
 0x1b8   : > { %v1997_v62 = vsel %vm1986_vm12, %v1956_v54, %v1600_v25  ;;  %1496 = vrot.lane.b32.xlu1 %v13104_v56, %s7773_s23  ;;  %v3784_v54 = vld [vmem:[%s12780_s3 + $0x118] sm:$0xff] }
 0x1b9   : > { %1494 = vrot.lane.b32.xlu0 %v13105_v46, %s7773_s23  ;;  %6399 = vmatprep.mubr.msk.f32.mxu1 %vm2038_vm13, %v1997_v62  ;;  %v6632_v25 = vpack.c.bf16 %v3784_v54, %v3783_v40  ;;  %v1717_v54 = vsel %vm1699_vm5, %v8926_v31, %v8535_v20 }
 0x1ba   : > { %6400 = vmatmul.mubr.msk.f32.gmra.mrb[10].mxu1 %vm2038_vm13, %v1998_v4  ;;  %v982_v59 = vpop.permute.xlu1 %981  ;;  %v13111_v4 = vld [vmem:[#allocation31_spill] sm:$0xff] }
 0x1bb   : > { %v980_v43 = vpop.permute.xlu0 %979  ;;  %v1795_v2 = vsel %vm1781_vm7, %v1754_v26, %v982_v59  ;;  %6633 = vmatprep.subr.bf16.mxu0 %v6632_v25  ;;  %v13113_v59 = vld [vmem:[#allocation57_spill] sm:$0xff] }
 0x1bc   : > { %1621 = vrot.lane.b32.xlu1 %v13106_v51, %s7774_s28  ;;  %v1794_v55 = vsel %vm1781_vm7, %v1753_v63, %v980_v43  ;;  %6635 = vmatpush3.bf16.msra.mxu0 %v6632_v25  ;;  %v13118_v25 = vld [vmem:[#allocation9_spill] sm:$0xff] }
 0x1bd   : > { %1619 = vrot.lane.b32.xlu0 %v13107_v53, %s7774_s28 }
 0x1be   : > { %v1108_v29 = vpop.permute.xlu1 %1107 }
 0x1bf   : > { %v1106_v17 = vpop.permute.xlu0 %1105  ;;  %v1836_v11 = vsel %vm1822_vm8, %v1795_v2, %v1108_v29  ;;  %v9327_v2 = vld [vmem:[%s7844_s8 + $0x158] sm:$0xff] }
 0x1c0   : > { %1001 = vrot.lane.b32.xlu1 %v9207_v5, %s7768_s11  ;;  %v1835_v45 = vsel %vm1822_vm8, %v1794_v55, %v1106_v17 }
 0x1c1   : > { %999 = vrot.lane.b32.xlu0 %v9214_v8, %s7768_s11 }
 0x1c2   : > { %v1233_v28 = vpop.permute.xlu1 %1232 }
 0x1c3   : > { %v1231_v7 = vpop.permute.xlu0 %1230  ;;  %v1877_v30 = vsel %vm1863_vm9, %v1836_v11, %v1233_v28 }
 0x1c4   : > { %1127 = vrot.lane.b32.xlu1 %v13104_v56, %s7769_s12  ;;  %v1876_v13 = vsel %vm1863_vm9, %v1835_v45, %v1231_v7  ;;  %v7681_v7 = vld [vmem:[%s7844_s8 + $0xb0] sm:$0xff] }
 0x1c5   : > { %1125 = vrot.lane.b32.xlu0 %v13105_v46, %s7769_s12  ;;  %v13112_v46 = vld [vmem:[#allocation56_spill] sm:$0xff] }
 0x1c6   : > { %v1355_v41 = vpop.permute.xlu1 %1354 }
 0x1c7   : > { %v1353_v21 = vpop.permute.xlu0 %1352  ;;  %v1918_v27 = vsel %vm1904_vm10, %v1877_v30, %v1355_v41  ;;  %v1715_v41 = vsel %vm1699_vm5, %v7681_v7, %v8518_v58 }
 0x1c8   : > { %1252 = vrot.lane.b32.xlu1 %v13106_v51, %s7770_s17  ;;  %v1917_v16 = vsel %vm1904_vm10, %v1876_v13, %v1353_v21  ;;  %v7682_v21 = vld [vmem:[%s7844_s8 + $0xa8] sm:$0xff]  ;;  %v1756_v24 = vsel %vm1740_vm6, %v1715_v41, %v8718_v23  ;;  %v13114_v13 = vld [vmem:[#allocation32_spill] sm:$0xff] }
 0x1c9   : > { %1250 = vrot.lane.b32.xlu0 %v13107_v53, %s7770_s17  ;;  %v1714_v37 = vsel %vm1699_vm5, %v7682_v21, %v8524_v35 }
 0x1ca   : > { %v1481_v6 = vpop.permute.xlu1 %1480  ;;  %v1755_v10 = vsel %vm1740_vm6, %v1714_v37, %v8720_v60 }
 0x1cb   : > { %v1479_v38 = vpop.permute.xlu0 %1478  ;;  %v1959_v42 = vsel %vm1945_vm11, %v1918_v27, %v1481_v6  ;;  %v9334_v6 = vld [vmem:[%s7844_s8 + $0x150] sm:$0xff]  ;;  %v13115_v27 = vld [vmem:[#allocation33_spill] sm:$0xff] }
 0x1cc   : > { %1374 = vrot.lane.b32.xlu1 %v9261_v33, %s7771_s22  ;;  %v1958_v50 = vsel %vm1945_vm11, %v1917_v16, %v1479_v38 }
 0x1cd   : > { %1372 = vrot.lane.b32.xlu0 %v9274_v34, %s7771_s22 }
 0x1ce   : > { %v1606_v1 = vpop.permute.xlu1 %1605 }
 0x1cf   : > { %v2000_v22 = vsel %vm1986_vm12, %v1959_v42, %v1606_v1  ;;  %v1604_v15 = vpop.permute.xlu0 %1603  ;;  %v13116_v42 = vld [vmem:[#allocation58_spill] sm:$0xff]  ;;  %v13117_v1 = vld [vmem:[#allocation59_spill] sm:$0xff] }
 0x1d0   : > { %v1999_v36 = vsel %vm1986_vm12, %v1958_v50, %v1604_v15  ;;  %1500 = vrot.lane.b32.xlu1 %v13110_v9, %s7773_s23 }
 0x1d1   : > { %1498 = vrot.lane.b32.xlu0 %v13111_v4, %s7773_s23  ;;  %6402 = vmatprep.mubr.msk.f32.mxu1 %vm2038_vm13, %v1999_v36 }
 0x1d2   : > { %6403 = vmatmul.mubr.msk.f32.gmra.mrb[12].mxu1 %vm2038_vm13, %v2000_v22  ;;  %v986_v62 = vpop.permute.xlu1 %985 }
 0x1d3   : > { %v984_v56 = vpop.permute.xlu0 %983  ;;  %v1797_v57 = vsel %vm1781_vm7, %v1756_v24, %v986_v62  ;;  %v1758_v62 = vsel %vm1740_vm6, %v1717_v54, %v13118_v25 }
 0x1d4   : > { %1625 = vrot.lane.b32.xlu1 %v13112_v46, %s7774_s28  ;;  %v1796_v3 = vsel %vm1781_vm7, %v1755_v10, %v984_v56  ;;  %v13119_v56 = vld [vmem:[#allocation8_spill] sm:$0xff] }
 0x1d5   : > { %1623 = vrot.lane.b32.xlu0 %v13113_v59, %s7774_s28 }
 0x1d6   : > { %v1112_v43 = vpop.permute.xlu1 %1111 }
 0x1d7   : > { %v1110_v51 = vpop.permute.xlu0 %1109  ;;  %v1838_v19 = vsel %vm1822_vm8, %v1797_v57, %v1112_v43 }
 0x1d8   : > { %1005 = vrot.lane.b32.xlu1 %v9261_v33, %s7768_s11  ;;  %v1837_v63 = vsel %vm1822_vm8, %v1796_v3, %v1110_v51  ;;  %v13121_v3 = vld [vmem:[#allocation37_spill] sm:$0xff] }
 0x1d9   : > { %1003 = vrot.lane.b32.xlu0 %v9274_v34, %s7768_s11 }
 0x1da   : > { %v1237_v53 = vpop.permute.xlu1 %1236 }
 0x1db   : > { %v1235_v29 = vpop.permute.xlu0 %1234  ;;  %v1879_v35 = vsel %vm1863_vm9, %v1838_v19, %v1237_v53 }
 0x1dc   : > { %1131 = vrot.lane.b32.xlu1 %v13110_v9, %s7769_s12  ;;  %v1878_v23 = vsel %vm1863_vm9, %v1837_v63, %v1235_v29  ;;  %v13122_v63 = vld [vmem:[#allocation60_spill] sm:$0xff] }
 0x1dd   : > { %1129 = vrot.lane.b32.xlu0 %v13111_v4, %s7769_s12  ;;  %v1716_v4 = vsel %vm1699_vm5, %v8932_v39, %v8541_v61  ;;  %v7685_v39 = vld [vmem:[%s7844_s8 + $0x170] sm:$0xff] }
 0x1de   : > { %v1359_v17 = vpop.permute.xlu1 %1358 }
 0x1df   : > { %v1357_v28 = vpop.permute.xlu0 %1356  ;;  %v1920_v60 = vsel %vm1904_vm10, %v1879_v35, %v1359_v17  ;;  %v13123_v35 = vld [vmem:[#allocation61_spill] sm:$0xff] }
 0x1e0   : > { %1256 = vrot.lane.b32.xlu1 %v13112_v46, %s7770_s17  ;;  %v1919_v55 = vsel %vm1904_vm10, %v1878_v23, %v1357_v28  ;;  %v1757_v46 = vsel %vm1740_vm6, %v1716_v4, %v13119_v56  ;;  %v7686_v28 = vld [vmem:[%s7844_s8 + $0x168] sm:$0xff]  ;;  %v7688_v4 = vld [vmem:[%s7844_s8 + $0x180] sm:$0xff] }
 0x1e1   : > { %1254 = vrot.lane.b32.xlu0 %v13113_v59, %s7770_s17 }
 0x1e2   : > { %v1485_v58 = vpop.permute.xlu1 %1484 }
 0x1e3   : > { %v1483_v26 = vpop.permute.xlu0 %1482  ;;  %v1961_v11 = vsel %vm1945_vm11, %v1920_v60, %v1485_v58  ;;  %v13120_v58 = vld [vmem:[#allocation36_spill] sm:$0xff] }
 0x1e4   : > { %1378 = vrot.lane.b32.xlu1 %v9327_v2, %s7771_s22  ;;  %v1960_v45 = vsel %vm1945_vm11, %v1919_v55, %v1483_v26 }
 0x1e5   : > { %1376 = vrot.lane.b32.xlu0 %v9334_v6, %s7771_s22 }
 0x1e6   : > { %v1610_v38 = vpop.permute.xlu1 %1609 }
 0x1e7   : > { %v2002_v30 = vsel %vm1986_vm12, %v1961_v11, %v1610_v38  ;;  %v1608_v0 = vpop.permute.xlu0 %1607 }
 0x1e8   : > { %v2001_v49 = vsel %vm1986_vm12, %v1960_v45, %v1608_v0  ;;  %1504 = vrot.lane.b32.xlu1 %v13114_v13, %s7773_s23 }
 0x1e9   : > { %1502 = vrot.lane.b32.xlu0 %v13115_v27, %s7773_s23  ;;  %6405 = vmatprep.mubr.msk.f32.mxu1 %vm2038_vm13, %v2001_v49  ;;  %v13125_v49 = vld [vmem:[#allocation64_spill] sm:$0xff] }
 0x1ea   : > { %6406 = vmatmul.mubr.msk.f32.gmra.mrb[14].mxu1 %vm2038_vm13, %v2002_v30  ;;  %v990_v12 = vpop.permute.xlu1 %989  ;;  %v13124_v30 = vld [vmem:[#allocation46_spill] sm:$0xff] }
 0x1eb   : > { %v988_v16 = vpop.permute.xlu0 %987  ;;  %v1799_v59 = vsel %vm1781_vm7, %v1758_v62, %v990_v12  ;;  %v1719_v0 = vsel %vm1699_vm5, %v8965_v14, %v13124_v30 }
 0x1ec   : > { %1629 = vrot.lane.b32.xlu1 %v13116_v42, %s7774_s28  ;;  %v1798_v31 = vsel %vm1781_vm7, %v1757_v46, %v988_v16  ;;  %v13127_v16 = vld [vmem:[#allocation11_spill] sm:$0xff] }
 0x1ed   : > { %1627 = vrot.lane.b32.xlu0 %v13117_v1, %s7774_s28 }
 0x1ee   : > { %v1116_v50 = vpop.permute.xlu1 %1115 }
 0x1ef   : > { %v1114_v22 = vpop.permute.xlu0 %1113  ;;  %v1840_v43 = vsel %vm1822_vm8, %v1799_v59, %v1116_v50 }
 0x1f0   : > { %1009 = vrot.lane.b32.xlu1 %v9327_v2, %s7768_s11  ;;  %v1839_v53 = vsel %vm1822_vm8, %v1798_v31, %v1114_v22 }
 0x1f1   : > { %1007 = vrot.lane.b32.xlu0 %v9334_v6, %s7768_s11 }
 0x1f2   : > { %v1241_v15 = vpop.permute.xlu1 %1240 }
 0x1f3   : > { %v1239_v36 = vpop.permute.xlu0 %1238  ;;  %v1881_v61 = vsel %vm1863_vm9, %v1840_v43, %v1241_v15  ;;  %v13128_v43 = vld [vmem:[#allocation41_spill] sm:$0xff] }
 0x1f4   : > { %1135 = vrot.lane.b32.xlu1 %v13114_v13, %s7769_s12  ;;  %v1880_v29 = vsel %vm1863_vm9, %v1839_v53, %v1239_v36  ;;  %v1718_v13 = vsel %vm1699_vm5, %v8972_v44, %v13125_v49 }
 0x1f5   : > { %1133 = vrot.lane.b32.xlu0 %v13115_v27, %s7769_s12  ;;  %v13126_v27 = vld [vmem:[#allocation10_spill] sm:$0xff] }
 0x1f6   : > { %v1363_v9 = vpop.permute.xlu1 %1362  ;;  %v1760_v12 = vsel %vm1740_vm6, %v1719_v0, %v13126_v27 }
 0x1f7   : > { %v1361_v40 = vpop.permute.xlu0 %1360  ;;  %v1922_v17 = vsel %vm1904_vm10, %v1881_v61, %v1363_v9  ;;  %v7687_v9 = vld [vmem:[%s7844_s8 + $0x188] sm:$0xff] }
 0x1f8   : > { %1260 = vrot.lane.b32.xlu1 %v13116_v42, %s7770_s17  ;;  %v1921_v7 = vsel %vm1904_vm10, %v1880_v29, %v1361_v40  ;;  %v1759_v42 = vsel %vm1740_vm6, %v1718_v13, %v13127_v16  ;;  %v13131_v29 = vld [vmem:[#allocation38_spill] sm:$0xff] }
 0x1f9   : > { %1258 = vrot.lane.b32.xlu0 %v13117_v1, %s7770_s17 }
 0x1fa   : > { %v1489_v20 = vpop.permute.xlu1 %1488 }
 0x1fb   : > { %v1487_v51 = vpop.permute.xlu0 %1486  ;;  %v1963_v41 = vsel %vm1945_vm11, %v1922_v17, %v1489_v20  ;;  %v9450_v17 = vld [vmem:[%s12779_s2] ss:$0 sm:$0xff] }
 0x1fc   : > { %1382 = vrot.lane.b32.xlu1 %v7685_v39, %s7771_s22  ;;  %v1962_v37 = vsel %vm1945_vm11, %v1921_v7, %v1487_v51  ;;  %v13129_v51 = vld [vmem:[#allocation42_spill] sm:$0xff] }
 0x1fd   : > { %1380 = vrot.lane.b32.xlu0 %v7686_v28, %s7771_s22 }
 0x1fe   : > { %v1614_v21 = vpop.permute.xlu1 %1613 }
 0x1ff   : > { %v2004_v24 = vsel %vm1986_vm12, %v1963_v41, %v1614_v21  ;;  %v1612_v10 = vpop.permute.xlu0 %1611 }
 0x200   : > { %v2003_v57 = vsel %vm1986_vm12, %v1962_v37, %v1612_v10  ;;  %1508 = vrot.lane.b32.xlu1 %v13120_v58, %s7773_s23 }
 0x201   : > { %1506 = vrot.lane.b32.xlu0 %v13121_v3, %s7773_s23  ;;  %6408 = vmatprep.mubr.msk.f32.mxu1 %vm2038_vm13, %v2003_v57 }
 0x202   : > { %6409 = vmatmul.mubr.msk.f32.gmra.mrb[16].mxu1 %vm2038_vm13, %v2004_v24  ;;  %v994_v19 = vpop.permute.xlu1 %993 }
 0x203   : > { %v992_v26 = vpop.permute.xlu0 %991  ;;  %v1801_v1 = vsel %vm1781_vm7, %v1760_v12, %v994_v19  ;;  %v7689_v12 = vld [vmem:[%s7844_s8 + $0x1a0] sm:$0xff] }
 0x204   : > { %1633 = vrot.lane.b32.xlu1 %v13122_v63, %s7774_s28  ;;  %v1800_v50 = vsel %vm1781_vm7, %v1759_v42, %v992_v26 }
 0x205   : > { %1631 = vrot.lane.b32.xlu0 %v13123_v35, %s7774_s28 }
 0x206   : > { %v1120_v23 = vpop.permute.xlu1 %1119 }
 0x207   : > { %v1118_v60 = vpop.permute.xlu0 %1117  ;;  %v1842_v22 = vsel %vm1822_vm8, %v1801_v1, %v1120_v23  ;;  %v13133_v23 = vld [vmem:[#allocation68_spill] sm:$0xff]  ;;  %v7690_v1 = vld [vmem:[%s7844_s8 + $0x198] sm:$0xff] }
 0x208   : > { %1013 = vrot.lane.b32.xlu1 %v7685_v39, %s7768_s11  ;;  %v1841_v36 = vsel %vm1822_vm8, %v1800_v50, %v1118_v60  ;;  %v13130_v39 = vld [vmem:[#allocation62_spill] sm:$0xff]  ;;  %v1720_v60 = vsel %vm1699_vm5, %v9026_v18, %v13133_v23 }
 0x209   : > { %1011 = vrot.lane.b32.xlu0 %v7686_v28, %s7768_s11 }
 0x20a   : > { %v1245_v55 = vpop.permute.xlu1 %1244 }
 0x20b   : > { %v1243_v11 = vpop.permute.xlu0 %1242  ;;  %v1883_v44 = vsel %vm1863_vm9, %v1842_v22, %v1245_v55  ;;  %v13134_v55 = vld [vmem:[#allocation83_spill] sm:$0xff] }
 0x20c   : > { %1139 = vrot.lane.b32.xlu1 %v13120_v58, %s7769_s12  ;;  %v1882_v40 = vsel %vm1863_vm9, %v1841_v36, %v1243_v11 }
 0x20d   : > { %1137 = vrot.lane.b32.xlu0 %v13121_v3, %s7769_s12 }
 0x20e   : > { %v1367_v38 = vpop.permute.xlu1 %1366 }
 0x20f   : > { %v1365_v45 = vpop.permute.xlu0 %1364  ;;  %v1924_v54 = vsel %vm1904_vm10, %v1883_v44, %v1367_v38  ;;  %v13135_v38 = vld [vmem:[#allocation84_spill] sm:$0xff] }
 0x210   : > { %1264 = vrot.lane.b32.xlu1 %v13122_v63, %s7770_s17  ;;  %v1923_v25 = vsel %vm1904_vm10, %v1882_v40, %v1365_v45  ;;  %v13132_v63 = vld [vmem:[#allocation66_spill] sm:$0xff]  ;;  %v1761_v45 = vsel %vm1740_vm6, %v1720_v60, %v13135_v38  ;;  %v13136_v40 = vld [vmem:[#allocation44_spill] sm:$0xff]  ;;  %v7691_v60 = vld [vmem:[%s7844_s8 + $0x1b8] sm:$0xff] }
 0x211   : > { %1262 = vrot.lane.b32.xlu0 %v13123_v35, %s7770_s17  ;;  %v1721_v35 = vsel %vm1699_vm5, %v9019_v47, %v13132_v63 }
 0x212   : > { %v1493_v14 = vpop.permute.xlu1 %1492  ;;  %v1762_v11 = vsel %vm1740_vm6, %v1721_v35, %v13134_v55 }
 0x213   : > { %v1491_v15 = vpop.permute.xlu0 %1490  ;;  %v1965_v62 = vsel %vm1945_vm11, %v1924_v54, %v1493_v14  ;;  %v13137_v54 = vld [vmem:[#allocation45_spill] sm:$0xff] }
 0x214   : > { %1386 = vrot.lane.b32.xlu1 %v7687_v9, %s7771_s22  ;;  %v1964_v46 = vsel %vm1945_vm11, %v1923_v25, %v1491_v15 }
 0x215   : > { %1384 = vrot.lane.b32.xlu0 %v7688_v4, %s7771_s22 }
 0x216   : > { %v1618_v56 = vpop.permute.xlu1 %1617 }
 0x217   : > { %v2006_v59 = vsel %vm1986_vm12, %v1965_v62, %v1618_v56  ;;  %v1616_v20 = vpop.permute.xlu0 %1615  ;;  %v13138_v62 = vld [vmem:[#allocation39_spill] sm:$0xff]  ;;  %v13139_v56 = vld [vmem:[#allocation40_spill] sm:$0xff] }
 0x218   : > { %v2005_v31 = vsel %vm1986_vm12, %v1964_v46, %v1616_v20  ;;  %1512 = vrot.lane.b32.xlu1 %v13128_v43, %s7773_s23 }
 0x219   : > { %1510 = vrot.lane.b32.xlu0 %v13129_v51, %s7773_s23  ;;  %6411 = vmatprep.mubr.msk.f32.mxu1 %vm2038_vm13, %v2005_v31 }
 0x21a   : > { %6412 = vmatmul.mubr.msk.f32.gmra.mrb[18].mxu1 %vm2038_vm13, %v2006_v59  ;;  %v998_v53 = vpop.permute.xlu1 %997 }
 0x21b   : > { %v996_v61 = vpop.permute.xlu0 %995  ;;  %v1803_v30 = vsel %vm1781_vm7, %v1762_v11, %v998_v53 }
 0x21c   : > { %1637 = vrot.lane.b32.xlu1 %v13130_v39, %s7774_s28  ;;  %v1802_v0 = vsel %vm1781_vm7, %v1761_v45, %v996_v61  ;;  %v7692_v45 = vld [vmem:[%s7844_s8 + $0x1b0] sm:$0xff] }
 0x21d   : > { %1635 = vrot.lane.b32.xlu0 %v13131_v29, %s7774_s28 }
 0x21e   : > { %v1124_v28 = vpop.permute.xlu1 %1123 }
 0x21f   : > { %v1122_v7 = vpop.permute.xlu0 %1121  ;;  %v6386_v41 = vpop.f32.mrb[0].mxu1  ;;  %v1844_v49 = vsel %vm1822_vm8, %v1803_v30, %v1124_v28 }
 0x220   : > { %v2235_v21 = vadd.f32 %v6386_v41, %v9450_v17  ;;  %1017 = vrot.lane.b32.xlu1 %v7687_v9, %s7768_s11  ;;  %v2229_v37 = vpop.f32.mrb[1].mxu1  ;;  %v1843_v27 = vsel %vm1822_vm8, %v1802_v0, %v1122_v7  ;;  %v13140_v41 = vld [vmem:[#allocation69_spill] sm:$0xff] }
 0x221   : > { %v2230_v24 = vadd.f32 %v9450_v17, %v2229_v37  ;;  %1015 = vrot.lane.b32.xlu0 %v7688_v4, %s7768_s11  ;;  %v13141_v37 = vld [vmem:[#allocation70_spill] sm:$0xff] }
 0x222   : > { %v2429_v10 = vmax.f32 %v2235_v21, 0.0  ;;  %v1249_v57 = vpop.permute.xlu1 %1248  ;;  %v1723_v21 = vsel %vm1699_vm5, %v9073_v48, %v13140_v41  ;;  %v3751_v41 = vld [vmem:[%s12780_s3 + $0x10] sm:$0xff] }
 0x223   : > { %v2428_v58 = vmax.f32 %v2230_v24, 0.0  ;;  %v1247_v3 = vpop.permute.xlu0 %1246  ;;  %v1885_v18 = vsel %vm1863_vm9, %v1844_v49, %v1249_v57  ;;  %v1722_v24 = vsel %vm1699_vm5, %v9080_v32, %v13141_v37  ;;  %v13148_v37 = vld [vmem:[#allocation71_spill] sm:$0xff] }
 0x224   : > { %2470 = vst.msk [vmem:[#allocation2 + $0x9] sm:$0xff] %vm2468_vm15, %v2429_v10  ;;  %1143 = vrot.lane.b32.xlu1 %v13128_v43, %s7769_s12  ;;  %v1884_v16 = vsel %vm1863_vm9, %v1843_v27, %v1247_v3  ;;  %v13142_v10 = vld [vmem:[#allocation85_spill] sm:$0xff] }
 0x225   : > { %2516 = vst.msk [vmem:[#allocation2 + $0x10] sm:$0x3] %vm2515_vm2, %v12906_v52  ;;  %1141 = vrot.lane.b32.xlu0 %v13129_v51, %s7769_s12  ;;  %v1764_v57 = vsel %vm1740_vm6, %v1723_v21, %v13142_v10  ;;  %v3752_v21 = vld [vmem:[%s12780_s3 + $0x18] sm:$0xff] }
 0x226   : > { %2469 = vst.msk [vmem:[#allocation2 + $0x1] sm:$0xff] %vm2468_vm15, %v2428_v58  ;;  %v1371_v19 = vpop.permute.xlu1 %1370  ;;  %v13143_v58 = vld [vmem:[#allocation86_spill] sm:$0xff]  ;;  %v6584_v10 = vpack.c.bf16 %v3752_v21, %v3751_v41  ;;  %v3759_v41 = vld [vmem:[%s12780_s3 + $0x50] sm:$0xff]  ;;  %v3760_v21 = vld [vmem:[%s12780_s3 + $0x58] sm:$0xff] }
 0x227   : > { %2513 = vst.msk [vmem:[#allocation2] sm:$0xff] %vm2468_vm15, %v12906_v52  ;;  %2514 = vst.msk [vmem:[#allocation2 + $0x8] sm:$0xff] %vm2468_vm15, %v12906_v52  ;;  %v1369_v26 = vpop.permute.xlu0 %1368  ;;  %v1926_v42 = vsel %vm1904_vm10, %v1885_v18, %v1371_v19  ;;  %v1763_v3 = vsel %vm1740_vm6, %v1722_v24, %v13143_v58  ;;  %v1725_v24 = vsel %vm1699_vm5, %v9207_v5, %v13148_v37 }
 0x228   : > { %1268 = vrot.lane.b32.xlu1 %v13130_v39, %s7770_s17  ;;  %v1925_v14 = vsel %vm1904_vm10, %v1884_v16, %v1369_v26  ;;  %v6596_v37 = vpack.c.bf16 %v3760_v21, %v3759_v41 }
 0x229   : > { %1266 = vrot.lane.b32.xlu0 %v13131_v29, %s7770_s17 }
 0x22a   : > { %v1497_v47 = vpop.permute.xlu1 %1496 }
 0x22b   : > { %v1495_v13 = vpop.permute.xlu0 %1494  ;;  %v1967_v50 = vsel %vm1945_vm11, %v1926_v42, %v1497_v47 }
 0x22c   : > { %1390 = vrot.lane.b32.xlu1 %v7689_v12, %s7771_s22  ;;  %v1966_v15 = vsel %vm1945_vm11, %v1925_v14, %v1495_v13  ;;  %v13144_v14 = vld [vmem:[#allocation47_spill] sm:$0xff] }
 0x22d   : > { %1388 = vrot.lane.b32.xlu0 %v7690_v1, %s7771_s22 }
 0x22e   : > { %v1622_v22 = vpop.permute.xlu1 %1621 }
 0x22f   : > { %v2008_v36 = vsel %vm1986_vm12, %v1967_v50, %v1622_v22  ;;  %v1620_v44 = vpop.permute.xlu0 %1619  ;;  %v13145_v22 = vld [vmem:[#allocation48_spill] sm:$0xff] }
 0x230   : > { %v2007_v9 = vsel %vm1986_vm12, %v1966_v15, %v1620_v44  ;;  %1516 = vrot.lane.b32.xlu1 %v13136_v40, %s7773_s23  ;;  %v13146_v44 = vld [vmem:[#allocation43_spill] sm:$0xff] }
 0x231   : > { %1514 = vrot.lane.b32.xlu0 %v13137_v54, %s7773_s23  ;;  %6414 = vmatprep.mubr.msk.f32.mxu1 %vm2038_vm13, %v2007_v9  ;;  %v13147_v9 = vld [vmem:[#allocation63_spill] sm:$0xff] }
 0x232   : > { %6415 = vmatmul.mubr.msk.f32.gmra.mrb[20].mxu1 %vm2038_vm13, %v2008_v36  ;;  %v1002_v4 = vpop.permute.xlu1 %1001 }
 0x233   : > { %v1000_v25 = vpop.permute.xlu0 %999  ;;  %v1805_v19 = vsel %vm1781_vm7, %v1764_v57, %v1002_v4  ;;  %v13149_v57 = vld [vmem:[#allocation72_spill] sm:$0xff] }
 0x234   : > { %1641 = vrot.lane.b32.xlu1 %v13138_v62, %s7774_s28  ;;  %v1804_v26 = vsel %vm1781_vm7, %v1763_v3, %v1000_v25  ;;  %v1724_v58 = vsel %vm1699_vm5, %v9214_v8, %v13149_v57  ;;  %v13150_v3 = vld [vmem:[#allocation87_spill] sm:$0xff] }
 0x235   : > { %1639 = vrot.lane.b32.xlu0 %v13139_v56, %s7774_s28 }
 0x236   : > { %v1128_v46 = vpop.permute.xlu1 %1127 }
 0x237   : > { %v1126_v59 = vpop.permute.xlu0 %1125  ;;  %v1846_v63 = vsel %vm1822_vm8, %v1805_v19, %v1128_v46  ;;  %v1766_v19 = vsel %vm1740_vm6, %v1725_v24, %v13150_v3 }
 0x238   : > { %v6389_v20 = vpop.f32.mrb[2].mxu1  ;;  %1021 = vrot.lane.b32.xlu1 %v7689_v12, %s7768_s11  ;;  %v1845_v32 = vsel %vm1822_vm8, %v1804_v26, %v1126_v59 }
 0x239   : > { %v2245_v31 = vadd.f32 %v6389_v20, %v9450_v17  ;;  %v2239_v43 = vpop.f32.mrb[3].mxu1  ;;  %1019 = vrot.lane.b32.xlu0 %v7690_v1, %s7768_s11 }
 0x23a   : > { %v2240_v51 = vadd.f32 %v9450_v17, %v2239_v43  ;;  %v1253_v53 = vpop.permute.xlu1 %1252  ;;  %v3749_v43 = vld [vmem:[%s12780_s3] sm:$0xff] }
 0x23b   : > { %v2431_v61 = vmax.f32 %v2245_v31, 0.0  ;;  %v1251_v39 = vpop.permute.xlu0 %1250  ;;  %v1887_v23 = vsel %vm1863_vm9, %v1846_v63, %v1253_v53 }
 0x23c   : > { %v2430_v29 = vmax.f32 %v2240_v51, 0.0  ;;  %1147 = vrot.lane.b32.xlu1 %v13136_v40, %s7769_s12  ;;  %v1886_v55 = vsel %vm1863_vm9, %v1845_v32, %v1251_v39  ;;  %v3750_v51 = vld [vmem:[%s12780_s3 + $0x8] sm:$0xff] }
 0x23d   : > { %2472 = vst.msk [vmem:[#allocation2 + $0x21] sm:$0xff] %vm2468_vm15, %v2431_v61  ;;  %1145 = vrot.lane.b32.xlu0 %v13137_v54, %s7769_s12  ;;  %v6581_v39 = vpack.c.bf16 %v3750_v51, %v3749_v43  ;;  %v13154_v43 = vld [vmem:[#allocation65_spill] sm:$0xff] }
 0x23e   : > { %2519 = vst.msk [vmem:[#allocation2 + $0x28] sm:$0x3] %vm2515_vm2, %v12906_v52  ;;  %v1375_v28 = vpop.permute.xlu1 %1374 }
 0x23f   : > { %2471 = vst.msk [vmem:[#allocation2 + $0x19] sm:$0xff] %vm2468_vm15, %v2430_v29  ;;  %v1373_v7 = vpop.permute.xlu0 %1372  ;;  %v1928_v11 = vsel %vm1904_vm10, %v1887_v23, %v1375_v28  ;;  %v3753_v23 = vld [vmem:[%s12780_s3 + $0x20] sm:$0xff] }
 0x240   : > { %2517 = vst.msk [vmem:[#allocation2 + $0x18] sm:$0xff] %vm2468_vm15, %v12906_v52  ;;  %2518 = vst.msk [vmem:[#allocation2 + $0x20] sm:$0xff] %vm2468_vm15, %v12906_v52  ;;  %1272 = vrot.lane.b32.xlu1 %v13138_v62, %s7770_s17  ;;  %v1927_v30 = vsel %vm1904_vm10, %v1886_v55, %v1373_v7  ;;  %v12908_v7 = vmov 0.0|0.0  }
 0x241   : > { %1270 = vrot.lane.b32.xlu0 %v13139_v56, %s7770_s17  ;;  %6580 = vmatprep.subr.bf16.mxu1 %v12908_v7 }
 0x242   : > { %v1501_v48 = vpop.permute.xlu1 %1500  ;;  %6582 = vmatpush1.bf16.msra.mxu1 %v6581_v39  ;;  %6636 = vmatprep.subr.bf16.mxu0 %v12908_v7  ;;  %v13155_v39 = vld [vmem:[#allocation67_spill] sm:$0xff] }
 0x243   : > { %v1499_v35 = vpop.permute.xlu0 %1498  ;;  %v1969_v47 = vsel %vm1945_vm11, %v1928_v11, %v1501_v48  ;;  %6583 = vmatprep.subr.bf16.mxu1 %v12908_v7  ;;  %v13151_v48 = vld [vmem:[#allocation88_spill] sm:$0xff] }
 0x244   : > { %1394 = vrot.lane.b32.xlu1 %v7691_v60, %s7771_s22  ;;  %v1968_v27 = vsel %vm1945_vm11, %v1927_v30, %v1499_v35  ;;  %v1765_v5 = vsel %vm1740_vm6, %v1724_v58, %v13151_v48 }
 0x245   : > { %v6392_v38 = vpop.f32.mrb[4].mxu1  ;;  %1392 = vrot.lane.b32.xlu0 %v7692_v45, %s7771_s22 }
 0x246   : > { %v2255_v0 = vadd.f32 %v6392_v38, %v9450_v17  ;;  %v2249_v49 = vpop.f32.mrb[5].mxu1  ;;  %v1626_v13 = vpop.permute.xlu1 %1625  ;;  %v7693_v38 = vld [vmem:[%s7844_s8 + $0x1d0] sm:$0xff]  ;;  %6585 = vmatpush1.bf16.msra.mxu1 %v6584_v10 }
 0x247   : > { %v2250_v18 = vadd.f32 %v9450_v17, %v2249_v49  ;;  %v2010_v12 = vsel %vm1986_vm12, %v1969_v47, %v1626_v13  ;;  %v1624_v16 = vpop.permute.xlu0 %1623  ;;  %v7694_v49 = vld [vmem:[%s7844_s8 + $0x1c8] sm:$0xff]  ;;  %6586 = vmatprep.subr.bf16.mxu1 %v12908_v7 }
 0x248   : > { %v2433_v42 = vmax.f32 %v2255_v0, 0.0  ;;  %v2009_v1 = vsel %vm1986_vm12, %v1968_v27, %v1624_v16  ;;  %1520 = vrot.lane.b32.xlu1 %v13144_v14, %s7773_s23 }
 0x249   : > { %v2432_v50 = vmax.f32 %v2250_v18, 0.0  ;;  %1518 = vrot.lane.b32.xlu0 %v13145_v22, %s7773_s23  ;;  %6417 = vmatprep.mubr.msk.f32.mxu1 %vm2038_vm13, %v2009_v1 }
 0x24a   : > { %2474 = vst.msk [vmem:[#allocation2 + $0x39] sm:$0xff] %vm2468_vm15, %v2433_v42  ;;  %6418 = vmatmul.mubr.msk.f32.gmra.mrb[22].mxu1 %vm2038_vm13, %v2010_v12  ;;  %v1006_v15 = vpop.permute.xlu1 %1005 }
 0x24b   : > { %2473 = vst.msk [vmem:[#allocation2 + $0x31] sm:$0xff] %vm2468_vm15, %v2432_v50  ;;  %v1004_v36 = vpop.permute.xlu0 %1003  ;;  %v1807_v26 = vsel %vm1781_vm7, %v1766_v19, %v1006_v15  ;;  %v3756_v15 = vld [vmem:[%s12780_s3 + $0x38] sm:$0xff] }
 0x24c   : > { %1645 = vrot.lane.b32.xlu1 %v13146_v44, %s7774_s28  ;;  %v1806_v35 = vsel %vm1781_vm7, %v1765_v5, %v1004_v36 }
 0x24d   : > { %1643 = vrot.lane.b32.xlu0 %v13147_v9, %s7774_s28 }
 0x24e   : > { %v1132_v40 = vpop.permute.xlu1 %1131 }
 0x24f   : > { %v1130_v54 = vpop.permute.xlu0 %1129  ;;  %v1848_v8 = vsel %vm1822_vm8, %v1807_v26, %v1132_v40  ;;  %v3761_v26 = vld [vmem:[%s12780_s3 + $0x60] sm:$0xff] }
 0x250   : > { %1025 = vrot.lane.b32.xlu1 %v7691_v60, %s7768_s11  ;;  %v3754_v60 = vld [vmem:[%s12780_s3 + $0x28] sm:$0xff]  ;;  %v1847_v55 = vsel %vm1822_vm8, %v1806_v35, %v1130_v54 }
 0x251   : > { %1023 = vrot.lane.b32.xlu0 %v7692_v45, %s7768_s11  ;;  %v9570_v4 = vld [vmem:[#allocation2 + $0x40] sm:$0x3]  ;;  %v6587_v45 = vpack.c.bf16 %v3754_v60, %v3753_v23  ;;  %v9700_v35 = vld [vmem:[%s7844_s8 + $0x1e8] sm:$0xff] }
 0x252   : > { %v1257_v25 = vpop.permute.xlu1 %1256  ;;  %v9572_v62 = vld [vmem:[#allocation2 + $0x30] sm:$0xff]  ;;  %v9574_v56 = vld [vmem:[#allocation2 + $0x38] sm:$0xff]  ;;  %v2852_v46 = vrot.slane %v9570_v4, 2 }
 0x253   : > { %v1255_v59 = vpop.permute.xlu0 %1254  ;;  %v2849_v20 = vrot.slane %v9572_v62, 2  ;;  %v2850_v31 = vrot.slane %v9574_v56, 2  ;;  %v1889_v11 = vsel %vm1863_vm9, %v1848_v8, %v1257_v25  ;;  %6588 = vmatpush1.bf16.msra.mxu1 %v6587_v45  ;;  %v13153_v25 = vld [vmem:[#allocation50_spill] sm:$0xff]  ;;  %v9703_v8 = vld [vmem:[%s7844_s8 + $0x1f0] sm:$0x3]  ;;  %v1077_v45 = vrot.slane %v9700_v35, 1 }
 0x254   : > { %1151 = vrot.lane.b32.xlu1 %v13144_v14, %s7769_s12  ;;  %v1888_v30 = vsel %vm1863_vm9, %v1847_v55, %v1255_v59  ;;  %6589 = vmatprep.subr.bf16.mxu1 %v12908_v7 }
 0x255   : > { %1149 = vrot.lane.b32.xlu0 %v13145_v22, %s7769_s12  ;;  %v9590_v53 = vsel %vm732_vm1, %v2849_v20, %v2850_v31  ;;  %v9593_v61 = vsel %vm732_vm1, %v2850_v31, %v2852_v46  ;;  %v3755_v22 = vld [vmem:[%s12780_s3 + $0x30] sm:$0xff]  ;;  %v3757_v20 = vld [vmem:[%s12780_s3 + $0x40] sm:$0xff]  ;;  %v3758_v31 = vld [vmem:[%s12780_s3 + $0x48] sm:$0xff] }
 0x256   : > { %6452 = vmatprep.mubr.msk.f32.mxu0 %vm2468_vm15, %v9590_v53  ;;  %v1379_v29 = vpop.permute.xlu1 %1378  ;;  %v6590_v40 = vpack.c.bf16 %v3756_v15, %v3755_v22  ;;  %v6593_v51 = vpack.c.bf16 %v3758_v31, %v3757_v20 }
 0x257   : > { %6453 = vmatmul.mubr.msk.f32.vlgmr.msra.gmra.mrb[0].mxu0 %vm2468_vm15, %v9593_v61  ;;  %v1377_v28 = vpop.permute.xlu0 %1376  ;;  %v1930_v47 = vsel %vm1904_vm10, %v1889_v11, %v1379_v29  ;;  %v9717_v11 = vld [vmem:[%s7844_s8 + $0x1e0] sm:$0xff] }
 0x258   : > { %1276 = vrot.lane.b32.xlu1 %v13146_v44, %s7770_s17  ;;  %v1929_v13 = vsel %vm1904_vm10, %v1888_v30, %v1377_v28  ;;  %6591 = vmatpush1.bf16.msra.mxu1 %v6590_v40  ;;  %v1079_v30 = vrot.slane %v9703_v8, 1  ;;  %v3766_v40 = vld [vmem:[%s12780_s3 + $0x88] sm:$0xff]  ;;  %v1201_v21 = vrot.slane %v9717_v11, 2 }
 0x259   : > { %1274 = vrot.lane.b32.xlu0 %v13147_v9, %s7770_s17  ;;  %v13152_v9 = vld [vmem:[#allocation49_spill] sm:$0xff]  ;;  %6592 = vmatprep.subr.bf16.mxu1 %v12908_v7 }
 0x25a   : > { %v1505_v63 = vpop.permute.xlu1 %1504 }
 0x25b   : > { %v1503_v32 = vpop.permute.xlu0 %1502  ;;  %v1971_v27 = vsel %vm1945_vm11, %v1930_v47, %v1505_v63  ;;  %v3762_v63 = vld [vmem:[%s12780_s3 + $0x68] sm:$0xff]  ;;  %v3763_v47 = vld [vmem:[%s12780_s3 + $0x70] sm:$0xff] }
 0x25c   : > { %1398 = vrot.lane.b32.xlu1 %v7693_v38, %s7771_s22  ;;  %v1970_v42 = vsel %vm1945_vm11, %v1929_v13, %v1503_v32  ;;  %6594 = vmatpush1.bf16.msra.mxu1 %v6593_v51  ;;  %v6599_v60 = vpack.c.bf16 %v3762_v63, %v3761_v26  ;;  %v3767_v26 = vld [vmem:[%s12780_s3 + $0x90] sm:$0xff]  ;;  %v3768_v63 = vld [vmem:[%s12780_s3 + $0x98] sm:$0xff] }
 0x25d   : > { %v6395_v0 = vpop.f32.mrb[6].mxu1  ;;  %1396 = vrot.lane.b32.xlu0 %v7694_v49, %s7771_s22  ;;  %6595 = vmatprep.subr.bf16.mxu1 %v12908_v7 }
 0x25e   : > { %v2265_v18 = vadd.f32 %v6395_v0, %v9450_v17  ;;  %v2259_v12 = vpop.f32.mrb[7].mxu1  ;;  %v1630_v16 = vpop.permute.xlu1 %1629  ;;  %v3764_v0 = vld [vmem:[%s12780_s3 + $0x78] sm:$0xff] }
 0x25f   : > { %v2260_v1 = vadd.f32 %v9450_v17, %v2259_v12  ;;  %v2012_v14 = vsel %vm1986_vm12, %v1971_v27, %v1630_v16  ;;  %v1628_v50 = vpop.permute.xlu0 %1627  ;;  %v6602_v27 = vpack.c.bf16 %v3764_v0, %v3763_v47  ;;  %v13158_v16 = vld [vmem:[#allocation89_spill] sm:$0xff] }
 0x260   : > { %v2435_v36 = vmax.f32 %v2265_v18, 0.0  ;;  %v2011_v44 = vsel %vm1986_vm12, %v1970_v42, %v1628_v50  ;;  %1524 = vrot.lane.b32.xlu1 %v13152_v9, %s7773_s23  ;;  %6597 = vmatpush1.bf16.msra.mxu1 %v6596_v37  ;;  %v13157_v18 = vld [vmem:[#allocation74_spill] sm:$0xff] }
 0x261   : > { %v2434_v54 = vmax.f32 %v2260_v1, 0.0  ;;  %1522 = vrot.lane.b32.xlu0 %v13153_v25, %s7773_s23  ;;  %6420 = vmatprep.mubr.msk.f32.mxu1 %vm2038_vm13, %v2011_v44  ;;  %v1726_v12 = vsel %vm1699_vm5, %v9274_v34, %v13157_v18  ;;  %v1076_v1 = vrot.slane %v9717_v11, 1  ;;  %v9749_v44 = vsel %vm511_vm0, %v1077_v45, %v1079_v30 }
 0x262   : > { %2476 = vst.msk [vmem:[#allocation2 + $0x51] sm:$0xff] %vm2468_vm15, %v2435_v36  ;;  %6421 = vmatmul.mubr.msk.f32.gmra.mrb[24].mxu1 %vm2038_vm13, %v2012_v14  ;;  %v1010_v46 = vpop.permute.xlu1 %1009  ;;  %6598 = vmatprep.subr.bf16.mxu1 %v12908_v7 }
 0x263   : > { %2475 = vst.msk [vmem:[#allocation2 + $0x49] sm:$0xff] %vm2468_vm15, %v2434_v54  ;;  %v1008_v59 = vpop.permute.xlu0 %1007  ;;  %v1078_v51 = vsel %vm511_vm0, %v1076_v1, %v1077_v45 }
 0x264   : > { %1649 = vrot.lane.b32.xlu1 %v13154_v43, %s7774_s28  ;;  %6600 = vmatpush1.bf16.msra.mxu1 %v6599_v60 }
 0x265   : > { %1647 = vrot.lane.b32.xlu0 %v13155_v39, %s7774_s28  ;;  %6601 = vmatprep.subr.bf16.mxu1 %v12908_v7 }
 0x266   : > { %v1136_v29 = vpop.permute.xlu1 %1135 }
 0x267   : > { %v1134_v28 = vpop.permute.xlu0 %1133 }
 0x268   : > { %1029 = vrot.lane.b32.xlu1 %v7693_v38, %s7768_s11  ;;  %6603 = vmatpush1.bf16.msra.mxu1 %v6602_v27 }
 0x269   : > { %1027 = vrot.lane.b32.xlu0 %v7694_v49, %s7768_s11  ;;  %v9681_v24 = vld [vmem:[#allocation2 + $0x58] sm:$0x3]  ;;  %6604 = vmatprep.subr.bf16.mxu1 %v12908_v7 }
 0x26a   : > { %v1261_v10 = vpop.permute.xlu1 %1260  ;;  %v9684_v57 = vld [vmem:[#allocation2 + $0x48] sm:$0xff]  ;;  %v9686_v58 = vld [vmem:[#allocation2 + $0x50] sm:$0xff]  ;;  %v2857_v3 = vrot.slane %v9681_v24, 2  ;;  %v13156_v49 = vld [vmem:[#allocation73_spill] sm:$0xff] }
 0x26b   : > { %v1259_v19 = vpop.permute.xlu0 %1258  ;;  %v2854_v48 = vrot.slane %v9684_v57, 2  ;;  %v2855_v5 = vrot.slane %v9686_v58, 2  ;;  %v1727_v13 = vsel %vm1699_vm5, %v9261_v33, %v13156_v49  ;;  %v13159_v33 = vld [vmem:[#allocation90_spill] sm:$0xff] }
 0x26c   : > { %1155 = vrot.lane.b32.xlu1 %v13152_v9, %s7769_s12  ;;  %v1768_v42 = vsel %vm1740_vm6, %v1727_v13, %v13158_v16  ;;  %v1767_v14 = vsel %vm1740_vm6, %v1726_v12, %v13159_v33  ;;  %v3765_v9 = vld [vmem:[%s12780_s3 + $0x80] sm:$0xff]  ;;  %v3770_v13 = vld [vmem:[%s12780_s3 + $0xa8] sm:$0xff]  ;;  %v3771_v16 = vld [vmem:[%s12780_s3 + $0xb0] sm:$0xff] }
 0x26d   : > { %1153 = vrot.lane.b32.xlu0 %v13153_v25, %s7769_s12  ;;  %v9708_v32 = vsel %vm732_vm1, %v2854_v48, %v2855_v5  ;;  %v9711_v23 = vsel %vm732_vm1, %v2855_v5, %v2857_v3  ;;  %v1809_v50 = vsel %vm1781_vm7, %v1768_v42, %v1010_v46  ;;  %v1808_v15 = vsel %vm1781_vm7, %v1767_v14, %v1008_v59  ;;  %v3769_v49 = vld [vmem:[%s12780_s3 + $0xa0] sm:$0xff]  ;;  %v3772_v42 = vld [vmem:[%s12780_s3 + $0xb8] sm:$0xff] }
 0x26e   : > { %6455 = vmatprep.mubr.msk.f32.mxu0 %vm2468_vm15, %v9708_v32  ;;  %v1383_v55 = vpop.permute.xlu1 %1382  ;;  %v1850_v34 = vsel %vm1822_vm8, %v1809_v50, %v1136_v29  ;;  %v1849_v54 = vsel %vm1822_vm8, %v1808_v15, %v1134_v28  ;;  %v1202_v46 = vrot.slane %v9700_v35, 2  ;;  %v6605_v59 = vpack.c.bf16 %v3766_v40, %v3765_v9  ;;  %v9817_v14 = vld [vmem:[%s7844_s8 + $0x200] sm:$0xff]  ;;  %v9831_v40 = vld [vmem:[%s7844_s8 + $0x208] sm:$0x3] }
 0x26f   : > { %6456 = vmatmul.mubr.msk.f32.gmra.mrb[2].mxu0 %vm2468_vm15, %v9711_v23  ;;  %v1381_v38 = vpop.permute.xlu0 %1380  ;;  %v1891_v25 = vsel %vm1863_vm9, %v1850_v34, %v1261_v10  ;;  %v1890_v20 = vsel %vm1863_vm9, %v1849_v54, %v1259_v19  ;;  %v6611_v27 = vpack.c.bf16 %v3770_v13, %v3769_v49  ;;  %v6614_v1 = vpack.c.bf16 %v3772_v42, %v3771_v16  ;;  %v3773_v54 = vld [vmem:[%s12780_s3 + $0xc0] sm:$0xff]  ;;  %v3778_v16 = vld [vmem:[%s12780_s3 + $0xe8] sm:$0xff] }
 0x270   : > { %1280 = vrot.lane.b32.xlu1 %v13154_v43, %s7770_s17  ;;  %v1932_v31 = vsel %vm1904_vm10, %v1891_v25, %v1383_v55  ;;  %v1931_v29 = vsel %vm1904_vm10, %v1890_v20, %v1381_v38  ;;  %6606 = vmatpush1.bf16.msra.mxu1 %v6605_v59  ;;  %v6608_v55 = vpack.c.bf16 %v3768_v63, %v3767_v26  ;;  %v3774_v25 = vld [vmem:[%s12780_s3 + $0xc8] sm:$0xff]  ;;  %v9874_v63 = vld [vmem:[#allocation2] sm:$0xff] }
 0x271   : > { %1278 = vrot.lane.b32.xlu0 %v13155_v39, %s7770_s17  ;;  %v1204_v39 = vrot.slane %v9703_v8, 2  ;;  %v1203_v47 = vsel %vm732_vm1, %v1201_v21, %v1202_v46  ;;  %6607 = vmatprep.subr.bf16.mxu1 %v12908_v7  ;;  %v6617_v20 = vpack.c.bf16 %v3774_v25, %v3773_v54 }
 0x272   : > { %v1509_v22 = vpop.permute.xlu1 %1508 }
 0x273   : > { %v1507_v36 = vpop.permute.xlu0 %1506  ;;  %v1973_v28 = vsel %vm1945_vm11, %v1932_v31, %v1509_v22  ;;  %v1205_v45 = vsel %vm732_vm1, %v1202_v46, %v1204_v39  ;;  %v1452_v39 = vrot.slane %v9831_v40, 1 }
 0x274   : > { %1402 = vrot.lane.b32.xlu1 %v9700_v35, %s7771_s22  ;;  %v1972_v3 = vsel %vm1945_vm11, %v1931_v29, %v1507_v36  ;;  %6609 = vmatpush1.bf16.msra.mxu1 %v6608_v55  ;;  %v9826_v36 = vld [vmem:[%s7844_s8 + $0x1f8] sm:$0xff]  ;;  %v3775_v29 = vld [vmem:[%s12780_s3 + $0xd0] sm:$0xff] }
 0x275   : > { %v6398_v43 = vpop.f32.mrb[8].mxu1  ;;  %1400 = vrot.lane.b32.xlu0 %v9717_v11, %s7771_s22  ;;  %6610 = vmatprep.subr.bf16.mxu1 %v12908_v7  ;;  %v1574_v13 = vrot.slane %v9826_v36, 2 }
 0x276   : > { %v2275_v41 = vadd.f32 %v6398_v43, %v9450_v17  ;;  %v2269_v37 = vpop.f32.mrb[9].mxu1  ;;  %v1634_v10 = vpop.permute.xlu1 %1633  ;;  %v1450_v43 = vrot.slane %v9817_v14, 1 }
 0x277   : > { %v2270_v19 = vadd.f32 %v9450_v17, %v2269_v37  ;;  %v2014_v48 = vsel %vm1986_vm12, %v1973_v28, %v1634_v10  ;;  %v1632_v5 = vpop.permute.xlu0 %1631  ;;  %v3776_v28 = vld [vmem:[%s12780_s3 + $0xd8] sm:$0xff]  ;;  %v13161_v37 = vld [vmem:[#allocation75_spill] sm:$0xff] }
 0x278   : > { %v2437_v8 = vmax.f32 %v2275_v41, 0.0  ;;  %v2013_v60 = vsel %vm1986_vm12, %v1972_v3, %v1632_v5  ;;  %1528 = vrot.lane.b32.xlu1 %v9749_v44, %s7773_s23  ;;  %6612 = vmatpush1.bf16.msra.mxu1 %v6611_v27  ;;  %v13160_v41 = vld [vmem:[#allocation4_spill] sm:$0xff]  ;;  %v1728_v10 = vsel %vm1699_vm5, %v9334_v6, %v13161_v37  ;;  %v6620_v3 = vpack.c.bf16 %v3776_v28, %v3775_v29  ;;  %v13163_v5 = vld [vmem:[#allocation13_spill] sm:$0xff] }
 0x279   : > { %v2436_v38 = vmax.f32 %v2270_v19, 0.0  ;;  %1526 = vrot.lane.b32.xlu0 %v1078_v51, %s7773_s23  ;;  %6423 = vmatprep.mubr.msk.f32.mxu1 %vm2038_vm13, %v2013_v60  ;;  %v1729_v21 = vsel %vm1699_vm5, %v9327_v2, %v13160_v41  ;;  %v13162_v19 = vld [vmem:[#allocation12_spill] sm:$0xff]  ;;  %v1769_v26 = vsel %vm1740_vm6, %v1728_v10, %v13163_v5  ;;  %v1575_v6 = vrot.slane %v9817_v14, 2  ;;  %v3780_v41 = vld [vmem:[%s12780_s3 + $0xf8] sm:$0xff] }
 0x27a   : > { %2478 = vst.msk [vmem:[#allocation2 + $0x69] sm:$0xff] %vm2468_vm15, %v2437_v8  ;;  %6424 = vmatmul.mubr.msk.f32.gmra.mrb[26].mxu1 %vm2038_vm13, %v2014_v48  ;;  %v1014_v30 = vpop.permute.xlu1 %1013  ;;  %6613 = vmatprep.subr.bf16.mxu1 %v12908_v7  ;;  %v1770_v48 = vsel %vm1740_vm6, %v1729_v21, %v13162_v19  ;;  %v1453_v60 = vsel %vm511_vm0, %v1450_v43, %v1452_v39  ;;  %v1577_v27 = vrot.slane %v9831_v40, 2 }
 0x27b   : > { %2477 = vst.msk [vmem:[#allocation2 + $0x61] sm:$0xff] %vm2468_vm15, %v2436_v38  ;;  %v9793_v0 = vpop.permute.xlu0 %1011  ;;  %v1811_v2 = vsel %vm1781_vm7, %v1770_v48, %v1014_v30  ;;  %v9881_v38 = vld [vmem:[#allocation2 + $0x8] sm:$0xff]  ;;  %v3777_v30 = vld [vmem:[%s12780_s3 + $0xe0] sm:$0xff] }
 0x27c   : > { %1653 = vrot.lane.b32.xlu1 %v1205_v45, %s7774_s28  ;;  %6615 = vmatpush1.bf16.msra.mxu1 %v6614_v1  ;;  %v2840_v40 = vrot.slane %v9881_v38, 2  ;;  %v1578_v5 = vsel %vm732_vm1, %v1575_v6, %v1577_v27  ;;  %v2651_v27 = vrot.slane %v9572_v62, 1 }
 0x27d   : > { %1651 = vrot.lane.b32.xlu0 %v1203_v47, %s7774_s28  ;;  %6616 = vmatprep.subr.bf16.mxu1 %v12908_v7 }
 0x27e   : > { %v1140_v18 = vpop.permute.xlu1 %1139 }
 0x27f   : > { %v1138_v12 = vpop.permute.xlu0 %1137 }
 0x280   : > { %1033 = vrot.lane.b32.xlu1 %v9700_v35, %s7768_s11  ;;  %6618 = vmatpush1.bf16.msra.mxu1 %v6617_v20 }
 0x281   : > { %1031 = vrot.lane.b32.xlu0 %v9717_v11, %s7768_s11  ;;  %v9814_v33 = vld [vmem:[#allocation2 + $0x70] sm:$0x3]  ;;  %6619 = vmatprep.subr.bf16.mxu1 %v12908_v7  ;;  %s7779_s11 = smov 96  }
 0x282   : > { %v1265_v50 = vpop.permute.xlu1 %1264  ;;  %v9820_v22 = vld [vmem:[#allocation2 + $0x60] sm:$0xff]  ;;  %v9822_v15 = vld [vmem:[#allocation2 + $0x68] sm:$0xff]  ;;  %v2862_v34 = vrot.slane %v9814_v33, 2 }
 0x283   : > { %v1263_v35 = vpop.permute.xlu0 %1262  ;;  %v2859_v9 = vrot.slane %v9820_v22, 2  ;;  %v2860_v11 = vrot.slane %v9822_v15, 2 }
 0x284   : > { %1159 = vrot.lane.b32.xlu1 %v9749_v44, %s7769_s12  ;;  %v1449_v44 = vrot.slane %v9826_v36, 1  ;;  %6621 = vmatpush1.bf16.msra.mxu1 %v6620_v3  ;;  %v2529_v3 = vld [vmem:[#allocation2 + $0x10] sm:$0x3] }
 0x285   : > { %1157 = vrot.lane.b32.xlu0 %v1078_v51, %s7769_s12  ;;  %v9843_v46 = vsel %vm732_vm1, %v2859_v9, %v2860_v11  ;;  %v9846_v59 = vsel %vm732_vm1, %v2860_v11, %v2862_v34  ;;  %6622 = vmatprep.subr.bf16.mxu1 %v12908_v7 }
 0x286   : > { %6458 = vmatprep.mubr.msk.f32.mxu0 %vm2468_vm15, %v9843_v46  ;;  %v1387_v31 = vpop.permute.xlu1 %1386  ;;  %v1451_v55 = vsel %vm511_vm0, %v1449_v44, %v1450_v43  ;;  %v9912_v43 = vld [vmem:[#allocation2 + $0x20] sm:$0xff] }
 0x287   : > { %6459 = vmatmul.mubr.msk.f32.gmra.mrb[4].mxu0 %vm2468_vm15, %v9846_v59  ;;  %v1385_v51 = vpop.permute.xlu0 %1384  ;;  %v2845_v10 = vrot.slane %v9912_v43, 2 }
 0x288   : > { %1284 = vrot.lane.b32.xlu1 %v1205_v45, %s7770_s17  ;;  %v1810_v45 = vsel %vm1781_vm7, %v1769_v26, %v9793_v0  ;;  %v2839_v0 = vrot.slane %v9874_v63, 2  ;;  %v2644_v26 = vrot.slane %v2529_v3, 1 }
 0x289   : > { %1282 = vrot.lane.b32.xlu0 %v1203_v47, %s7770_s17  ;;  %v1852_v47 = vsel %vm1822_vm8, %v1811_v2, %v1140_v18  ;;  %v1851_v42 = vsel %vm1822_vm8, %v1810_v45, %v1138_v12  ;;  %v6623_v18 = vpack.c.bf16 %v3778_v16, %v3777_v30  ;;  %v2641_v12 = vrot.slane %v9874_v63, 1  ;;  %v9930_v2 = vld [vmem:[#allocation2 + $0x28] sm:$0x3] }
 0x28a   : > { %v1513_v8 = vpop.permute.xlu1 %1512  ;;  %v1893_v1 = vsel %vm1863_vm9, %v1852_v47, %v1265_v50  ;;  %v1892_v34 = vsel %vm1863_vm9, %v1851_v42, %v1263_v35  ;;  %v9906_v50 = vld [vmem:[#allocation2 + $0x18] sm:$0xff]  ;;  %v2841_v47 = vsel %vm732_vm1, %v2839_v0, %v2840_v40  ;;  %v2652_v30 = vrot.slane %v9574_v56, 1 }
 0x28b   : > { %v1511_v49 = vpop.permute.xlu0 %1510  ;;  %v1934_v9 = vsel %vm1904_vm10, %v1893_v1, %v1387_v31  ;;  %v2642_v31 = vrot.slane %v9881_v38, 1  ;;  %v2844_v28 = vrot.slane %v9906_v50, 2  ;;  %6624 = vmatpush1.bf16.msra.mxu1 %v6623_v18  ;;  %v6915_v1 = vpack.i.bf16 %v2841_v47, %v9572_v62 }
 0x28c   : > { %1406 = vrot.lane.b32.xlu1 %v9817_v14, %s7771_s22  ;;  %v1933_v14 = vsel %vm1904_vm10, %v1892_v34, %v1385_v51  ;;  %v1975_v54 = vsel %vm1945_vm11, %v1934_v9, %v1513_v8  ;;  %v3779_v51 = vld [vmem:[%s12780_s3 + $0xf0] sm:$0xff]  ;;  %6625 = vmatprep.subr.bf16.mxu1 %v12908_v7  ;;  %v2654_v0 = vrot.slane %v9570_v4, 1  ;;  %v9962_v9 = vsel %vm511_vm0, %v2651_v27, %v2652_v30  ;;  %v13166_v27 = vld [vmem:[#allocation91_spill] sm:$0xff] }
 0x28d   : > { %v6401_v11 = vpop.f32.mrb[10].mxu1  ;;  %1404 = vrot.lane.b32.xlu0 %v9826_v36, %s7771_s22  ;;  %v1974_v36 = vsel %vm1945_vm11, %v1933_v14, %v1511_v49  ;;  %v6626_v19 = vpack.c.bf16 %v3780_v41, %v3779_v51  ;;  %v2643_v45 = vsel %vm511_vm0, %v2641_v12, %v2642_v31  ;;  %v2847_v49 = vrot.slane %v9930_v2, 2 }
 0x28e   : > { %v2285_v35 = vadd.f32 %v6401_v11, %v9450_v17  ;;  %v2279_v25 = vpop.f32.mrb[11].mxu1  ;;  %v1638_v20 = vpop.permute.xlu1 %1637  ;;  %v2645_v16 = vsel %vm511_vm0, %v2642_v31, %v2644_v26  ;;  %v2842_v12 = vrot.slane %v2529_v3, 2 }
 0x28f   : > { %v2280_v44 = vadd.f32 %v9450_v17, %v2279_v25  ;;  %v2016_v39 = vsel %vm1986_vm12, %v1975_v54, %v1638_v20  ;;  %v1636_v29 = vpop.permute.xlu0 %1635  ;;  %6627 = vmatpush1.bf16.msra.mxu1 %v6626_v19  ;;  %v9959_v34 = vsel %vm732_vm1, %v2845_v10, %v2847_v49  ;;  %v9975_v20 = vsel %vm511_vm0, %v2652_v30, %v2654_v0  ;;  %v7695_v19 = vld [vmem:[%s7844_s8 + $0x170] sm:$0xff] }
 0x290   : > { %v2439_v21 = vmax.f32 %v2285_v35, 0.0  ;;  %v2015_v37 = vsel %vm1986_vm12, %v1974_v36, %v1636_v29  ;;  %1532 = vrot.lane.b32.xlu1 %v1453_v60, %s7773_s23  ;;  %v1576_v60 = vsel %vm732_vm1, %v1574_v13, %v1575_v6  ;;  %v9950_v6 = vsel %vm732_vm1, %v2844_v28, %v2845_v10  ;;  %6748 = vmatprep.subr.bf16.mxu1 %v12908_v7 }
 0x291   : > { %v2438_v48 = vmax.f32 %v2280_v44, 0.0  ;;  %1530 = vrot.lane.b32.xlu0 %v1451_v55, %s7773_s23  ;;  %6426 = vmatprep.mubr.msk.f32.mxu1 %vm2038_vm13, %v2015_v37  ;;  %v6910_v13 = vpack.i.bf16 %v2643_v45, %v9950_v6  ;;  %s7777_s23 = smov 64   ;;  %v6925_v11 = vpack.i.bf16 %v2645_v16, %v9959_v34  ;;  %v6920_v36 = vpack.i.bf16 %v9906_v50, %v9962_v9  ;;  %v13165_v45 = vld [vmem:[#allocation76_spill] sm:$0xff] }
 0x292   : > { %2480 = vst.msk [vmem:[#allocation2 + $0x81] sm:$0xff] %vm2468_vm15, %v2439_v21  ;;  %6427 = vmatmul.mubr.msk.f32.gmra.mrb[28].mxu1 %vm2038_vm13, %v2016_v39  ;;  %v9934_v8 = vpop.permute.xlu1 %1017  ;;  %v2646_v29 = vrot.slane %v9906_v50, 1  ;;  %v2647_v28 = vrot.slane %v9912_v43, 1  ;;  %v2843_v51 = vsel %vm732_vm1, %v2840_v40, %v2842_v12  ;;  %v2649_v37 = vrot.slane %v9930_v2, 1  ;;  %v13164_v40 = vld [vmem:[#allocation5_spill] sm:$0xff] }
 0x293   : > { %2479 = vst.msk [vmem:[#allocation2 + $0x79] sm:$0xff] %vm2468_vm15, %v2438_v48  ;;  %v9940_v55 = vpop.permute.xlu0 %1015  ;;  %v6935_v3 = vpack.i.bf16 %v9912_v43, %v9975_v20  ;;  %v1731_v48 = vsel %vm1699_vm5, %v7695_v19, %v13164_v40  ;;  %v6930_v26 = vpack.i.bf16 %v2843_v51, %v9574_v56  ;;  %v2656_v49 = vrot.slane %v9684_v57, 1 }
 0x294   : > { %1657 = vrot.lane.b32.xlu1 %v1578_v5, %s7774_s28  ;;  %v10009_v47 = vsel %vm511_vm0, %v2646_v29, %v2647_v28  ;;  %v2657_v43 = vrot.slane %v9686_v58, 1  ;;  %v1772_v30 = vsel %vm1740_vm6, %v1731_v48, %v13166_v27  ;;  %v2659_v0 = vrot.slane %v9681_v24, 1 }
 0x295   : > { %1655 = vrot.lane.b32.xlu0 %v1576_v60, %s7774_s28  ;;  %s7778_s28 = smov 32   ;;  %v7696_v60 = vld [vmem:[%s7844_s8 + $0x168] sm:$0xff]  ;;  %v2661_v27 = vrot.slane %v9820_v22, 1 }
 0x296   : > { %v1144_v42 = vpop.permute.xlu1 %1143  ;;  %v1730_v2 = vsel %vm1699_vm5, %v7696_v60, %v13165_v45 }
 0x297   : > { %v1142_v18 = vpop.permute.xlu0 %1141 }
 0x298   : > { %6916 = vrot.lane.b32.xlu1 %v6915_v1, %s7777_s23  ;;  %v10020_v1 = vsel %vm511_vm0, %v2647_v28, %v2649_v37  ;;  %v10033_v28 = vsel %vm511_vm0, %v2656_v49, %v2657_v43 }
 0x299   : > { %6911 = vrot.lane.b32.xlu0 %v6910_v13, %s7778_s28  ;;  %v9967_v14 = vld [vmem:[#allocation2 + $0x88] sm:$0x3]  ;;  %v13167_v13 = vld [vmem:[#allocation92_spill] sm:$0xff]  ;;  %v6950_v60 = vpack.i.bf16 %v9572_v62, %v10033_v28 }
 0x29a   : > { %v1269_v54 = vpop.permute.xlu1 %1268  ;;  %v9969_v4 = vld [vmem:[#allocation2 + $0x78] sm:$0xff]  ;;  %v9971_v35 = vld [vmem:[#allocation2 + $0x80] sm:$0xff]  ;;  %v2867_v25 = vrot.slane %v9967_v14, 2  ;;  %v1771_v16 = vsel %vm1740_vm6, %v1730_v2, %v13167_v13 }
 0x29b   : > { %v1267_v31 = vpop.permute.xlu0 %1266  ;;  %v2864_v44 = vrot.slane %v9969_v4, 2  ;;  %v2865_v39 = vrot.slane %v9971_v35, 2 }
 0x29c   : > { %6926 = vrot.lane.b32.xlu1 %v6925_v11, %s7778_s28  ;;  %v1813_v11 = vsel %vm1781_vm7, %v1772_v30, %v9934_v8  ;;  %v2662_v30 = vrot.slane %v9822_v15, 1 }
 0x29d   : > { %6921 = vrot.lane.b32.xlu0 %v6920_v36, %s7779_s11  ;;  %v9989_v41 = vsel %vm732_vm1, %v2864_v44, %v2865_v39  ;;  %v9992_v21 = vsel %vm732_vm1, %v2865_v39, %v2867_v25  ;;  %v6945_v25 = vpack.i.bf16 %v9950_v6, %v9684_v57  ;;  %v6940_v36 = vpack.i.bf16 %v10009_v47, %v9590_v53 }
 0x29e   : > { %6461 = vmatprep.mubr.msk.f32.mxu0 %vm2468_vm15, %v9989_v41  ;;  %v1391_v10 = vpop.permute.xlu1 %1390  ;;  %v1812_v44 = vsel %vm1781_vm7, %v1771_v16, %v9940_v55  ;;  %v1854_v39 = vsel %vm1822_vm8, %v1813_v11, %v1144_v42  ;;  %v6955_v6 = vpack.i.bf16 %v10020_v1, %v9593_v61  ;;  %v10044_v42 = vsel %vm511_vm0, %v2657_v43, %v2659_v0 }
 0x29f   : > { %6462 = vmatmul.mubr.msk.f32.gmra.mrb[6].mxu0 %vm2468_vm15, %v9992_v21  ;;  %v1389_v5 = vpop.permute.xlu0 %1388  ;;  %v1853_v24 = vsel %vm1822_vm8, %v1812_v44, %v1142_v18  ;;  %v1895_v8 = vsel %vm1863_vm9, %v1854_v39, %v1269_v54  ;;  %v6965_v49 = vpack.i.bf16 %v9574_v56, %v10044_v42  ;;  %v6960_v43 = vpack.i.bf16 %v9959_v34, %v9686_v58 }
 0x2a0   : > { %6936 = vrot.lane.b32.xlu1 %v6935_v3, %s7779_s11  ;;  %v1894_v51 = vsel %vm1863_vm9, %v1853_v24, %v1267_v31  ;;  %v1936_v37 = vsel %vm1904_vm10, %v1895_v8, %v1391_v10  ;;  %v6975_v16 = vpack.i.bf16 %v9590_v53, %v9820_v22  ;;  %v6970_v56 = vpack.i.bf16 %v9962_v9, %v9708_v32 }
 0x2a1   : > { %6931 = vrot.lane.b32.xlu0 %v6930_v26, %s7777_s23  ;;  %v1935_v3 = vsel %vm1904_vm10, %v1894_v51, %v1389_v5  ;;  %v2664_v0 = vrot.slane %v9814_v33, 1  ;;  %v10075_v34 = vsel %vm511_vm0, %v2661_v27, %v2662_v30  ;;  %v7005_v27 = vpack.i.bf16 %v9708_v32, %v9969_v4 }
 0x2a2   : > { %v1517_v12 = vpop.permute.xlu1 %1516  ;;  %v6980_v24 = vpack.i.bf16 %v9684_v57, %v10075_v34  ;;  %v7015_v32 = vpack.i.bf16 %v10044_v42, %v9846_v59 }
 0x2a3   : > { %v1515_v29 = vpop.permute.xlu0 %1514  ;;  %v1977_v18 = vsel %vm1945_vm11, %v1936_v37, %v1517_v12  ;;  %v10089_v39 = vsel %vm511_vm0, %v2662_v30, %v2664_v0  ;;  %v7000_v30 = vpack.i.bf16 %v10033_v28, %v9843_v46 }
 0x2a4   : > { %6946 = vrot.lane.b32.xlu1 %v6945_v25, %s7777_s23  ;;  %v1976_v48 = vsel %vm1945_vm11, %v1935_v3, %v1515_v29  ;;  %v6985_v25 = vpack.i.bf16 %v9975_v20, %v9711_v23  ;;  %v6995_v57 = vpack.i.bf16 %v9686_v58, %v10089_v39 }
 0x2a5   : > { %v6404_v55 = vpop.f32.mrb[12].mxu1  ;;  %6941 = vrot.lane.b32.xlu0 %v6940_v36, %s7778_s28 }
 0x2a6   : > { %v2295_v54 = vadd.f32 %v6404_v55, %v9450_v17  ;;  %v2289_v19 = vpop.f32.mrb[13].mxu1  ;;  %v1642_v40 = vpop.permute.xlu1 %1641 }
 0x2a7   : > { %v2290_v31 = vadd.f32 %v9450_v17, %v2289_v19  ;;  %v2018_v10 = vsel %vm1986_vm12, %v1977_v18, %v1642_v40  ;;  %v1640_v26 = vpop.permute.xlu0 %1639  ;;  %v6990_v18 = vpack.i.bf16 %v9593_v61, %v9822_v15  ;;  %v13168_v19 = vld [vmem:[#allocation77_spill] sm:$0xff]  ;;  %v13171_v61 = vld [vmem:[#allocation94_spill] sm:$0xff] }
 0x2a8   : > { %v2441_v45 = vmax.f32 %v2295_v54, 0.0  ;;  %v2017_v2 = vsel %vm1986_vm12, %v1976_v48, %v1640_v26  ;;  %6956 = vrot.lane.b32.xlu1 %v6955_v6, %s7778_s28  ;;  %v7697_v54 = vld [vmem:[%s7844_s8 + $0x188] sm:$0xff]  ;;  %v2666_v48 = vrot.slane %v9969_v4, 1  ;;  %v13169_v26 = vld [vmem:[#allocation78_spill] sm:$0xff] }
 0x2a9   : > { %v2440_v5 = vmax.f32 %v2290_v31, 0.0  ;;  %6951 = vrot.lane.b32.xlu0 %v6950_v60, %s7779_s11  ;;  %6429 = vmatprep.mubr.msk.f32.mxu1 %vm2038_vm13, %v2017_v2  ;;  %v1733_v40 = vsel %vm1699_vm5, %v7697_v54, %v13168_v19  ;;  %v2667_v31 = vrot.slane %v9971_v35, 1  ;;  %v13170_v60 = vld [vmem:[#allocation93_spill] sm:$0xff] }
 0x2aa   : > { %2482 = vst.msk [vmem:[#allocation2 + $0x99] sm:$0xff] %vm2468_vm15, %v2441_v45  ;;  %6430 = vmatmul.mubr.msk.f32.gmra.mrb[30].mxu1 %vm2038_vm13, %v2018_v10  ;;  %v1022_v17 = vpop.permute.xlu1 %1021  ;;  %v7698_v10 = vld [vmem:[%s7844_s8 + $0x180] sm:$0xff]  ;;  %v1774_v45 = vsel %vm1740_vm6, %v1733_v40, %v13170_v60 }
 0x2ab   : > { %2481 = vst.msk [vmem:[#allocation2 + $0x91] sm:$0xff] %vm2468_vm15, %v2440_v5  ;;  %v1020_v62 = vpop.permute.xlu0 %1019  ;;  %v1732_v58 = vsel %vm1699_vm5, %v7698_v10, %v13169_v26  ;;  %v2669_v5 = vrot.slane %v9967_v14, 1  ;;  %v10136_v14 = vsel %vm511_vm0, %v2666_v48, %v2667_v31 }
 0x2ac   : > { %6966 = vrot.lane.b32.xlu1 %v6965_v49, %s7779_s11  ;;  %v1773_v2 = vsel %vm1740_vm6, %v1732_v58, %v13171_v61  ;;  %v1815_v49 = vsel %vm1781_vm7, %v1774_v45, %v1022_v17  ;;  %v7020_v58 = vpack.i.bf16 %v9711_v23, %v9971_v35 }
 0x2ad   : > { %6961 = vrot.lane.b32.xlu0 %v6960_v43, %s7777_s23 }
 0x2ae   : > { %v1148_v13 = vpop.permute.xlu1 %1147 }
 0x2af   : > { %v1146_v11 = vpop.permute.xlu0 %1145 }
 0x2b0   : > { %6976 = vrot.lane.b32.xlu1 %v6975_v16, %s7777_s23  ;;  %v1814_v16 = vsel %vm1781_vm7, %v1773_v2, %v1020_v62 }
 0x2b1   : > { %6971 = vrot.lane.b32.xlu0 %v6970_v56, %s7778_s28  ;;  %v10079_v12 = vld [vmem:[#allocation2 + $0xa0] sm:$0x3]  ;;  %v1856_v56 = vsel %vm1822_vm8, %v1815_v49, %v1148_v13  ;;  %v10145_v13 = vsel %vm511_vm0, %v2667_v31, %v2669_v5 }
 0x2b2   : > { %v1273_v36 = vpop.permute.xlu1 %1272  ;;  %v10083_v53 = vld [vmem:[#allocation2 + $0x90] sm:$0xff]  ;;  %v10085_v44 = vld [vmem:[#allocation2 + $0x98] sm:$0xff]  ;;  %v2872_v33 = vrot.slane %v10079_v12, 2  ;;  %v7025_v26 = vpack.i.bf16 %v9822_v15, %v10145_v13  ;;  %v7030_v15 = vpack.i.bf16 %v10075_v34, %v9989_v41  ;;  %v2674_v5 = vrot.slane %v10079_v12, 1 }
 0x2b3   : > { %v1271_v29 = vpop.permute.xlu0 %1270  ;;  %v2869_v8 = vrot.slane %v10083_v53, 2  ;;  %v2870_v6 = vrot.slane %v10085_v44, 2  ;;  %v2671_v60 = vrot.slane %v10083_v53, 1  ;;  %v2672_v45 = vrot.slane %v10085_v44, 1 }
 0x2b4   : > { %6986 = vrot.lane.b32.xlu1 %v6985_v25, %s7778_s28  ;;  %v1855_v25 = vsel %vm1822_vm8, %v1814_v16, %v1146_v11  ;;  %v7035_v2 = vpack.i.bf16 %v9843_v46, %v10083_v53 }
 0x2b5   : > { %6981 = vrot.lane.b32.xlu0 %v6980_v24, %s7779_s11  ;;  %v10098_v51 = vsel %vm732_vm1, %v2869_v8, %v2870_v6  ;;  %v10101_v37 = vsel %vm732_vm1, %v2870_v6, %v2872_v33  ;;  %v1897_v33 = vsel %vm1863_vm9, %v1856_v56, %v1273_v36  ;;  %v1896_v17 = vsel %vm1863_vm9, %v1855_v25, %v1271_v29  ;;  %v10152_v8 = vld [vmem:[%s12779_s2] ss:$0 sm:$0xff] }
 0x2b6   : > { %6464 = vmatprep.mubr.msk.f32.mxu0 %vm2468_vm15, %v10098_v51  ;;  %v1395_v55 = vpop.permute.xlu1 %1394  ;;  %v10182_v23 = vsel %vm511_vm0, %v2671_v60, %v2672_v45 }
 0x2b7   : > { %6465 = vmatmul.mubr.msk.f32.gmra.mrb[8].mxu0 %vm2468_vm15, %v10101_v37  ;;  %v1393_v3 = vpop.permute.xlu0 %1392  ;;  %v1938_v24 = vsel %vm1904_vm10, %v1897_v33, %v1395_v55 }
 0x2b8   : > { %6996 = vrot.lane.b32.xlu1 %v6995_v57, %s7779_s11  ;;  %v1937_v11 = vsel %vm1904_vm10, %v1896_v17, %v1393_v3  ;;  %v7010_v3 = vpack.i.bf16 %v9820_v22, %v10136_v14 }
 0x2b9   : > { %6991 = vrot.lane.b32.xlu0 %v6990_v18, %s7777_s23 }
 0x2ba   : > { %v1521_v43 = vpop.permute.xlu1 %1520 }
 0x2bb   : > { %v1519_v0 = vpop.permute.xlu0 %1518  ;;  %v1979_v36 = vsel %vm1945_vm11, %v1938_v24, %v1521_v43 }
 0x2bc   : > { %7006 = vrot.lane.b32.xlu1 %v7005_v27, %s7777_s23  ;;  %v1978_v55 = vsel %vm1945_vm11, %v1937_v11, %v1519_v0  ;;  %v7045_v27 = vpack.i.bf16 %v10089_v39, %v9992_v21  ;;  %v7040_v0 = vpack.i.bf16 %v9969_v4, %v10182_v23 }
 0x2bd   : > { %v6407_v62 = vpop.f32.mrb[14].mxu1  ;;  %7001 = vrot.lane.b32.xlu0 %v7000_v30, %s7778_s28 }
 0x2be   : > { %v2305_v6 = vadd.f32 %v10152_v8, %v6407_v62  ;;  %v2299_v29 = vpop.f32.mrb[15].mxu1  ;;  %v1646_v57 = vpop.permute.xlu1 %1645 }
 0x2bf   : > { %v2300_v18 = vadd.f32 %v10152_v8, %v2299_v29  ;;  %v2020_v54 = vsel %vm1986_vm12, %v1979_v36, %v1646_v57  ;;  %v1644_v19 = vpop.permute.xlu0 %1643  ;;  %v7050_v36 = vpack.i.bf16 %v9846_v59, %v10085_v44  ;;  %v13172_v29 = vld [vmem:[#allocation7_spill] sm:$0xff]  ;;  %v13175_v59 = vld [vmem:[#allocation96_spill] sm:$0xff] }
 0x2c0   : > { %v2443_v40 = vmax.f32 %v2305_v6, 0.0  ;;  %v2019_v48 = vsel %vm1986_vm12, %v1978_v55, %v1644_v19  ;;  %7016 = vrot.lane.b32.xlu1 %v7015_v32, %s7778_s28  ;;  %v10196_v32 = vsel %vm511_vm0, %v2672_v45, %v2674_v5  ;;  %v7700_v6 = vld [vmem:[%s7844_s8 + $0x1a0] sm:$0xff]  ;;  %v13173_v19 = vld [vmem:[#allocation79_spill] sm:$0xff]  ;;  %v7060_v45 = vpack.i.bf16 %v10136_v14, %v10098_v51 }
 0x2c1   : > { %v2442_v31 = vmax.f32 %v2300_v18, 0.0  ;;  %7011 = vrot.lane.b32.xlu0 %v7010_v3, %s7779_s11  ;;  %6432 = vmatprep.mubr.msk.f32.mxu1 %vm2038_vm13, %v2019_v48  ;;  %v7055_v62 = vpack.i.bf16 %v9971_v35, %v10196_v32  ;;  %v1735_v57 = vsel %vm1699_vm5, %v7700_v6, %v13172_v29  ;;  %v13174_v3 = vld [vmem:[#allocation95_spill] sm:$0xff] }
 0x2c2   : > { %2484 = vst.msk [vmem:[#allocation2 + $0xb1] sm:$0xff] %vm2468_vm15, %v2443_v40  ;;  %6433 = vmatmul.mubr.msk.f32.gmra.mrb[32].mxu1 %vm2038_vm13, %v2020_v54  ;;  %v1026_v10 = vpop.permute.xlu1 %1025  ;;  %v7701_v54 = vld [vmem:[%s7844_s8 + $0x198] sm:$0xff]  ;;  %v1776_v40 = vsel %vm1740_vm6, %v1735_v57, %v13174_v3 }
 0x2c3   : > { %2483 = vst.msk [vmem:[#allocation2 + $0xa9] sm:$0xff] %vm2468_vm15, %v2442_v31  ;;  %v1024_v22 = vpop.permute.xlu0 %1023  ;;  %v1734_v35 = vsel %vm1699_vm5, %v7701_v54, %v13173_v19  ;;  %v1817_v31 = vsel %vm1781_vm7, %v1776_v40, %v1026_v10 }
 0x2c4   : > { %7026 = vrot.lane.b32.xlu1 %v7025_v26, %s7779_s11  ;;  %v1775_v48 = vsel %vm1740_vm6, %v1734_v35, %v13175_v59 }
 0x2c5   : > { %7021 = vrot.lane.b32.xlu0 %v7020_v58, %s7777_s23 }
 0x2c6   : > { %v1152_v61 = vpop.permute.xlu1 %1151 }
 0x2c7   : > { %v1150_v49 = vpop.permute.xlu0 %1149 }
 0x2c8   : > { %7036 = vrot.lane.b32.xlu1 %v7035_v2, %s7777_s23  ;;  %v1816_v2 = vsel %vm1781_vm7, %v1775_v48, %v1024_v22 }
 0x2c9   : > { %7031 = vrot.lane.b32.xlu0 %v7030_v15, %s7778_s28  ;;  %v2550_v43 = vld [vmem:[#allocation2 + $0xb8] sm:$0x3]  ;;  %v1858_v15 = vsel %vm1822_vm8, %v1817_v31, %v1152_v61 }
 0x2ca   : > { %v1277_v30 = vpop.permute.xlu1 %1276  ;;  %v10187_v16 = vld [vmem:[#allocation2 + $0xa8] sm:$0xff]  ;;  %v10189_v46 = vld [vmem:[#allocation2 + $0xb0] sm:$0xff]  ;;  %v2877_v56 = vrot.slane %v2550_v43, 2  ;;  %v2679_v26 = vrot.slane %v2550_v43, 1 }
 0x2cb   : > { %v1275_v12 = vpop.permute.xlu0 %1274  ;;  %v2874_v25 = vrot.slane %v10187_v16, 2  ;;  %v2875_v33 = vrot.slane %v10189_v46, 2  ;;  %v2676_v55 = vrot.slane %v10187_v16, 1  ;;  %v2677_v18 = vrot.slane %v10189_v46, 1 }
 0x2cc   : > { %7046 = vrot.lane.b32.xlu1 %v7045_v27, %s7778_s28  ;;  %v7065_v60 = vpack.i.bf16 %v9989_v41, %v10187_v16  ;;  %v1857_v27 = vsel %vm1822_vm8, %v1816_v2, %v1150_v49  ;;  %v7075_v41 = vpack.i.bf16 %v10145_v13, %v10101_v37  ;;  %v7080_v19 = vpack.i.bf16 %v9992_v21, %v10189_v46 }
 0x2cd   : > { %7041 = vrot.lane.b32.xlu0 %v7040_v0, %s7779_s11  ;;  %v10201_v17 = vsel %vm732_vm1, %v2874_v25, %v2875_v33  ;;  %v10204_v24 = vsel %vm732_vm1, %v2875_v33, %v2877_v56  ;;  %v1899_v56 = vsel %vm1863_vm9, %v1858_v15, %v1277_v30  ;;  %v10239_v10 = vsel %vm511_vm0, %v2676_v55, %v2677_v18 }
 0x2ce   : > { %6467 = vmatprep.mubr.msk.f32.mxu0 %vm2468_vm15, %v10201_v17  ;;  %v1399_v4 = vpop.permute.xlu1 %1398  ;;  %v1898_v43 = vsel %vm1863_vm9, %v1857_v27, %v1275_v12  ;;  %v7070_v29 = vpack.i.bf16 %v10083_v53, %v10239_v10  ;;  %v7090_v3 = vpack.i.bf16 %v10182_v23, %v10201_v17 }
 0x2cf   : > { %6468 = vmatmul.mubr.msk.f32.gmra.mrb[10].mxu0 %vm2468_vm15, %v10204_v24  ;;  %v1397_v11 = vpop.permute.xlu0 %1396  ;;  %v1940_v0 = vsel %vm1904_vm10, %v1899_v56, %v1399_v4 }
 0x2d0   : > { %7056 = vrot.lane.b32.xlu1 %v7055_v62, %s7779_s11  ;;  %v1939_v61 = vsel %vm1904_vm10, %v1898_v43, %v1397_v11  ;;  %v10250_v62 = vsel %vm511_vm0, %v2677_v18, %v2679_v26  ;;  %v7105_v43 = vpack.i.bf16 %v10196_v32, %v10204_v24 }
 0x2d1   : > { %7051 = vrot.lane.b32.xlu0 %v7050_v36, %s7777_s23  ;;  %v7085_v54 = vpack.i.bf16 %v10085_v44, %v10250_v62 }
 0x2d2   : > { %v1525_v58 = vpop.permute.xlu1 %1524 }
 0x2d3   : > { %v1523_v5 = vpop.permute.xlu0 %1522  ;;  %v1981_v49 = vsel %vm1945_vm11, %v1940_v0, %v1525_v58 }
 0x2d4   : > { %7066 = vrot.lane.b32.xlu1 %v7065_v60, %s7777_s23  ;;  %v1980_v36 = vsel %vm1945_vm11, %v1939_v61, %v1523_v5  ;;  %v7702_v61 = vld [vmem:[%s7844_s8 + $0x1b8] sm:$0xff] }
 0x2d5   : > { %v6410_v22 = vpop.f32.mrb[16].mxu1  ;;  %7061 = vrot.lane.b32.xlu0 %v7060_v45, %s7778_s28 }
 0x2d6   : > { %v2315_v30 = vadd.f32 %v10152_v8, %v6410_v22  ;;  %v2309_v25 = vpop.f32.mrb[17].mxu1  ;;  %v1650_v33 = vpop.permute.xlu1 %1649 }
 0x2d7   : > { %v2310_v12 = vadd.f32 %v10152_v8, %v2309_v25  ;;  %v2022_v4 = vsel %vm1986_vm12, %v1981_v49, %v1650_v33  ;;  %v1648_v6 = vpop.permute.xlu0 %1647  ;;  %v13176_v49 = vld [vmem:[#allocation6_spill] sm:$0xff]  ;;  %v7703_v33 = vld [vmem:[%s7844_s8 + $0x1b0] sm:$0xff] }
 0x2d8   : > { %v2445_v11 = vmax.f32 %v2315_v30, 0.0  ;;  %v2021_v57 = vsel %vm1986_vm12, %v1980_v36, %v1648_v6  ;;  %7076 = vrot.lane.b32.xlu1 %v7075_v41, %s7778_s28  ;;  %v1737_v30 = vsel %vm1699_vm5, %v7702_v61, %v13176_v49  ;;  %v13177_v36 = vld [vmem:[#allocation80_spill] sm:$0xff] }
 0x2d9   : > { %v2444_v55 = vmax.f32 %v2310_v12, 0.0  ;;  %7071 = vrot.lane.b32.xlu0 %v7070_v29, %s7779_s11  ;;  %6435 = vmatprep.mubr.msk.f32.mxu1 %vm2038_vm13, %v2021_v57  ;;  %v1736_v12 = vsel %vm1699_vm5, %v7703_v33, %v13177_v36  ;;  %v13179_v29 = vld [vmem:[#allocation98_spill] sm:$0xff] }
 0x2da   : > { %2486 = vst.msk [vmem:[#allocation2 + $0xc9] sm:$0xff] %vm2468_vm15, %v2445_v11  ;;  %6436 = vmatmul.mubr.msk.f32.gmra.mrb[34].mxu1 %vm2038_vm13, %v2022_v4  ;;  %v1030_v18 = vpop.permute.xlu1 %1029  ;;  %v13178_v4 = vld [vmem:[#allocation97_spill] sm:$0xff] }
 0x2db   : > { %2485 = vst.msk [vmem:[#allocation2 + $0xc1] sm:$0xff] %vm2468_vm15, %v2444_v55  ;;  %v1028_v53 = vpop.permute.xlu0 %1027  ;;  %v1778_v6 = vsel %vm1740_vm6, %v1737_v30, %v13178_v4 }
 0x2dc   : > { %7086 = vrot.lane.b32.xlu1 %v7085_v54, %s7779_s11  ;;  %v1819_v11 = vsel %vm1781_vm7, %v1778_v6, %v1030_v18 }
 0x2dd   : > { %7081 = vrot.lane.b32.xlu0 %v7080_v19, %s7777_s23 }
 0x2de   : > { %v1156_v35 = vpop.permute.xlu1 %1155 }
 0x2df   : > { %v1154_v40 = vpop.permute.xlu0 %1153  ;;  %v1860_v54 = vsel %vm1822_vm8, %v1819_v11, %v1156_v35 }
 0x2e1   : > { %7091 = vrot.lane.b32.xlu0 %v7090_v3, %s7778_s28  ;;  %v2553_v59 = vld [vmem:[#allocation2 + $0xd0] sm:$0x3] }
 0x2e2   : > { %v1281_v48 = vpop.permute.xlu1 %1280  ;;  %v10273_v44 = vld [vmem:[#allocation2 + $0xc0] sm:$0xff]  ;;  %v10275_v31 = vld [vmem:[#allocation2 + $0xc8] sm:$0xff]  ;;  %v2882_v26 = vrot.slane %v2553_v59, 2  ;;  %v2684_v2 = vrot.slane %v2553_v59, 1 }
 0x2e3   : > { %v1279_v58 = vpop.permute.xlu0 %1278  ;;  %v7095_v21 = vpack.i.bf16 %v10098_v51, %v10273_v44  ;;  %v2879_v60 = vrot.slane %v10273_v44, 2  ;;  %v2880_v45 = vrot.slane %v10275_v31, 2  ;;  %v2681_v15 = vrot.slane %v10273_v44, 1 }
 0x2e4   : > { %v2682_v5 = vrot.slane %v10275_v31, 1  ;;  %v7110_v3 = vpack.i.bf16 %v10101_v37, %v10275_v31 }
 0x2e5   : > { %7096 = vrot.lane.b32.xlu1 %v7095_v21, %s7777_s23  ;;  %v10285_v27 = vsel %vm732_vm1, %v2879_v60, %v2880_v45  ;;  %v10288_v56 = vsel %vm732_vm1, %v2880_v45, %v2882_v26  ;;  %v1901_v21 = vsel %vm1863_vm9, %v1860_v54, %v1281_v48 }
 0x2e6   : > { %6470 = vmatprep.mubr.msk.f32.mxu0 %vm2468_vm15, %v10285_v27  ;;  %v1403_v51 = vpop.permute.xlu1 %1402  ;;  %v10293_v41 = vsel %vm511_vm0, %v2681_v15, %v2682_v5  ;;  %v10305_v25 = vsel %vm511_vm0, %v2682_v5, %v2684_v2 }
 0x2e7   : > { %6471 = vmatmul.mubr.msk.f32.gmra.mrb[12].mxu0 %vm2468_vm15, %v10288_v56  ;;  %v1401_v0 = vpop.permute.xlu0 %1400  ;;  %v7100_v22 = vpack.i.bf16 %v10187_v16, %v10293_v41  ;;  %v1777_v16 = vsel %vm1740_vm6, %v1736_v12, %v13179_v29  ;;  %v7115_v59 = vpack.i.bf16 %v10189_v46, %v10305_v25  ;;  %v1942_v18 = vsel %vm1904_vm10, %v1901_v21, %v1403_v51 }
 0x2e8   : > { %v1818_v55 = vsel %vm1781_vm7, %v1777_v16, %v1028_v53  ;;  %v7135_v21 = vpack.i.bf16 %v10250_v62, %v10288_v56 }
 0x2e9   : > { %7101 = vrot.lane.b32.xlu0 %v7100_v22, %s7779_s11  ;;  %7106 = vrot.lane.b32.xlu1 %v7105_v43, %s7778_s28  ;;  %v1859_v26 = vsel %vm1822_vm8, %v1818_v55, %v1154_v40  ;;  %v7120_v40 = vpack.i.bf16 %v10239_v10, %v10285_v27 }
 0x2ea   : > { %v1529_v57 = vpop.permute.xlu1 %1528  ;;  %v1900_v60 = vsel %vm1863_vm9, %v1859_v26, %v1279_v58 }
 0x2eb   : > { %v1527_v19 = vpop.permute.xlu0 %1526  ;;  %v1941_v35 = vsel %vm1904_vm10, %v1900_v60, %v1401_v0  ;;  %v1983_v37 = vsel %vm1945_vm11, %v1942_v18, %v1529_v57 }
 0x2ec   : > { %v1982_v48 = vsel %vm1945_vm11, %v1941_v35, %v1527_v19  ;;  %v13180_v35 = vld [vmem:[#allocation81_spill] sm:$0xff] }
 0x2ed   : > { %7111 = vrot.lane.b32.xlu0 %v7110_v3, %s7777_s23  ;;  %7116 = vrot.lane.b32.xlu1 %v7115_v59, %s7779_s11  ;;  %v6413_v53 = vpop.f32.mrb[18].mxu1 }
 0x2ee   : > { %v2325_v45 = vadd.f32 %v10152_v8, %v6413_v53  ;;  %v2319_v46 = vpop.f32.mrb[19].mxu1  ;;  %v1654_v2 = vpop.permute.xlu1 %1653  ;;  %v7704_v53 = vld [vmem:[%s7844_s8 + $0x1d0] sm:$0xff] }
 0x2ef   : > { %v2320_v58 = vadd.f32 %v10152_v8, %v2319_v46  ;;  %v2024_v15 = vsel %vm1986_vm12, %v1983_v37, %v1654_v2  ;;  %v1652_v5 = vpop.permute.xlu0 %1651  ;;  %v1739_v37 = vsel %vm1699_vm5, %v7704_v53, %v13180_v35  ;;  %v7705_v46 = vld [vmem:[%s7844_s8 + $0x1c8] sm:$0xff]  ;;  %v13181_v2 = vld [vmem:[#allocation82_spill] sm:$0xff]  ;;  %s12661_s8 = scalar_lea.vmem %s12784_s7, %s6251_s20 }
 0x2f0   : > { %v2447_v51 = vmax.f32 %v2325_v45, 0.0  ;;  %v2023_v43 = vsel %vm1986_vm12, %v1982_v48, %v1652_v5  ;;  %v13182_v48 = vld [vmem:[#allocation99_spill] sm:$0xff] }
 0x2f1   : > { %v2446_v0 = vmax.f32 %v2320_v58, 0.0  ;;  %7121 = vrot.lane.b32.xlu0 %v7120_v40, %s7778_s28  ;;  %6438 = vmatprep.mubr.msk.f32.mxu1 %vm2038_vm13, %v2023_v43  ;;  %v1738_v40 = vsel %vm1699_vm5, %v7705_v46, %v13181_v2  ;;  %v1780_v58 = vsel %vm1740_vm6, %v1739_v37, %v13182_v48  ;;  %vm346_vm5 = vcmask 516096  }
 0x2f2   : > { %2488 = vst.msk [vmem:[#allocation2 + $0xe1] sm:$0xff] %vm2468_vm15, %v2447_v51  ;;  %6439 = vmatmul.mubr.msk.f32.gmra.mrb[36].mxu1 %vm2038_vm13, %v2024_v15  ;;  %v1034_v22 = vpop.permute.xlu1 %1033  ;;  %v13183_v15 = vld [vmem:[#allocation100_spill] sm:$0xff] }
 0x2f3   : > { %2487 = vst.msk [vmem:[#allocation2 + $0xd9] sm:$0xff] %vm2468_vm15, %v2446_v0  ;;  %v1032_v61 = vpop.permute.xlu0 %1031  ;;  %v1821_v5 = vsel %vm1781_vm7, %v1780_v58, %v1034_v22 }
 0x2f4   : > { %347 = vst.msk [vmem:[#allocation3] sm:$0x1] %vm346_vm5, %v12906_v52  ;;  %348 = vst.msk [vmem:[#allocation3 + $0x18] sm:$0x1] %vm346_vm5, %v12906_v52 }
 0x2f5   : > { %349 = vst.msk [vmem:[#allocation3 + $0x30] sm:$0x1] %vm346_vm5, %v12906_v52  ;;  %350 = vst.msk [vmem:[#allocation3 + $0x48] sm:$0x1] %vm346_vm5, %v12906_v52 }
 0x2f6   : > { %v1160_v49 = vpop.permute.xlu1 %1159  ;;  %351 = vst.msk [vmem:[#allocation3 + $0x60] sm:$0x1] %vm346_vm5, %v12906_v52  ;;  %352 = vst.msk [vmem:[#allocation3 + $0x78] sm:$0x1] %vm346_vm5, %v12906_v52 }
 0x2f7   : > { %v1158_v30 = vpop.permute.xlu0 %1157  ;;  %v1862_v0 = vsel %vm1822_vm8, %v1821_v5, %v1160_v49  ;;  %353 = vst.msk [vmem:[#allocation3 + $0x90] sm:$0x1] %vm346_vm5, %v12906_v52  ;;  %354 = vst.msk [vmem:[#allocation3 + $0xa8] sm:$0x1] %vm346_vm5, %v12906_v52 }
 0x2f8   : > { %355 = vst.msk [vmem:[#allocation3 + $0xc0] sm:$0x1] %vm346_vm5, %v12906_v52  ;;  %356 = vst.msk [vmem:[#allocation3 + $0xd8] sm:$0x1] %vm346_vm5, %v12906_v52 }
 0x2f9   : > { %v2556_v33 = vld [vmem:[#allocation2 + $0xe8] sm:$0x3]  ;;  %357 = vst.msk [vmem:[#allocation3 + $0xf0] sm:$0x1] %vm346_vm5, %v12906_v52  ;;  %358 = vst.msk [vmem:[#allocation3 + $0x108] sm:$0x1] %vm346_vm5, %v12906_v52 }
 0x2fa   : > { %v1285_v36 = vpop.permute.xlu1 %1284  ;;  %v10343_v12 = vld [vmem:[#allocation2 + $0xd8] sm:$0xff]  ;;  %v10345_v4 = vld [vmem:[#allocation2 + $0xe0] sm:$0xff]  ;;  %v2887_v6 = vrot.slane %v2556_v33, 2  ;;  %v2689_v55 = vrot.slane %v2556_v33, 1  ;;  %359 = vst.msk [vmem:[#allocation3 + $0x120] sm:$0x1] %vm346_vm5, %v12906_v52 }
 0x2fb   : > { %v1283_v29 = vpop.permute.xlu0 %1282  ;;  %v7125_v16 = vpack.i.bf16 %v10201_v17, %v10343_v12  ;;  %v2884_v11 = vrot.slane %v10343_v12, 2  ;;  %v2885_v57 = vrot.slane %v10345_v4, 2  ;;  %v2686_v54 = vrot.slane %v10343_v12, 1  ;;  %360 = vst.msk [vmem:[#allocation3 + $0x138] sm:$0x1] %vm346_vm5, %v12906_v52 }
 0x2fc   : > { %v2687_v19 = vrot.slane %v10345_v4, 1  ;;  %361 = vst.msk [vmem:[#allocation3 + $0x150] sm:$0x1] %vm346_vm5, %v12906_v52  ;;  %362 = vst.msk [vmem:[#allocation3 + $0x168] sm:$0x1] %vm346_vm5, %v12906_v52 }
 0x2fd   : > { %7126 = vrot.lane.b32.xlu1 %v7125_v16, %s7777_s23  ;;  %v10355_v3 = vsel %vm732_vm1, %v2884_v11, %v2885_v57  ;;  %v10358_v59 = vsel %vm732_vm1, %v2885_v57, %v2887_v6  ;;  %v7140_v6 = vpack.i.bf16 %v10204_v24, %v10345_v4  ;;  %v1903_v57 = vsel %vm1863_vm9, %v1862_v0, %v1285_v36 }
 0x2fe   : > { %6473 = vmatprep.mubr.msk.f32.mxu0 %vm2468_vm15, %v10355_v3  ;;  %v1407_v17 = vpop.permute.xlu1 %1406  ;;  %v10363_v26 = vsel %vm511_vm0, %v2686_v54, %v2687_v19  ;;  %v10375_v45 = vsel %vm511_vm0, %v2687_v19, %v2689_v55  ;;  %363 = vst.msk [vmem:[#allocation3 + $0x180] sm:$0x1] %vm346_vm5, %v12906_v52  ;;  %364 = vst.msk [vmem:[#allocation3 + $0x198] sm:$0x1] %vm346_vm5, %v12906_v52 }
 0x2ff   : > { %6474 = vmatmul.mubr.msk.f32.gmra.mrb[14].mxu0 %vm2468_vm15, %v10358_v59  ;;  %v1405_v60 = vpop.permute.xlu0 %1404  ;;  %v7130_v18 = vpack.i.bf16 %v10273_v44, %v10363_v26  ;;  %v1779_v44 = vsel %vm1740_vm6, %v1738_v40, %v13183_v15  ;;  %v7145_v16 = vpack.i.bf16 %v10275_v31, %v10375_v45  ;;  %v1944_v22 = vsel %vm1904_vm10, %v1903_v57, %v1407_v17 }
 0x300   : > { %v1820_v43 = vsel %vm1781_vm7, %v1779_v44, %v1032_v61  ;;  %365 = vst.msk [vmem:[#allocation3 + $0x11] sm:$0x1] %vm346_vm5, %v12906_v52  ;;  %366 = vst.msk [vmem:[#allocation3 + $0x29] sm:$0x1] %vm346_vm5, %v12906_v52  ;;  %vm4431_vm6 = vcmask 517120  }
 0x301   : > { %7131 = vrot.lane.b32.xlu0 %v7130_v18, %s7779_s11  ;;  %7136 = vrot.lane.b32.xlu1 %v7135_v21, %s7778_s28  ;;  %v1861_v11 = vsel %vm1822_vm8, %v1820_v43, %v1158_v30  ;;  %v7150_v30 = vpack.i.bf16 %v10293_v41, %v10355_v3  ;;  %367 = vst.msk [vmem:[#allocation3 + $0x41] sm:$0x1] %vm346_vm5, %v12906_v52  ;;  %368 = vst.msk [vmem:[#allocation3 + $0x59] sm:$0x1] %vm346_vm5, %v12906_v52 }
 0x302   : > { %v1533_v51 = vpop.permute.xlu1 %1532  ;;  %v1902_v55 = vsel %vm1863_vm9, %v1861_v11, %v1283_v29  ;;  %369 = vst.msk [vmem:[#allocation3 + $0x71] sm:$0x1] %vm346_vm5, %v12906_v52  ;;  %370 = vst.msk [vmem:[#allocation3 + $0x89] sm:$0x1] %vm346_vm5, %v12906_v52 }
 0x303   : > { %v1531_v33 = vpop.permute.xlu0 %1530  ;;  %v1943_v49 = vsel %vm1904_vm10, %v1902_v55, %v1405_v60  ;;  %v1985_v24 = vsel %vm1945_vm11, %v1944_v22, %v1533_v51  ;;  %371 = vst.msk [vmem:[#allocation3 + $0xa1] sm:$0x1] %vm346_vm5, %v12906_v52  ;;  %372 = vst.msk [vmem:[#allocation3 + $0xb9] sm:$0x1] %vm346_vm5, %v12906_v52 }
 0x304   : > { %v1984_v36 = vsel %vm1945_vm11, %v1943_v49, %v1531_v33  ;;  %373 = vst.msk [vmem:[#allocation3 + $0xd1] sm:$0x1] %vm346_vm5, %v12906_v52  ;;  %374 = vst.msk [vmem:[#allocation3 + $0xe9] sm:$0x1] %vm346_vm5, %v12906_v52 }
 0x305   : > { %7141 = vrot.lane.b32.xlu0 %v7140_v6, %s7777_s23  ;;  %7146 = vrot.lane.b32.xlu1 %v7145_v16, %s7779_s11  ;;  %v6416_v61 = vpop.f32.mrb[20].mxu1  ;;  %375 = vst.msk [vmem:[#allocation3 + $0x101] sm:$0x1] %vm346_vm5, %v12906_v52  ;;  %376 = vst.msk [vmem:[#allocation3 + $0x119] sm:$0x1] %vm346_vm5, %v12906_v52 }
 0x306   : > { %v2335_v54 = vadd.f32 %v10152_v8, %v6416_v61  ;;  %v2329_v31 = vpop.f32.mrb[21].mxu1  ;;  %v1658_v19 = vpop.permute.xlu1 %1657  ;;  %377 = vst.msk [vmem:[#allocation3 + $0x131] sm:$0x1] %vm346_vm5, %v12906_v52  ;;  %378 = vst.msk [vmem:[#allocation3 + $0x149] sm:$0x1] %vm346_vm5, %v12906_v52 }
 0x307   : > { %v2330_v29 = vadd.f32 %v10152_v8, %v2329_v31  ;;  %v2026_v17 = vsel %vm1986_vm12, %v1985_v24, %v1658_v19  ;;  %v1656_v21 = vpop.permute.xlu0 %1655  ;;  %379 = vst.msk [vmem:[#allocation3 + $0x161] sm:$0x1] %vm346_vm5, %v12906_v52  ;;  %380 = vst.msk [vmem:[#allocation3 + $0x179] sm:$0x1] %vm346_vm5, %v12906_v52 }
 0x308   : > { %v2449_v18 = vmax.f32 %v2335_v54, 0.0  ;;  %v2025_v53 = vsel %vm1986_vm12, %v1984_v36, %v1656_v21  ;;  %381 = vst.msk [vmem:[#allocation3 + $0x191] sm:$0x1] %vm346_vm5, %v12906_v52  ;;  %382 = vst.msk [vmem:[#allocation3 + $0x1a9] sm:$0x1] %vm346_vm5, %v12906_v52 }
 0x309   : > { %v2448_v60 = vmax.f32 %v2330_v29, 0.0  ;;  %7151 = vrot.lane.b32.xlu0 %v7150_v30, %s7778_s28  ;;  %6441 = vmatprep.mubr.msk.f32.mxu1 %vm2038_vm13, %v2025_v53 }
 0x30a   : > { %2490 = vst.msk [vmem:[#allocation2 + $0xf9] sm:$0xff] %vm2468_vm15, %v2449_v18  ;;  %6442 = vmatmul.mubr.msk.f32.gmra.mrb[38].mxu1 %vm2038_vm13, %v2026_v17  ;;  %v6917_v35 = vpop.permute.xlu1 %6916 }
 0x30b   : > { %2489 = vst.msk [vmem:[#allocation2 + $0xf1] sm:$0xff] %vm2468_vm15, %v2448_v60  ;;  %v6912_v37 = vpop.permute.xlu0 %6911  ;;  %v6919_v40 = vunpack.i.h.bf16 %v6917_v35  ;;  %v6918_v48 = vunpack.i.l.bf16 %v6917_v35 }
 0x30c   : > { %v6914_v46 = vunpack.i.h.bf16 %v6912_v37  ;;  %v6913_v2 = vunpack.i.l.bf16 %v6912_v37 }
 0x30e   : > { %v3531_v58 = vsel %vm2468_vm15, %v9874_v63, %v6914_v46  ;;  %v6927_v15 = vpop.permute.xlu1 %6926  ;;  %v3641_v44 = vsel %vm2468_vm15, %v10009_v47, %v6913_v2  ;;  %v7165_v46 = vpack.i.bf16 %v10305_v25, %v10358_v59 }
 0x30f   : > { %v6929_v5 = vunpack.i.h.bf16 %v6927_v15  ;;  %v6928_v51 = vunpack.i.l.bf16 %v6927_v15  ;;  %v6922_v43 = vpop.permute.xlu0 %6921  ;;  %v3677_v6 = vsel %vm3567_vm3, %v3641_v44, %v6918_v48  ;;  %v3568_v16 = vsel %vm3567_vm3, %v3531_v58, %v6919_v40 }
 0x310   : > { %v6924_v0 = vunpack.i.h.bf16 %v6922_v43  ;;  %v6923_v33 = vunpack.i.l.bf16 %v6922_v43 }
 0x311   : > { %v2559_v11 = vld [vmem:[#allocation2 + $0x100] sm:$0x3]  ;;  %v3642_v49 = vsel %vm2468_vm15, %v10020_v1, %v6928_v51  ;;  %v3532_v30 = vsel %vm2468_vm15, %v9881_v38, %v6929_v5 }
 0x312   : > { %v6937_v57 = vpop.permute.xlu1 %6936  ;;  %v3713_v55 = vsel %vm3604_vm4, %v3677_v6, %v6923_v33  ;;  %v3605_v63 = vsel %vm3604_vm4, %v3568_v16, %v6924_v0  ;;  %v10421_v22 = vld [vmem:[#allocation2 + $0xf0] sm:$0xff]  ;;  %v10423_v61 = vld [vmem:[#allocation2 + $0xf8] sm:$0xff]  ;;  %v2892_v47 = vrot.slane %v2559_v11, 2  ;;  %v2694_v1 = vrot.slane %v2559_v11, 1 }
 0x313   : > { %v6938_v24 = vunpack.i.l.bf16 %v6937_v57  ;;  %v6932_v54 = vpop.permute.xlu0 %6931  ;;  %3928 = vmatprep.mubr.f32.mxu1 %v3713_v55  ;;  %v7155_v31 = vpack.i.bf16 %v10285_v27, %v10421_v22  ;;  %v2889_v19 = vrot.slane %v10421_v22, 2  ;;  %v2890_v17 = vrot.slane %v10423_v61, 2 }
 0x314   : > { %v6934_v36 = vunpack.i.h.bf16 %v6932_v54  ;;  %v6933_v29 = vunpack.i.l.bf16 %v6932_v54  ;;  %3929 = vmatmul.mubr.f32.vlgmr.msra.gmra.mrb[40].mxu1 %v3605_v63  ;;  %v2691_v21 = vrot.slane %v10421_v22, 1  ;;  %v6939_v18 = vunpack.i.h.bf16 %v6937_v57 }
 0x315   : > { %7156 = vrot.lane.b32.xlu1 %v7155_v31, %s7777_s23  ;;  %v2692_v53 = vrot.slane %v10423_v61, 1  ;;  %v10437_v27 = vsel %vm732_vm1, %v2889_v19, %v2890_v17  ;;  %v10440_v35 = vsel %vm732_vm1, %v2890_v17, %v2892_v47  ;;  %v7170_v63 = vpack.i.bf16 %v10288_v56, %v10423_v61 }
 0x316   : > { %v6947_v60 = vpop.permute.xlu1 %6946  ;;  %v3678_v38 = vsel %vm3567_vm3, %v3642_v49, %v6933_v29  ;;  %v3569_v37 = vsel %vm3567_vm3, %v3532_v30, %v6934_v36  ;;  %6476 = vmatprep.mubr.msk.f32.mxu0 %vm2468_vm15, %v10437_v27 }
 0x317   : > { %v6949_v2 = vunpack.i.h.bf16 %v6947_v60  ;;  %v6942_v40 = vpop.permute.xlu0 %6941  ;;  %6477 = vmatmul.mubr.msk.f32.gmra.mrb[16].mxu0 %vm2468_vm15, %v10440_v35  ;;  %v10451_v15 = vsel %vm511_vm0, %v2691_v21, %v2692_v53  ;;  %v3714_v44 = vsel %vm3604_vm4, %v3678_v38, %v6938_v24  ;;  %v6948_v5 = vunpack.i.l.bf16 %v6947_v60 }
 0x318   : > { %v6944_v48 = vunpack.i.h.bf16 %v6942_v40  ;;  %v6943_v58 = vunpack.i.l.bf16 %v6942_v40  ;;  %v7160_v51 = vpack.i.bf16 %v10343_v12, %v10451_v15  ;;  %3933 = vmatprep.mubr.f32.mxu1 %v3714_v44  ;;  %v3606_v43 = vsel %vm3604_vm4, %v3569_v37, %v6939_v18  ;;  %v7706_v37 = vld [vmem:[#allocation2 + $0x20] sm:$0xff] }
 0x319   : > { %7166 = vrot.lane.b32.xlu1 %v7165_v46, %s7778_s28  ;;  %v10459_v0 = vsel %vm511_vm0, %v2692_v53, %v2694_v1  ;;  %3934 = vmatmul.mubr.f32.gmra.mrb[42].mxu1 %v3606_v43  ;;  %v7180_v53 = vpack.i.bf16 %v10363_v26, %v10437_v27 }
 0x31a   : > { %v6957_v33 = vpop.permute.xlu1 %6956  ;;  %v3643_v6 = vsel %vm2468_vm15, %v9962_v9, %v6943_v58  ;;  %v3533_v16 = vsel %vm2468_vm15, %v9906_v50, %v6944_v48  ;;  %7161 = vrot.lane.b32.xlu0 %v7160_v51, %s7779_s11  ;;  %v7175_v12 = vpack.i.bf16 %v10345_v4, %v10459_v0 }
 0x31b   : > { %v6952_v11 = vpop.permute.xlu0 %6951  ;;  %v6959_v47 = vunpack.i.h.bf16 %v6957_v33  ;;  %v6958_v49 = vunpack.i.l.bf16 %v6957_v33  ;;  %v3679_v9 = vsel %vm3567_vm3, %v3643_v6, %v6948_v5  ;;  %v3570_v50 = vsel %vm3567_vm3, %v3533_v16, %v6949_v2 }
 0x31c   : > { %v6954_v57 = vunpack.i.h.bf16 %v6952_v11  ;;  %v6953_v55 = vunpack.i.l.bf16 %v6952_v11  ;;  %v7707_v11 = vld [vmem:[#allocation2 + $0x30] sm:$0xff] }
 0x31d   : > { %7176 = vrot.lane.b32.xlu1 %v7175_v12, %s7779_s11  ;;  %v6419_v24 = vpop.f32.mrb[22].mxu1  ;;  %v3644_v38 = vsel %vm2468_vm15, %v9975_v20, %v6958_v49  ;;  %v3534_v46 = vsel %vm2468_vm15, %v7706_v37, %v6959_v47 }
 0x31e   : > { %v2345_v54 = vadd.f32 %v10152_v8, %v6419_v24  ;;  %v2339_v31 = vpop.f32.mrb[23].mxu1  ;;  %v6967_v19 = vpop.permute.xlu1 %6966  ;;  %v3715_v4 = vsel %vm3604_vm4, %v3679_v9, %v6953_v55  ;;  %v3607_v30 = vsel %vm3604_vm4, %v3570_v50, %v6954_v57  ;;  %7171 = vrot.lane.b32.xlu0 %v7170_v63, %s7777_s23 }
 0x31f   : > { %v2340_v56 = vadd.f32 %v10152_v8, %v2339_v31  ;;  %v6969_v36 = vunpack.i.h.bf16 %v6967_v19  ;;  %v6968_v29 = vunpack.i.l.bf16 %v6967_v19  ;;  %v6962_v17 = vpop.permute.xlu0 %6961  ;;  %3938 = vmatprep.mubr.f32.mxu1 %v3715_v4 }
 0x320   : > { %v2451_v21 = vmax.f32 %v2345_v54, 0.0  ;;  %v6964_v18 = vunpack.i.h.bf16 %v6962_v17  ;;  %v6963_v1 = vunpack.i.l.bf16 %v6962_v17  ;;  %3939 = vmatmul.mubr.f32.gmra.mrb[44].mxu1 %v3607_v30 }
 0x321   : > { %v2450_v60 = vmax.f32 %v2340_v56, 0.0 }
 0x322   : > { %2492 = vst.msk [vmem:[#allocation2 + $0x111] sm:$0xff] %vm2468_vm15, %v2451_v21  ;;  %v6977_v2 = vpop.permute.xlu1 %6976  ;;  %v3680_v40 = vsel %vm3567_vm3, %v3644_v38, %v6963_v1  ;;  %v3571_v48 = vsel %vm3567_vm3, %v3534_v46, %v6964_v18  ;;  %7181 = vrot.lane.b32.xlu0 %v7180_v53, %s7778_s28 }
 0x323   : > { %2491 = vst.msk [vmem:[#allocation2 + $0x109] sm:$0xff] %vm2468_vm15, %v2450_v60  ;;  %v6972_v58 = vpop.permute.xlu0 %6971  ;;  %v3716_v44 = vsel %vm3604_vm4, %v3680_v40, %v6968_v29  ;;  %v3608_v5 = vsel %vm3604_vm4, %v3571_v48, %v6969_v36  ;;  %v6979_v43 = vunpack.i.h.bf16 %v6977_v2  ;;  %v6978_v33 = vunpack.i.l.bf16 %v6977_v2  ;;  %v7708_v48 = vld [vmem:[#allocation2 + $0x38] sm:$0xff] }
 0x324   : > { %v6974_v20 = vunpack.i.h.bf16 %v6972_v58  ;;  %v6973_v51 = vunpack.i.l.bf16 %v6972_v58  ;;  %3943 = vmatprep.mubr.f32.mxu1 %v3716_v44 }
 0x325   : > { %3944 = vmatmul.mubr.f32.gmra.mrb[46].mxu1 %v3608_v5 }
 0x326   : > { %v6987_v6 = vpop.permute.xlu1 %6986  ;;  %v3645_v16 = vsel %vm2468_vm15, %v10033_v28, %v6973_v51  ;;  %v3535_v12 = vsel %vm2468_vm15, %v7707_v11, %v6974_v20  ;;  %v7195_v51 = vpack.i.bf16 %v10375_v45, %v10440_v35 }
 0x327   : > { %v6988_v57 = vunpack.i.l.bf16 %v6987_v6  ;;  %v6982_v55 = vpop.permute.xlu0 %6981  ;;  %v6989_v49 = vunpack.i.h.bf16 %v6987_v6  ;;  %v3681_v24 = vsel %vm3567_vm3, %v3645_v16, %v6978_v33  ;;  %v3572_v9 = vsel %vm3567_vm3, %v3535_v12, %v6979_v43 }
 0x328   : > { %v6984_v63 = vunpack.i.h.bf16 %v6982_v55  ;;  %v6983_v47 = vunpack.i.l.bf16 %v6982_v55 }
 0x329   : > { %v2562_v50 = vld [vmem:[#allocation2 + $0x118] sm:$0x3]  ;;  %v3646_v1 = vsel %vm2468_vm15, %v10044_v42, %v6988_v57 }
 0x32a   : > { %v10495_v54 = vpop.f32.mrb[0].mxu0  ;;  %v6997_v31 = vpop.permute.xlu1 %6996  ;;  %v3717_v19 = vsel %vm3604_vm4, %v3681_v24, %v6983_v47  ;;  %v3609_v28 = vsel %vm3604_vm4, %v3572_v9, %v6984_v63  ;;  %v10499_v4 = vld [vmem:[#allocation2 + $0x108] sm:$0xff]  ;;  %v10501_v30 = vld [vmem:[#allocation2 + $0x110] sm:$0xff]  ;;  %v2897_v56 = vrot.slane %v2562_v50, 2  ;;  %v2699_v2 = vrot.slane %v2562_v50, 1 }
 0x32b   : > { %v10503_v36 = vpop.f32.mrb[1].mxu0  ;;  %v6998_v29 = vunpack.i.l.bf16 %v6997_v31  ;;  %v6992_v17 = vpop.permute.xlu0 %6991  ;;  %3948 = vmatprep.mubr.f32.mxu1 %v3717_v19  ;;  %v7185_v21 = vpack.i.bf16 %v10355_v3, %v10499_v4  ;;  %v2894_v18 = vrot.slane %v10499_v4, 2  ;;  %v2895_v38 = vrot.slane %v10501_v30, 2  ;;  %v7709_v9 = vld [vmem:[#allocation2 + $0x48] sm:$0xff] }
 0x32c   : > { %v6994_v53 = vunpack.i.h.bf16 %v6992_v17  ;;  %v6993_v60 = vunpack.i.l.bf16 %v6992_v17  ;;  %3949 = vmatmul.mubr.f32.gmra.mrb[48].mxu1 %v3609_v28  ;;  %v2696_v37 = vrot.slane %v10499_v4, 1  ;;  %v6999_v46 = vunpack.i.h.bf16 %v6997_v31 }
 0x32d   : > { %7186 = vrot.lane.b32.xlu1 %v7185_v21, %s7777_s23  ;;  %v2697_v40 = vrot.slane %v10501_v30, 1  ;;  %v3536_v3 = vsel %vm2468_vm15, %v7708_v48, %v6989_v49  ;;  %v10516_v58 = vsel %vm732_vm1, %v2894_v18, %v2895_v38  ;;  %v10519_v44 = vsel %vm732_vm1, %v2895_v38, %v2897_v56 }
 0x32e   : > { %v7007_v42 = vpop.permute.xlu1 %7006  ;;  %v3682_v5 = vsel %vm3567_vm3, %v3646_v1, %v6993_v60  ;;  %v3573_v20 = vsel %vm3567_vm3, %v3536_v3, %v6994_v53  ;;  %6479 = vmatprep.mubr.msk.f32.mxu0 %vm2468_vm15, %v10516_v58  ;;  %v7200_v56 = vpack.i.bf16 %v10358_v59, %v10501_v30 }
 0x32f   : > { %v7009_v43 = vunpack.i.h.bf16 %v7007_v42  ;;  %v7002_v33 = vpop.permute.xlu0 %7001  ;;  %6480 = vmatmul.mubr.msk.f32.gmra.mrb[18].mxu0 %vm2468_vm15, %v10519_v44  ;;  %v10530_v11 = vsel %vm511_vm0, %v2696_v37, %v2697_v40  ;;  %v3718_v12 = vsel %vm3604_vm4, %v3682_v5, %v6998_v29  ;;  %v7008_v57 = vunpack.i.l.bf16 %v7007_v42 }
 0x330   : > { %v7004_v6 = vunpack.i.h.bf16 %v7002_v33  ;;  %v7003_v16 = vunpack.i.l.bf16 %v7002_v33  ;;  %v7190_v55 = vpack.i.bf16 %v10421_v22, %v10530_v11  ;;  %3953 = vmatprep.mubr.f32.mxu1 %v3718_v12  ;;  %v3610_v63 = vsel %vm3604_vm4, %v3573_v20, %v6999_v46 }
 0x331   : > { %7196 = vrot.lane.b32.xlu1 %v7195_v51, %s7778_s28  ;;  %v10538_v47 = vsel %vm511_vm0, %v2697_v40, %v2699_v2  ;;  %3954 = vmatmul.mubr.f32.gmra.mrb[50].mxu1 %v3610_v63  ;;  %v7210_v42 = vpack.i.bf16 %v10451_v15, %v10516_v58  ;;  %v7710_v51 = vld [vmem:[#allocation2 + $0x50] sm:$0xff] }
 0x332   : > { %v7017_v49 = vpop.permute.xlu1 %7016  ;;  %v3647_v24 = vsel %vm2468_vm15, %v10075_v34, %v7003_v16  ;;  %v3537_v50 = vsel %vm2468_vm15, %v7709_v9, %v7004_v6  ;;  %7191 = vrot.lane.b32.xlu0 %v7190_v55, %s7779_s11  ;;  %v7205_v22 = vpack.i.bf16 %v10423_v61, %v10538_v47 }
 0x333   : > { %v7012_v31 = vpop.permute.xlu0 %7011  ;;  %v7019_v29 = vunpack.i.h.bf16 %v7017_v49  ;;  %v7018_v17 = vunpack.i.l.bf16 %v7017_v49  ;;  %v3683_v34 = vsel %vm3567_vm3, %v3647_v24, %v7008_v57  ;;  %v3574_v18 = vsel %vm3567_vm3, %v3537_v50, %v7009_v43  ;;  %v7711_v50 = vld [vmem:[#allocation2 + $0x60] sm:$0xff] }
 0x334   : > { %v7014_v19 = vunpack.i.h.bf16 %v7012_v31  ;;  %v7013_v28 = vunpack.i.l.bf16 %v7012_v31 }
 0x335   : > { %7206 = vrot.lane.b32.xlu1 %v7205_v22, %s7779_s11  ;;  %v6422_v21 = vpop.f32.mrb[24].mxu1  ;;  %v3648_v20 = vsel %vm2468_vm15, %v10089_v39, %v7018_v17  ;;  %v3538_v43 = vsel %vm2468_vm15, %v7710_v51, %v7019_v29 }
 0x336   : > { %v2355_v1 = vadd.f32 %v10152_v8, %v6422_v21  ;;  %v2349_v53 = vpop.f32.mrb[25].mxu1  ;;  %v7027_v60 = vpop.permute.xlu1 %7026  ;;  %v3719_v61 = vsel %vm3604_vm4, %v3683_v34, %v7013_v28  ;;  %v3611_v38 = vsel %vm3604_vm4, %v3574_v18, %v7014_v19  ;;  %7201 = vrot.lane.b32.xlu0 %v7200_v56, %s7777_s23 }
 0x337   : > { %v2350_v59 = vadd.f32 %v10152_v8, %v2349_v53  ;;  %v7029_v37 = vunpack.i.h.bf16 %v7027_v60  ;;  %v7028_v46 = vunpack.i.l.bf16 %v7027_v60  ;;  %v7022_v2 = vpop.permute.xlu0 %7021  ;;  %3958 = vmatprep.mubr.f32.mxu1 %v3719_v61 }
 0x338   : > { %v2453_v40 = vmax.f32 %v2355_v1, 0.0  ;;  %v7024_v48 = vunpack.i.h.bf16 %v7022_v2  ;;  %v7023_v3 = vunpack.i.l.bf16 %v7022_v2  ;;  %3959 = vmatmul.mubr.f32.gmra.mrb[52].mxu1 %v3611_v38 }
 0x339   : > { %v2452_v5 = vmax.f32 %v2350_v59, 0.0 }
 0x33a   : > { %2494 = vst.msk [vmem:[#allocation2 + $0x129] sm:$0xff] %vm2468_vm15, %v2453_v40  ;;  %v7037_v8 = vpop.permute.xlu1 %7036  ;;  %v3684_v33 = vsel %vm3567_vm3, %v3648_v20, %v7023_v3  ;;  %v3575_v6 = vsel %vm3567_vm3, %v3538_v43, %v7024_v48  ;;  %7211 = vrot.lane.b32.xlu0 %v7210_v42, %s7778_s28 }
 0x33b   : > { %2493 = vst.msk [vmem:[#allocation2 + $0x121] sm:$0xff] %vm2468_vm15, %v2452_v5  ;;  %v7032_v16 = vpop.permute.xlu0 %7031  ;;  %v3720_v12 = vsel %vm3604_vm4, %v3684_v33, %v7028_v46  ;;  %v3612_v57 = vsel %vm3604_vm4, %v3575_v6, %v7029_v37  ;;  %v7039_v63 = vunpack.i.h.bf16 %v7037_v8  ;;  %v7038_v49 = vunpack.i.l.bf16 %v7037_v8  ;;  %v7712_v33 = vld [vmem:[#allocation2 + $0x68] sm:$0xff] }
 0x33c   : > { %v7034_v39 = vunpack.i.h.bf16 %v7032_v16  ;;  %v7033_v55 = vunpack.i.l.bf16 %v7032_v16  ;;  %3963 = vmatprep.mubr.f32.mxu1 %v3720_v12 }
 0x33d   : > { %3964 = vmatmul.mubr.f32.gmra.mrb[54].mxu1 %v3612_v57 }
 0x33e   : > { %v7047_v24 = vpop.permute.xlu1 %7046  ;;  %v3649_v9 = vsel %vm2468_vm15, %v10136_v14, %v7033_v55  ;;  %v3539_v31 = vsel %vm2468_vm15, %v7711_v50, %v7034_v39  ;;  %v7225_v39 = vpack.i.bf16 %v10459_v0, %v10519_v44 }
 0x33f   : > { %v7048_v22 = vunpack.i.l.bf16 %v7047_v24  ;;  %v7042_v19 = vpop.permute.xlu0 %7041  ;;  %v7049_v29 = vunpack.i.h.bf16 %v7047_v24  ;;  %v3685_v17 = vsel %vm3567_vm3, %v3649_v9, %v7038_v49  ;;  %v3576_v21 = vsel %vm3567_vm3, %v3539_v31, %v7039_v63 }
 0x340   : > { %v7044_v28 = vunpack.i.h.bf16 %v7042_v19  ;;  %v7043_v56 = vunpack.i.l.bf16 %v7042_v19 }
 0x341   : > { %v2565_v34 = vld [vmem:[#allocation2 + $0x130] sm:$0x3]  ;;  %v3650_v48 = vsel %vm2468_vm15, %v10145_v13, %v7048_v22 }
 0x342   : > { %v10573_v18 = vpop.f32.mrb[2].mxu0  ;;  %v7057_v1 = vpop.permute.xlu1 %7056  ;;  %v3721_v53 = vsel %vm3604_vm4, %v3685_v17, %v7043_v56  ;;  %v3613_v14 = vsel %vm3604_vm4, %v3576_v21, %v7044_v28  ;;  %v10577_v60 = vld [vmem:[#allocation2 + $0x120] sm:$0xff]  ;;  %v10579_v61 = vld [vmem:[#allocation2 + $0x128] sm:$0xff]  ;;  %v2902_v38 = vrot.slane %v2565_v34, 2  ;;  %v2704_v43 = vrot.slane %v2565_v34, 1  ;;  %v7713_v17 = vld [vmem:[#allocation2 + $0x78] sm:$0xff] }
 0x343   : > { %v10581_v59 = vpop.f32.mrb[3].mxu0  ;;  %v7058_v37 = vunpack.i.l.bf16 %v7057_v1  ;;  %v7052_v46 = vpop.permute.xlu0 %7051  ;;  %3968 = vmatprep.mubr.f32.mxu1 %v3721_v53  ;;  %v7215_v2 = vpack.i.bf16 %v10437_v27, %v10577_v60  ;;  %v2899_v40 = vrot.slane %v10577_v60, 2  ;;  %v2900_v5 = vrot.slane %v10579_v61, 2 }
 0x344   : > { %v7054_v3 = vunpack.i.h.bf16 %v7052_v46  ;;  %v7053_v42 = vunpack.i.l.bf16 %v7052_v46  ;;  %3969 = vmatmul.mubr.f32.gmra.mrb[56].mxu1 %v3613_v14  ;;  %v2701_v20 = vrot.slane %v10577_v60, 1  ;;  %v7059_v51 = vunpack.i.h.bf16 %v7057_v1 }
 0x345   : > { %7216 = vrot.lane.b32.xlu1 %v7215_v2, %s7777_s23  ;;  %v2702_v8 = vrot.slane %v10579_v61, 1  ;;  %v3540_v27 = vsel %vm2468_vm15, %v7712_v33, %v7049_v29  ;;  %v10594_v6 = vsel %vm732_vm1, %v2899_v40, %v2900_v5  ;;  %v10597_v16 = vsel %vm732_vm1, %v2900_v5, %v2902_v38  ;;  %v10632_v40 = vld [vmem:[%s12779_s2] ss:$0 sm:$0xff] }
 0x346   : > { %v7067_v13 = vpop.permute.xlu1 %7066  ;;  %v3686_v12 = vsel %vm3567_vm3, %v3650_v48, %v7053_v42  ;;  %v3577_v57 = vsel %vm3567_vm3, %v3540_v27, %v7054_v3  ;;  %6482 = vmatprep.mubr.msk.f32.mxu0 %vm2468_vm15, %v10594_v6  ;;  %v7230_v14 = vpack.i.bf16 %v10440_v35, %v10579_v61 }
 0x347   : > { %v7069_v55 = vunpack.i.h.bf16 %v7067_v13  ;;  %v7062_v63 = vpop.permute.xlu0 %7061  ;;  %6483 = vmatmul.mubr.msk.f32.gmra.mrb[20].mxu0 %vm2468_vm15, %v10597_v16  ;;  %v10608_v9 = vsel %vm511_vm0, %v2701_v20, %v2702_v8  ;;  %v3722_v50 = vsel %vm3604_vm4, %v3686_v12, %v7058_v37  ;;  %v7068_v31 = vunpack.i.l.bf16 %v7067_v13 }
 0x348   : > { %v7064_v49 = vunpack.i.h.bf16 %v7062_v63  ;;  %v7063_v24 = vunpack.i.l.bf16 %v7062_v63  ;;  %v7220_v22 = vpack.i.bf16 %v10499_v4, %v10608_v9  ;;  %3973 = vmatprep.mubr.f32.mxu1 %v3722_v50  ;;  %v3614_v19 = vsel %vm3604_vm4, %v3577_v57, %v7059_v51 }
 0x349   : > { %7226 = vrot.lane.b32.xlu1 %v7225_v39, %s7778_s28  ;;  %v10616_v28 = vsel %vm511_vm0, %v2702_v8, %v2704_v43  ;;  %3974 = vmatmul.mubr.f32.gmra.mrb[58].mxu1 %v3614_v19  ;;  %v7240_v13 = vpack.i.bf16 %v10530_v11, %v10594_v6  ;;  %v7715_v39 = vld [vmem:[#allocation2 + $0x80] sm:$0xff] }
 0x34a   : > { %v7077_v56 = vpop.permute.xlu1 %7076  ;;  %v3651_v29 = vsel %vm2468_vm15, %v10182_v23, %v7063_v24  ;;  %v3541_v21 = vsel %vm2468_vm15, %v7713_v17, %v7064_v49  ;;  %7221 = vrot.lane.b32.xlu0 %v7220_v22, %s7779_s11  ;;  %v7235_v4 = vpack.i.bf16 %v10501_v30, %v10616_v28 }
 0x34b   : > { %v7072_v34 = vpop.permute.xlu0 %7071  ;;  %v7079_v38 = vunpack.i.h.bf16 %v7077_v56  ;;  %v7078_v37 = vunpack.i.l.bf16 %v7077_v56  ;;  %v3687_v23 = vsel %vm3567_vm3, %v3651_v29, %v7068_v31  ;;  %v3578_v2 = vsel %vm3567_vm3, %v3541_v21, %v7069_v55  ;;  %v7716_v21 = vld [vmem:[#allocation2 + $0x90] sm:$0xff] }
 0x34c   : > { %v7074_v1 = vunpack.i.h.bf16 %v7072_v34  ;;  %v7073_v53 = vunpack.i.l.bf16 %v7072_v34 }
 0x34d   : > { %7236 = vrot.lane.b32.xlu1 %v7235_v4, %s7779_s11  ;;  %v6425_v46 = vpop.f32.mrb[26].mxu1  ;;  %v3652_v57 = vsel %vm2468_vm15, %v10196_v32, %v7078_v37  ;;  %v3542_v55 = vsel %vm2468_vm15, %v7715_v39, %v7079_v38 }
 0x34e   : > { %v2365_v30 = vadd.f32 %v10632_v40, %v6425_v46  ;;  %v2359_v48 = vpop.f32.mrb[27].mxu1  ;;  %v7087_v3 = vpop.permute.xlu1 %7086  ;;  %v3723_v35 = vsel %vm3604_vm4, %v3687_v23, %v7073_v53  ;;  %v3615_v42 = vsel %vm3604_vm4, %v3578_v2, %v7074_v1  ;;  %7231 = vrot.lane.b32.xlu0 %v7230_v14, %s7777_s23 }
 0x34f   : > { %v2360_v5 = vadd.f32 %v10632_v40, %v2359_v48  ;;  %v7089_v20 = vunpack.i.h.bf16 %v7087_v3  ;;  %v7088_v51 = vunpack.i.l.bf16 %v7087_v3  ;;  %v7082_v43 = vpop.permute.xlu0 %7081  ;;  %3978 = vmatprep.mubr.f32.mxu1 %v3723_v35 }
 0x350   : > { %v2455_v8 = vmax.f32 %v2365_v30, 0.0  ;;  %v7084_v33 = vunpack.i.h.bf16 %v7082_v43  ;;  %v7083_v27 = vunpack.i.l.bf16 %v7082_v43  ;;  %3979 = vmatmul.mubr.f32.gmra.mrb[60].mxu1 %v3615_v42 }
 0x351   : > { %v2454_v12 = vmax.f32 %v2360_v5, 0.0 }
 0x352   : > { %2496 = vst.msk [vmem:[#allocation2 + $0x141] sm:$0xff] %vm2468_vm15, %v2455_v8  ;;  %v3688_v63 = vsel %vm3567_vm3, %v3652_v57, %v7083_v27  ;;  %v3579_v49 = vsel %vm3567_vm3, %v3542_v55, %v7084_v33  ;;  %7241 = vrot.lane.b32.xlu0 %v7240_v13, %s7778_s28 }
 0x353   : > { %2495 = vst.msk [vmem:[#allocation2 + $0x139] sm:$0xff] %vm2468_vm15, %v2454_v12  ;;  %v7092_v24 = vpop.permute.xlu0 %7091  ;;  %v3724_v50 = vsel %vm3604_vm4, %v3688_v63, %v7088_v51  ;;  %v3616_v31 = vsel %vm3604_vm4, %v3579_v49, %v7089_v20  ;;  %v7255_v12 = vpack.i.bf16 %v10538_v47, %v10597_v16 }
 0x354   : > { %3983 = vmatprep.mubr.f32.mxu1 %v3724_v50  ;;  %v7094_v32 = vunpack.i.h.bf16 %v7092_v24  ;;  %v7093_v22 = vunpack.i.l.bf16 %v7092_v24 }
 0x355   : > { %3984 = vmatmul.mubr.f32.gmra.mrb[62].mxu1 %v3616_v31 }
 0x356   : > { %v3653_v17 = vsel %vm2468_vm15, %v10239_v10, %v7093_v22  ;;  %v3543_v34 = vsel %vm2468_vm15, %v7716_v21, %v7094_v32 }
 0x357   : > { %v7097_v19 = vpop.permute.xlu1 %7096 }
 0x358   : > { %v7099_v56 = vunpack.i.h.bf16 %v7097_v19  ;;  %v7098_v29 = vunpack.i.l.bf16 %v7097_v19  ;;  %v7717_v19 = vld [vmem:[#allocation2 + $0x98] sm:$0xff] }
 0x359   : > { %v2568_v4 = vld [vmem:[#allocation2 + $0x148] sm:$0x3] }
 0x35a   : > { %v10654_v1 = vpop.f32.mrb[4].mxu0  ;;  %v10656_v53 = vld [vmem:[#allocation2 + $0x138] sm:$0xff]  ;;  %v10658_v14 = vld [vmem:[#allocation2 + $0x140] sm:$0xff]  ;;  %v3689_v38 = vsel %vm3567_vm3, %v3653_v17, %v7098_v29  ;;  %v3580_v37 = vsel %vm3567_vm3, %v3543_v34, %v7099_v56  ;;  %v2907_v46 = vrot.slane %v2568_v4, 2  ;;  %v2709_v20 = vrot.slane %v2568_v4, 1 }
 0x35b   : > { %v7102_v23 = vpop.permute.xlu0 %7101  ;;  %v10662_v2 = vpop.f32.mrb[5].mxu0  ;;  %v7245_v10 = vpack.i.bf16 %v10516_v58, %v10656_v53  ;;  %v2904_v30 = vrot.slane %v10656_v53, 2  ;;  %v2905_v48 = vrot.slane %v10658_v14, 2  ;;  %v2706_v3 = vrot.slane %v10656_v53, 1 }
 0x35c   : > { %v7104_v35 = vunpack.i.h.bf16 %v7102_v23  ;;  %v7103_v42 = vunpack.i.l.bf16 %v7102_v23  ;;  %v7107_v5 = vpop.permute.xlu1 %7106  ;;  %v2707_v51 = vrot.slane %v10658_v14, 1 }
 0x35d   : > { %v7109_v43 = vunpack.i.h.bf16 %v7107_v5  ;;  %v7108_v8 = vunpack.i.l.bf16 %v7107_v5  ;;  %7246 = vrot.lane.b32.xlu1 %v7245_v10, %s7777_s23  ;;  %v10672_v33 = vsel %vm732_vm1, %v2904_v30, %v2905_v48  ;;  %v10675_v58 = vsel %vm732_vm1, %v2905_v48, %v2907_v46 }
 0x35e   : > { %6485 = vmatprep.mubr.msk.f32.mxu0 %vm2468_vm15, %v10672_v33  ;;  %v3725_v27 = vsel %vm3604_vm4, %v3689_v38, %v7103_v42  ;;  %v3617_v13 = vsel %vm3604_vm4, %v3580_v37, %v7104_v35  ;;  %v10686_v39 = vsel %vm511_vm0, %v2706_v3, %v2707_v51  ;;  %v10691_v50 = vsel %vm511_vm0, %v2707_v51, %v2709_v20  ;;  %v7718_v20 = vld [vmem:[#allocation2 + $0xa8] sm:$0xff] }
 0x35f   : > { %v7112_v57 = vpop.permute.xlu0 %7111  ;;  %3988 = vmatprep.mubr.f32.mxu1 %v3725_v27  ;;  %6486 = vmatmul.mubr.msk.f32.gmra.mrb[22].mxu0 %vm2468_vm15, %v10675_v58  ;;  %v7250_v24 = vpack.i.bf16 %v10577_v60, %v10686_v39  ;;  %v3654_v22 = vsel %vm2468_vm15, %v10250_v62, %v7108_v8  ;;  %v3544_v56 = vsel %vm2468_vm15, %v7717_v19, %v7109_v43 }
 0x360   : > { %v7114_v55 = vunpack.i.h.bf16 %v7112_v57  ;;  %v7113_v63 = vunpack.i.l.bf16 %v7112_v57  ;;  %v7117_v49 = vpop.permute.xlu1 %7116  ;;  %3989 = vmatmul.mubr.f32.gmra.mrb[64].mxu1 %v3617_v13  ;;  %v7265_v34 = vpack.i.bf16 %v10579_v61, %v10691_v50  ;;  %v7260_v62 = vpack.i.bf16 %v10519_v44, %v10658_v14 }
 0x361   : > { %v7119_v31 = vunpack.i.h.bf16 %v7117_v49  ;;  %v7118_v32 = vunpack.i.l.bf16 %v7117_v49  ;;  %7256 = vrot.lane.b32.xlu1 %v7255_v12, %s7778_s28  ;;  %7251 = vrot.lane.b32.xlu0 %v7250_v24, %s7779_s11  ;;  %v7270_v23 = vpack.i.bf16 %v10608_v9, %v10672_v33 }
 0x362   : > { %v3690_v29 = vsel %vm3567_vm3, %v3654_v22, %v7113_v63  ;;  %v3581_v17 = vsel %vm3567_vm3, %v3544_v56, %v7114_v55 }
 0x363   : > { %v3726_v60 = vsel %vm3604_vm4, %v3690_v29, %v7118_v32  ;;  %v3618_v21 = vsel %vm3604_vm4, %v3581_v17, %v7119_v31  ;;  %v7122_v44 = vpop.permute.xlu0 %7121 }
 0x364   : > { %3993 = vmatprep.mubr.f32.mxu1 %v3726_v60  ;;  %v7124_v30 = vunpack.i.h.bf16 %v7122_v44  ;;  %v7123_v48 = vunpack.i.l.bf16 %v7122_v44 }
 0x365   : > { %3994 = vmatmul.mubr.f32.gmra.mrb[66].mxu1 %v3618_v21  ;;  %7266 = vrot.lane.b32.xlu1 %v7265_v34, %s7779_s11  ;;  %v6428_v4 = vpop.f32.mrb[28].mxu1 }
 0x366   : > { %7261 = vrot.lane.b32.xlu0 %v7260_v62, %s7777_s23  ;;  %v2375_v38 = vadd.f32 %v10632_v40, %v6428_v4  ;;  %v2369_v37 = vpop.f32.mrb[29].mxu1  ;;  %v3655_v5 = vsel %vm2468_vm15, %v10293_v41, %v7123_v48  ;;  %v3545_v51 = vsel %vm2468_vm15, %v7718_v20, %v7124_v30 }
 0x367   : > { %v2370_v46 = vadd.f32 %v10632_v40, %v2369_v37 }
 0x368   : > { %v2457_v10 = vmax.f32 %v2375_v38, 0.0  ;;  %v7285_v38 = vpack.i.bf16 %v10616_v28, %v10675_v58 }
 0x369   : > { %v2456_v61 = vmax.f32 %v2370_v46, 0.0 }
 0x36a   : > { %2498 = vst.msk [vmem:[#allocation2 + $0x159] sm:$0xff] %vm2468_vm15, %v2457_v10  ;;  %7271 = vrot.lane.b32.xlu0 %v7270_v23, %s7778_s28 }
 0x36b   : > { %2497 = vst.msk [vmem:[#allocation2 + $0x151] sm:$0xff] %vm2468_vm15, %v2456_v61 }
 0x36f   : > { %v7127_v3 = vpop.permute.xlu1 %7126 }
 0x370   : > { %v7129_v35 = vunpack.i.h.bf16 %v7127_v3  ;;  %v7128_v42 = vunpack.i.l.bf16 %v7127_v3 }
 0x371   : > { %v2571_v43 = vld [vmem:[#allocation2 + $0x160] sm:$0x3] }
 0x372   : > { %v10790_v8 = vpop.f32.mrb[6].mxu0  ;;  %v10792_v27 = vld [vmem:[#allocation2 + $0x150] sm:$0xff]  ;;  %v10794_v13 = vld [vmem:[#allocation2 + $0x158] sm:$0xff]  ;;  %v3691_v12 = vsel %vm3567_vm3, %v3655_v5, %v7128_v42  ;;  %v3582_v57 = vsel %vm3567_vm3, %v3545_v51, %v7129_v35  ;;  %v2912_v55 = vrot.slane %v2571_v43, 2  ;;  %v2714_v29 = vrot.slane %v2571_v43, 1 }
 0x373   : > { %v7132_v63 = vpop.permute.xlu0 %7131  ;;  %v10798_v49 = vpop.f32.mrb[7].mxu0  ;;  %v7275_v41 = vpack.i.bf16 %v10594_v6, %v10792_v27  ;;  %v2909_v24 = vrot.slane %v10792_v27, 2  ;;  %v2910_v31 = vrot.slane %v10794_v13, 2  ;;  %v2711_v32 = vrot.slane %v10792_v27, 1  ;;  %v7719_v42 = vld [vmem:[#allocation2 + $0xb0] sm:$0xff] }
 0x374   : > { %v7134_v22 = vunpack.i.h.bf16 %v7132_v63  ;;  %v7133_v19 = vunpack.i.l.bf16 %v7132_v63  ;;  %v7137_v56 = vpop.permute.xlu1 %7136  ;;  %v2712_v17 = vrot.slane %v10794_v13, 1 }
 0x375   : > { %v7139_v60 = vunpack.i.h.bf16 %v7137_v56  ;;  %v7138_v21 = vunpack.i.l.bf16 %v7137_v56  ;;  %7276 = vrot.lane.b32.xlu1 %v7275_v41, %s7777_s23  ;;  %v10808_v34 = vsel %vm732_vm1, %v2909_v24, %v2910_v31  ;;  %v10811_v6 = vsel %vm732_vm1, %v2910_v31, %v2912_v55 }
 0x376   : > { %6488 = vmatprep.mubr.msk.f32.mxu0 %vm2468_vm15, %v10808_v34  ;;  %v3727_v62 = vsel %vm3604_vm4, %v3691_v12, %v7133_v19  ;;  %v3619_v4 = vsel %vm3604_vm4, %v3582_v57, %v7134_v22  ;;  %v10822_v46 = vsel %vm511_vm0, %v2711_v32, %v2712_v17  ;;  %v10827_v30 = vsel %vm511_vm0, %v2712_v17, %v2714_v29 }
 0x377   : > { %v7142_v37 = vpop.permute.xlu0 %7141  ;;  %3998 = vmatprep.mubr.f32.mxu1 %v3727_v62  ;;  %6489 = vmatmul.mubr.msk.f32.gmra.mrb[24].mxu0 %vm2468_vm15, %v10811_v6  ;;  %v7280_v44 = vpack.i.bf16 %v10656_v53, %v10822_v46  ;;  %v3656_v35 = vsel %vm2468_vm15, %v10305_v25, %v7138_v21  ;;  %v3546_v5 = vsel %vm2468_vm15, %v7719_v42, %v7139_v60 }
 0x378   : > { %v7144_v23 = vunpack.i.h.bf16 %v7142_v37  ;;  %v7143_v10 = vunpack.i.l.bf16 %v7142_v37  ;;  %v7147_v61 = vpop.permute.xlu1 %7146  ;;  %3999 = vmatmul.mubr.f32.gmra.mrb[68].mxu1 %v3619_v4  ;;  %v7295_v12 = vpack.i.bf16 %v10658_v14, %v10827_v30  ;;  %v7290_v25 = vpack.i.bf16 %v10597_v16, %v10794_v13 }
 0x379   : > { %v7149_v48 = vunpack.i.h.bf16 %v7147_v61  ;;  %v7148_v3 = vunpack.i.l.bf16 %v7147_v61  ;;  %7286 = vrot.lane.b32.xlu1 %v7285_v38, %s7778_s28  ;;  %7281 = vrot.lane.b32.xlu0 %v7280_v44, %s7779_s11  ;;  %v7300_v24 = vpack.i.bf16 %v10686_v39, %v10808_v34 }
 0x37a   : > { %v3692_v20 = vsel %vm3567_vm3, %v3656_v35, %v7143_v10  ;;  %v3583_v51 = vsel %vm3567_vm3, %v3546_v5, %v7144_v23  ;;  %v7315_v35 = vpack.i.bf16 %v10691_v50, %v10811_v6 }
 0x37b   : > { %v3728_v53 = vsel %vm3604_vm4, %v3692_v20, %v7148_v3  ;;  %v3620_v43 = vsel %vm3604_vm4, %v3583_v51, %v7149_v48  ;;  %v7152_v16 = vpop.permute.xlu0 %7151 }
 0x37c   : > { %4003 = vmatprep.mubr.f32.mxu1 %v3728_v53  ;;  %v7153_v22 = vunpack.i.l.bf16 %v7152_v16  ;;  %v7154_v56 = vunpack.i.h.bf16 %v7152_v16 }
 0x37d   : > { %4004 = vmatmul.mubr.f32.gmra.mrb[70].mxu1 %v3620_v43  ;;  %7296 = vrot.lane.b32.xlu1 %v7295_v12, %s7779_s11  ;;  %v6431_v57 = vpop.f32.mrb[30].mxu1  ;;  %v7720_v12 = vld [vmem:[#allocation2 + $0xc0] sm:$0xff] }
 0x37e   : > { %7291 = vrot.lane.b32.xlu0 %v7290_v25, %s7777_s23  ;;  %v2385_v55 = vadd.f32 %v10632_v40, %v6431_v57  ;;  %v2379_v63 = vpop.f32.mrb[31].mxu1  ;;  %v3547_v25 = vsel %vm2468_vm15, %v7720_v12, %v7154_v56 }
 0x37f   : > { %v2380_v41 = vadd.f32 %v10632_v40, %v2379_v63 }
 0x380   : > { %v2459_v31 = vmax.f32 %v2385_v55, 0.0 }
 0x381   : > { %v2458_v14 = vmax.f32 %v2380_v41, 0.0 }
 0x382   : > { %2500 = vst.msk [vmem:[#allocation2 + $0x171] sm:$0xff] %vm2468_vm15, %v2459_v31  ;;  %7301 = vrot.lane.b32.xlu0 %v7300_v24, %s7778_s28 }
 0x383   : > { %2499 = vst.msk [vmem:[#allocation2 + $0x169] sm:$0xff] %vm2468_vm15, %v2458_v14 }
 0x387   : > { %v7157_v32 = vpop.permute.xlu1 %7156 }
 0x388   : > { %v7159_v29 = vunpack.i.h.bf16 %v7157_v32  ;;  %v7158_v17 = vunpack.i.l.bf16 %v7157_v32 }
 0x389   : > { %v2574_v19 = vld [vmem:[#allocation2 + $0x178] sm:$0x3] }
 0x38a   : > { %v10851_v60 = vpop.f32.mrb[8].mxu0  ;;  %v10853_v21 = vld [vmem:[#allocation2 + $0x168] sm:$0xff]  ;;  %v10855_v62 = vld [vmem:[#allocation2 + $0x170] sm:$0xff]  ;;  %v2917_v4 = vrot.slane %v2574_v19, 2  ;;  %v2719_v48 = vrot.slane %v2574_v19, 1  ;;  %v3584_v41 = vsel %vm3567_vm3, %v3547_v25, %v7159_v29 }
 0x38b   : > { %v10857_v38 = vpop.f32.mrb[9].mxu0  ;;  %v7167_v37 = vpop.permute.xlu1 %7166  ;;  %v7305_v23 = vpack.i.bf16 %v10672_v33, %v10853_v21  ;;  %v2914_v10 = vrot.slane %v10853_v21, 2  ;;  %v2915_v61 = vrot.slane %v10855_v62, 2  ;;  %v2716_v44 = vrot.slane %v10853_v21, 1 }
 0x38c   : > { %v2717_v3 = vrot.slane %v10855_v62, 1  ;;  %v7162_v42 = vpop.permute.xlu0 %7161  ;;  %v3657_v33 = vsel %vm2468_vm15, %v10363_v26, %v7153_v22  ;;  %v7169_v57 = vunpack.i.h.bf16 %v7167_v37  ;;  %v7168_v55 = vunpack.i.l.bf16 %v7167_v37 }
 0x38d   : > { %7306 = vrot.lane.b32.xlu1 %v7305_v23, %s7777_s23  ;;  %v10869_v5 = vsel %vm732_vm1, %v2914_v10, %v2915_v61  ;;  %v10874_v20 = vsel %vm732_vm1, %v2915_v61, %v2917_v4  ;;  %v7164_v51 = vunpack.i.h.bf16 %v7162_v42  ;;  %v7163_v53 = vunpack.i.l.bf16 %v7162_v42  ;;  %v7721_v4 = vld [vmem:[#allocation2 + $0xc8] sm:$0xff] }
 0x38e   : > { %6491 = vmatprep.mubr.msk.f32.mxu0 %vm2468_vm15, %v10869_v5  ;;  %v3693_v43 = vsel %vm3567_vm3, %v3657_v33, %v7158_v17  ;;  %v10884_v26 = vsel %vm511_vm0, %v2716_v44, %v2717_v3  ;;  %v10889_v14 = vsel %vm511_vm0, %v2717_v3, %v2719_v48  ;;  %v3658_v17 = vsel %vm2468_vm15, %v10375_v45, %v7168_v55 }
 0x38f   : > { %v7177_v63 = vpop.permute.xlu1 %7176  ;;  %6492 = vmatmul.mubr.msk.f32.gmra.mrb[26].mxu0 %vm2468_vm15, %v10874_v20  ;;  %v3729_v24 = vsel %vm3604_vm4, %v3693_v43, %v7163_v53  ;;  %v3621_v31 = vsel %vm3604_vm4, %v3584_v41, %v7164_v51  ;;  %v7310_v19 = vpack.i.bf16 %v10792_v27, %v10884_v26  ;;  %v3548_v37 = vsel %vm2468_vm15, %v7721_v4, %v7169_v57 }
 0x390   : > { %v7172_v16 = vpop.permute.xlu0 %7171  ;;  %4008 = vmatprep.mubr.f32.mxu1 %v3729_v24  ;;  %v7179_v32 = vunpack.i.h.bf16 %v7177_v63  ;;  %v7178_v22 = vunpack.i.l.bf16 %v7177_v63  ;;  %v7325_v23 = vpack.i.bf16 %v10794_v13, %v10889_v14  ;;  %v7320_v44 = vpack.i.bf16 %v10675_v58, %v10855_v62 }
 0x391   : > { %7316 = vrot.lane.b32.xlu1 %v7315_v35, %s7778_s28  ;;  %v7174_v56 = vunpack.i.h.bf16 %v7172_v16  ;;  %v7173_v29 = vunpack.i.l.bf16 %v7172_v16  ;;  %4009 = vmatmul.mubr.f32.gmra.mrb[72].mxu1 %v3621_v31  ;;  %v7330_v33 = vpack.i.bf16 %v10822_v46, %v10869_v5 }
 0x392   : > { %7311 = vrot.lane.b32.xlu0 %v7310_v19, %s7779_s11 }
 0x393   : > { %v3694_v10 = vsel %vm3567_vm3, %v3658_v17, %v7173_v29  ;;  %v3585_v27 = vsel %vm3567_vm3, %v3548_v37, %v7174_v56  ;;  %v7345_v37 = vpack.i.bf16 %v10827_v30, %v10874_v20 }
 0x394   : > { %v3730_v61 = vsel %vm3604_vm4, %v3694_v10, %v7178_v22  ;;  %v3622_v48 = vsel %vm3604_vm4, %v3585_v27, %v7179_v32  ;;  %v7182_v58 = vpop.permute.xlu0 %7181 }
 0x395   : > { %7326 = vrot.lane.b32.xlu1 %v7325_v23, %s7779_s11  ;;  %v6434_v45 = vpop.f32.mrb[32].mxu1  ;;  %4013 = vmatprep.mubr.f32.mxu1 %v3730_v61  ;;  %v7183_v43 = vunpack.i.l.bf16 %v7182_v58  ;;  %v7184_v25 = vunpack.i.h.bf16 %v7182_v58 }
 0x396   : > { %v2395_v3 = vadd.f32 %v10632_v40, %v6434_v45  ;;  %v2389_v35 = vpop.f32.mrb[33].mxu1  ;;  %7321 = vrot.lane.b32.xlu0 %v7320_v44, %s7777_s23  ;;  %4014 = vmatmul.mubr.f32.gmra.mrb[74].mxu1 %v3622_v48  ;;  %v7722_v45 = vld [vmem:[#allocation2 + $0xd8] sm:$0xff] }
 0x397   : > { %v2390_v13 = vadd.f32 %v10632_v40, %v2389_v35 }
 0x398   : > { %v2461_v42 = vmax.f32 %v2395_v3, 0.0  ;;  %v3549_v3 = vsel %vm2468_vm15, %v7722_v45, %v7184_v25 }
 0x399   : > { %v2460_v51 = vmax.f32 %v2390_v13, 0.0 }
 0x39a   : > { %2502 = vst.msk [vmem:[#allocation2 + $0x189] sm:$0xff] %vm2468_vm15, %v2461_v42  ;;  %7331 = vrot.lane.b32.xlu0 %v7330_v33, %s7778_s28 }
 0x39b   : > { %2501 = vst.msk [vmem:[#allocation2 + $0x181] sm:$0xff] %vm2468_vm15, %v2460_v51 }
 0x39f   : > { %v7187_v53 = vpop.permute.xlu1 %7186 }
 0x3a0   : > { %v7189_v57 = vunpack.i.h.bf16 %v7187_v53  ;;  %v7188_v55 = vunpack.i.l.bf16 %v7187_v53 }
 0x3a1   : > { %v2577_v12 = vld [vmem:[#allocation2 + $0x190] sm:$0x3] }
 0x3a2   : > { %v10915_v63 = vpop.f32.mrb[10].mxu0  ;;  %v10917_v41 = vld [vmem:[#allocation2 + $0x180] sm:$0xff]  ;;  %v10919_v24 = vld [vmem:[#allocation2 + $0x188] sm:$0xff]  ;;  %v2922_v31 = vrot.slane %v2577_v12, 2  ;;  %v2724_v17 = vrot.slane %v2577_v12, 1  ;;  %v3586_v33 = vsel %vm3567_vm3, %v3549_v3, %v7189_v57 }
 0x3a3   : > { %v10921_v16 = vpop.f32.mrb[11].mxu0  ;;  %v7197_v32 = vpop.permute.xlu1 %7196  ;;  %v7335_v22 = vpack.i.bf16 %v10808_v34, %v10917_v41  ;;  %v2919_v19 = vrot.slane %v10917_v41, 2  ;;  %v2920_v56 = vrot.slane %v10919_v24, 2  ;;  %v2721_v29 = vrot.slane %v10917_v41, 1 }
 0x3a4   : > { %v2722_v4 = vrot.slane %v10919_v24, 1  ;;  %v7192_v23 = vpop.permute.xlu0 %7191  ;;  %v3659_v34 = vsel %vm2468_vm15, %v10451_v15, %v7183_v43  ;;  %v7199_v35 = vunpack.i.h.bf16 %v7197_v32  ;;  %v7198_v13 = vunpack.i.l.bf16 %v7197_v32 }
 0x3a5   : > { %7336 = vrot.lane.b32.xlu1 %v7335_v22, %s7777_s23  ;;  %v10933_v10 = vsel %vm732_vm1, %v2919_v19, %v2920_v56  ;;  %v10938_v27 = vsel %vm732_vm1, %v2920_v56, %v2922_v31  ;;  %v7194_v61 = vunpack.i.h.bf16 %v7192_v23  ;;  %v7193_v44 = vunpack.i.l.bf16 %v7192_v23  ;;  %v7723_v22 = vld [vmem:[#allocation2 + $0xe0] sm:$0xff] }
 0x3a6   : > { %6494 = vmatprep.mubr.msk.f32.mxu0 %vm2468_vm15, %v10933_v10  ;;  %v3695_v48 = vsel %vm3567_vm3, %v3659_v34, %v7188_v55  ;;  %v10948_v15 = vsel %vm511_vm0, %v2721_v29, %v2722_v4  ;;  %v10953_v53 = vsel %vm511_vm0, %v2722_v4, %v2724_v17  ;;  %v3660_v32 = vsel %vm2468_vm15, %v10459_v0, %v7198_v13 }
 0x3a7   : > { %v7207_v42 = vpop.permute.xlu1 %7206  ;;  %6495 = vmatmul.mubr.msk.f32.gmra.mrb[28].mxu0 %vm2468_vm15, %v10938_v27  ;;  %v3731_v51 = vsel %vm3604_vm4, %v3695_v48, %v7193_v44  ;;  %v3623_v58 = vsel %vm3604_vm4, %v3586_v33, %v7194_v61  ;;  %v7340_v57 = vpack.i.bf16 %v10853_v21, %v10948_v15  ;;  %v3550_v19 = vsel %vm2468_vm15, %v7723_v22, %v7199_v35 }
 0x3a8   : > { %v7202_v43 = vpop.permute.xlu0 %7201  ;;  %4018 = vmatprep.mubr.f32.mxu1 %v3731_v51  ;;  %v7209_v12 = vunpack.i.h.bf16 %v7207_v42  ;;  %v7208_v25 = vunpack.i.l.bf16 %v7207_v42  ;;  %v7355_v56 = vpack.i.bf16 %v10855_v62, %v10953_v53  ;;  %v7350_v4 = vpack.i.bf16 %v10811_v6, %v10919_v24 }
 0x3a9   : > { %7346 = vrot.lane.b32.xlu1 %v7345_v37, %s7778_s28  ;;  %v7204_v55 = vunpack.i.h.bf16 %v7202_v43  ;;  %v7203_v31 = vunpack.i.l.bf16 %v7202_v43  ;;  %4019 = vmatmul.mubr.f32.gmra.mrb[76].mxu1 %v3623_v58  ;;  %v7360_v44 = vpack.i.bf16 %v10884_v26, %v10933_v10 }
 0x3aa   : > { %7341 = vrot.lane.b32.xlu0 %v7340_v57, %s7779_s11 }
 0x3ab   : > { %v3696_v29 = vsel %vm3567_vm3, %v3660_v32, %v7203_v31  ;;  %v3587_v21 = vsel %vm3567_vm3, %v3550_v19, %v7204_v55 }
 0x3ac   : > { %v3732_v17 = vsel %vm3604_vm4, %v3696_v29, %v7208_v25  ;;  %v3624_v37 = vsel %vm3604_vm4, %v3587_v21, %v7209_v12  ;;  %v7212_v6 = vpop.permute.xlu0 %7211  ;;  %v7375_v29 = vpack.i.bf16 %v10889_v14, %v10938_v27 }
 0x3ad   : > { %7356 = vrot.lane.b32.xlu1 %v7355_v56, %s7779_s11  ;;  %v6437_v0 = vpop.f32.mrb[34].mxu1  ;;  %4023 = vmatprep.mubr.f32.mxu1 %v3732_v17  ;;  %v7213_v3 = vunpack.i.l.bf16 %v7212_v6  ;;  %v7214_v13 = vunpack.i.h.bf16 %v7212_v6 }
 0x3ae   : > { %v2405_v23 = vadd.f32 %v10632_v40, %v6437_v0  ;;  %v2399_v34 = vpop.f32.mrb[35].mxu1  ;;  %7351 = vrot.lane.b32.xlu0 %v7350_v4, %s7777_s23  ;;  %4024 = vmatmul.mubr.f32.gmra.mrb[78].mxu1 %v3624_v37 }
 0x3af   : > { %v2400_v62 = vadd.f32 %v10632_v40, %v2399_v34  ;;  %v7724_v34 = vld [vmem:[#allocation2 + $0xf0] sm:$0xff] }
 0x3b0   : > { %v2463_v61 = vmax.f32 %v2405_v23, 0.0 }
 0x3b1   : > { %v2462_v48 = vmax.f32 %v2400_v62, 0.0  ;;  %v3551_v62 = vsel %vm2468_vm15, %v7724_v34, %v7214_v13 }
 0x3b2   : > { %2504 = vst.msk [vmem:[#allocation2 + $0x1a1] sm:$0xff] %vm2468_vm15, %v2463_v61  ;;  %7361 = vrot.lane.b32.xlu0 %v7360_v44, %s7778_s28  ;;  %v5189_v61 = vld [vmem:[%s12782_s5] sm:$0xff] }
 0x3b3   : > { %2503 = vst.msk [vmem:[#allocation2 + $0x199] sm:$0xff] %vm2468_vm15, %v2462_v48 }
 0x3b7   : > { %v7217_v45 = vpop.permute.xlu1 %7216 }
 0x3b8   : > { %v7219_v42 = vunpack.i.h.bf16 %v7217_v45  ;;  %v7218_v33 = vunpack.i.l.bf16 %v7217_v45 }
 0x3b9   : > { %v2580_v35 = vld [vmem:[#allocation2 + $0x1a8] sm:$0x3] }
 0x3ba   : > { %v10979_v51 = vpop.f32.mrb[12].mxu0  ;;  %v10981_v58 = vld [vmem:[#allocation2 + $0x198] sm:$0xff]  ;;  %v10983_v43 = vld [vmem:[#allocation2 + $0x1a0] sm:$0xff]  ;;  %v2927_v12 = vrot.slane %v2580_v35, 2  ;;  %v2729_v19 = vrot.slane %v2580_v35, 1  ;;  %v3588_v45 = vsel %vm3567_vm3, %v3551_v62, %v7219_v42 }
 0x3bb   : > { %v10985_v25 = vpop.f32.mrb[13].mxu0  ;;  %v7227_v57 = vpop.permute.xlu1 %7226  ;;  %v7365_v55 = vpack.i.bf16 %v10869_v5, %v10981_v58  ;;  %v2924_v31 = vrot.slane %v10981_v58, 2  ;;  %v2925_v32 = vrot.slane %v10983_v43, 2  ;;  %v2726_v22 = vrot.slane %v10981_v58, 1 }
 0x3bc   : > { %v2727_v56 = vrot.slane %v10983_v43, 1  ;;  %v7222_v21 = vpop.permute.xlu0 %7221  ;;  %v3661_v5 = vsel %vm2468_vm15, %v10530_v11, %v7213_v3  ;;  %v5190_v11 = vld [vmem:[%s12782_s5 + $0x8] sm:$0xff]  ;;  %v7229_v44 = vunpack.i.h.bf16 %v7227_v57  ;;  %v7228_v48 = vunpack.i.l.bf16 %v7227_v57 }
 0x3bd   : > { %7366 = vrot.lane.b32.xlu1 %v7365_v55, %s7777_s23  ;;  %v10997_v17 = vsel %vm732_vm1, %v2924_v31, %v2925_v32  ;;  %v11002_v4 = vsel %vm732_vm1, %v2925_v32, %v2927_v12  ;;  %v7224_v37 = vunpack.i.h.bf16 %v7222_v21  ;;  %v7223_v0 = vunpack.i.l.bf16 %v7222_v21  ;;  %v5191_v32 = vld [vmem:[%s12782_s5 + $0x10] sm:$0xff] }
 0x3be   : > { %6497 = vmatprep.mubr.msk.f32.mxu0 %vm2468_vm15, %v10997_v17  ;;  %v3697_v23 = vsel %vm3567_vm3, %v3661_v5, %v7218_v33  ;;  %v11018_v3 = vsel %vm511_vm0, %v2726_v22, %v2727_v56  ;;  %v11023_v33 = vsel %vm511_vm0, %v2727_v56, %v2729_v19  ;;  %v6637_v31 = vpack.c.bf16 %v5190_v11, %v5189_v61  ;;  %v5192_v22 = vld [vmem:[%s12782_s5 + $0x18] sm:$0xff]  ;;  %v5194_v11 = vld [vmem:[%s12782_s5 + $0x28] sm:$0xff] }
 0x3bf   : > { %v7237_v6 = vpop.permute.xlu1 %7236  ;;  %6498 = vmatmul.mubr.msk.f32.gmra.mrb[30].mxu0 %vm2468_vm15, %v11002_v4  ;;  %v3733_v35 = vsel %vm3604_vm4, %v3697_v23, %v7223_v0  ;;  %v3625_v13 = vsel %vm3604_vm4, %v3588_v45, %v7224_v37  ;;  %v7370_v42 = vpack.i.bf16 %v10917_v41, %v11018_v3  ;;  %v3662_v21 = vsel %vm2468_vm15, %v10538_v47, %v7228_v48  ;;  %v7725_v41 = vld [vmem:[#allocation2 + $0xf8] sm:$0xff] }
 0x3c0   : > { %v7232_v12 = vpop.permute.xlu0 %7231  ;;  %4028 = vmatprep.mubr.f32.mxu1 %v3733_v35  ;;  %v7239_v55 = vunpack.i.h.bf16 %v7237_v6  ;;  %v7238_v57 = vunpack.i.l.bf16 %v7237_v6  ;;  %v7385_v5 = vpack.i.bf16 %v10919_v24, %v11023_v33  ;;  %6638 = vmatpush1.bf16.msra.mxu0 %v6637_v31  ;;  %v6640_v23 = vpack.c.bf16 %v5192_v22, %v5191_v32  ;;  %v5193_v24 = vld [vmem:[%s12782_s5 + $0x20] sm:$0xff] }
 0x3c1   : > { %7376 = vrot.lane.b32.xlu1 %v7375_v29, %s7778_s28  ;;  %v7234_v19 = vunpack.i.h.bf16 %v7232_v12  ;;  %v7233_v56 = vunpack.i.l.bf16 %v7232_v12  ;;  %4029 = vmatmul.mubr.f32.gmra.mrb[80].mxu1 %v3625_v13  ;;  %v3552_v29 = vsel %vm2468_vm15, %v7725_v41, %v7229_v44  ;;  %v7380_v47 = vpack.i.bf16 %v10874_v20, %v10983_v43  ;;  %v5195_v12 = vld [vmem:[%s12782_s5 + $0x30] sm:$0xff] }
 0x3c2   : > { %7371 = vrot.lane.b32.xlu0 %v7370_v42, %s7779_s11  ;;  %6639 = vmatprep.subr.bf16.mxu0 %v12908_v7  ;;  %v6643_v45 = vpack.c.bf16 %v5194_v11, %v5193_v24  ;;  %v7390_v35 = vpack.i.bf16 %v10948_v15, %v10997_v17  ;;  %v5197_v42 = vld [vmem:[%s12782_s5 + $0x40] sm:$0xff]  ;;  %v5199_v41 = vld [vmem:[%s12782_s5 + $0x50] sm:$0xff] }
 0x3c3   : > { %v3698_v37 = vsel %vm3567_vm3, %v3662_v21, %v7233_v56  ;;  %v3589_v0 = vsel %vm3567_vm3, %v3552_v29, %v7234_v19  ;;  %6764 = vmatpush1.bf16.msra.mxu1 %v6637_v31  ;;  %v5198_v31 = vld [vmem:[%s12782_s5 + $0x48] sm:$0xff]  ;;  %v5200_v29 = vld [vmem:[%s12782_s5 + $0x58] sm:$0xff] }
 0x3c4   : > { %v3734_v34 = vsel %vm3604_vm4, %v3698_v37, %v7238_v57  ;;  %v3626_v62 = vsel %vm3604_vm4, %v3589_v0, %v7239_v55  ;;  %6749 = vmatprep.subr.bf16.mxu1 %v12908_v7  ;;  %6641 = vmatpush1.bf16.msra.mxu0 %v6640_v23  ;;  %v5196_v55 = vld [vmem:[%s12782_s5 + $0x38] sm:$0xff]  ;;  %v6649_v21 = vpack.c.bf16 %v5198_v31, %v5197_v42 }
 0x3c5   : > { %7386 = vrot.lane.b32.xlu1 %v7385_v5, %s7779_s11  ;;  %v6440_v61 = vpop.f32.mrb[36].mxu1  ;;  %4033 = vmatprep.mubr.f32.mxu1 %v3734_v34  ;;  %v6646_v57 = vpack.c.bf16 %v5196_v55, %v5195_v12 }
 0x3c6   : > { %v2415_v44 = vadd.f32 %v10632_v40, %v6440_v61  ;;  %v2409_v48 = vpop.f32.mrb[37].mxu1  ;;  %7381 = vrot.lane.b32.xlu0 %v7380_v47, %s7777_s23  ;;  %4034 = vmatmul.mubr.f32.gmra.mrb[82].mxu1 %v3626_v62  ;;  %v7726_v61 = vld [vmem:[#allocation2 + $0x108] sm:$0xff] }
 0x3c7   : > { %v2410_v20 = vadd.f32 %v10632_v40, %v2409_v48  ;;  %6765 = vmatpush1.bf16.msra.mxu1 %v6640_v23  ;;  %6642 = vmatprep.subr.bf16.mxu0 %v12908_v7  ;;  %v7242_v40 = vpop.permute.xlu0 %7241 }
 0x3c8   : > { %v2465_v6 = vmax.f32 %v2415_v44, 0.0  ;;  %6750 = vmatprep.subr.bf16.mxu1 %v12908_v7  ;;  %6644 = vmatpush1.bf16.msra.mxu0 %v6643_v45  ;;  %v7243_v32 = vunpack.i.l.bf16 %v7242_v40  ;;  %v7244_v22 = vunpack.i.h.bf16 %v7242_v40 }
 0x3c9   : > { %v2464_v13 = vmax.f32 %v2410_v20, 0.0  ;;  %6645 = vmatprep.subr.bf16.mxu0 %v12908_v7 }
 0x3ca   : > { %2506 = vst.msk [vmem:[#allocation2 + $0x1b9] sm:$0xff] %vm2468_vm15, %v2465_v6  ;;  %7391 = vrot.lane.b32.xlu0 %v7390_v35, %s7778_s28  ;;  %v3663_v0 = vsel %vm2468_vm15, %v10608_v9, %v7243_v32  ;;  %v3553_v24 = vsel %vm2468_vm15, %v7726_v61, %v7244_v22 }
 0x3cb   : > { %2523 = vst.msk [vmem:[#allocation2 + $0x1c0] sm:$0x3] %vm2515_vm2, %v12906_v52  ;;  %6766 = vmatpush1.bf16.msra.mxu1 %v6643_v45  ;;  %v6652_v45 = vpack.c.bf16 %v5200_v29, %v5199_v41  ;;  %v5202_v41 = vld [vmem:[%s12782_s5 + $0x68] sm:$0xff]  ;;  %v7405_v29 = vpack.i.bf16 %v10953_v53, %v11002_v4 }
 0x3cc   : > { %2505 = vst.msk [vmem:[#allocation2 + $0x1b1] sm:$0xff] %vm2468_vm15, %v2464_v13  ;;  %6751 = vmatprep.subr.bf16.mxu1 %v12908_v7  ;;  %6647 = vmatpush1.bf16.msra.mxu0 %v6646_v57 }
 0x3cd   : > { %2521 = vst.msk [vmem:[#allocation2 + $0x1b0] sm:$0xff] %vm2468_vm15, %v12906_v52  ;;  %2522 = vst.msk [vmem:[#allocation2 + $0x1b8] sm:$0xff] %vm2468_vm15, %v12906_v52  ;;  %6648 = vmatprep.subr.bf16.mxu0 %v12908_v7 }
 0x3cf   : > { %v7247_v19 = vpop.permute.xlu1 %7246  ;;  %6767 = vmatpush1.bf16.msra.mxu1 %v6646_v57 }
 0x3d0   : > { %v7248_v56 = vunpack.i.l.bf16 %v7247_v19  ;;  %6752 = vmatprep.subr.bf16.mxu1 %v12908_v7  ;;  %v7249_v5 = vunpack.i.h.bf16 %v7247_v19  ;;  %6650 = vmatpush1.bf16.msra.mxu0 %v6649_v21 }
 0x3d1   : > { %6651 = vmatprep.subr.bf16.mxu0 %v12908_v7 }
 0x3d2   : > { %v11093_v37 = vpop.f32.mrb[14].mxu0  ;;  %v3699_v62 = vsel %vm3567_vm3, %v3663_v0, %v7248_v56  ;;  %v2583_v44 = vld [vmem:[#allocation2 + $0x1c0] sm:$0x3]  ;;  %v3590_v40 = vsel %vm3567_vm3, %v3553_v24, %v7249_v5 }
 0x3d3   : > { %v11097_v23 = vpop.f32.mrb[15].mxu0  ;;  %v7257_v34 = vpop.permute.xlu1 %7256  ;;  %6768 = vmatpush1.bf16.msra.mxu1 %v6649_v21  ;;  %v3151_v57 = vrot.slane %v2583_v44, 1  ;;  %v3192_v56 = vrot.slane %v2583_v44, 2  ;;  %v5201_v21 = vld [vmem:[%s12782_s5 + $0x60] sm:$0xff] }
 0x3d4   : > { %v11099_v47 = vld [vmem:[#allocation2 + $0x1b0] sm:$0xff]  ;;  %v11103_v11 = vld [vmem:[#allocation2 + $0x1b8] sm:$0xff]  ;;  %v7252_v48 = vpop.permute.xlu0 %7251  ;;  %v7259_v20 = vunpack.i.h.bf16 %v7257_v34  ;;  %v7258_v12 = vunpack.i.l.bf16 %v7257_v34  ;;  %6753 = vmatprep.subr.bf16.mxu1 %v12908_v7  ;;  %6653 = vmatpush1.bf16.msra.mxu0 %v6652_v45 }
 0x3d5   : > { %v7395_v6 = vpack.i.bf16 %v10933_v10, %v11099_v47  ;;  %v3148_v9 = vrot.slane %v11099_v47, 1  ;;  %v7254_v35 = vunpack.i.h.bf16 %v7252_v48  ;;  %v7253_v13 = vunpack.i.l.bf16 %v7252_v48  ;;  %v7727_v48 = vld [vmem:[#allocation2 + $0x110] sm:$0xff]  ;;  %6654 = vmatprep.subr.bf16.mxu0 %v12908_v7 }
 0x3d6   : > { %v3149_v55 = vrot.slane %v11103_v11, 1  ;;  %v3189_v10 = vrot.slane %v11099_v47, 2  ;;  %v3190_v42 = vrot.slane %v11103_v11, 2  ;;  %v3664_v44 = vsel %vm2468_vm15, %v10616_v28, %v7258_v12  ;;  %v5204_v28 = vld [vmem:[%s12782_s5 + $0x78] sm:$0xff] }
 0x3d7   : > { %7396 = vrot.lane.b32.xlu1 %v7395_v6, %s7777_s23  ;;  %v3735_v31 = vsel %vm3604_vm4, %v3699_v62, %v7253_v13  ;;  %v7267_v32 = vpop.permute.xlu1 %7266  ;;  %v3627_v22 = vsel %vm3604_vm4, %v3590_v40, %v7254_v35  ;;  %v3554_v6 = vsel %vm2468_vm15, %v7727_v48, %v7259_v20  ;;  %v6655_v35 = vpack.c.bf16 %v5202_v41, %v5201_v21  ;;  %v5203_v13 = vld [vmem:[%s12782_s5 + $0x70] sm:$0xff]  ;;  %v5206_v21 = vld [vmem:[%s12782_s5 + $0x88] sm:$0xff] }
 0x3d8   : > { %v11118_v19 = vsel %vm511_vm0, %v3148_v9, %v3149_v55  ;;  %v7262_v5 = vpop.permute.xlu0 %7261  ;;  %4038 = vmatprep.mubr.f32.mxu1 %v3735_v31  ;;  %v7269_v0 = vunpack.i.h.bf16 %v7267_v32  ;;  %v7268_v34 = vunpack.i.l.bf16 %v7267_v32  ;;  %v11137_v9 = vsel %vm511_vm0, %v3149_v55, %v3151_v57  ;;  %6769 = vmatpush1.bf16.msra.mxu1 %v6652_v45  ;;  %v7728_v45 = vld [vmem:[%s12779_s2] ss:$0 sm:$0xff] }
 0x3d9   : > { %v7400_v62 = vpack.i.bf16 %v10981_v58, %v11118_v19  ;;  %v7264_v61 = vunpack.i.h.bf16 %v7262_v5  ;;  %v7263_v24 = vunpack.i.l.bf16 %v7262_v5  ;;  %4039 = vmatmul.mubr.f32.gmra.mrb[84].mxu1 %v3627_v22  ;;  %v3191_v58 = vsel %vm732_vm1, %v3189_v10, %v3190_v42  ;;  %6754 = vmatprep.subr.bf16.mxu1 %v12908_v7 }
 0x3da   : > { %v11149_v40 = vsel %vm732_vm1, %v3190_v42, %v3192_v56  ;;  %6500 = vmatprep.mubr.msk.f32.mxu0 %vm2468_vm15, %v3191_v58  ;;  %v7410_v10 = vpack.i.bf16 %v10938_v27, %v11103_v11  ;;  %v7415_v42 = vpack.i.bf16 %v10983_v43, %v11137_v9  ;;  %6656 = vmatpush1.bf16.msra.mxu0 %v6655_v35  ;;  %v5205_v56 = vld [vmem:[%s12782_s5 + $0x80] sm:$0xff] }
 0x3db   : > { %7401 = vrot.lane.b32.xlu0 %v7400_v62, %s7779_s11  ;;  %7406 = vrot.lane.b32.xlu1 %v7405_v29, %s7778_s28  ;;  %v3700_v20 = vsel %vm3567_vm3, %v3664_v44, %v7263_v24  ;;  %v3591_v12 = vsel %vm3567_vm3, %v3554_v6, %v7264_v61  ;;  %v6658_v32 = vpack.c.bf16 %v5204_v28, %v5203_v13  ;;  %v5208_v62 = vld [vmem:[%s12782_s5 + $0x98] sm:$0xff]  ;;  %v11194_v24 = vld [vmem:[%s12781_s4] ss:$0 sm:$0xff] }
 0x3dc   : > { %v3736_v55 = vsel %vm3604_vm4, %v3700_v20, %v7268_v34  ;;  %v3628_v57 = vsel %vm3604_vm4, %v3591_v12, %v7269_v0  ;;  %6501 = vmatmul.mubr.msk.f32.gmra.mrb[32].mxu0 %vm2468_vm15, %v11149_v40  ;;  %6657 = vmatprep.subr.bf16.mxu0 %v12908_v7  ;;  %v7420_v29 = vpack.i.bf16 %v11018_v3, %v3191_v58  ;;  %v5207_v34 = vld [vmem:[%s12782_s5 + $0x90] sm:$0xff]  ;;  %v7272_v61 = vpop.permute.xlu0 %7271  ;;  %v5209_v6 = vld [vmem:[%s12782_s5 + $0xa0] sm:$0xff]  ;;  %v5210_v58 = vld [vmem:[%s12782_s5 + $0xa8] sm:$0xff] }
 0x3dd   : > { %4043 = vmatprep.mubr.f32.mxu1 %v3736_v55  ;;  %v6443_v31 = vpop.f32.mrb[38].mxu1  ;;  %6770 = vmatpush1.bf16.msra.mxu1 %v6655_v35  ;;  %v6661_v0 = vpack.c.bf16 %v5206_v21, %v5205_v56  ;;  %v6664_v44 = vpack.c.bf16 %v5208_v62, %v5207_v34  ;;  %v7273_v48 = vunpack.i.l.bf16 %v7272_v61  ;;  %v7274_v35 = vunpack.i.h.bf16 %v7272_v61 }
 0x3de   : > { %4044 = vmatmul.mubr.f32.gmra.mrb[86].mxu1 %v3628_v57  ;;  %v2425_v22 = vadd.f32 %v7728_v45, %v6443_v31  ;;  %v2419_v27 = vpop.f32.mrb[39].mxu1  ;;  %6659 = vmatpush1.bf16.msra.mxu0 %v6658_v32  ;;  %v6667_v57 = vpack.c.bf16 %v5210_v58, %v5209_v6  ;;  %v5212_v31 = vld [vmem:[%s12782_s5 + $0xb8] sm:$0xff] }
 0x3df   : > { %7411 = vrot.lane.b32.xlu0 %v7410_v10, %s7777_s23  ;;  %7416 = vrot.lane.b32.xlu1 %v7415_v42, %s7779_s11  ;;  %v2420_v43 = vadd.f32 %v7728_v45, %v2419_v27  ;;  %v5211_v10 = vld [vmem:[%s12782_s5 + $0xb0] sm:$0xff]  ;;  %v3665_v45 = vsel %vm2468_vm15, %v10686_v39, %v7273_v48 }
 0x3e0   : > { %v2467_v41 = vmax.f32 %v2425_v22, 0.0  ;;  %6755 = vmatprep.subr.bf16.mxu1 %v12908_v7  ;;  %6660 = vmatprep.subr.bf16.mxu0 %v12908_v7  ;;  %v7435_v22 = vpack.i.bf16 %v11023_v33, %v11149_v40 }
 0x3e1   : > { %v2466_v5 = vmax.f32 %v2420_v43, 0.0  ;;  %6771 = vmatpush1.bf16.msra.mxu1 %v6658_v32 }
 0x3e2   : > { %2508 = vst.msk [vmem:[#allocation2 + $0x1d1] sm:$0xff] %vm2468_vm15, %v2467_v41  ;;  %6662 = vmatpush1.bf16.msra.mxu0 %v6661_v0  ;;  %6756 = vmatprep.subr.bf16.mxu1 %v12908_v7 }
 0x3e3   : > { %7421 = vrot.lane.b32.xlu0 %v7420_v29, %s7778_s28  ;;  %2526 = vst.msk [vmem:[#allocation2 + $0x1d8] sm:$0x3] %vm2515_vm2, %v12906_v52  ;;  %6663 = vmatprep.subr.bf16.mxu0 %v12908_v7  ;;  %v7729_v29 = vld [vmem:[#allocation2 + $0x120] sm:$0xff] }
 0x3e4   : > { %2507 = vst.msk [vmem:[#allocation2 + $0x1c9] sm:$0xff] %vm2468_vm15, %v2466_v5 }
 0x3e5   : > { %2524 = vst.msk [vmem:[#allocation2 + $0x1c8] sm:$0xff] %vm2468_vm15, %v12906_v52  ;;  %2525 = vst.msk [vmem:[#allocation2 + $0x1d0] sm:$0xff] %vm2468_vm15, %v12906_v52  ;;  %6772 = vmatpush1.bf16.msra.mxu1 %v6661_v0  ;;  %v11229_v0 = vpack.c.bf16 %v5212_v31, %v5211_v10 }
 0x3e6   : > { %6665 = vmatpush1.bf16.msra.mxu0 %v6664_v44  ;;  %6757 = vmatprep.subr.bf16.mxu1 %v12908_v7 }
 0x3e7   : > { %v7277_v13 = vpop.permute.xlu1 %7276  ;;  %v3930_v28 = vpop.f32.mrb[40].mxu1  ;;  %6666 = vmatprep.subr.bf16.mxu0 %v12908_v7 }
 0x3e8   : > { %v7278_v20 = vunpack.i.l.bf16 %v7277_v13  ;;  %v3931_v12 = vadd.f32 %v11194_v24, %v3930_v28  ;;  %v3932_v55 = vpop.f32.mrb[41].mxu1  ;;  %v7279_v42 = vunpack.i.h.bf16 %v7277_v13 }
 0x3e9   : > { %6773 = vmatpush1.bf16.msra.mxu1 %v6664_v44 }
 0x3ea   : > { %v4176_v32 = vadd.f32 %v10503_v36, %v3931_v12  ;;  %v11217_v27 = vld [vmem:[#allocation2 + $0x1d8] sm:$0x3]  ;;  %v11220_v56 = vpop.f32.mrb[16].mxu0  ;;  %v3701_v41 = vsel %vm3567_vm3, %v3665_v45, %v7278_v20  ;;  %v3555_v36 = vsel %vm2468_vm15, %v7729_v29, %v7274_v35  ;;  %6668 = vmatpush1.bf16.msra.mxu0 %v6667_v57  ;;  %6758 = vmatprep.subr.bf16.mxu1 %v12908_v7 }
 0x3eb   : > { %v7287_v21 = vpop.permute.xlu1 %7286  ;;  %v3416_v39 = vrot.slane %v11217_v27, 1  ;;  %v7282_v34 = vpop.permute.xlu0 %7281  ;;  %v3529_v10 = vrot.slane %v11217_v27, 2  ;;  %6669 = vmatprep.subr.bf16.mxu0 %v12908_v7 }
 0x3ec   : > { %v11222_v43 = vld [vmem:[#allocation2 + $0x1c8] sm:$0xff]  ;;  %v11226_v5 = vld [vmem:[#allocation2 + $0x1d0] sm:$0xff]  ;;  %v4354_v40 = vmax.f32 %v4176_v32, 0.0  ;;  %v11231_v62 = vpop.f32.mrb[17].mxu0  ;;  %v7289_v61 = vunpack.i.h.bf16 %v7287_v21  ;;  %v7288_v48 = vunpack.i.l.bf16 %v7287_v21  ;;  %v7284_v58 = vunpack.i.h.bf16 %v7282_v34  ;;  %v3935_v28 = vpop.f32.mrb[42].mxu1 }
 0x3ed   : > { %v7425_v6 = vpack.i.bf16 %v10997_v17, %v11222_v43  ;;  %v7283_v13 = vunpack.i.l.bf16 %v7282_v34  ;;  %v3413_v35 = vrot.slane %v11222_v43, 1  ;;  %v3414_v20 = vrot.slane %v11226_v5, 1  ;;  %v3937_v55 = vpop.f32.mrb[43].mxu1  ;;  %v5214_v34 = vld [vmem:[%s12782_s5 + $0xc8] sm:$0xff]  ;;  %6774 = vmatpush1.bf16.msra.mxu1 %v6667_v57 }
 0x3ee   : > { %4390 = vst.msk [vmem:[#allocation3 + $0x1] sm:$0xff] %vm3567_vm3, %v4354_v40  ;;  %v3936_v12 = vadd.f32 %v11194_v24, %v3935_v28  ;;  %v3592_v17 = vsel %vm3567_vm3, %v3555_v36, %v7279_v42  ;;  %v3666_v44 = vsel %vm2468_vm15, %v10691_v50, %v7288_v48  ;;  %6671 = vmatpush1.bf16.msra.mxu0 %v11229_v0  ;;  %v3527_v28 = vrot.slane %v11226_v5, 2 }
 0x3ef   : > { %7426 = vrot.lane.b32.xlu1 %v7425_v6, %s7777_s23  ;;  %4429 = vst.msk [vmem:[#allocation3] sm:$0xff] %vm3567_vm3, %v12906_v52  ;;  %v3737_v31 = vsel %vm3604_vm4, %v3701_v41, %v7283_v13  ;;  %v7297_v32 = vpop.permute.xlu1 %7296  ;;  %v3629_v45 = vsel %vm3604_vm4, %v3592_v17, %v7284_v58  ;;  %v3415_v21 = vsel %vm511_vm0, %v3413_v35, %v3414_v20  ;;  %v5213_v41 = vld [vmem:[%s12782_s5 + $0xc0] sm:$0xff]  ;;  %v7730_v6 = vld [vmem:[#allocation2 + $0x128] sm:$0xff]  ;;  %v3526_v58 = vrot.slane %v11222_v43, 2  ;;  %v5215_v17 = vld [vmem:[%s12782_s5 + $0xd0] sm:$0xff] }
 0x3f0   : > { %v3417_v29 = vsel %vm511_vm0, %v3414_v20, %v3416_v39  ;;  %v4181_v42 = vadd.f32 %v10495_v54, %v3936_v12  ;;  %v7292_v36 = vpop.permute.xlu0 %7291  ;;  %4048 = vmatprep.mubr.f32.mxu1 %v3737_v31  ;;  %v7299_v50 = vunpack.i.h.bf16 %v7297_v32  ;;  %v7298_v27 = vunpack.i.l.bf16 %v7297_v32  ;;  %6672 = vmatprep.subr.bf16.mxu0 %v12908_v7 }
 0x3f1   : > { %v7430_v40 = vpack.i.bf16 %v11099_v47, %v3415_v21  ;;  %v7294_v39 = vunpack.i.h.bf16 %v7292_v36  ;;  %v7293_v48 = vunpack.i.l.bf16 %v7292_v36  ;;  %4049 = vmatmul.mubr.f32.gmra.mrb[88].mxu1 %v3629_v45  ;;  %v3556_v54 = vsel %vm2468_vm15, %v7730_v6, %v7289_v61  ;;  %6759 = vmatprep.subr.bf16.mxu1 %v12908_v7 }
 0x3f2   : > { %v4355_v47 = vmax.f32 %v4181_v42, 0.0  ;;  %v7440_v13 = vpack.i.bf16 %v11002_v4, %v11226_v5  ;;  %v7445_v57 = vpack.i.bf16 %v11103_v11, %v3417_v29  ;;  %v6673_v43 = vpack.c.bf16 %v5214_v34, %v5213_v41  ;;  %6775 = vmatpush1.bf16.msra.mxu1 %v11229_v0  ;;  %v5218_v42 = vld [vmem:[%s12782_s5 + $0xe8] sm:$0xff] }
 0x3f3   : > { %7431 = vrot.lane.b32.xlu0 %v7430_v40, %s7779_s11  ;;  %7436 = vrot.lane.b32.xlu1 %v7435_v22, %s7778_s28  ;;  %v3940_v35 = vpop.f32.mrb[44].mxu1  ;;  %v3702_v20 = vsel %vm3567_vm3, %v3666_v44, %v7293_v48  ;;  %v3593_v61 = vsel %vm3567_vm3, %v3556_v54, %v7294_v39  ;;  %v3528_v5 = vsel %vm732_vm1, %v3526_v58, %v3527_v28  ;;  %v5216_v44 = vld [vmem:[%s12782_s5 + $0xd8] sm:$0xff]  ;;  %v5219_v48 = vld [vmem:[%s12782_s5 + $0xf0] sm:$0xff] }
 0x3f4   : > { %4391 = vst.msk [vmem:[#allocation3 + $0x9] sm:$0xff] %vm3567_vm3, %v4355_v47  ;;  %v3941_v22 = vadd.f32 %v11194_v24, %v3940_v35  ;;  %v3738_v4 = vsel %vm3604_vm4, %v3702_v20, %v7298_v27  ;;  %v3942_v12 = vpop.f32.mrb[45].mxu1  ;;  %v3630_v11 = vsel %vm3604_vm4, %v3593_v61, %v7299_v50  ;;  %6503 = vmatprep.mubr.msk.f32.mxu0 %vm2468_vm15, %v3528_v5  ;;  %v7302_v6 = vpop.permute.xlu0 %7301 }
 0x3f5   : > { %4430 = vst.msk [vmem:[#allocation3 + $0x8] sm:$0xff] %vm3567_vm3, %v12906_v52  ;;  %4053 = vmatprep.mubr.f32.mxu1 %v3738_v4  ;;  %v3530_v55 = vsel %vm732_vm1, %v3527_v28, %v3529_v10  ;;  %6674 = vmatpush1.bf16.msra.mxu0 %v6673_v43  ;;  %v6676_v45 = vpack.c.bf16 %v5216_v44, %v5215_v17  ;;  %v7303_v20 = vunpack.i.l.bf16 %v7302_v6 }
 0x3f6   : > { %4432 = vst.msk [vmem:[#allocation3 + $0x10] sm:$0x3] %vm4431_vm6, %v12906_v52  ;;  %v4186_v0 = vadd.f32 %v10581_v59, %v3941_v22  ;;  %4054 = vmatmul.mubr.f32.gmra.mrb[90].mxu1 %v3630_v11  ;;  %6504 = vmatmul.mubr.msk.f32.gmra.mrb[34].mxu0 %vm2468_vm15, %v3530_v55  ;;  %v11295_v10 = vld [vmem:[#allocation3] sm:$0xff] }
 0x3f7   : > { %7441 = vrot.lane.b32.xlu0 %v7440_v13, %s7777_s23  ;;  %7446 = vrot.lane.b32.xlu1 %v7445_v57, %s7779_s11  ;;  %v5217_v59 = vld [vmem:[%s12782_s5 + $0xe0] sm:$0xff]  ;;  %v4539_v50 = vrot.slane %v11295_v10, 1 }
 0x3f8   : > { %v4356_v31 = vmax.f32 %v4186_v0, 0.0  ;;  %v3945_v32 = vpop.f32.mrb[46].mxu1  ;;  %6760 = vmatprep.subr.bf16.mxu1 %v12908_v7  ;;  %6675 = vmatprep.subr.bf16.mxu0 %v12908_v7  ;;  %v6679_v40 = vpack.c.bf16 %v5218_v42, %v5217_v59  ;;  %v7731_v42 = vld [vmem:[#allocation2 + $0x138] sm:$0xff] }
 0x3f9   : > { %v3946_v21 = vadd.f32 %v11194_v24, %v3945_v32  ;;  %v3947_v29 = vpop.f32.mrb[47].mxu1  ;;  %6776 = vmatpush1.bf16.msra.mxu1 %v6673_v43  ;;  %6677 = vmatpush1.bf16.msra.mxu0 %v6676_v45  ;;  %v7304_v43 = vunpack.i.h.bf16 %v7302_v6 }
 0x3fa   : > { %4392 = vst.msk [vmem:[#allocation3 + $0x19] sm:$0xff] %vm3567_vm3, %v4356_v31  ;;  %6761 = vmatprep.subr.bf16.mxu1 %v12908_v7  ;;  %6678 = vmatprep.subr.bf16.mxu0 %v12908_v7 }
 0x3fb   : > { %v4191_v36 = vadd.f32 %v10573_v18, %v3946_v21  ;;  %v5220_v18 = vld [vmem:[%s12782_s5 + $0xf8] sm:$0xff] }
 0x3fc   : > { %v11310_v27 = vld [vmem:[#allocation3 + $0x8] sm:$0xff]  ;;  %v6682_v35 = vpack.c.bf16 %v5220_v18, %v5219_v48 }
 0x3fd   : > { %v4357_v41 = vmax.f32 %v4191_v36, 0.0  ;;  %v4540_v34 = vrot.slane %v11310_v27, 1  ;;  %v11313_v39 = vld [vmem:[#allocation3 + $0x10] sm:$0x3]  ;;  %6777 = vmatpush1.bf16.msra.mxu1 %v6676_v45  ;;  %6680 = vmatpush1.bf16.msra.mxu0 %v6679_v40  ;;  %v3557_v36 = vsel %vm2468_vm15, %v7731_v42, %v7304_v43 }
 0x3fe   : > { %6762 = vmatprep.subr.bf16.mxu1 %v12908_v7  ;;  %v4542_v28 = vrot.slane %v11313_v39, 1  ;;  %6681 = vmatprep.subr.bf16.mxu0 %v12908_v7 }
 0x3ff   : > { %4393 = vst.msk [vmem:[#allocation3 + $0x21] sm:$0xff] %vm3567_vm3, %v4357_v41  ;;  %v7307_v54 = vpop.permute.xlu1 %7306  ;;  %v3950_v58 = vpop.f32.mrb[48].mxu1  ;;  %v4541_v47 = vsel %vm511_vm0, %v4539_v50, %v4540_v34 }
 0x400   : > { %v3951_v13 = vadd.f32 %v11194_v24, %v3950_v58  ;;  %v3952_v57 = vpop.f32.mrb[49].mxu1  ;;  %v7308_v12 = vunpack.i.l.bf16 %v7307_v54  ;;  %v7309_v55 = vunpack.i.h.bf16 %v7307_v54  ;;  %v4543_v0 = vsel %vm511_vm0, %v4540_v34, %v4542_v28 }
 0x401   : > { %v11327_v61 = vld [vmem:[#allocation3 + $0x18] sm:$0xff]  ;;  %6778 = vmatpush1.bf16.msra.mxu1 %v6679_v40  ;;  %6683 = vmatpush1.bf16.msra.mxu0 %v6682_v35 }
 0x402   : > { %v4196_v22 = vadd.f32 %v10662_v2, %v3951_v13  ;;  %v7450_v4 = vpack.i.bf16 %v4541_v47, %v11327_v61  ;;  %6763 = vmatprep.subr.bf16.mxu1 %v12908_v7  ;;  %v11333_v11 = vpop.f32.mrb[18].mxu0  ;;  %v3667_v2 = vsel %vm2468_vm15, %v10822_v46, %v7303_v20  ;;  %6684 = vmatprep.subr.bf16.mxu0 %v12908_v7 }
 0x403   : > { %v7317_v5 = vpop.permute.xlu1 %7316  ;;  %v11335_v44 = vpop.f32.mrb[19].mxu0  ;;  %v3703_v34 = vsel %vm3567_vm3, %v3667_v2, %v7308_v12  ;;  %v3594_v54 = vsel %vm3567_vm3, %v3557_v36, %v7309_v55 }
 0x404   : > { %v4358_v17 = vmax.f32 %v4196_v22, 0.0  ;;  %7451 = vrot.lane.b32.xlu0 %v7450_v4, %s7777_s23  ;;  %v7312_v31 = vpop.permute.xlu0 %7311  ;;  %v3955_v32 = vpop.f32.mrb[50].mxu1  ;;  %v7319_v40 = vunpack.i.h.bf16 %v7317_v5  ;;  %v7318_v41 = vunpack.i.l.bf16 %v7317_v5  ;;  %v7732_v4 = vld [vmem:[#allocation2 + $0x140] sm:$0xff]  ;;  %v4544_v5 = vrot.slane %v11327_v61, 1 }
 0x405   : > { %6779 = vmatpush1.bf16.msra.mxu1 %v6682_v35  ;;  %v7314_v45 = vunpack.i.h.bf16 %v7312_v31  ;;  %v7313_v21 = vunpack.i.l.bf16 %v7312_v31  ;;  %v3956_v29 = vadd.f32 %v11194_v24, %v3955_v32  ;;  %v3957_v59 = vpop.f32.mrb[51].mxu1 }
 0x406   : > { %4394 = vst.msk [vmem:[#allocation3 + $0x31] sm:$0xff] %vm3567_vm3, %v4358_v17  ;;  %v11345_v50 = vld [vmem:[#allocation3 + $0x20] sm:$0xff]  ;;  %v3558_v12 = vsel %vm2468_vm15, %v7732_v4, %v7319_v40  ;;  %v11363_v32 = vld [vmem:[#allocation3 + $0x28] sm:$0x3] }
 0x407   : > { %v7327_v46 = vpop.permute.xlu1 %7326  ;;  %v7455_v48 = vpack.i.bf16 %v4543_v0, %v11345_v50  ;;  %v4201_v18 = vadd.f32 %v10654_v1, %v3956_v29  ;;  %v3739_v6 = vsel %vm3604_vm4, %v3703_v34, %v7313_v21  ;;  %v3631_v57 = vsel %vm3604_vm4, %v3594_v54, %v7314_v45 }
 0x408   : > { %v7322_v58 = vpop.permute.xlu0 %7321  ;;  %4058 = vmatprep.mubr.f32.mxu1 %v3739_v6  ;;  %v7329_v47 = vunpack.i.h.bf16 %v7327_v46  ;;  %v7328_v13 = vunpack.i.l.bf16 %v7327_v46  ;;  %v4545_v28 = vrot.slane %v11345_v50, 1  ;;  %v3668_v1 = vsel %vm2468_vm15, %v10827_v30, %v7318_v41 }
 0x409   : > { %7456 = vrot.lane.b32.xlu1 %v7455_v48, %s7777_s23  ;;  %v4359_v35 = vmax.f32 %v4201_v18, 0.0  ;;  %v7324_v20 = vunpack.i.h.bf16 %v7322_v58  ;;  %v7323_v43 = vunpack.i.l.bf16 %v7322_v58  ;;  %4059 = vmatmul.mubr.f32.gmra.mrb[92].mxu1 %v3631_v57  ;;  %v4547_v42 = vrot.slane %v11363_v32, 1 }
 0x40a   : > { %v11370_v21 = vsel %vm511_vm0, %v4544_v5, %v4545_v28 }
 0x40b   : > { %v3960_v22 = vpop.f32.mrb[52].mxu1  ;;  %4395 = vst.msk [vmem:[#allocation3 + $0x39] sm:$0xff] %vm3567_vm3, %v4359_v35  ;;  %v3704_v17 = vsel %vm3567_vm3, %v3668_v1, %v7323_v43  ;;  %v3595_v31 = vsel %vm3567_vm3, %v3558_v12, %v7324_v20 }
 0x40c   : > { %v3961_v55 = vadd.f32 %v11194_v24, %v3960_v22  ;;  %v3962_v0 = vpop.f32.mrb[53].mxu1  ;;  %v3740_v2 = vsel %vm3604_vm4, %v3704_v17, %v7328_v13  ;;  %v3632_v30 = vsel %vm3604_vm4, %v3595_v31, %v7329_v47  ;;  %v7332_v58 = vpop.permute.xlu0 %7331 }
 0x40d   : > { %v11367_v45 = vld [vmem:[#allocation3 + $0x30] sm:$0xff]  ;;  %4063 = vmatprep.mubr.f32.mxu1 %v3740_v2  ;;  %v7334_v20 = vunpack.i.h.bf16 %v7332_v58  ;;  %v7333_v43 = vunpack.i.l.bf16 %v7332_v58 }
 0x40e   : > { %v4206_v29 = vadd.f32 %v10798_v49, %v3961_v55  ;;  %v7460_v59 = vpack.i.bf16 %v11370_v21, %v11367_v45  ;;  %4064 = vmatmul.mubr.f32.gmra.mrb[94].mxu1 %v3632_v30  ;;  %v11383_v49 = vsel %vm511_vm0, %v4545_v28, %v4547_v42  ;;  %v7733_v42 = vld [vmem:[#allocation2 + $0x150] sm:$0xff] }
 0x410   : > { %v4360_v36 = vmax.f32 %v4206_v29, 0.0  ;;  %v3965_v40 = vpop.f32.mrb[54].mxu1  ;;  %7461 = vrot.lane.b32.xlu0 %v7460_v59, %s7777_s23 }
 0x411   : > { %v3966_v41 = vadd.f32 %v11194_v24, %v3965_v40  ;;  %v3967_v34 = vpop.f32.mrb[55].mxu1 }
 0x412   : > { %4396 = vst.msk [vmem:[#allocation3 + $0x49] sm:$0xff] %vm3567_vm3, %v4360_v36  ;;  %v11380_v48 = vld [vmem:[#allocation3 + $0x38] sm:$0xff]  ;;  %v11391_v57 = vld [vmem:[#allocation3 + $0x40] sm:$0x3]  ;;  %v3559_v36 = vsel %vm2468_vm15, %v7733_v42, %v7334_v20 }
 0x413   : > { %v4211_v46 = vadd.f32 %v10790_v8, %v3966_v41  ;;  %v7465_v18 = vpack.i.bf16 %v11383_v49, %v11380_v48  ;;  %v4550_v54 = vrot.slane %v11380_v48, 1  ;;  %v4549_v8 = vrot.slane %v11367_v45, 1 }
 0x414   : > { %v4552_v5 = vrot.slane %v11391_v57, 1 }
 0x415   : > { %v4361_v6 = vmax.f32 %v4211_v46, 0.0  ;;  %7466 = vrot.lane.b32.xlu1 %v7465_v18, %s7777_s23  ;;  %v11397_v1 = vsel %vm511_vm0, %v4549_v8, %v4550_v54 }
 0x417   : > { %4397 = vst.msk [vmem:[#allocation3 + $0x51] sm:$0xff] %vm3567_vm3, %v4361_v6  ;;  %v7337_v47 = vpop.permute.xlu1 %7336  ;;  %v3970_v13 = vpop.f32.mrb[56].mxu1  ;;  %v11416_v6 = vsel %vm511_vm0, %v4550_v54, %v4552_v5 }
 0x418   : > { %v3971_v28 = vadd.f32 %v11194_v24, %v3970_v13  ;;  %v3972_v35 = vpop.f32.mrb[57].mxu1  ;;  %v7338_v55 = vunpack.i.l.bf16 %v7337_v47  ;;  %v7339_v31 = vunpack.i.h.bf16 %v7337_v47 }
 0x419   : > { %v11394_v22 = vld [vmem:[#allocation3 + $0x48] sm:$0xff] }
 0x41a   : > { %v4216_v4 = vadd.f32 %v10857_v38, %v3971_v28  ;;  %v7470_v12 = vpack.i.bf16 %v11397_v1, %v11394_v22  ;;  %v11403_v17 = vpop.f32.mrb[20].mxu0  ;;  %v3669_v38 = vsel %vm2468_vm15, %v10884_v26, %v7333_v43  ;;  %v3596_v20 = vsel %vm3567_vm3, %v3559_v36, %v7339_v31 }
 0x41b   : > { %v7347_v0 = vpop.permute.xlu1 %7346  ;;  %v11405_v30 = vpop.f32.mrb[21].mxu0  ;;  %v3705_v13 = vsel %vm3567_vm3, %v3669_v38, %v7338_v55  ;;  %v4554_v38 = vrot.slane %v11394_v22, 1 }
 0x41c   : > { %v4362_v2 = vmax.f32 %v4216_v4, 0.0  ;;  %7471 = vrot.lane.b32.xlu0 %v7470_v12, %s7777_s23  ;;  %v7342_v29 = vpop.permute.xlu0 %7341  ;;  %v3975_v59 = vpop.f32.mrb[58].mxu1  ;;  %v7349_v58 = vunpack.i.h.bf16 %v7347_v0  ;;  %v7348_v47 = vunpack.i.l.bf16 %v7347_v0 }
 0x41d   : > { %v7344_v40 = vunpack.i.h.bf16 %v7342_v29  ;;  %v7343_v41 = vunpack.i.l.bf16 %v7342_v29  ;;  %v3976_v34 = vadd.f32 %v11194_v24, %v3975_v59  ;;  %v3977_v46 = vpop.f32.mrb[59].mxu1  ;;  %v7734_v59 = vld [vmem:[#allocation2 + $0x158] sm:$0xff] }
 0x41e   : > { %4398 = vst.msk [vmem:[#allocation3 + $0x61] sm:$0xff] %vm3567_vm3, %v4362_v2  ;;  %v11413_v18 = vld [vmem:[#allocation3 + $0x50] sm:$0xff]  ;;  %v3560_v31 = vsel %vm2468_vm15, %v7734_v59, %v7349_v58 }
 0x41f   : > { %v7357_v26 = vpop.permute.xlu1 %7356  ;;  %v7475_v8 = vpack.i.bf16 %v11416_v6, %v11413_v18  ;;  %v4221_v28 = vadd.f32 %v10851_v60, %v3976_v34  ;;  %v3741_v35 = vsel %vm3604_vm4, %v3705_v13, %v7343_v41  ;;  %v3633_v54 = vsel %vm3604_vm4, %v3596_v20, %v7344_v40  ;;  %v11435_v34 = vld [vmem:[#allocation3 + $0x58] sm:$0x3] }
 0x420   : > { %v7352_v43 = vpop.permute.xlu0 %7351  ;;  %4068 = vmatprep.mubr.f32.mxu1 %v3741_v35  ;;  %v7359_v4 = vunpack.i.h.bf16 %v7357_v26  ;;  %v7358_v12 = vunpack.i.l.bf16 %v7357_v26  ;;  %v4555_v5 = vrot.slane %v11413_v18, 1  ;;  %v3670_v60 = vsel %vm2468_vm15, %v10889_v14, %v7348_v47 }
 0x421   : > { %7476 = vrot.lane.b32.xlu1 %v7475_v8, %s7777_s23  ;;  %v4363_v55 = vmax.f32 %v4221_v28, 0.0  ;;  %v7354_v0 = vunpack.i.h.bf16 %v7352_v43  ;;  %v7353_v2 = vunpack.i.l.bf16 %v7352_v43  ;;  %4069 = vmatmul.mubr.f32.gmra.mrb[96].mxu1 %v3633_v54  ;;  %v4557_v8 = vrot.slane %v11435_v34, 1 }
 0x422   : > { %v11442_v58 = vsel %vm511_vm0, %v4554_v38, %v4555_v5 }
 0x423   : > { %v3980_v29 = vpop.f32.mrb[60].mxu1  ;;  %4399 = vst.msk [vmem:[#allocation3 + $0x69] sm:$0xff] %vm3567_vm3, %v4363_v55  ;;  %v3706_v36 = vsel %vm3567_vm3, %v3670_v60, %v7353_v2  ;;  %v3597_v41 = vsel %vm3567_vm3, %v3560_v31, %v7354_v0  ;;  %13184 = vst [vmem:[#allocation14_spill] sm:$0xff] %v11442_v58 }
 0x424   : > { %v3981_v42 = vadd.f32 %v11194_v24, %v3980_v29  ;;  %v3982_v40 = vpop.f32.mrb[61].mxu1  ;;  %v3742_v46 = vsel %vm3604_vm4, %v3706_v36, %v7358_v12  ;;  %v3634_v14 = vsel %vm3604_vm4, %v3597_v41, %v7359_v4  ;;  %v7362_v2 = vpop.permute.xlu0 %7361 }
 0x425   : > { %v11439_v47 = vld [vmem:[#allocation3 + $0x60] sm:$0xff]  ;;  %4073 = vmatprep.mubr.f32.mxu1 %v3742_v46  ;;  %v7364_v59 = vunpack.i.h.bf16 %v7362_v2  ;;  %v7363_v31 = vunpack.i.l.bf16 %v7362_v2 }
 0x426   : > { %v4226_v13 = vadd.f32 %v10921_v16, %v3981_v42  ;;  %v7480_v26 = vpack.i.bf16 %v11442_v58, %v11439_v47  ;;  %4074 = vmatmul.mubr.f32.gmra.mrb[98].mxu1 %v3634_v14  ;;  %v11455_v16 = vsel %vm511_vm0, %v4555_v5, %v4557_v8 }
 0x427   : > { %13185 = vst [vmem:[#allocation15_spill] sm:$0xff] %v11455_v16 }
 0x428   : > { %v4364_v28 = vmax.f32 %v4226_v13, 0.0  ;;  %v3985_v35 = vpop.f32.mrb[62].mxu1  ;;  %7481 = vrot.lane.b32.xlu0 %v7480_v26, %s7777_s23 }
 0x429   : > { %v3986_v20 = vadd.f32 %v11194_v24, %v3985_v35  ;;  %v3987_v43 = vpop.f32.mrb[63].mxu1 }
 0x42a   : > { %4400 = vst.msk [vmem:[#allocation3 + $0x79] sm:$0xff] %vm3567_vm3, %v4364_v28  ;;  %v11452_v12 = vld [vmem:[#allocation3 + $0x68] sm:$0xff]  ;;  %v11461_v29 = vld [vmem:[#allocation3 + $0x70] sm:$0x3] }
 0x42b   : > { %v4231_v4 = vadd.f32 %v10915_v63, %v3986_v20  ;;  %v7485_v54 = vpack.i.bf16 %v11455_v16, %v11452_v12  ;;  %v4560_v0 = vrot.slane %v11452_v12, 1  ;;  %v4559_v63 = vrot.slane %v11439_v47, 1  ;;  %v7735_v43 = vld [vmem:[#allocation2 + $0x168] sm:$0xff] }
 0x42c   : > { %v4562_v42 = vrot.slane %v11461_v29, 1  ;;  %v3671_v20 = vsel %vm2468_vm15, %v10948_v15, %v7363_v31 }
 0x42d   : > { %v4365_v55 = vmax.f32 %v4231_v4, 0.0  ;;  %7486 = vrot.lane.b32.xlu1 %v7485_v54, %s7777_s23  ;;  %v11468_v38 = vsel %vm511_vm0, %v4559_v63, %v4560_v0  ;;  %v3561_v4 = vsel %vm2468_vm15, %v7735_v43, %v7364_v59 }
 0x42e   : > { %13186 = vst [vmem:[#allocation18_spill] sm:$0xff] %v11468_v38  ;;  %v11483_v54 = vsel %vm511_vm0, %v4560_v0, %v4562_v42 }
 0x42f   : > { %4401 = vst.msk [vmem:[#allocation3 + $0x81] sm:$0xff] %vm3567_vm3, %v4365_v55  ;;  %v7367_v60 = vpop.permute.xlu1 %7366  ;;  %13187 = vst [vmem:[#allocation19_spill] sm:$0xff] %v11483_v54 }
 0x430   : > { %v7368_v36 = vunpack.i.l.bf16 %v7367_v60  ;;  %v7369_v46 = vunpack.i.h.bf16 %v7367_v60 }
 0x431   : > { %v11465_v5 = vld [vmem:[#allocation3 + $0x78] sm:$0xff] }
 0x432   : > { %v11471_v40 = vpop.f32.mrb[22].mxu0  ;;  %v7490_v41 = vpack.i.bf16 %v11468_v38, %v11465_v5  ;;  %v3707_v63 = vsel %vm3567_vm3, %v3671_v20, %v7368_v36  ;;  %v3598_v52 = vsel %vm3567_vm3, %v3561_v4, %v7369_v46 }
 0x433   : > { %v3990_v14 = vpop.f32.mrb[64].mxu1  ;;  %v11475_v13 = vpop.f32.mrb[23].mxu0 }
 0x434   : > { %v3991_v26 = vadd.f32 %v11194_v24, %v3990_v14  ;;  %v7377_v8 = vpop.permute.xlu1 %7376  ;;  %v3992_v28 = vpop.f32.mrb[65].mxu1  ;;  %7491 = vrot.lane.b32.xlu0 %v7490_v41, %s7777_s23 }
 0x435   : > { %v7372_v35 = vpop.permute.xlu0 %7371  ;;  %v7379_v28 = vunpack.i.h.bf16 %v7377_v8  ;;  %v7378_v41 = vunpack.i.l.bf16 %v7377_v8 }
 0x436   : > { %v7374_v55 = vunpack.i.h.bf16 %v7372_v35  ;;  %v7373_v2 = vunpack.i.l.bf16 %v7372_v35  ;;  %v4236_v60 = vadd.f32 %v10985_v25, %v3991_v26  ;;  %v11487_v14 = vld [vmem:[#allocation3 + $0x80] sm:$0xff] }
 0x437   : > { %v7495_v15 = vpack.i.bf16 %v11483_v54, %v11487_v14 }
 0x438   : > { %v4366_v31 = vmax.f32 %v4236_v60, 0.0  ;;  %v3743_v59 = vsel %vm3604_vm4, %v3707_v63, %v7373_v2  ;;  %v7387_v0 = vpop.permute.xlu1 %7386  ;;  %v3995_v42 = vpop.f32.mrb[66].mxu1  ;;  %v3635_v35 = vsel %vm3604_vm4, %v3598_v52, %v7374_v55  ;;  %v3672_v2 = vsel %vm2468_vm15, %v10953_v53, %v7378_v41  ;;  %v7736_v52 = vld [vmem:[#allocation2 + $0x170] sm:$0xff] }
 0x439   : > { %v7382_v43 = vpop.permute.xlu0 %7381  ;;  %4078 = vmatprep.mubr.f32.mxu1 %v3743_v59  ;;  %v7389_v25 = vunpack.i.h.bf16 %v7387_v0  ;;  %v7388_v36 = vunpack.i.l.bf16 %v7387_v0  ;;  %v3996_v26 = vadd.f32 %v11194_v24, %v3995_v42  ;;  %v3997_v20 = vpop.f32.mrb[67].mxu1  ;;  %7496 = vrot.lane.b32.xlu1 %v7495_v15, %s7777_s23  ;;  %v3562_v55 = vsel %vm2468_vm15, %v7736_v52, %v7379_v28 }
 0x43a   : > { %4402 = vst.msk [vmem:[#allocation3 + $0x91] sm:$0xff] %vm3567_vm3, %v4366_v31  ;;  %v7384_v46 = vunpack.i.h.bf16 %v7382_v43  ;;  %v7383_v8 = vunpack.i.l.bf16 %v7382_v43  ;;  %4079 = vmatmul.mubr.f32.gmra.mrb[100].mxu1 %v3635_v35  ;;  %v4565_v0 = vrot.slane %v11487_v14, 1  ;;  %v4564_v53 = vrot.slane %v11465_v5, 1 }
 0x43b   : > { %v4241_v4 = vadd.f32 %v10979_v51, %v3996_v26  ;;  %v11508_v51 = vld [vmem:[#allocation3 + $0x88] sm:$0x3] }
 0x43c   : > { %v3708_v60 = vsel %vm3567_vm3, %v3672_v2, %v7383_v8  ;;  %v3599_v63 = vsel %vm3567_vm3, %v3562_v55, %v7384_v46  ;;  %v11513_v41 = vsel %vm511_vm0, %v4564_v53, %v4565_v0  ;;  %v4567_v35 = vrot.slane %v11508_v51, 1 }
 0x43d   : > { %v4367_v59 = vmax.f32 %v4241_v4, 0.0  ;;  %v3744_v15 = vsel %vm3604_vm4, %v3708_v60, %v7388_v36  ;;  %v3636_v31 = vsel %vm3604_vm4, %v3599_v63, %v7389_v25  ;;  %13188 = vst [vmem:[#allocation16_spill] sm:$0xff] %v11513_v41  ;;  %v7392_v43 = vpop.permute.xlu0 %7391 }
 0x43e   : > { %4083 = vmatprep.mubr.f32.mxu1 %v3744_v15  ;;  %v11522_v36 = vsel %vm511_vm0, %v4565_v0, %v4567_v35  ;;  %v7393_v20 = vunpack.i.l.bf16 %v7392_v43  ;;  %v7394_v8 = vunpack.i.h.bf16 %v7392_v43  ;;  %v7737_v43 = vld [vmem:[#allocation2 + $0x180] sm:$0xff] }
 0x43f   : > { %4403 = vst.msk [vmem:[#allocation3 + $0x99] sm:$0xff] %vm3567_vm3, %v4367_v59  ;;  %4084 = vmatmul.mubr.f32.gmra.mrb[102].mxu1 %v3636_v31  ;;  %13189 = vst [vmem:[#allocation17_spill] sm:$0xff] %v11522_v36 }
 0x440   : > { %v3673_v31 = vsel %vm2468_vm15, %v11018_v3, %v7393_v20 }
 0x441   : > { %v11510_v28 = vld [vmem:[#allocation3 + $0x90] sm:$0xff] }
 0x442   : > { %v7500_v42 = vpack.i.bf16 %v11513_v41, %v11510_v28 }
 0x444   : > { %7501 = vrot.lane.b32.xlu0 %v7500_v42, %s7777_s23 }
 0x446   : > { %v11519_v25 = vld [vmem:[#allocation3 + $0x98] sm:$0xff] }
 0x447   : > { %v7505_v26 = vpack.i.bf16 %v11522_v36, %v11519_v25 }
 0x449   : > { %v7397_v46 = vpop.permute.xlu1 %7396  ;;  %7506 = vrot.lane.b32.xlu1 %v7505_v26, %s7777_s23  ;;  %v3563_v26 = vsel %vm2468_vm15, %v7737_v43, %v7394_v8 }
 0x44a   : > { %v7398_v4 = vunpack.i.l.bf16 %v7397_v46  ;;  %v7399_v2 = vunpack.i.h.bf16 %v7397_v46  ;;  %v11527_v52 = vpop.f32.mrb[24].mxu0 }
 0x44b   : > { %v4000_v55 = vpop.f32.mrb[68].mxu1  ;;  %v11529_v60 = vpop.f32.mrb[25].mxu0 }
 0x44c   : > { %v4001_v63 = vadd.f32 %v11194_v24, %v4000_v55  ;;  %v4002_v15 = vpop.f32.mrb[69].mxu1  ;;  %v3709_v35 = vsel %vm3567_vm3, %v3673_v31, %v7398_v4  ;;  %v3600_v41 = vsel %vm3567_vm3, %v3563_v26, %v7399_v2 }
 0x44d   : > { %v7402_v59 = vpop.permute.xlu0 %7401  ;;  %v7407_v42 = vpop.permute.xlu1 %7406 }
 0x44e   : > { %v7404_v0 = vunpack.i.h.bf16 %v7402_v59  ;;  %v7403_v53 = vunpack.i.l.bf16 %v7402_v59  ;;  %v4246_v46 = vadd.f32 %v11097_v23, %v4001_v63  ;;  %v7409_v7 = vunpack.i.h.bf16 %v7407_v42 }
 0x44f   : > { %v7408_v36 = vunpack.i.l.bf16 %v7407_v42 }
 0x450   : > { %v3745_v55 = vsel %vm3604_vm4, %v3709_v35, %v7403_v53  ;;  %v3637_v15 = vsel %vm3604_vm4, %v3600_v41, %v7404_v0  ;;  %v4368_v54 = vmax.f32 %v4246_v46, 0.0  ;;  %v4005_v20 = vpop.f32.mrb[70].mxu1  ;;  %v7738_v53 = vld [vmem:[#allocation2 + $0x188] sm:$0xff] }
 0x451   : > { %v7412_v3 = vpop.permute.xlu0 %7411  ;;  %4088 = vmatprep.mubr.f32.mxu1 %v3745_v55  ;;  %v4006_v4 = vadd.f32 %v11194_v24, %v4005_v20  ;;  %v7417_v31 = vpop.permute.xlu1 %7416  ;;  %v3674_v2 = vsel %vm2468_vm15, %v11023_v33, %v7408_v36  ;;  %v3564_v41 = vsel %vm2468_vm15, %v7738_v53, %v7409_v7  ;;  %v4569_v33 = vrot.slane %v11510_v28, 1  ;;  %v11553_v7 = vld [vmem:[#allocation3 + $0xa0] sm:$0x3] }
 0x452   : > { %v7414_v59 = vunpack.i.h.bf16 %v7412_v3  ;;  %v7413_v38 = vunpack.i.l.bf16 %v7412_v3  ;;  %v4007_v8 = vpop.f32.mrb[71].mxu1  ;;  %4089 = vmatmul.mubr.f32.gmra.mrb[104].mxu1 %v3637_v15  ;;  %4404 = vst.msk [vmem:[#allocation3 + $0xa9] sm:$0xff] %vm3567_vm3, %v4368_v54  ;;  %v7419_v23 = vunpack.i.h.bf16 %v7417_v31  ;;  %v7418_v63 = vunpack.i.l.bf16 %v7417_v31 }
 0x453   : > { %v4251_v0 = vadd.f32 %v11093_v37, %v4006_v4  ;;  %v4570_v54 = vrot.slane %v11519_v25, 1  ;;  %v4572_v55 = vrot.slane %v11553_v7, 1 }
 0x454   : > { %v3710_v42 = vsel %vm3567_vm3, %v3674_v2, %v7413_v38  ;;  %v3601_v35 = vsel %vm3567_vm3, %v3564_v41, %v7414_v59 }
 0x455   : > { %v3746_v43 = vsel %vm3604_vm4, %v3710_v42, %v7418_v63  ;;  %v3638_v26 = vsel %vm3604_vm4, %v3601_v35, %v7419_v23  ;;  %v4369_v46 = vmax.f32 %v4251_v0, 0.0  ;;  %v11558_v38 = vsel %vm511_vm0, %v4569_v33, %v4570_v54  ;;  %v7422_v15 = vpop.permute.xlu0 %7421 }
 0x456   : > { %4093 = vmatprep.mubr.f32.mxu1 %v3746_v43  ;;  %13190 = vst [vmem:[#allocation20_spill] sm:$0xff] %v11558_v38  ;;  %v11567_v20 = vsel %vm511_vm0, %v4570_v54, %v4572_v55  ;;  %v7423_v4 = vunpack.i.l.bf16 %v7422_v15  ;;  %v7424_v8 = vunpack.i.h.bf16 %v7422_v15  ;;  %v7739_v54 = vld [vmem:[#allocation2 + $0x198] sm:$0xff] }
 0x457   : > { %4094 = vmatmul.mubr.f32.gmra.mrb[106].mxu1 %v3638_v26  ;;  %4405 = vst.msk [vmem:[#allocation3 + $0xb1] sm:$0xff] %vm3567_vm3, %v4369_v46  ;;  %13191 = vst [vmem:[#allocation21_spill] sm:$0xff] %v11567_v20 }
 0x458   : > { %v3675_v42 = vsel %vm2468_vm15, %v11118_v19, %v7423_v4  ;;  %v3565_v33 = vsel %vm2468_vm15, %v7739_v54, %v7424_v8 }
 0x459   : > { %v11555_v37 = vld [vmem:[#allocation3 + $0xa8] sm:$0xff] }
 0x45a   : > { %v7510_v36 = vpack.i.bf16 %v11558_v38, %v11555_v37 }
 0x45c   : > { %7511 = vrot.lane.b32.xlu0 %v7510_v36, %s7777_s23 }
 0x45e   : > { %v11564_v3 = vld [vmem:[#allocation3 + $0xb0] sm:$0xff] }
 0x45f   : > { %v7515_v59 = vpack.i.bf16 %v11567_v20, %v11564_v3 }
 0x461   : > { %v7427_v31 = vpop.permute.xlu1 %7426  ;;  %7516 = vrot.lane.b32.xlu1 %v7515_v59, %s7777_s23 }
 0x462   : > { %v7429_v23 = vunpack.i.h.bf16 %v7427_v31  ;;  %v7428_v63 = vunpack.i.l.bf16 %v7427_v31  ;;  %v11572_v2 = vpop.f32.mrb[26].mxu0 }
 0x463   : > { %v11574_v53 = vpop.f32.mrb[27].mxu0 }
 0x464   : > { %v4010_v35 = vpop.f32.mrb[72].mxu1  ;;  %v3711_v59 = vsel %vm3567_vm3, %v3675_v42, %v7428_v63  ;;  %v3602_v31 = vsel %vm3567_vm3, %v3565_v33, %v7429_v23  ;;  %v7740_v23 = vld [vmem:[#allocation2 + $0x1a0] sm:$0xff]  ;;  %v4575_v33 = vrot.slane %v11564_v3, 1 }
 0x465   : > { %v7432_v41 = vpop.permute.xlu0 %7431  ;;  %v7437_v0 = vpop.permute.xlu1 %7436  ;;  %v4011_v36 = vadd.f32 %v11194_v24, %v4010_v35 }
 0x466   : > { %v7434_v43 = vunpack.i.h.bf16 %v7432_v41  ;;  %v7433_v26 = vunpack.i.l.bf16 %v7432_v41  ;;  %v7438_v46 = vunpack.i.l.bf16 %v7437_v0  ;;  %v4012_v55 = vpop.f32.mrb[73].mxu1  ;;  %v7439_v15 = vunpack.i.h.bf16 %v7437_v0 }
 0x467   : > { %v4256_v19 = vadd.f32 %v11231_v62, %v4011_v36  ;;  %v4715_v36 = vrot.slane %v11295_v10, 2  ;;  %v4716_v55 = vrot.slane %v11310_v27, 2 }
 0x468   : > { %v3747_v20 = vsel %vm3604_vm4, %v3711_v59, %v7433_v26  ;;  %v3639_v38 = vsel %vm3604_vm4, %v3602_v31, %v7434_v43  ;;  %v3676_v8 = vsel %vm2468_vm15, %v11137_v9, %v7438_v46  ;;  %v3566_v26 = vsel %vm2468_vm15, %v7740_v23, %v7439_v15 }
 0x469   : > { %v7442_v4 = vpop.permute.xlu0 %7441  ;;  %4098 = vmatprep.mubr.f32.mxu1 %v3747_v20  ;;  %v7447_v58 = vpop.permute.xlu1 %7446  ;;  %v4370_v0 = vmax.f32 %v4256_v19, 0.0 }
 0x46a   : > { %v7444_v41 = vunpack.i.h.bf16 %v7442_v4  ;;  %v7443_v16 = vunpack.i.l.bf16 %v7442_v4  ;;  %4099 = vmatmul.mubr.f32.gmra.mrb[108].mxu1 %v3639_v38  ;;  %v4015_v35 = vpop.f32.mrb[74].mxu1  ;;  %v7449_v63 = vunpack.i.h.bf16 %v7447_v58  ;;  %v7448_v42 = vunpack.i.l.bf16 %v7447_v58 }
 0x46b   : > { %v4016_v43 = vadd.f32 %v11194_v24, %v4015_v35  ;;  %v4017_v54 = vpop.f32.mrb[75].mxu1  ;;  %4406 = vst.msk [vmem:[#allocation3 + $0xc1] sm:$0xff] %vm3567_vm3, %v4370_v0  ;;  %v4574_v24 = vrot.slane %v11555_v37, 1  ;;  %v4717_v4 = vsel %vm732_vm1, %v4715_v36, %v4716_v55  ;;  %v4718_v0 = vrot.slane %v11313_v39, 2 }
 0x46c   : > { %v3712_v62 = vsel %vm3567_vm3, %v3676_v8, %v7443_v16  ;;  %v3603_v20 = vsel %vm3567_vm3, %v3566_v26, %v7444_v41  ;;  %v11598_v16 = vld [vmem:[#allocation3 + $0xb8] sm:$0x3] }
 0x46d   : > { %v3748_v38 = vsel %vm3604_vm4, %v3712_v62, %v7448_v42  ;;  %v3640_v9 = vsel %vm3604_vm4, %v3603_v20, %v7449_v63  ;;  %v4261_v46 = vadd.f32 %v11220_v56, %v4016_v43  ;;  %v11605_v59 = vsel %vm511_vm0, %v4574_v24, %v4575_v33 }
 0x46e   : > { %4103 = vmatprep.mubr.f32.mxu1 %v3748_v38  ;;  %13192 = vst [vmem:[#allocation22_spill] sm:$0xff] %v11605_v59  ;;  %v4577_v31 = vrot.slane %v11598_v16, 1  ;;  %v4719_v62 = vsel %vm732_vm1, %v4716_v55, %v4718_v0  ;;  %v4721_v55 = vrot.slane %v11345_v50, 2 }
 0x46f   : > { %4104 = vmatmul.mubr.f32.gmra.mrb[110].mxu1 %v3640_v9  ;;  %v4371_v58 = vmax.f32 %v4261_v46, 0.0  ;;  %v11632_v46 = vld [vmem:[%s12781_s4] ss:$0 sm:$0xff] }
 0x470   : > { %v11616_v63 = vsel %vm511_vm0, %v4575_v33, %v4577_v31 }
 0x471   : > { %4407 = vst.msk [vmem:[#allocation3 + $0xc9] sm:$0xff] %vm3567_vm3, %v4371_v58  ;;  %13193 = vst [vmem:[#allocation23_spill] sm:$0xff] %v11616_v63 }
 0x472   : > { %v11602_v15 = vld [vmem:[#allocation3 + $0xc0] sm:$0xff] }
 0x473   : > { %v7520_v56 = vpack.i.bf16 %v11605_v59, %v11602_v15 }
 0x475   : > { %7521 = vrot.lane.b32.xlu0 %v7520_v56, %s7777_s23 }
 0x476   : > { %v7452_v19 = vpop.permute.xlu0 %7451 }
 0x477   : > { %v7454_v41 = vunpack.i.h.bf16 %v7452_v19  ;;  %v7453_v8 = vunpack.i.l.bf16 %v7452_v19 }
 0x478   : > { %v11613_v35 = vld [vmem:[#allocation3 + $0xc8] sm:$0xff] }
 0x479   : > { %v7525_v42 = vpack.i.bf16 %v11616_v63, %v11613_v35  ;;  %v5121_v23 = vsel %vm3567_vm3, %v4717_v4, %v7453_v8  ;;  %v5089_v26 = vsel %vm3567_vm3, %v11295_v10, %v7454_v41  ;;  %v4720_v4 = vrot.slane %v11327_v61, 2 }
 0x47a   : > { %v11623_v43 = vpop.f32.mrb[28].mxu0  ;;  %5396 = vmatprep.mubr.f32.mxu0 %v5121_v23  ;;  %v4746_v63 = vrot.slane %v11519_v25, 2 }
 0x47b   : > { %7526 = vrot.lane.b32.xlu1 %v7525_v42, %s7777_s23  ;;  %v11626_v54 = vpop.f32.mrb[29].mxu0  ;;  %v7457_v39 = vpop.permute.xlu1 %7456  ;;  %5397 = vmatmul.mubr.f32.vlgmr.msra.gmra.mrb[36].mxu0 %v5089_v26 }
 0x47c   : > { %v7459_v20 = vunpack.i.h.bf16 %v7457_v39  ;;  %v7458_v38 = vunpack.i.l.bf16 %v7457_v39  ;;  %v4020_v9 = vpop.f32.mrb[76].mxu1  ;;  %v4723_v39 = vrot.slane %v11363_v32, 2 }
 0x47d   : > { %v4021_v10 = vadd.f32 %v11632_v46, %v4020_v9  ;;  %v4022_v58 = vpop.f32.mrb[77].mxu1 }
 0x47e   : > { %v5122_v33 = vsel %vm3567_vm3, %v4719_v62, %v7458_v38  ;;  %v5090_v24 = vsel %vm3567_vm3, %v11310_v27, %v7459_v20  ;;  %v11644_v27 = vsel %vm732_vm1, %v4720_v4, %v4721_v55  ;;  %v4580_v20 = vrot.slane %v11613_v35, 1  ;;  %v11655_v58 = vld [vmem:[#allocation3 + $0xd0] sm:$0x3] }
 0x47f   : > { %5401 = vmatprep.mubr.f32.mxu0 %v5122_v33  ;;  %v4266_v36 = vadd.f32 %v11335_v44, %v4021_v10  ;;  %v11658_v33 = vsel %vm732_vm1, %v4721_v55, %v4723_v39  ;;  %v4726_v55 = vrot.slane %v11380_v48, 2  ;;  %v4725_v4 = vrot.slane %v11367_v45, 2 }
 0x480   : > { %5402 = vmatmul.mubr.f32.gmra.mrb[38].mxu0 %v5090_v24  ;;  %v4728_v39 = vrot.slane %v11391_v57, 2 }
 0x481   : > { %v4372_v56 = vmax.f32 %v4266_v36, 0.0  ;;  %v4025_v31 = vpop.f32.mrb[78].mxu1 }
 0x482   : > { %v7462_v19 = vpop.permute.xlu0 %7461  ;;  %v4026_v41 = vadd.f32 %v11632_v46, %v4025_v31  ;;  %v4027_v8 = vpop.f32.mrb[79].mxu1  ;;  %v4582_v31 = vrot.slane %v11655_v58, 1 }
 0x483   : > { %v7464_v0 = vunpack.i.h.bf16 %v7462_v19  ;;  %v7463_v42 = vunpack.i.l.bf16 %v7462_v19  ;;  %4408 = vst.msk [vmem:[#allocation3 + $0xd9] sm:$0xff] %vm3567_vm3, %v4372_v56 }
 0x484   : > { %v4271_v44 = vadd.f32 %v11333_v11, %v4026_v41  ;;  %v4579_v11 = vrot.slane %v11602_v15, 1 }
 0x485   : > { %v5123_v23 = vsel %vm3567_vm3, %v11644_v27, %v7463_v42  ;;  %v5091_v26 = vsel %vm3567_vm3, %v11327_v61, %v7464_v0  ;;  %v11681_v42 = vsel %vm732_vm1, %v4725_v4, %v4726_v55  ;;  %v5222_v4 = vld [vmem:[%s12782_s5 + $0x108] sm:$0xff] }
 0x486   : > { %5406 = vmatprep.mubr.f32.mxu0 %v5123_v23  ;;  %v4373_v62 = vmax.f32 %v4271_v44, 0.0  ;;  %v11663_v32 = vsel %vm511_vm0, %v4579_v11, %v4580_v20 }
 0x487   : > { %5407 = vmatmul.mubr.f32.gmra.mrb[40].mxu0 %v5091_v26  ;;  %v7467_v38 = vpop.permute.xlu1 %7466  ;;  %13194 = vst [vmem:[#allocation51_spill] sm:$0xff] %v11663_v32 }
 0x488   : > { %4409 = vst.msk [vmem:[#allocation3 + $0xe1] sm:$0xff] %vm3567_vm3, %v4373_v62  ;;  %v7469_v9 = vunpack.i.h.bf16 %v7467_v38  ;;  %v7468_v10 = vunpack.i.l.bf16 %v7467_v38 }
 0x48a   : > { %v11660_v61 = vld [vmem:[#allocation3 + $0xd8] sm:$0xff]  ;;  %v5124_v24 = vsel %vm3567_vm3, %v11658_v33, %v7468_v10  ;;  %v5092_v36 = vsel %vm3567_vm3, %v11345_v50, %v7469_v9  ;;  %v11678_v50 = vsel %vm511_vm0, %v4580_v20, %v4582_v31 }
 0x48b   : > { %v7530_v56 = vpack.i.bf16 %v11663_v32, %v11660_v61  ;;  %5411 = vmatprep.mubr.f32.mxu0 %v5124_v24  ;;  %13195 = vst [vmem:[#allocation24_spill] sm:$0xff] %v11678_v50  ;;  %v11699_v24 = vsel %vm732_vm1, %v4726_v55, %v4728_v39  ;;  %v5221_v55 = vld [vmem:[%s12782_s5 + $0x100] sm:$0xff] }
 0x48c   : > { %5412 = vmatmul.mubr.f32.gmra.mrb[42].mxu0 %v5092_v36 }
 0x48d   : > { %7531 = vrot.lane.b32.xlu0 %v7530_v56, %s7777_s23 }
 0x48e   : > { %v7472_v19 = vpop.permute.xlu0 %7471 }
 0x48f   : > { %v7474_v41 = vunpack.i.h.bf16 %v7472_v19  ;;  %v7473_v8 = vunpack.i.l.bf16 %v7472_v19  ;;  %v11675_v0 = vld [vmem:[#allocation3 + $0xe0] sm:$0xff]  ;;  %v4731_v19 = vrot.slane %v11413_v18, 2 }
 0x490   : > { %v7535_v44 = vpack.i.bf16 %v11678_v50, %v11675_v0 }
 0x491   : > { %v5125_v23 = vsel %vm3567_vm3, %v11681_v42, %v7473_v8  ;;  %v11689_v26 = vsel %vm3567_vm3, %v11367_v45, %v7474_v41 }
 0x492   : > { %v11692_v62 = vpop.f32.mrb[30].mxu0  ;;  %5416 = vmatprep.mubr.f32.mxu0 %v5125_v23  ;;  %7536 = vrot.lane.b32.xlu1 %v7535_v44, %s7777_s23  ;;  %v6685_v23 = vpack.c.bf16 %v5222_v4, %v5221_v55  ;;  %v13196_v55 = vmov 0.0|0.0  }
 0x493   : > { %v11695_v20 = vpop.f32.mrb[31].mxu0  ;;  %v7477_v38 = vpop.permute.xlu1 %7476  ;;  %5417 = vmatmul.mubr.f32.gmra.mrb[44].mxu0 %v11689_v26 }
 0x494   : > { %v7479_v9 = vunpack.i.h.bf16 %v7477_v38  ;;  %v7478_v10 = vunpack.i.l.bf16 %v7477_v38  ;;  %v4030_v11 = vpop.f32.mrb[80].mxu1  ;;  %6686 = vmatpush1.bf16.msra.mxu0 %v6685_v23 }
 0x495   : > { %v4031_v45 = vadd.f32 %v11632_v46, %v4030_v11  ;;  %v4032_v36 = vpop.f32.mrb[81].mxu1  ;;  %v5223_v11 = vld [vmem:[%s12782_s5 + $0x110] sm:$0xff]  ;;  %6687 = vmatprep.subr.bf16.mxu0 %v13196_v55 }
 0x496   : > { %v5126_v57 = vsel %vm3567_vm3, %v11699_v24, %v7478_v10  ;;  %v11706_v56 = vsel %vm3567_vm3, %v11380_v48, %v7479_v9  ;;  %v4730_v48 = vrot.slane %v11394_v22, 2 }
 0x497   : > { %5421 = vmatprep.mubr.f32.mxu0 %v5126_v57  ;;  %v4276_v31 = vadd.f32 %v11405_v30, %v4031_v45  ;;  %v5224_v45 = vld [vmem:[%s12782_s5 + $0x118] sm:$0xff] }
 0x498   : > { %5422 = vmatmul.mubr.f32.gmra.mrb[46].mxu0 %v11706_v56  ;;  %v11721_v10 = vsel %vm732_vm1, %v4730_v48, %v4731_v19  ;;  %v6688_v4 = vpack.c.bf16 %v5224_v45, %v5223_v11  ;;  %v5225_v45 = vld [vmem:[%s12782_s5 + $0x120] sm:$0xff] }
 0x499   : > { %v4374_v41 = vmax.f32 %v4276_v31, 0.0  ;;  %v4035_v8 = vpop.f32.mrb[82].mxu1 }
 0x49a   : > { %v7482_v44 = vpop.permute.xlu0 %7481  ;;  %v4036_v30 = vadd.f32 %v11632_v46, %v4035_v8  ;;  %v4037_v39 = vpop.f32.mrb[83].mxu1  ;;  %6689 = vmatpush1.bf16.msra.mxu0 %v6688_v4  ;;  %v4736_v4 = vrot.slane %v11452_v12, 2 }
 0x49b   : > { %v7484_v38 = vunpack.i.h.bf16 %v7482_v44  ;;  %v7483_v9 = vunpack.i.l.bf16 %v7482_v44  ;;  %4410 = vst.msk [vmem:[#allocation3 + $0xf1] sm:$0xff] %vm3567_vm3, %v4374_v41  ;;  %v4733_v41 = vrot.slane %v11435_v34, 2  ;;  %v4585_v44 = vrot.slane %v11675_v0, 1  ;;  %6690 = vmatprep.subr.bf16.mxu0 %v13196_v55 }
 0x49c   : > { %v4281_v36 = vadd.f32 %v11403_v17, %v4036_v30  ;;  %v11742_v30 = vld [vmem:[#allocation3 + $0xe8] sm:$0x3] }
 0x49d   : > { %v5127_v57 = vsel %vm3567_vm3, %v11721_v10, %v7483_v9  ;;  %v11734_v31 = vsel %vm3567_vm3, %v11394_v22, %v7484_v38  ;;  %v4584_v22 = vrot.slane %v11660_v61, 1  ;;  %v11746_v39 = vsel %vm732_vm1, %v4731_v19, %v4733_v41  ;;  %v5226_v19 = vld [vmem:[%s12782_s5 + $0x128] sm:$0xff] }
 0x49e   : > { %5426 = vmatprep.mubr.f32.mxu0 %v5127_v57  ;;  %v4375_v8 = vmax.f32 %v4281_v36, 0.0  ;;  %v4587_v57 = vrot.slane %v11742_v30, 1  ;;  %v6691_v41 = vpack.c.bf16 %v5226_v19, %v5225_v45 }
 0x49f   : > { %5427 = vmatmul.mubr.f32.gmra.mrb[48].mxu0 %v11734_v31  ;;  %v7487_v48 = vpop.permute.xlu1 %7486  ;;  %v11751_v38 = vsel %vm511_vm0, %v4584_v22, %v4585_v44 }
 0x4a0   : > { %4411 = vst.msk [vmem:[#allocation3 + $0xf9] sm:$0xff] %vm3567_vm3, %v4375_v8  ;;  %v7489_v17 = vunpack.i.h.bf16 %v7487_v48  ;;  %v7488_v23 = vunpack.i.l.bf16 %v7487_v48  ;;  %13197 = vst [vmem:[#allocation25_spill] sm:$0xff] %v11751_v38  ;;  %v4735_v8 = vrot.slane %v11439_v47, 2  ;;  %6692 = vmatpush1.bf16.msra.mxu0 %v6691_v41  ;;  %v11776_v22 = vsel %vm511_vm0, %v4585_v44, %v4587_v57  ;;  %v5227_v57 = vld [vmem:[%s12782_s5 + $0x130] sm:$0xff] }
 0x4a1   : > { %6693 = vmatprep.subr.bf16.mxu0 %v13196_v55  ;;  %13198 = vst [vmem:[#allocation52_spill] sm:$0xff] %v11776_v22  ;;  %v4738_v41 = vrot.slane %v11461_v29, 2 }
 0x4a2   : > { %v11748_v34 = vld [vmem:[#allocation3 + $0xf0] sm:$0xff]  ;;  %v5128_v9 = vsel %vm3567_vm3, %v11746_v39, %v7488_v23  ;;  %v11757_v11 = vsel %vm3567_vm3, %v11413_v18, %v7489_v17 }
 0x4a3   : > { %v7540_v36 = vpack.i.bf16 %v11751_v38, %v11748_v34  ;;  %5431 = vmatprep.mubr.f32.mxu0 %v5128_v9  ;;  %v11779_v9 = vsel %vm732_vm1, %v4735_v8, %v4736_v4 }
 0x4a4   : > { %5432 = vmatmul.mubr.f32.gmra.mrb[50].mxu0 %v11757_v11 }
 0x4a5   : > { %7541 = vrot.lane.b32.xlu0 %v7540_v36, %s7777_s23 }
 0x4a6   : > { %v7492_v18 = vpop.permute.xlu0 %7491 }
 0x4a7   : > { %v7494_v48 = vunpack.i.h.bf16 %v7492_v18  ;;  %v7493_v17 = vunpack.i.l.bf16 %v7492_v18  ;;  %v11773_v23 = vld [vmem:[#allocation3 + $0xf8] sm:$0xff] }
 0x4a8   : > { %v7545_v45 = vpack.i.bf16 %v11776_v22, %v11773_v23  ;;  %v5228_v18 = vld [vmem:[%s12782_s5 + $0x138] sm:$0xff] }
 0x4a9   : > { %v5129_v19 = vsel %vm3567_vm3, %v11779_v9, %v7493_v17  ;;  %v11787_v36 = vsel %vm3567_vm3, %v11439_v47, %v7494_v48  ;;  %v6694_v48 = vpack.c.bf16 %v5228_v18, %v5227_v57 }
 0x4aa   : > { %13199 = vst [vmem:[#allocation26_spill] sm:$0xff] %v11787_v36  ;;  %5436 = vmatprep.mubr.f32.mxu0 %v5129_v19  ;;  %7546 = vrot.lane.b32.xlu1 %v7545_v45, %s7777_s23  ;;  %v11800_v45 = vsel %vm732_vm1, %v4736_v4, %v4738_v41  ;;  %v5229_v4 = vld [vmem:[%s12782_s5 + $0x140] sm:$0xff] }
 0x4ab   : > { %v7497_v44 = vpop.permute.xlu1 %7496  ;;  %5437 = vmatmul.mubr.f32.gmra.mrb[52].mxu0 %v11787_v36 }
 0x4ac   : > { %v4040_v8 = vpop.f32.mrb[84].mxu1  ;;  %v7499_v17 = vunpack.i.h.bf16 %v7497_v44  ;;  %v7498_v47 = vunpack.i.l.bf16 %v7497_v44  ;;  %6695 = vmatpush1.bf16.msra.mxu0 %v6694_v48 }
 0x4ad   : > { %v4041_v29 = vadd.f32 %v11632_v46, %v4040_v8  ;;  %v4042_v19 = vpop.f32.mrb[85].mxu1  ;;  %6696 = vmatprep.subr.bf16.mxu0 %v13196_v55 }
 0x4ae   : > { %v5130_v22 = vsel %vm3567_vm3, %v11800_v45, %v7498_v47  ;;  %v11806_v38 = vsel %vm3567_vm3, %v11452_v12, %v7499_v17  ;;  %v5230_v12 = vld [vmem:[%s12782_s5 + $0x148] sm:$0xff]  ;;  %v4741_v17 = vrot.slane %v11487_v14, 2  ;;  %v5231_v47 = vld [vmem:[%s12782_s5 + $0x150] sm:$0xff]  ;;  %v4740_v19 = vrot.slane %v11465_v5, 2 }
 0x4af   : > { %13200 = vst [vmem:[#allocation27_spill] sm:$0xff] %v11806_v38  ;;  %v4286_v50 = vadd.f32 %v11475_v13, %v4041_v29  ;;  %5441 = vmatprep.mubr.f32.mxu0 %v5130_v22  ;;  %v11809_v32 = vpop.f32.mrb[32].mxu0  ;;  %v6697_v13 = vpack.c.bf16 %v5230_v12, %v5229_v4  ;;  %v4590_v4 = vrot.slane %v11773_v23, 1 }
 0x4b0   : > { %5442 = vmatmul.mubr.f32.gmra.mrb[54].mxu0 %v11806_v38  ;;  %v11813_v44 = vpop.f32.mrb[33].mxu0 }
 0x4b1   : > { %v4376_v41 = vmax.f32 %v4286_v50, 0.0  ;;  %v4045_v57 = vpop.f32.mrb[86].mxu1  ;;  %6698 = vmatpush1.bf16.msra.mxu0 %v6697_v13  ;;  %v5232_v50 = vld [vmem:[%s12782_s5 + $0x158] sm:$0xff]  ;;  %v4589_v13 = vrot.slane %v11748_v34, 1 }
 0x4b2   : > { %v4046_v22 = vadd.f32 %v11632_v46, %v4045_v57  ;;  %v4047_v18 = vpop.f32.mrb[87].mxu1  ;;  %6699 = vmatprep.subr.bf16.mxu0 %v13196_v55  ;;  %v6700_v12 = vpack.c.bf16 %v5232_v50, %v5231_v47  ;;  %v11836_v57 = vsel %vm732_vm1, %v4740_v19, %v4741_v17  ;;  %v4743_v47 = vrot.slane %v11508_v51, 2 }
 0x4b3   : > { %4412 = vst.msk [vmem:[#allocation3 + $0x109] sm:$0xff] %vm3567_vm3, %v4376_v41 }
 0x4b4   : > { %v4291_v8 = vadd.f32 %v11471_v40, %v4046_v22  ;;  %v11839_v22 = vld [vmem:[#allocation3 + $0x100] sm:$0x3]  ;;  %v11860_v51 = vsel %vm732_vm1, %v4741_v17, %v4743_v47 }
 0x4b5   : > { %6701 = vmatpush1.bf16.msra.mxu0 %v6700_v12  ;;  %v4592_v12 = vrot.slane %v11839_v22, 1 }
 0x4b6   : > { %v4377_v48 = vmax.f32 %v4291_v8, 0.0  ;;  %v7502_v29 = vpop.permute.xlu0 %7501  ;;  %6702 = vmatprep.subr.bf16.mxu0 %v13196_v55 }
 0x4b7   : > { %v7504_v40 = vunpack.i.h.bf16 %v7502_v29  ;;  %v7503_v41 = vunpack.i.l.bf16 %v7502_v29  ;;  %v11877_v17 = vsel %vm511_vm0, %v4590_v4, %v4592_v12  ;;  %v5236_v12 = vld [vmem:[%s12782_s5 + $0x178] sm:$0xff] }
 0x4b8   : > { %4413 = vst.msk [vmem:[#allocation3 + $0x111] sm:$0xff] %vm3567_vm3, %v4377_v48  ;;  %v11852_v48 = vsel %vm511_vm0, %v4589_v13, %v4590_v4  ;;  %v5234_v13 = vld [vmem:[%s12782_s5 + $0x168] sm:$0xff]  ;;  %13204 = vst [vmem:[#allocation54_spill] sm:$0xff] %v11877_v17  ;;  %v5235_v4 = vld [vmem:[%s12782_s5 + $0x170] sm:$0xff] }
 0x4b9   : > { %v5131_v18 = vsel %vm3567_vm3, %v11836_v57, %v7503_v41  ;;  %v11845_v8 = vsel %vm3567_vm3, %v11465_v5, %v7504_v40  ;;  %13202 = vst [vmem:[#allocation28_spill] sm:$0xff] %v11852_v48  ;;  %v5233_v41 = vld [vmem:[%s12782_s5 + $0x160] sm:$0xff] }
 0x4ba   : > { %13201 = vst [vmem:[#allocation53_spill] sm:$0xff] %v11845_v8  ;;  %5446 = vmatprep.mubr.f32.mxu0 %v5131_v18  ;;  %v11849_v50 = vld [vmem:[#allocation3 + $0x108] sm:$0xff] }
 0x4bb   : > { %v7507_v29 = vpop.permute.xlu1 %7506  ;;  %5447 = vmatmul.mubr.f32.gmra.mrb[56].mxu0 %v11845_v8  ;;  %v7550_v19 = vpack.i.bf16 %v11852_v48, %v11849_v50 }
 0x4bc   : > { %v7509_v5 = vunpack.i.h.bf16 %v7507_v29  ;;  %v7508_v40 = vunpack.i.l.bf16 %v7507_v29  ;;  %v6703_v29 = vpack.c.bf16 %v5234_v13, %v5233_v41 }
 0x4bd   : > { %7551 = vrot.lane.b32.xlu0 %v7550_v19, %s7777_s23 }
 0x4be   : > { %v5132_v18 = vsel %vm3567_vm3, %v11860_v51, %v7508_v40  ;;  %v11872_v48 = vsel %vm3567_vm3, %v11487_v14, %v7509_v5  ;;  %6704 = vmatpush1.bf16.msra.mxu0 %v6703_v29  ;;  %v5237_v29 = vld [vmem:[%s12782_s5 + $0x180] sm:$0xff] }
 0x4bf   : > { %13203 = vst [vmem:[#allocation29_spill] sm:$0xff] %v11872_v48  ;;  %5451 = vmatprep.mubr.f32.mxu0 %v5132_v18  ;;  %v11874_v19 = vld [vmem:[#allocation3 + $0x110] sm:$0xff]  ;;  %6705 = vmatprep.subr.bf16.mxu0 %v13196_v55 }
 0x4c0   : > { %5452 = vmatmul.mubr.f32.gmra.mrb[58].mxu0 %v11872_v48  ;;  %v7555_v47 = vpack.i.bf16 %v11877_v17, %v11874_v19 }
 0x4c2   : > { %7556 = vrot.lane.b32.xlu1 %v7555_v47, %s7777_s23 }
 0x4c4   : > { %v4050_v40 = vpop.f32.mrb[88].mxu1 }
 0x4c5   : > { %v4051_v14 = vadd.f32 %v11632_v46, %v4050_v40  ;;  %v4052_v5 = vpop.f32.mrb[89].mxu1 }
 0x4c7   : > { %v4296_v41 = vadd.f32 %v11529_v60, %v4051_v14  ;;  %v6706_v60 = vpack.c.bf16 %v5236_v12, %v5235_v4  ;;  %v5238_v14 = vld [vmem:[%s12782_s5 + $0x188] sm:$0xff]  ;;  %v4745_v4 = vrot.slane %v11510_v28, 2  ;;  %v4595_v12 = vrot.slane %v11874_v19, 1 }
 0x4c8   : > { %v6709_v59 = vpack.c.bf16 %v5238_v14, %v5237_v29  ;;  %v5239_v14 = vld [vmem:[%s12782_s5 + $0x190] sm:$0xff] }
 0x4c9   : > { %v4378_v13 = vmax.f32 %v4296_v41, 0.0  ;;  %v4055_v18 = vpop.f32.mrb[90].mxu1  ;;  %v11896_v5 = vpop.f32.mrb[34].mxu0  ;;  %6707 = vmatpush1.bf16.msra.mxu0 %v6706_v60  ;;  %v4748_v60 = vrot.slane %v11553_v7, 2 }
 0x4ca   : > { %v4056_v47 = vadd.f32 %v11632_v46, %v4055_v18  ;;  %v4057_v40 = vpop.f32.mrb[91].mxu1  ;;  %v11902_v41 = vpop.f32.mrb[35].mxu0  ;;  %6708 = vmatprep.subr.bf16.mxu0 %v13196_v55 }
 0x4cb   : > { %4414 = vst.msk [vmem:[#allocation3 + $0x121] sm:$0xff] %vm3567_vm3, %v4378_v13  ;;  %v11911_v13 = vsel %vm732_vm1, %v4745_v4, %v4746_v63 }
 0x4cc   : > { %v4301_v17 = vadd.f32 %v11527_v52, %v4056_v47  ;;  %v4594_v52 = vrot.slane %v11849_v50, 1  ;;  %v11914_v47 = vld [vmem:[#allocation3 + $0x118] sm:$0x3] }
 0x4cd   : > { %6710 = vmatpush1.bf16.msra.mxu0 %v6709_v59 }
 0x4ce   : > { %v4379_v18 = vmax.f32 %v4301_v17, 0.0  ;;  %v7512_v40 = vpop.permute.xlu0 %7511  ;;  %6711 = vmatprep.subr.bf16.mxu0 %v13196_v55 }
 0x4cf   : > { %v7514_v48 = vunpack.i.h.bf16 %v7512_v40  ;;  %v7513_v8 = vunpack.i.l.bf16 %v7512_v40  ;;  %v4597_v40 = vrot.slane %v11914_v47, 1 }
 0x4d0   : > { %4415 = vst.msk [vmem:[#allocation3 + $0x129] sm:$0xff] %vm3567_vm3, %v4379_v18  ;;  %v5240_v18 = vld [vmem:[%s12782_s5 + $0x198] sm:$0xff] }
 0x4d1   : > { %v5133_v17 = vsel %vm3567_vm3, %v11911_v13, %v7513_v8  ;;  %v11920_v29 = vsel %vm3567_vm3, %v11510_v28, %v7514_v48  ;;  %v11933_v8 = vsel %vm511_vm0, %v4594_v52, %v4595_v12  ;;  %v6712_v28 = vpack.c.bf16 %v5240_v18, %v5239_v14  ;;  %v5241_v18 = vld [vmem:[%s12782_s5 + $0x1a0] sm:$0xff] }
 0x4d2   : > { %13205 = vst [vmem:[#allocation55_spill] sm:$0xff] %v11920_v29  ;;  %5456 = vmatprep.mubr.f32.mxu0 %v5133_v17  ;;  %v11930_v59 = vld [vmem:[#allocation3 + $0x120] sm:$0xff]  ;;  %13206 = vst [vmem:[#allocation34_spill] sm:$0xff] %v11933_v8  ;;  %v11941_v17 = vsel %vm732_vm1, %v4746_v63, %v4748_v60  ;;  %v11959_v60 = vsel %vm511_vm0, %v4595_v12, %v4597_v40  ;;  %v5243_v12 = vld [vmem:[%s12782_s5 + $0x1b0] sm:$0xff] }
 0x4d3   : > { %v7517_v48 = vpop.permute.xlu1 %7516  ;;  %5457 = vmatmul.mubr.f32.gmra.mrb[60].mxu0 %v11920_v29  ;;  %v7560_v7 = vpack.i.bf16 %v11933_v8, %v11930_v59  ;;  %13208 = vst [vmem:[#allocation30_spill] sm:$0xff] %v11959_v60  ;;  %v5244_v40 = vld [vmem:[%s12782_s5 + $0x1b8] sm:$0xff] }
 0x4d4   : > { %v7519_v4 = vunpack.i.h.bf16 %v7517_v48  ;;  %v7518_v38 = vunpack.i.l.bf16 %v7517_v48  ;;  %6713 = vmatpush1.bf16.msra.mxu0 %v6712_v28  ;;  %v5242_v28 = vld [vmem:[%s12782_s5 + $0x1a8] sm:$0xff] }
 0x4d5   : > { %7561 = vrot.lane.b32.xlu0 %v7560_v7, %s7777_s23  ;;  %6714 = vmatprep.subr.bf16.mxu0 %v13196_v55  ;;  %v6715_v48 = vpack.c.bf16 %v5242_v28, %v5241_v18 }
 0x4d6   : > { %v5134_v52 = vsel %vm3567_vm3, %v11941_v17, %v7518_v38  ;;  %v11948_v14 = vsel %vm3567_vm3, %v11519_v25, %v7519_v4 }
 0x4d7   : > { %13207 = vst [vmem:[#allocation35_spill] sm:$0xff] %v11948_v14  ;;  %5461 = vmatprep.mubr.f32.mxu0 %v5134_v52  ;;  %v11956_v63 = vld [vmem:[#allocation3 + $0x128] sm:$0xff] }
 0x4d8   : > { %5462 = vmatmul.mubr.f32.gmra.mrb[62].mxu0 %v11948_v14  ;;  %v7565_v25 = vpack.i.bf16 %v11959_v60, %v11956_v63 }
 0x4d9   : > { %6716 = vmatpush1.bf16.msra.mxu0 %v6715_v48  ;;  %v6718_v48 = vpack.c.bf16 %v5244_v40, %v5243_v12 }
 0x4da   : > { %7566 = vrot.lane.b32.xlu1 %v7565_v25, %s7777_s23  ;;  %6717 = vmatprep.subr.bf16.mxu0 %v13196_v55 }
 0x4dc   : > { %v4060_v38 = vpop.f32.mrb[92].mxu1 }
 0x4dd   : > { %v4061_v7 = vadd.f32 %v11632_v46, %v4060_v38  ;;  %v4062_v4 = vpop.f32.mrb[93].mxu1  ;;  %6719 = vmatpush1.bf16.msra.mxu0 %v6718_v48  ;;  %v4599_v48 = vrot.slane %v11930_v59, 1 }
 0x4de   : > { %6720 = vmatprep.subr.bf16.mxu0 %v13196_v55  ;;  %v5246_v4 = vld [vmem:[%s12782_s5 + $0x1c8] sm:$0xff] }
 0x4df   : > { %v4306_v52 = vadd.f32 %v11574_v53, %v4061_v7  ;;  %v4751_v53 = vrot.slane %v11564_v3, 2  ;;  %v5245_v7 = vld [vmem:[%s12782_s5 + $0x1c0] sm:$0xff] }
 0x4e0   : > { %v6721_v12 = vpack.c.bf16 %v5246_v4, %v5245_v7 }
 0x4e1   : > { %v4380_v18 = vmax.f32 %v4306_v52, 0.0  ;;  %v4065_v28 = vpop.f32.mrb[94].mxu1 }
 0x4e2   : > { %v4066_v25 = vadd.f32 %v11632_v46, %v4065_v28  ;;  %v4067_v60 = vpop.f32.mrb[95].mxu1  ;;  %6722 = vmatpush1.bf16.msra.mxu0 %v6721_v12 }
 0x4e3   : > { %4416 = vst.msk [vmem:[#allocation3 + $0x139] sm:$0xff] %vm3567_vm3, %v4380_v18  ;;  %v4600_v60 = vrot.slane %v11956_v63, 1  ;;  %v4750_v18 = vrot.slane %v11555_v37, 2  ;;  %6723 = vmatprep.subr.bf16.mxu0 %v13196_v55 }
 0x4e4   : > { %v4311_v38 = vadd.f32 %v11572_v2, %v4066_v25  ;;  %v11989_v25 = vld [vmem:[#allocation3 + $0x130] sm:$0x3] }
 0x4e5   : > { %v11992_v8 = vsel %vm732_vm1, %v4750_v18, %v4751_v53  ;;  %v4602_v18 = vrot.slane %v11989_v25, 1 }
 0x4e6   : > { %v4381_v52 = vmax.f32 %v4311_v38, 0.0 }
 0x4e7   : > { %v7522_v40 = vpop.permute.xlu0 %7521  ;;  %v12030_v36 = vsel %vm511_vm0, %v4600_v60, %v4602_v18 }
 0x4e8   : > { %4417 = vst.msk [vmem:[#allocation3 + $0x141] sm:$0xff] %vm3567_vm3, %v4381_v52  ;;  %v7524_v2 = vunpack.i.h.bf16 %v7522_v40  ;;  %v7523_v28 = vunpack.i.l.bf16 %v7522_v40  ;;  %v12004_v52 = vsel %vm511_vm0, %v4599_v48, %v4600_v60  ;;  %v4753_v40 = vrot.slane %v11598_v16, 2  ;;  %13212 = vst [vmem:[#allocation32_spill] sm:$0xff] %v12030_v36 }
 0x4e9   : > { %13210 = vst [vmem:[#allocation56_spill] sm:$0xff] %v12004_v52 }
 0x4ea   : > { %v5135_v38 = vsel %vm3567_vm3, %v11992_v8, %v7523_v28  ;;  %v11999_v7 = vsel %vm3567_vm3, %v11555_v37, %v7524_v2  ;;  %v12001_v4 = vld [vmem:[#allocation3 + $0x138] sm:$0xff]  ;;  %v5247_v37 = vld [vmem:[%s12782_s5 + $0x1d0] sm:$0xff] }
 0x4eb   : > { %13209 = vst [vmem:[#allocation31_spill] sm:$0xff] %v11999_v7  ;;  %5466 = vmatprep.mubr.f32.mxu0 %v5135_v38  ;;  %v7570_v12 = vpack.i.bf16 %v12004_v52, %v12001_v4  ;;  %v5248_v2 = vld [vmem:[%s12782_s5 + $0x1d8] sm:$0xff]  ;;  %v12019_v38 = vsel %vm732_vm1, %v4751_v53, %v4753_v40  ;;  %v5249_v53 = vld [vmem:[%s12782_s5 + $0x1e0] sm:$0xff] }
 0x4ec   : > { %5467 = vmatmul.mubr.f32.gmra.mrb[64].mxu0 %v11999_v7  ;;  %v6724_v16 = vpack.c.bf16 %v5248_v2, %v5247_v37  ;;  %13211 = vst [vmem:[#allocation57_spill] sm:$0xff] %v12019_v38  ;;  %v5251_v37 = vld [vmem:[%s12782_s5 + $0x1f0] sm:$0xff]  ;;  %v5252_v2 = vld [vmem:[%s12782_s5 + $0x1f8] sm:$0xff] }
 0x4ed   : > { %v7527_v14 = vpop.permute.xlu1 %7526  ;;  %7571 = vrot.lane.b32.xlu0 %v7570_v12, %s7777_s23 }
 0x4ee   : > { %v7529_v28 = vunpack.i.h.bf16 %v7527_v14  ;;  %v7528_v48 = vunpack.i.l.bf16 %v7527_v14  ;;  %6725 = vmatpush1.bf16.msra.mxu0 %v6724_v16  ;;  %v6730_v16 = vpack.c.bf16 %v5252_v2, %v5251_v37 }
 0x4ef   : > { %v12027_v29 = vld [vmem:[#allocation3 + $0x140] sm:$0xff]  ;;  %6726 = vmatprep.subr.bf16.mxu0 %v13196_v55 }
 0x4f0   : > { %v5136_v52 = vsel %vm3567_vm3, %v12019_v38, %v7528_v48  ;;  %v12025_v7 = vsel %vm3567_vm3, %v11564_v3, %v7529_v28  ;;  %v7575_v14 = vpack.i.bf16 %v12030_v36, %v12027_v29  ;;  %v5250_v3 = vld [vmem:[%s12782_s5 + $0x1e8] sm:$0xff] }
 0x4f1   : > { %5471 = vmatprep.mubr.f32.mxu0 %v5136_v52  ;;  %v6727_v40 = vpack.c.bf16 %v5250_v3, %v5249_v53  ;;  %v4605_v3 = vrot.slane %v12027_v29, 1 }
 0x4f2   : > { %5472 = vmatmul.mubr.f32.gmra.mrb[66].mxu0 %v12025_v7  ;;  %7576 = vrot.lane.b32.xlu1 %v7575_v14, %s7777_s23 }
 0x4f3   : > { %6728 = vmatpush1.bf16.msra.mxu0 %v6727_v40 }
 0x4f4   : > { %v4070_v60 = vpop.f32.mrb[96].mxu1  ;;  %6729 = vmatprep.subr.bf16.mxu0 %v13196_v55 }
 0x4f5   : > { %v4071_v52 = vadd.f32 %v11632_v46, %v4070_v60  ;;  %v4072_v12 = vpop.f32.mrb[97].mxu1  ;;  %v4755_v60 = vrot.slane %v11602_v15, 2 }
 0x4f6   : > { %4968 = vrot.lane.b32.xlu1 %v11644_v27, %s7777_s23  ;;  %v4756_v27 = vrot.slane %v11613_v35, 2 }
 0x4f7   : > { %v4316_v18 = vadd.f32 %v11626_v54, %v4071_v52  ;;  %6731 = vmatpush1.bf16.msra.mxu0 %v6730_v16  ;;  %v7585_v52 = vpack.i.bf16 %v11800_v45, %v11779_v9 }
 0x4f8   : > { %v12069_v37 = vsel %vm732_vm1, %v4755_v60, %v4756_v27 }
 0x4f9   : > { %v4382_v28 = vmax.f32 %v4316_v18, 0.0  ;;  %v4075_v48 = vpop.f32.mrb[98].mxu1  ;;  %13213 = vst [vmem:[#allocation33_spill] sm:$0xff] %v12069_v37 }
 0x4fa   : > { %v4076_v55 = vadd.f32 %v11632_v46, %v4075_v48  ;;  %v4077_v14 = vpop.f32.mrb[99].mxu1  ;;  %4972 = vrot.lane.b32.xlu1 %v11681_v42, %s7777_s23 }
 0x4fb   : > { %4418 = vst.msk [vmem:[#allocation3 + $0x151] sm:$0xff] %vm3567_vm3, %v4382_v28 }
 0x4fc   : > { %v4321_v54 = vadd.f32 %v11623_v43, %v4076_v55  ;;  %v4604_v43 = vrot.slane %v12001_v4, 1  ;;  %v4758_v55 = vrot.slane %v11655_v58, 2 }
 0x4fe   : > { %v4383_v53 = vmax.f32 %v4321_v54, 0.0  ;;  %4976 = vrot.lane.b32.xlu1 %v11721_v10, %s7777_s23  ;;  %v12081_v16 = vsel %vm511_vm0, %v4604_v43, %v4605_v3 }
 0x4ff   : > { %v7532_v40 = vpop.permute.xlu0 %7531  ;;  %13214 = vst [vmem:[#allocation58_spill] sm:$0xff] %v12081_v16 }
 0x500   : > { %4419 = vst.msk [vmem:[#allocation3 + $0x159] sm:$0xff] %vm3567_vm3, %v4383_v53  ;;  %v7534_v12 = vunpack.i.h.bf16 %v7532_v40  ;;  %v7533_v18 = vunpack.i.l.bf16 %v7532_v40 }
 0x502   : > { %7586 = vrot.lane.b32.xlu1 %v7585_v52, %s7777_s23  ;;  %v5137_v2 = vsel %vm3567_vm3, %v12069_v37, %v7533_v18  ;;  %v12076_v28 = vsel %vm3567_vm3, %v11602_v15, %v7534_v12  ;;  %v12078_v48 = vld [vmem:[#allocation3 + $0x150] sm:$0xff]  ;;  %v12089_v15 = vsel %vm732_vm1, %v4756_v27, %v4758_v55 }
 0x503   : > { %5476 = vmatprep.mubr.f32.mxu0 %v5137_v2  ;;  %v7580_v14 = vpack.i.bf16 %v12081_v16, %v12078_v48 }
 0x504   : > { %v7537_v54 = vpop.permute.xlu1 %7536  ;;  %5477 = vmatmul.mubr.f32.gmra.mrb[68].mxu0 %v12076_v28 }
 0x505   : > { %v7539_v53 = vunpack.i.h.bf16 %v7537_v54  ;;  %v7538_v40 = vunpack.i.l.bf16 %v7537_v54  ;;  %7581 = vrot.lane.b32.xlu0 %v7580_v14, %s7777_s23 }
 0x507   : > { %v5138_v60 = vsel %vm3567_vm3, %v12089_v15, %v7538_v40  ;;  %v12095_v58 = vsel %vm3567_vm3, %v11613_v35, %v7539_v53  ;;  %v12097_v52 = vld [vmem:[#allocation3 + $0x158] sm:$0xff]  ;;  %v12108_v35 = vld [vmem:[#allocation3 + $0x148] sm:$0x3]  ;;  %v7590_v40 = vpack.i.bf16 %v11860_v51, %v11836_v57 }
 0x508   : > { %5481 = vmatprep.mubr.f32.mxu0 %v5138_v60  ;;  %v7595_v12 = vpack.i.bf16 %v12097_v52, %v11911_v13  ;;  %v4607_v55 = vrot.slane %v12108_v35, 1 }
 0x509   : > { %4970 = vrot.lane.b32.xlu0 %v11658_v33, %s7777_s23  ;;  %5482 = vmatmul.mubr.f32.gmra.mrb[70].mxu0 %v12095_v58 }
 0x50a   : > { %7596 = vrot.lane.b32.xlu1 %v7595_v12, %s7777_s23  ;;  %v12120_v12 = vsel %vm511_vm0, %v4605_v3, %v4607_v55  ;;  %v4610_v3 = vrot.slane %v12097_v52, 1 }
 0x50b   : > { %13215 = vst [vmem:[#allocation59_spill] sm:$0xff] %v12120_v12 }
 0x50d   : > { %v4080_v27 = vpop.f32.mrb[100].mxu1  ;;  %4974 = vrot.lane.b32.xlu0 %v11699_v24, %s7777_s23 }
 0x50e   : > { %v4081_v18 = vadd.f32 %v11632_v46, %v4080_v27  ;;  %v4082_v43 = vpop.f32.mrb[101].mxu1  ;;  %v12124_v27 = vld [vmem:[#allocation3 + $0x160] sm:$0x3] }
 0x50f   : > { %v4612_v55 = vrot.slane %v12124_v27, 1 }
 0x510   : > { %v4326_v2 = vadd.f32 %v11695_v20, %v4081_v18  ;;  %v4761_v20 = vrot.slane %v11675_v0, 2 }
 0x511   : > { %4978 = vrot.lane.b32.xlu0 %v11746_v39, %s7777_s23 }
 0x512   : > { %v4384_v14 = vmax.f32 %v4326_v2, 0.0  ;;  %v4085_v54 = vpop.f32.mrb[102].mxu1  ;;  %v7600_v2 = vpack.i.bf16 %v12120_v12, %v11941_v17 }
 0x513   : > { %v4086_v33 = vadd.f32 %v11632_v46, %v4085_v54  ;;  %v4087_v53 = vpop.f32.mrb[103].mxu1  ;;  %v4760_v54 = vrot.slane %v11660_v61, 2 }
 0x514   : > { %4420 = vst.msk [vmem:[#allocation3 + $0x169] sm:$0xff] %vm3567_vm3, %v4384_v14 }
 0x515   : > { %v4331_v60 = vadd.f32 %v11692_v62, %v4086_v33  ;;  %7591 = vrot.lane.b32.xlu0 %v7590_v40, %s7777_s23  ;;  %v12134_v33 = vsel %vm732_vm1, %v4760_v54, %v4761_v20 }
 0x516   : > { %13216 = vst [vmem:[#allocation9_spill] sm:$0xff] %v12134_v33 }
 0x517   : > { %v4385_v18 = vmax.f32 %v4331_v60, 0.0  ;;  %v7542_v43 = vpop.permute.xlu0 %7541 }
 0x518   : > { %v7544_v14 = vunpack.i.h.bf16 %v7542_v43  ;;  %v7543_v62 = vunpack.i.l.bf16 %v7542_v43 }
 0x519   : > { %4421 = vst.msk [vmem:[#allocation3 + $0x171] sm:$0xff] %vm3567_vm3, %v4385_v18  ;;  %7601 = vrot.lane.b32.xlu0 %v7600_v2, %s7777_s23  ;;  %v4763_v18 = vrot.slane %v11742_v30, 2  ;;  %v12149_v2 = vsel %vm511_vm0, %v4610_v3, %v4612_v55 }
 0x51a   : > { %v5139_v53 = vsel %vm3567_vm3, %v12134_v33, %v7543_v62  ;;  %v12140_v40 = vsel %vm3567_vm3, %v11660_v61, %v7544_v14  ;;  %13217 = vst [vmem:[#allocation8_spill] sm:$0xff] %v12149_v2  ;;  %v4609_v61 = vrot.slane %v12078_v48, 1 }
 0x51b   : > { %v12142_v60 = vld [vmem:[#allocation3 + $0x168] sm:$0xff]  ;;  %5486 = vmatprep.mubr.f32.mxu0 %v5139_v53  ;;  %v12154_v14 = vsel %vm732_vm1, %v4761_v20, %v4763_v18  ;;  %v7615_v53 = vpack.i.bf16 %v12149_v2, %v12019_v38 }
 0x51c   : > { %v7605_v43 = vpack.i.bf16 %v11992_v8, %v12142_v60  ;;  %v7547_v12 = vpop.permute.xlu1 %7546  ;;  %5487 = vmatmul.mubr.f32.gmra.mrb[72].mxu0 %v12140_v40  ;;  %13218 = vst [vmem:[#allocation36_spill] sm:$0xff] %v12154_v14 }
 0x51d   : > { %v7549_v54 = vunpack.i.h.bf16 %v7547_v12  ;;  %v7548_v62 = vunpack.i.l.bf16 %v7547_v12  ;;  %v12167_v12 = vsel %vm511_vm0, %v4609_v61, %v4610_v3  ;;  %v5253_v3 = vld [vmem:[%s12782_s5 + $0x200] sm:$0xff]  ;;  %v5254_v61 = vld [vmem:[%s12782_s5 + $0x208] sm:$0xff] }
 0x51e   : > { %7606 = vrot.lane.b32.xlu1 %v7605_v43, %s7777_s23  ;;  %13219 = vst [vmem:[#allocation37_spill] sm:$0xff] %v12167_v12 }
 0x51f   : > { %v5140_v30 = vsel %vm3567_vm3, %v12154_v14, %v7548_v62  ;;  %v12162_v16 = vsel %vm3567_vm3, %v11675_v0, %v7549_v54 }
 0x520   : > { %v12164_v55 = vld [vmem:[#allocation3 + $0x170] sm:$0xff]  ;;  %5491 = vmatprep.mubr.f32.mxu0 %v5140_v30 }
 0x521   : > { %v7610_v20 = vpack.i.bf16 %v12164_v55, %v12167_v12  ;;  %5492 = vmatmul.mubr.f32.gmra.mrb[74].mxu0 %v12162_v16  ;;  %v4765_v12 = vrot.slane %v11748_v34, 2 }
 0x522   : > { %7616 = vrot.lane.b32.xlu1 %v7615_v53, %s7777_s23 }
 0x523   : > { %7611 = vrot.lane.b32.xlu0 %v7610_v20, %s7777_s23  ;;  %v12183_v20 = vpack.c.bf16 %v5254_v61, %v5253_v3  ;;  %v4615_v3 = vrot.slane %v12164_v55, 1 }
 0x525   : > { %v4090_v18 = vpop.f32.mrb[104].mxu1  ;;  %6733 = vmatprep.subr.bf16.mxu1 %v12183_v20 }
 0x526   : > { %v4091_v43 = vadd.f32 %v11632_v46, %v4090_v18  ;;  %v4092_v0 = vpop.f32.mrb[105].mxu1 }
 0x528   : > { %v4336_v54 = vadd.f32 %v11813_v44, %v4091_v43  ;;  %v4766_v44 = vrot.slane %v11773_v23, 2  ;;  %v12189_v43 = vld [vmem:[#allocation3 + $0x178] sm:$0x3] }
 0x52a   : > { %v4386_v62 = vmax.f32 %v4336_v54, 0.0  ;;  %v4095_v2 = vpop.f32.mrb[106].mxu1 }
 0x52b   : > { %v4096_v30 = vadd.f32 %v11632_v46, %v4095_v2  ;;  %v4097_v53 = vpop.f32.mrb[107].mxu1 }
 0x52c   : > { %4422 = vst.msk [vmem:[#allocation3 + $0x181] sm:$0xff] %vm3567_vm3, %v4386_v62  ;;  %v4617_v62 = vrot.slane %v12189_v43, 1 }
 0x52d   : > { %v4341_v18 = vadd.f32 %v11809_v32, %v4096_v30  ;;  %v12196_v32 = vsel %vm732_vm1, %v4765_v12, %v4766_v44 }
 0x52e   : > { %13220 = vst [vmem:[#allocation60_spill] sm:$0xff] %v12196_v32  ;;  %v12211_v12 = vsel %vm511_vm0, %v4615_v3, %v4617_v62 }
 0x52f   : > { %v4387_v0 = vmax.f32 %v4341_v18, 0.0  ;;  %v7552_v54 = vpop.permute.xlu0 %7551  ;;  %13221 = vst [vmem:[#allocation61_spill] sm:$0xff] %v12211_v12  ;;  %v7630_v62 = vpack.i.bf16 %v12211_v12, %v12089_v15 }
 0x530   : > { %v7554_v2 = vunpack.i.h.bf16 %v7552_v54  ;;  %v7553_v53 = vunpack.i.l.bf16 %v7552_v54 }
 0x531   : > { %4423 = vst.msk [vmem:[#allocation3 + $0x189] sm:$0xff] %vm3567_vm3, %v4387_v0  ;;  %v4768_v0 = vrot.slane %v11839_v22, 2 }
 0x532   : > { %v5141_v61 = vsel %vm3567_vm3, %v12196_v32, %v7553_v53  ;;  %v12202_v30 = vsel %vm3567_vm3, %v11748_v34, %v7554_v2  ;;  %v4614_v34 = vrot.slane %v12142_v60, 1 }
 0x533   : > { %v12204_v18 = vld [vmem:[#allocation3 + $0x180] sm:$0xff]  ;;  %5496 = vmatprep.mubr.f32.mxu0 %v5141_v61  ;;  %v12216_v2 = vsel %vm732_vm1, %v4766_v44, %v4768_v0 }
 0x534   : > { %v7620_v54 = vpack.i.bf16 %v12069_v37, %v12204_v18  ;;  %v7557_v36 = vpop.permute.xlu1 %7556  ;;  %5497 = vmatmul.mubr.f32.gmra.mrb[76].mxu0 %v12202_v30  ;;  %13222 = vst [vmem:[#allocation46_spill] sm:$0xff] %v12216_v2 }
 0x535   : > { %v7559_v38 = vunpack.i.h.bf16 %v7557_v36  ;;  %v7558_v53 = vunpack.i.l.bf16 %v7557_v36  ;;  %v12229_v36 = vsel %vm511_vm0, %v4614_v34, %v4615_v3 }
 0x536   : > { %7621 = vrot.lane.b32.xlu0 %v7620_v54, %s7777_s23  ;;  %13223 = vst [vmem:[#allocation64_spill] sm:$0xff] %v12229_v36  ;;  %v4771_v54 = vrot.slane %v11874_v19, 2 }
 0x537   : > { %v5142_v22 = vsel %vm3567_vm3, %v12216_v2, %v7558_v53  ;;  %v12222_v61 = vsel %vm3567_vm3, %v11773_v23, %v7559_v38  ;;  %v4773_v53 = vrot.slane %v11914_v47, 2 }
 0x538   : > { %v12226_v37 = vld [vmem:[#allocation3 + $0x188] sm:$0xff]  ;;  %5501 = vmatprep.mubr.f32.mxu0 %v5142_v22 }
 0x539   : > { %v7625_v44 = vpack.i.bf16 %v12226_v37, %v12229_v36  ;;  %5502 = vmatmul.mubr.f32.gmra.mrb[78].mxu0 %v12222_v61 }
 0x53a   : > { %7631 = vrot.lane.b32.xlu0 %v7630_v62, %s7777_s23 }
 0x53b   : > { %7626 = vrot.lane.b32.xlu1 %v7625_v44, %s7777_s23 }
 0x53d   : > { %v4100_v23 = vpop.f32.mrb[108].mxu1 }
 0x53e   : > { %v4101_v38 = vadd.f32 %v11632_v46, %v4100_v23  ;;  %v4102_v0 = vpop.f32.mrb[109].mxu1  ;;  %5002 = vrot.lane.b32.xlu0 %v12154_v14, %s7777_s23  ;;  %v4770_v23 = vrot.slane %v11849_v50, 2  ;;  %v4790_v14 = vrot.slane %v12142_v60, 2 }
 0x53f   : > { %5000 = vrot.lane.b32.xlu1 %v12134_v33, %s7777_s23  ;;  %v4776_v0 = vrot.slane %v11956_v63, 2 }
 0x540   : > { %v4346_v3 = vadd.f32 %v11902_v41, %v4101_v38  ;;  %v13224_v41 = vmov 0.0   ;;  %v12255_v38 = vsel %vm732_vm1, %v4771_v54, %v4773_v53  ;;  %v4781_v53 = vrot.slane %v12027_v29, 2 }
 0x541   : > { %13225 = vst [vmem:[#allocation10_spill] sm:$0xff] %v12255_v38 }
 0x542   : > { %v4388_v34 = vmax.f32 %v4346_v3, 0.0  ;;  %v4105_v22 = vpop.f32.mrb[110].mxu1  ;;  %5006 = vrot.lane.b32.xlu0 %v12216_v2, %s7777_s23  ;;  %v12262_v3 = vsel %vm732_vm1, %v4770_v23, %v4771_v54 }
 0x543   : > { %v4106_v62 = vadd.f32 %v11632_v46, %v4105_v22  ;;  %v4107_v44 = vpop.f32.mrb[111].mxu1  ;;  %5004 = vrot.lane.b32.xlu1 %v12196_v32, %s7777_s23  ;;  %v4778_v46 = vrot.slane %v11989_v25, 2  ;;  %13226 = vst [vmem:[#allocation11_spill] sm:$0xff] %v12262_v3 }
 0x544   : > { %4424 = vst.msk [vmem:[#allocation3 + $0x199] sm:$0xff] %vm3567_vm3, %v4388_v34 }
 0x545   : > { %4434 = vst.msk [vmem:[#allocation3 + $0x198] sm:$0xff] %vm3567_vm3, %v13224_v41  ;;  %v4351_v47 = vadd.f32 %v11896_v5, %v4106_v62  ;;  %v4775_v5 = vrot.slane %v11930_v59, 2  ;;  %v4783_v62 = vrot.slane %v12108_v35, 2  ;;  %v12271_v12 = vsel %vm732_vm1, %v4776_v0, %v4778_v46  ;;  %v4487_v35 = vld [vmem:[#allocation3 + $0x190] sm:$0x3] }
 0x546   : > { %5010 = vrot.lane.b32.xlu0 %v12255_v38, %s7777_s23  ;;  %v4780_v46 = vrot.slane %v12001_v4, 2 }
 0x547   : > { %v4389_v34 = vmax.f32 %v4351_v47, 0.0  ;;  %5008 = vrot.lane.b32.xlu1 %v12262_v3, %s7777_s23  ;;  %v7562_v22 = vpop.permute.xlu0 %7561  ;;  %v12280_v54 = vsel %vm732_vm1, %v4775_v5, %v4776_v0  ;;  %v4786_v0 = vrot.slane %v12097_v52, 2  ;;  %v4927_v5 = vrot.slane %v12226_v37, 1 }
 0x548   : > { %v7564_v25 = vunpack.i.h.bf16 %v7562_v22  ;;  %v7563_v44 = vunpack.i.l.bf16 %v7562_v22  ;;  %v4788_v22 = vrot.slane %v12124_v27, 2  ;;  %v4793_v27 = vrot.slane %v12189_v43, 2 }
 0x549   : > { %4425 = vst.msk [vmem:[#allocation3 + $0x1a1] sm:$0xff] %vm3567_vm3, %v4389_v34 }
 0x54a   : > { %4435 = vst.msk [vmem:[#allocation3 + $0x1a0] sm:$0xff] %vm3567_vm3, %v13224_v41  ;;  %5014 = vrot.lane.b32.xlu0 %v12271_v12, %s7777_s23  ;;  %v5143_v23 = vsel %vm3567_vm3, %v12262_v3, %v7563_v44  ;;  %v12288_v47 = vsel %vm3567_vm3, %v11849_v50, %v7564_v25  ;;  %v4929_v44 = vrot.slane %v4487_v35, 1  ;;  %v12301_v50 = vsel %vm732_vm1, %v4780_v46, %v4781_v53 }
 0x54b   : > { %4436 = vst.msk [vmem:[#allocation3 + $0x1a8] sm:$0x3] %vm4431_vm6, %v13224_v41  ;;  %5012 = vrot.lane.b32.xlu1 %v12280_v54, %s7777_s23  ;;  %5506 = vmatprep.mubr.f32.mxu0 %v5143_v23  ;;  %v12291_v41 = vsel %vm732_vm1, %v4781_v53, %v4783_v62  ;;  %v4785_v62 = vrot.slane %v12078_v48, 2  ;;  %v4791_v25 = vrot.slane %v12164_v55, 2  ;;  %v4926_v53 = vrot.slane %v12204_v18, 1 }
 0x54c   : > { %v7567_v34 = vpop.permute.xlu1 %7566  ;;  %5507 = vmatmul.mubr.f32.gmra.mrb[80].mxu0 %v12288_v47  ;;  %v12308_v23 = vld [vmem:[#allocation3 + $0x198] sm:$0xff]  ;;  %v12318_v46 = vsel %vm732_vm1, %v4786_v0, %v4788_v22  ;;  %v12324_v43 = vsel %vm511_vm0, %v4927_v5, %v4929_v44 }
 0x54d   : > { %v7569_v36 = vunpack.i.h.bf16 %v7567_v34  ;;  %v7568_v3 = vunpack.i.l.bf16 %v7567_v34  ;;  %v12321_v32 = vsel %vm732_vm1, %v4785_v62, %v4786_v0  ;;  %13227 = vst [vmem:[#allocation41_spill] sm:$0xff] %v12324_v43  ;;  %v5067_v22 = vrot.slane %v12308_v23, 1 }
 0x54e   : > { %5018 = vrot.lane.b32.xlu0 %v12291_v41, %s7777_s23  ;;  %v12343_v44 = vsel %vm732_vm1, %v4791_v25, %v4793_v27  ;;  %v4964_v62 = vrot.slane %v12226_v37, 2 }
 0x54f   : > { %5016 = vrot.lane.b32.xlu1 %v12301_v50, %s7777_s23  ;;  %v5144_v34 = vsel %vm3567_vm3, %v12255_v38, %v7568_v3  ;;  %v12314_v2 = vsel %vm3567_vm3, %v11874_v19, %v7569_v36  ;;  %v12335_v19 = vsel %vm511_vm0, %v4926_v53, %v4927_v5  ;;  %v7640_v38 = vpack.i.bf16 %v12343_v44, %v12324_v43 }
 0x550   : > { %5511 = vmatprep.mubr.f32.mxu0 %v5144_v34  ;;  %13230 = vst [vmem:[#allocation38_spill] sm:$0xff] %v12335_v19  ;;  %v4966_v34 = vrot.slane %v4487_v35, 2  ;;  %v12349_v5 = vsel %vm732_vm1, %v4790_v14, %v4791_v25 }
 0x551   : > { %v12327_v33 = vld [vmem:[#allocation3 + $0x1a0] sm:$0xff]  ;;  %5512 = vmatmul.mubr.f32.gmra.mrb[82].mxu0 %v12314_v2  ;;  %v7635_v53 = vpack.i.bf16 %v12349_v5, %v12335_v19 }
 0x552   : > { %13228 = vst [vmem:[#allocation42_spill] sm:$0xff] %v12327_v33  ;;  %v12329_v3 = vld [vmem:[#allocation3 + $0x1a8] sm:$0x3]  ;;  %5022 = vrot.lane.b32.xlu0 %v12318_v46, %s7777_s23  ;;  %v5068_v36 = vrot.slane %v12327_v33, 1  ;;  %v4963_v33 = vrot.slane %v12204_v18, 2  ;;  %v12359_v35 = vsel %vm732_vm1, %v4964_v62, %v4966_v34 }
 0x553   : > { %13229 = vst [vmem:[#allocation62_spill] sm:$0xff] %v12329_v3  ;;  %v5070_v0 = vrot.slane %v12329_v3, 1  ;;  %5020 = vrot.lane.b32.xlu1 %v12321_v32, %s7777_s23 }
 0x554   : > { %v5069_v27 = vsel %vm511_vm0, %v5067_v22, %v5068_v36  ;;  %v12363_v14 = vsel %vm732_vm1, %v4963_v33, %v4964_v62 }
 0x555   : > { %v5071_v3 = vsel %vm511_vm0, %v5068_v36, %v5070_v0  ;;  %v7645_v25 = vpack.i.bf16 %v12363_v14, %v5069_v27  ;;  %vm6007_vm0 = vcmask 31744  }
 0x556   : > { %7641 = vrot.lane.b32.xlu0 %v7640_v38, %s7777_s23  ;;  %v7650_v43 = vpack.i.bf16 %v12359_v35, %v5071_v3 }
 0x557   : > { %7636 = vrot.lane.b32.xlu1 %v7635_v53, %s7777_s23 }
 0x55a   : > { %7651 = vrot.lane.b32.xlu0 %v7650_v43, %s7777_s23 }
 0x55b   : > { %7646 = vrot.lane.b32.xlu1 %v7645_v25, %s7777_s23 }
 0x55f   : > { %v7572_v38 = vpop.permute.xlu0 %7571 }
 0x560   : > { %v7574_v0 = vunpack.i.h.bf16 %v7572_v38  ;;  %v7573_v19 = vunpack.i.l.bf16 %v7572_v38 }
 0x562   : > { %v5145_v36 = vsel %vm3567_vm3, %v12280_v54, %v7573_v19  ;;  %v12372_v22 = vsel %vm3567_vm3, %v11930_v59, %v7574_v0 }
 0x563   : > { %5516 = vmatprep.mubr.f32.mxu0 %v5145_v36 }
 0x564   : > { %v7577_v3 = vpop.permute.xlu1 %7576  ;;  %5517 = vmatmul.mubr.f32.gmra.mrb[84].mxu0 %v12372_v22 }
 0x565   : > { %v7579_v33 = vunpack.i.h.bf16 %v7577_v3  ;;  %v7578_v62 = vunpack.i.l.bf16 %v7577_v3 }
 0x567   : > { %v5146_v43 = vsel %vm3567_vm3, %v12271_v12, %v7578_v62  ;;  %v12379_v34 = vsel %vm3567_vm3, %v11956_v63, %v7579_v33 }
 0x568   : > { %v4969_v53 = vpop.permute.xlu1 %4968  ;;  %5521 = vmatprep.mubr.f32.mxu0 %v5146_v43 }
 0x569   : > { %5522 = vmatmul.mubr.f32.gmra.mrb[86].mxu0 %v12379_v34  ;;  %v5153_v43 = vsel %vm3567_vm3, %v11370_v21, %v4969_v53 }
 0x56c   : > { %v4973_v19 = vpop.permute.xlu1 %4972 }
 0x56d   : > { %v5155_v21 = vsel %vm3567_vm3, %v11397_v1, %v4973_v19  ;;  %v13231_v1 = vld [vmem:[#allocation26_spill] sm:$0xff] }
 0x570   : > { %v4977_v59 = vpop.permute.xlu1 %4976 }
 0x574   : > { %v12382_v25 = vpop.permute.xlu1 %7586 }
 0x577   : > { %v7582_v27 = vpop.permute.xlu0 %7581 }
 0x578   : > { %v7584_v38 = vunpack.i.h.bf16 %v7582_v27  ;;  %v7583_v0 = vunpack.i.l.bf16 %v7582_v27 }
 0x57a   : > { %v5147_v36 = vsel %vm3567_vm3, %v12301_v50, %v7583_v0  ;;  %v12388_v3 = vsel %vm3567_vm3, %v12001_v4, %v7584_v38 }
 0x57b   : > { %v4971_v63 = vpop.permute.xlu0 %4970  ;;  %5526 = vmatprep.mubr.f32.mxu0 %v5147_v36 }
 0x57c   : > { %v12390_v33 = vpop.permute.xlu1 %7596  ;;  %5527 = vmatmul.mubr.f32.gmra.mrb[88].mxu0 %v12388_v3  ;;  %v5154_v38 = vsel %vm3567_vm3, %v11383_v49, %v4971_v63  ;;  %v5257_v63 = vld [vmem:[%s12782_s5 + $0x220] sm:$0xff] }
 0x57d   : > { %v7599_v62 = vunpack.i.h.bf16 %v12390_v33  ;;  %5621 = vmatprep.mubr.f32.mxu0 %v11689_v26  ;;  %v5255_v26 = vld [vmem:[%s12782_s5 + $0x210] sm:$0xff] }
 0x57f   : > { %v4975_v27 = vpop.permute.xlu0 %4974  ;;  %v5148_v0 = vsel %vm3567_vm3, %v12291_v41, %v7599_v62  ;;  %v5258_v62 = vld [vmem:[%s12782_s5 + $0x228] sm:$0xff] }
 0x580   : > { %5531 = vmatprep.mubr.f32.mxu1 %v5148_v0  ;;  %5622 = vmatmul.mubr.f32.vlgmr.msra.gmra.mrb[36].mxu0 %v5153_v43 }
 0x581   : > { %5626 = vmatprep.mubr.f32.mxu0 %v11706_v56  ;;  %v5256_v56 = vld [vmem:[%s12782_s5 + $0x218] sm:$0xff] }
 0x582   : > { %v6736_v19 = vpack.c.bf16 %v5256_v56, %v5255_v26  ;;  %v7588_v26 = vunpack.i.l.bf16 %v12382_v25  ;;  %v13234_v56 = vld [vmem:[#allocation15_spill] sm:$0xff] }
 0x583   : > { %v4979_v4 = vpop.permute.xlu0 %4978 }
 0x584   : > { %5627 = vmatmul.mubr.f32.gmra.mrb[38].mxu0 %v5154_v38  ;;  %v6740_v38 = vpack.c.bf16 %v5258_v62, %v5257_v63 }
 0x585   : > { %5631 = vmatprep.mubr.f32.mxu0 %v11734_v31  ;;  %v5156_v31 = vsel %vm3567_vm3, %v11416_v6, %v4975_v27  ;;  %v13232_v6 = vld [vmem:[#allocation14_spill] sm:$0xff] }
 0x586   : > { %v5157_v27 = vsel %vm3567_vm3, %v13232_v6, %v4977_v59  ;;  %v5259_v59 = vld [vmem:[%s12782_s5 + $0x230] sm:$0xff]  ;;  %v13235_v6 = vld [vmem:[#allocation53_spill] sm:$0xff] }
 0x587   : > { %v12403_v36 = vpop.permute.xlu0 %7591 }
 0x588   : > { %5632 = vmatmul.mubr.f32.gmra.mrb[40].mxu0 %v5155_v21 }
 0x589   : > { %5636 = vmatprep.mubr.f32.mxu0 %v11757_v11 }
 0x58b   : > { %v12414_v49 = vpop.permute.xlu0 %7601 }
 0x58c   : > { %v7604_v53 = vunpack.i.h.bf16 %v12414_v49  ;;  %5637 = vmatmul.mubr.f32.gmra.mrb[42].mxu0 %v5156_v31  ;;  %v5158_v31 = vsel %vm3567_vm3, %v13234_v56, %v4979_v4  ;;  %v7589_v4 = vunpack.i.h.bf16 %v12382_v25  ;;  %v7593_v25 = vunpack.i.l.bf16 %v12403_v36 }
 0x58d   : > { %5641 = vmatprep.mubr.f32.mxu0 %v13231_v1 }
 0x58e   : > { %v12422_v11 = vsel %vm3567_vm3, %v12027_v29, %v7604_v53  ;;  %v13233_v29 = vld [vmem:[#allocation27_spill] sm:$0xff] }
 0x58f   : > { %5532 = vmatmul.mubr.f32.vlgmr.msra.gmra.mrb[112].mxu1 %v12422_v11 }
 0x590   : > { %v12430_v43 = vpop.permute.xlu1 %7606  ;;  %5642 = vmatmul.mubr.f32.gmra.mrb[44].mxu0 %v5157_v27  ;;  %6735 = vmatpush3.bf16.msra.mxu1 %v12183_v20  ;;  %v5260_v20 = vld [vmem:[%s12782_s5 + $0x238] sm:$0xff] }
 0x591   : > { %v7608_v0 = vunpack.i.l.bf16 %v12430_v43  ;;  %5646 = vmatprep.mubr.f32.mxu0 %v13233_v29  ;;  %6737 = vmatprep.subr.bf16.mxu1 %v6736_v19  ;;  %v6744_v27 = vpack.c.bf16 %v5260_v20, %v5259_v59 }
 0x593   : > { %v5149_v21 = vsel %vm3567_vm3, %v12321_v32, %v7608_v0 }
 0x594   : > { %5536 = vmatprep.mubr.f32.mxu1 %v5149_v21  ;;  %v12449_v53 = vpop.permute.xlu1 %7616  ;;  %5647 = vmatmul.mubr.f32.gmra.mrb[46].mxu0 %v5158_v31  ;;  %v13236_v21 = vld [vmem:[#allocation18_spill] sm:$0xff]  ;;  %v13237_v31 = vld [vmem:[#allocation29_spill] sm:$0xff] }
 0x595   : > { %v7612_v1 = vpop.permute.xlu0 %7611  ;;  %6739 = vmatpush3.bf16.msra.mxu1 %v6736_v19  ;;  %5651 = vmatprep.mubr.f32.mxu0 %v13235_v6  ;;  %v7619_v0 = vunpack.i.h.bf16 %v12449_v53  ;;  %v5159_v56 = vsel %vm3567_vm3, %v13236_v21, %v7588_v26  ;;  %v13239_v26 = vld [vmem:[#allocation55_spill] sm:$0xff]  ;;  %v13242_v6 = vld [vmem:[#allocation17_spill] sm:$0xff] }
 0x596   : > { %v7614_v63 = vunpack.i.h.bf16 %v7612_v1  ;;  %v7613_v62 = vunpack.i.l.bf16 %v7612_v1  ;;  %6741 = vmatprep.subr.bf16.mxu1 %v6740_v38  ;;  %v7594_v1 = vunpack.i.h.bf16 %v12403_v36 }
 0x597   : > { %v12467_v59 = vsel %vm3567_vm3, %v12097_v52, %v7619_v0  ;;  %v7598_v52 = vunpack.i.l.bf16 %v12390_v33  ;;  %v13243_v0 = vld [vmem:[#allocation31_spill] sm:$0xff]  ;;  %v7609_v33 = vunpack.i.h.bf16 %v12430_v43  ;;  %v7618_v43 = vunpack.i.l.bf16 %v12449_v53 }
 0x598   : > { %v12456_v29 = vsel %vm3567_vm3, %v12078_v48, %v7613_v62  ;;  %v5150_v19 = vsel %vm3567_vm3, %v12318_v46, %v7614_v63  ;;  %5652 = vmatmul.mubr.f32.gmra.mrb[48].mxu0 %v5159_v56  ;;  %v13238_v48 = vld [vmem:[#allocation19_spill] sm:$0xff]  ;;  %v13240_v63 = vld [vmem:[#allocation16_spill] sm:$0xff]  ;;  %v7603_v56 = vunpack.i.l.bf16 %v12414_v49 }
 0x599   : > { %5537 = vmatmul.mubr.f32.gmra.mrb[114].mxu1 %v12456_v29  ;;  %5656 = vmatprep.mubr.f32.mxu0 %v13237_v31  ;;  %v5160_v20 = vsel %vm3567_vm3, %v13238_v48, %v7589_v4  ;;  %v13241_v62 = vld [vmem:[#allocation35_spill] sm:$0xff]  ;;  %v5162_v4 = vsel %vm3567_vm3, %v13242_v6, %v7594_v1  ;;  %v13245_v48 = vld [vmem:[#allocation21_spill] sm:$0xff] }
 0x59a   : > { %5541 = vmatprep.mubr.f32.mxu1 %v5150_v19  ;;  %6743 = vmatpush3.bf16.msra.mxu1 %v6740_v38  ;;  %v5161_v38 = vsel %vm3567_vm3, %v13240_v63, %v7593_v25  ;;  %v13244_v19 = vld [vmem:[#allocation20_spill] sm:$0xff]  ;;  %v13247_v6 = vld [vmem:[#allocation23_spill] sm:$0xff] }
 0x59b   : > { %6745 = vmatprep.subr.bf16.mxu1 %v6744_v27  ;;  %v5163_v36 = vsel %vm3567_vm3, %v13244_v19, %v7598_v52 }
 0x59c   : > { %5657 = vmatmul.mubr.f32.gmra.mrb[50].mxu0 %v5160_v20  ;;  %v5164_v20 = vsel %vm3567_vm3, %v13245_v48, %v7603_v56  ;;  %v13254_v56 = vld [vmem:[#allocation57_spill] sm:$0xff] }
 0x59d   : > { %5542 = vmatmul.mubr.f32.gmra.mrb[116].mxu1 %v12467_v59  ;;  %5661 = vmatprep.mubr.f32.mxu0 %v13239_v26 }
 0x59e   : > { %6747 = vmatpush3.bf16.msra.mxu1 %v6744_v27 }
 0x5a0   : > { %5662 = vmatmul.mubr.f32.gmra.mrb[52].mxu0 %v5161_v38 }
 0x5a1   : > { %5666 = vmatprep.mubr.f32.mxu0 %v13241_v62  ;;  %v13246_v62 = vld [vmem:[#allocation22_spill] sm:$0xff] }
 0x5a2   : > { %v5165_v52 = vsel %vm3567_vm3, %v13246_v62, %v7609_v33  ;;  %v13259_v33 = vld [vmem:[#allocation36_spill] sm:$0xff] }
 0x5a4   : > { %5667 = vmatmul.mubr.f32.gmra.mrb[54].mxu0 %v5162_v4  ;;  %v5166_v4 = vsel %vm3567_vm3, %v13247_v6, %v7618_v43  ;;  %v13266_v43 = vld [vmem:[#allocation58_spill] sm:$0xff] }
 0x5a5   : > { %5671 = vmatprep.mubr.f32.mxu0 %v13243_v0  ;;  %v13248_v0 = vld [vmem:[#allocation51_spill] sm:$0xff] }
 0x5a8   : > { %v7622_v21 = vpop.permute.xlu0 %7621  ;;  %5672 = vmatmul.mubr.f32.gmra.mrb[56].mxu0 %v5163_v36  ;;  %v13258_v36 = vld [vmem:[#allocation30_spill] sm:$0xff] }
 0x5a9   : > { %v7623_v27 = vunpack.i.l.bf16 %v7622_v21  ;;  %5676 = vmatprep.mubr.f32.mxu0 %v12025_v7 }
 0x5ab   : > { %v5151_v31 = vsel %vm3567_vm3, %v12349_v5, %v7623_v27 }
 0x5ac   : > { %5546 = vmatprep.mubr.f32.mxu1 %v5151_v31  ;;  %v7632_v25 = vpop.permute.xlu0 %7631  ;;  %5677 = vmatmul.mubr.f32.gmra.mrb[58].mxu0 %v5164_v20  ;;  %v13262_v20 = vld [vmem:[#allocation46_spill] sm:$0xff] }
 0x5ad   : > { %v7627_v26 = vpop.permute.xlu1 %7626  ;;  %5681 = vmatprep.mubr.f32.mxu0 %v12076_v28  ;;  %v7634_v63 = vunpack.i.h.bf16 %v7632_v25  ;;  %v7633_v53 = vunpack.i.l.bf16 %v7632_v25  ;;  %v13261_v25 = vld [vmem:[#allocation56_spill] sm:$0xff] }
 0x5ae   : > { %v7629_v49 = vunpack.i.h.bf16 %v7627_v26  ;;  %v7628_v1 = vunpack.i.l.bf16 %v7627_v26 }
 0x5af   : > { %v12504_v28 = vsel %vm3567_vm3, %v12164_v55, %v7634_v63  ;;  %v13249_v55 = vld [vmem:[#allocation24_spill] sm:$0xff]  ;;  %v13265_v63 = vld [vmem:[#allocation10_spill] sm:$0xff] }
 0x5b0   : > { %v12493_v7 = vsel %vm3567_vm3, %v12142_v60, %v7628_v1  ;;  %v5152_v38 = vsel %vm3567_vm3, %v12343_v44, %v7629_v49  ;;  %5682 = vmatmul.mubr.f32.gmra.mrb[60].mxu0 %v5165_v52  ;;  %v7624_v60 = vunpack.i.h.bf16 %v7622_v21  ;;  %v5168_v21 = vsel %vm3567_vm3, %v13249_v55, %v7633_v53  ;;  %v13264_v49 = vld [vmem:[#allocation32_spill] sm:$0xff]  ;;  %v13267_v52 = vld [vmem:[#allocation59_spill] sm:$0xff] }
 0x5b1   : > { %5547 = vmatmul.mubr.f32.gmra.mrb[118].mxu1 %v12493_v7  ;;  %5686 = vmatprep.mubr.f32.mxu0 %v12095_v58 }
 0x5b2   : > { %5551 = vmatprep.mubr.f32.mxu1 %v5152_v38  ;;  %v5167_v58 = vsel %vm3567_vm3, %v13248_v0, %v7624_v60 }
 0x5b4   : > { %5687 = vmatmul.mubr.f32.gmra.mrb[62].mxu0 %v5166_v4 }
 0x5b5   : > { %5552 = vmatmul.mubr.f32.gmra.mrb[120].mxu1 %v12504_v28  ;;  %5691 = vmatprep.mubr.f32.mxu0 %v12140_v40 }
 0x5b6   : > { %6522 = vmatprep.mubr.msk.f32.mxu1 %vm3567_vm3, %v11681_v42  ;;  %v5001_v42 = vpop.permute.xlu1 %5000 }
 0x5b8   : > { %5692 = vmatmul.mubr.f32.gmra.mrb[64].mxu0 %v5167_v58 }
 0x5b9   : > { %6523 = vmatmul.mubr.msk.f32.vlgmr.msra.gmra.mrb[122].mxu1 %vm3567_vm3, %v11699_v24  ;;  %5696 = vmatprep.mubr.f32.mxu0 %v12162_v16  ;;  %v13250_v24 = vld [vmem:[#allocation25_spill] sm:$0xff] }
 0x5ba   : > { %6525 = vmatprep.mubr.msk.f32.mxu1 %vm3567_vm3, %v11721_v10  ;;  %v5169_v40 = vsel %vm3567_vm3, %v13250_v24, %v5001_v42  ;;  %v5003_v10 = vpop.permute.xlu0 %5002  ;;  %v13272_v42 = vld [vmem:[#allocation64_spill] sm:$0xff] }
 0x5bc   : > { %5697 = vmatmul.mubr.f32.gmra.mrb[66].mxu0 %v5168_v21 }
 0x5bd   : > { %6526 = vmatmul.mubr.msk.f32.gmra.mrb[124].mxu1 %vm3567_vm3, %v11746_v39  ;;  %5701 = vmatprep.mubr.f32.mxu0 %v12202_v30  ;;  %v13251_v39 = vld [vmem:[#allocation52_spill] sm:$0xff] }
 0x5be   : > { %6528 = vmatprep.mubr.msk.f32.mxu1 %vm3567_vm3, %v11779_v9  ;;  %v5170_v16 = vsel %vm3567_vm3, %v13251_v39, %v5003_v10  ;;  %v5005_v9 = vpop.permute.xlu1 %5004  ;;  %v13273_v39 = vld [vmem:[#allocation61_spill] sm:$0xff] }
 0x5c0   : > { %5702 = vmatmul.mubr.f32.gmra.mrb[68].mxu0 %v5169_v40 }
 0x5c1   : > { %6529 = vmatmul.mubr.msk.f32.gmra.mrb[126].mxu1 %vm3567_vm3, %v11800_v45  ;;  %5706 = vmatprep.mubr.f32.mxu0 %v12222_v61  ;;  %v13252_v45 = vld [vmem:[#allocation28_spill] sm:$0xff] }
 0x5c2   : > { %6531 = vmatprep.mubr.msk.f32.mxu1 %vm3567_vm3, %v11836_v57  ;;  %v5171_v30 = vsel %vm3567_vm3, %v13252_v45, %v5005_v9  ;;  %v5007_v57 = vpop.permute.xlu0 %5006 }
 0x5c4   : > { %5707 = vmatmul.mubr.f32.gmra.mrb[70].mxu0 %v5170_v16 }
 0x5c5   : > { %6532 = vmatmul.mubr.msk.f32.gmra.mrb[128].mxu1 %vm3567_vm3, %v11860_v51  ;;  %5711 = vmatprep.mubr.f32.mxu0 %v12288_v47  ;;  %v13253_v51 = vld [vmem:[#allocation54_spill] sm:$0xff]  ;;  %v13255_v47 = vld [vmem:[#allocation33_spill] sm:$0xff] }
 0x5c6   : > { %6534 = vmatprep.mubr.msk.f32.mxu1 %vm3567_vm3, %v11911_v13  ;;  %v5172_v61 = vsel %vm3567_vm3, %v13253_v51, %v5007_v57  ;;  %v5009_v13 = vpop.permute.xlu1 %5008  ;;  %v13275_v51 = vld [vmem:[#allocation41_spill] sm:$0xff] }
 0x5c8   : > { %5712 = vmatmul.mubr.f32.gmra.mrb[72].mxu0 %v5171_v30 }
 0x5c9   : > { %6535 = vmatmul.mubr.msk.f32.gmra.mrb[130].mxu1 %vm3567_vm3, %v11941_v17  ;;  %5716 = vmatprep.mubr.f32.mxu0 %v12314_v2  ;;  %v13256_v17 = vld [vmem:[#allocation34_spill] sm:$0xff]  ;;  %v13257_v2 = vld [vmem:[#allocation9_spill] sm:$0xff] }
 0x5ca   : > { %6537 = vmatprep.mubr.msk.f32.mxu1 %vm3567_vm3, %v11992_v8  ;;  %v5173_v27 = vsel %vm3567_vm3, %v13256_v17, %v5009_v13  ;;  %v5011_v8 = vpop.permute.xlu0 %5010  ;;  %v5013_v19 = vpop.permute.xlu1 %5012 }
 0x5cb   : > { %v5174_v31 = vsel %vm3567_vm3, %v13258_v36, %v5011_v8  ;;  %v5175_v48 = vsel %vm3567_vm3, %v13261_v25, %v5013_v19 }
 0x5cc   : > { %5717 = vmatmul.mubr.f32.gmra.mrb[74].mxu0 %v5172_v61 }
 0x5cd   : > { %6538 = vmatmul.mubr.msk.f32.gmra.mrb[132].mxu1 %vm3567_vm3, %v13254_v56  ;;  %5721 = vmatprep.mubr.f32.mxu0 %v12372_v22  ;;  %v13260_v22 = vld [vmem:[#allocation60_spill] sm:$0xff] }
 0x5ce   : > { %6540 = vmatprep.mubr.msk.f32.mxu1 %vm3567_vm3, %v13255_v47  ;;  %v5017_v26 = vpop.permute.xlu1 %5016 }
 0x5cf   : > { %v5177_v62 = vsel %vm3567_vm3, %v13266_v43, %v5017_v26 }
 0x5d0   : > { %5722 = vmatmul.mubr.f32.gmra.mrb[76].mxu0 %v5173_v27 }
 0x5d1   : > { %6541 = vmatmul.mubr.msk.f32.gmra.mrb[134].mxu1 %vm3567_vm3, %v12089_v15  ;;  %5726 = vmatprep.mubr.f32.mxu0 %v12379_v34  ;;  %v5015_v15 = vpop.permute.xlu0 %5014  ;;  %v13263_v34 = vld [vmem:[#allocation11_spill] sm:$0xff] }
 0x5d2   : > { %6543 = vmatprep.mubr.msk.f32.mxu1 %vm3567_vm3, %v13257_v2  ;;  %v5176_v1 = vsel %vm3567_vm3, %v13264_v49, %v5015_v15  ;;  %v5021_v38 = vpop.permute.xlu1 %5020 }
 0x5d4   : > { %5727 = vmatmul.mubr.f32.gmra.mrb[78].mxu0 %v5174_v31 }
 0x5d5   : > { %6544 = vmatmul.mubr.msk.f32.gmra.mrb[136].mxu1 %vm3567_vm3, %v13259_v33  ;;  %5731 = vmatprep.mubr.f32.mxu0 %v12388_v3  ;;  %v5019_v3 = vpop.permute.xlu0 %5018 }
 0x5d6   : > { %6546 = vmatprep.mubr.msk.f32.mxu1 %vm3567_vm3, %v13260_v22 }
 0x5d8   : > { %5732 = vmatmul.mubr.f32.gmra.mrb[80].mxu0 %v5175_v48 }
 0x5d9   : > { %6547 = vmatmul.mubr.msk.f32.gmra.mrb[138].mxu1 %vm3567_vm3, %v13262_v20  ;;  %5736 = vmatprep.mubr.f32.mxu0 %v12422_v11  ;;  %v5023_v11 = vpop.permute.xlu0 %5022 }
 0x5da   : > { %6549 = vmatprep.mubr.msk.f32.mxu1 %vm3567_vm3, %v13263_v34 }
 0x5dc   : > { %5737 = vmatmul.mubr.f32.gmra.mrb[82].mxu0 %v5176_v1 }
 0x5dd   : > { %6550 = vmatmul.mubr.msk.f32.gmra.mrb[140].mxu1 %vm3567_vm3, %v13265_v63  ;;  %5741 = vmatprep.mubr.f32.mxu0 %v12456_v29  ;;  %v7637_v29 = vpop.permute.xlu1 %7636 }
 0x5de   : > { %6552 = vmatprep.mubr.msk.f32.mxu1 %vm3567_vm3, %v12280_v54  ;;  %v5178_v54 = vsel %vm3567_vm3, %v13267_v52, %v5019_v3  ;;  %v7639_v4 = vunpack.i.h.bf16 %v7637_v29 }
 0x5e0   : > { %5742 = vmatmul.mubr.f32.gmra.mrb[84].mxu0 %v5177_v62  ;;  %v5181_v24 = vsel %vm3567_vm3, %v13272_v42, %v7639_v4 }
 0x5e1   : > { %6553 = vmatmul.mubr.msk.f32.gmra.mrb[142].mxu1 %vm3567_vm3, %v12271_v12  ;;  %5746 = vmatprep.mubr.f32.mxu0 %v12467_v59  ;;  %v13268_v12 = vld [vmem:[#allocation37_spill] sm:$0xff]  ;;  %v7642_v59 = vpop.permute.xlu0 %7641  ;;  %v7647_v58 = vpop.permute.xlu1 %7646 }
 0x5e2   : > { %6555 = vmatprep.mubr.msk.f32.mxu1 %vm3567_vm3, %v12301_v50  ;;  %v5179_v60 = vsel %vm3567_vm3, %v13268_v12, %v5021_v38  ;;  %v7638_v50 = vunpack.i.l.bf16 %v7637_v29  ;;  %v7644_v21 = vunpack.i.h.bf16 %v7642_v59  ;;  %v7649_v10 = vunpack.i.h.bf16 %v7647_v58 }
 0x5e4   : > { %5747 = vmatmul.mubr.f32.gmra.mrb[86].mxu0 %v5178_v54  ;;  %v5185_v0 = vsel %vm3567_vm3, %v12204_v18, %v7638_v50  ;;  %v5182_v16 = vsel %vm3567_vm3, %v13273_v39, %v7644_v21 }
 0x5e5   : > { %6556 = vmatmul.mubr.msk.f32.gmra.mrb[144].mxu1 %vm3567_vm3, %v12291_v41  ;;  %5751 = vmatprep.mubr.f32.mxu0 %v12493_v7  ;;  %v5084_v41 = vrot.slane %v12308_v23, 2  ;;  %v13270_v7 = vld [vmem:[#allocation8_spill] sm:$0xff]  ;;  %v7652_v40 = vpop.permute.xlu0 %7651 }
 0x5e6   : > { %6558 = vmatprep.mubr.msk.f32.mxu1 %vm3567_vm3, %v12321_v32  ;;  %v13269_v32 = vld [vmem:[#allocation42_spill] sm:$0xff]  ;;  %v5180_v53 = vsel %vm3567_vm3, %v13270_v7, %v5023_v11  ;;  %v7653_v9 = vunpack.i.l.bf16 %v7652_v40  ;;  %v7654_v45 = vunpack.i.h.bf16 %v7652_v40 }
 0x5e7   : > { %v5085_v6 = vrot.slane %v13269_v32, 2 }
 0x5e8   : > { %5752 = vmatmul.mubr.f32.gmra.mrb[88].mxu0 %v5179_v60  ;;  %v5188_v57 = vsel %vm3567_vm3, %v13269_v32, %v7653_v9  ;;  %v5184_v61 = vsel %vm3567_vm3, %v13275_v51, %v7654_v45  ;;  %v12651_v32 = vld [vmem:[%s12783_s6] ss:$0 sm:$0xff] }
 0x5e9   : > { %6559 = vmatmul.mubr.msk.f32.gmra.mrb[146].mxu1 %vm3567_vm3, %v12318_v46  ;;  %5756 = vmatprep.mubr.f32.mxu0 %v12504_v28  ;;  %v7643_v46 = vunpack.i.l.bf16 %v7642_v59  ;;  %v5086_v55 = vsel %vm732_vm1, %v5084_v41, %v5085_v6 }
 0x5ea   : > { %6561 = vmatprep.mubr.msk.f32.mxu1 %vm3567_vm3, %v12349_v5  ;;  %v13271_v5 = vld [vmem:[#allocation62_spill] sm:$0xff] }
 0x5eb   : > { %v5087_v28 = vrot.slane %v13271_v5, 2  ;;  %v5186_v18 = vsel %vm3567_vm3, %v12226_v37, %v7643_v46  ;;  %v13274_v37 = vld [vmem:[#allocation38_spill] sm:$0xff] }
 0x5ec   : > { %5757 = vmatmul.mubr.f32.gmra.mrb[90].mxu0 %v5180_v53  ;;  %v5183_v30 = vsel %vm3567_vm3, %v13274_v37, %v7649_v10 }
 0x5ed   : > { %6562 = vmatmul.mubr.msk.f32.gmra.mrb[148].mxu1 %vm3567_vm3, %v12343_v44  ;;  %5761 = vmatprep.mubr.f32.mxu0 %v5185_v0  ;;  %v7648_v44 = vunpack.i.l.bf16 %v7647_v58 }
 0x5ee   : > { %6564 = vmatprep.mubr.msk.f32.mxu1 %vm3567_vm3, %v12363_v14  ;;  %v5088_v14 = vsel %vm732_vm1, %v5085_v6, %v5087_v28 }
 0x5f0   : > { %5762 = vmatmul.mubr.f32.gmra.mrb[92].mxu0 %v5181_v24 }
 0x5f1   : > { %6565 = vmatmul.mubr.msk.f32.gmra.mrb[150].mxu1 %vm3567_vm3, %v12359_v35  ;;  %5766 = vmatprep.mubr.f32.mxu0 %v5186_v18  ;;  %v5187_v35 = vsel %vm3567_vm3, %v12308_v23, %v7648_v44 }
 0x5f2   : > { %6567 = vmatprep.mubr.msk.f32.mxu1 %vm3567_vm3, %v5086_v55 }
 0x5f4   : > { %5767 = vmatmul.mubr.f32.gmra.mrb[94].mxu0 %v5182_v16 }
 0x5f5   : > { %6568 = vmatmul.mubr.msk.f32.gmra.mrb[152].mxu1 %vm3567_vm3, %v5088_v14  ;;  %5771 = vmatprep.mubr.f32.mxu0 %v5187_v35 }
 0x5f8   : > { %5772 = vmatmul.mubr.f32.gmra.mrb[96].mxu0 %v5183_v30 }
 0x5f9   : > { %5776 = vmatprep.mubr.f32.mxu0 %v5188_v57 }
 0x5fc   : > { %5777 = vmatmul.mubr.f32.gmra.mrb[98].mxu0 %v5184_v61 }
 0x653   : > { %v5623_v56 = vpop.f32.mrb[36].mxu0 }
 0x654   : > { %v5625_v13 = vpop.f32.mrb[37].mxu0  ;;  %v6780_v46 = vadd.f32 %v12651_v32, %v5623_v56 }
 0x657   : > { %v5628_v47 = vpop.f32.mrb[38].mxu0 }
 0x658   : > { %v5630_v17 = vpop.f32.mrb[39].mxu0  ;;  %v6781_v53 = vadd.f32 %v12651_v32, %v5628_v47 }
 0x65b   : > { %v5633_v27 = vpop.f32.mrb[40].mxu0 }
 0x65c   : > { %v5635_v23 = vpop.f32.mrb[41].mxu0  ;;  %v6782_v24 = vadd.f32 %v12651_v32, %v5633_v27 }
 0x65f   : > { %v5638_v8 = vpop.f32.mrb[42].mxu0 }
 0x660   : > { %v5640_v2 = vpop.f32.mrb[43].mxu0  ;;  %v6783_v42 = vadd.f32 %v12651_v32, %v5638_v8 }
 0x662   : > { %v12634_v19 = vpop.f32.mrb[112].mxu1 }
 0x663   : > { %v5535_v36 = vpop.f32.mrb[113].mxu1  ;;  %v5643_v31 = vpop.f32.mrb[44].mxu0 }
 0x664   : > { %v5645_v33 = vpop.f32.mrb[45].mxu0  ;;  %v6784_v9 = vadd.f32 %v12651_v32, %v5643_v31 }
 0x667   : > { %v5648_v22 = vpop.f32.mrb[46].mxu0 }
 0x668   : > { %v5650_v15 = vpop.f32.mrb[47].mxu0  ;;  %v6785_v16 = vadd.f32 %v12651_v32, %v5648_v22 }
 0x66b   : > { %v5653_v48 = vpop.f32.mrb[48].mxu0 }
 0x66c   : > { %v12636_v25 = vpop.f32.mrb[114].mxu1  ;;  %v5655_v34 = vpop.f32.mrb[49].mxu0  ;;  %v6786_v56 = vadd.f32 %v12651_v32, %v5653_v48 }
 0x66d   : > { %v5540_v20 = vpop.f32.mrb[115].mxu1 }
 0x66f   : > { %v5658_v49 = vpop.f32.mrb[50].mxu0 }
 0x670   : > { %v12638_v26 = vpop.f32.mrb[116].mxu1  ;;  %v5660_v63 = vpop.f32.mrb[51].mxu0  ;;  %v6787_v61 = vadd.f32 %v12651_v32, %v5658_v49 }
 0x671   : > { %v5545_v1 = vpop.f32.mrb[117].mxu1 }
 0x673   : > { %v5663_v3 = vpop.f32.mrb[52].mxu0 }
 0x674   : > { %v5665_v38 = vpop.f32.mrb[53].mxu0  ;;  %v6788_v36 = vadd.f32 %v12651_v32, %v5663_v3 }
 0x677   : > { %v5668_v43 = vpop.f32.mrb[54].mxu0 }
 0x678   : > { %v5670_v62 = vpop.f32.mrb[55].mxu0  ;;  %v6789_v2 = vadd.f32 %v12651_v32, %v5668_v43 }
 0x67b   : > { %v12640_v11 = vpop.f32.mrb[56].mxu0 }
 0x67c   : > { %v5675_v52 = vpop.f32.mrb[57].mxu0  ;;  %v6790_v49 = vadd.f32 %v12651_v32, %v12640_v11 }
 0x67f   : > { %v5678_v54 = vpop.f32.mrb[58].mxu0 }
 0x680   : > { %v5680_v29 = vpop.f32.mrb[59].mxu0  ;;  %v6791_v34 = vadd.f32 %v12651_v32, %v5678_v54 }
 0x683   : > { %v12644_v60 = vpop.f32.mrb[60].mxu0 }
 0x684   : > { %v12642_v12 = vpop.f32.mrb[118].mxu1  ;;  %v5685_v59 = vpop.f32.mrb[61].mxu0  ;;  %v6792_v54 = vadd.f32 %v12651_v32, %v12644_v60 }
 0x685   : > { %v5550_v50 = vpop.f32.mrb[119].mxu1 }
 0x687   : > { %v12653_v6 = vpop.f32.mrb[62].mxu0 }
 0x688   : > { %v12646_v41 = vpop.f32.mrb[120].mxu1  ;;  %v5690_v7 = vpop.f32.mrb[63].mxu0  ;;  %v6793_v52 = vadd.f32 %v12651_v32, %v12653_v6 }
 0x689   : > { %v5555_v4 = vpop.f32.mrb[121].mxu1 }
 0x68b   : > { %v12663_v5 = vpop.f32.mrb[64].mxu0 }
 0x68c   : > { %v6524_v0 = vpop.f32.mrb[122].mxu1  ;;  %v5695_v55 = vpop.f32.mrb[65].mxu0  ;;  %v6794_v6 = vadd.f32 %v12651_v32, %v12663_v5 }
 0x68d   : > { %v5854_v28 = vadd.f32 %v6781_v53, %v6524_v0  ;;  %v5848_v58 = vpop.f32.mrb[123].mxu1 }
 0x68e   : > { %v5849_v21 = vadd.f32 %v6780_v46, %v5848_v58 }
 0x68f   : > { %6009 = vst.msk [vmem:[%s12661_s8 + $0x8] sm:$0xff] %vm6007_vm0, %v5854_v28  ;;  %v5698_v18 = vpop.f32.mrb[66].mxu0 }
 0x690   : > { %6008 = vst.msk [vmem:[%s12661_s8] sm:$0xff] %vm6007_vm0, %v5849_v21  ;;  %v6527_v44 = vpop.f32.mrb[124].mxu1  ;;  %v5700_v10 = vpop.f32.mrb[67].mxu0  ;;  %v6795_v53 = vadd.f32 %v12651_v32, %v5698_v18 }
 0x691   : > { %v5864_v14 = vadd.f32 %v6783_v42, %v6527_v44  ;;  %v5858_v40 = vpop.f32.mrb[125].mxu1 }
 0x692   : > { %v5859_v39 = vadd.f32 %v6782_v24, %v5858_v40 }
 0x693   : > { %6011 = vst.msk [vmem:[%s12661_s8 + $0x18] sm:$0xff] %vm6007_vm0, %v5864_v14  ;;  %v5703_v45 = vpop.f32.mrb[68].mxu0 }
 0x694   : > { %6010 = vst.msk [vmem:[%s12661_s8 + $0x10] sm:$0xff] %vm6007_vm0, %v5859_v39  ;;  %v6530_v35 = vpop.f32.mrb[126].mxu1  ;;  %v5705_v57 = vpop.f32.mrb[69].mxu0  ;;  %v6796_v42 = vadd.f32 %v12651_v32, %v5703_v45 }
 0x695   : > { %v5874_v37 = vadd.f32 %v6785_v16, %v6530_v35  ;;  %v5868_v30 = vpop.f32.mrb[127].mxu1 }
 0x696   : > { %v5869_v51 = vadd.f32 %v6784_v9, %v5868_v30 }
 0x697   : > { %6013 = vst.msk [vmem:[%s12661_s8 + $0x28] sm:$0xff] %vm6007_vm0, %v5874_v37  ;;  %v5708_v47 = vpop.f32.mrb[70].mxu0 }
 0x698   : > { %6012 = vst.msk [vmem:[%s12661_s8 + $0x20] sm:$0xff] %vm6007_vm0, %v5869_v51  ;;  %v6533_v13 = vpop.f32.mrb[128].mxu1  ;;  %v5710_v23 = vpop.f32.mrb[71].mxu0  ;;  %v6797_v21 = vadd.f32 %v12651_v32, %v5708_v47 }
 0x699   : > { %v5884_v17 = vadd.f32 %v6787_v61, %v6533_v13  ;;  %v5878_v27 = vpop.f32.mrb[129].mxu1 }
 0x69a   : > { %v5879_v8 = vadd.f32 %v6786_v56, %v5878_v27 }
 0x69b   : > { %6015 = vst.msk [vmem:[%s12661_s8 + $0x38] sm:$0xff] %vm6007_vm0, %v5884_v17  ;;  %v5713_v33 = vpop.f32.mrb[72].mxu0 }
 0x69c   : > { %6014 = vst.msk [vmem:[%s12661_s8 + $0x30] sm:$0xff] %vm6007_vm0, %v5879_v8  ;;  %v6536_v31 = vpop.f32.mrb[130].mxu1  ;;  %v5715_v48 = vpop.f32.mrb[73].mxu0  ;;  %v6798_v39 = vadd.f32 %v12651_v32, %v5713_v33 }
 0x69d   : > { %v5894_v22 = vadd.f32 %v6789_v2, %v6536_v31  ;;  %v5888_v15 = vpop.f32.mrb[131].mxu1 }
 0x69e   : > { %v5889_v20 = vadd.f32 %v6788_v36, %v5888_v15 }
 0x69f   : > { %6017 = vst.msk [vmem:[%s12661_s8 + $0x48] sm:$0xff] %vm6007_vm0, %v5894_v22  ;;  %v5718_v63 = vpop.f32.mrb[74].mxu0 }
 0x6a0   : > { %6016 = vst.msk [vmem:[%s12661_s8 + $0x40] sm:$0xff] %vm6007_vm0, %v5889_v20  ;;  %v6539_v1 = vpop.f32.mrb[132].mxu1  ;;  %v5720_v43 = vpop.f32.mrb[75].mxu0  ;;  %v6799_v10 = vadd.f32 %v12651_v32, %v5718_v63 }
 0x6a1   : > { %v5904_v3 = vadd.f32 %v6791_v34, %v6539_v1  ;;  %v5898_v38 = vpop.f32.mrb[133].mxu1  ;;  %v5534_v43 = vadd.f32 %v12651_v32, %v12634_v19 }
 0x6a2   : > { %v5899_v62 = vadd.f32 %v6790_v49, %v5898_v38 }
 0x6a3   : > { %6019 = vst.msk [vmem:[%s12661_s8 + $0x58] sm:$0xff] %vm6007_vm0, %v5904_v3  ;;  %v5723_v29 = vpop.f32.mrb[76].mxu0 }
 0x6a4   : > { %6018 = vst.msk [vmem:[%s12661_s8 + $0x50] sm:$0xff] %vm6007_vm0, %v5899_v62  ;;  %v6542_v11 = vpop.f32.mrb[134].mxu1  ;;  %v5725_v4 = vpop.f32.mrb[77].mxu0  ;;  %v6800_v51 = vadd.f32 %v12651_v32, %v5723_v29 }
 0x6a5   : > { %v5914_v50 = vadd.f32 %v6793_v52, %v6542_v11  ;;  %v5908_v59 = vpop.f32.mrb[135].mxu1  ;;  %v5539_v4 = vadd.f32 %v12651_v32, %v12636_v25 }
 0x6a6   : > { %v5909_v7 = vadd.f32 %v6792_v54, %v5908_v59 }
 0x6a7   : > { %6021 = vst.msk [vmem:[%s12661_s8 + $0x68] sm:$0xff] %vm6007_vm0, %v5914_v50  ;;  %v5728_v46 = vpop.f32.mrb[78].mxu0 }
 0x6a8   : > { %6020 = vst.msk [vmem:[%s12661_s8 + $0x60] sm:$0xff] %vm6007_vm0, %v5909_v7  ;;  %v6545_v60 = vpop.f32.mrb[136].mxu1  ;;  %v5730_v58 = vpop.f32.mrb[79].mxu0  ;;  %v6801_v57 = vadd.f32 %v12651_v32, %v5728_v46 }
 0x6a9   : > { %v5924_v0 = vadd.f32 %v6795_v53, %v6545_v60  ;;  %v5918_v28 = vpop.f32.mrb[137].mxu1 }
 0x6aa   : > { %v5919_v55 = vadd.f32 %v6794_v6, %v5918_v28 }
 0x6ab   : > { %6023 = vst.msk [vmem:[%s12661_s8 + $0x78] sm:$0xff] %vm6007_vm0, %v5924_v0  ;;  %v5733_v5 = vpop.f32.mrb[80].mxu0  ;;  %v5544_v0 = vadd.f32 %v12651_v32, %v12638_v26  ;;  %v5554_v26 = vadd.f32 %v12651_v32, %v12646_v41 }
 0x6ac   : > { %6022 = vst.msk [vmem:[%s12661_s8 + $0x70] sm:$0xff] %vm6007_vm0, %v5919_v55  ;;  %v6548_v24 = vpop.f32.mrb[138].mxu1  ;;  %v5735_v14 = vpop.f32.mrb[81].mxu0  ;;  %v6802_v8 = vadd.f32 %v12651_v32, %v5733_v5 }
 0x6ad   : > { %v5934_v44 = vadd.f32 %v6797_v21, %v6548_v24  ;;  %v5928_v18 = vpop.f32.mrb[139].mxu1  ;;  %v5549_v24 = vadd.f32 %v12651_v32, %v12642_v12 }
 0x6ae   : > { %v5929_v40 = vadd.f32 %v6796_v42, %v5928_v18 }
 0x6af   : > { %6025 = vst.msk [vmem:[%s12661_s8 + $0x88] sm:$0xff] %vm6007_vm0, %v5934_v44  ;;  %v5738_v9 = vpop.f32.mrb[82].mxu0 }
 0x6b0   : > { %6024 = vst.msk [vmem:[%s12661_s8 + $0x80] sm:$0xff] %vm6007_vm0, %v5929_v40  ;;  %v6551_v16 = vpop.f32.mrb[140].mxu1  ;;  %v5740_v37 = vpop.f32.mrb[83].mxu0  ;;  %v6803_v23 = vadd.f32 %v12651_v32, %v5738_v9 }
 0x6b1   : > { %v5944_v35 = vadd.f32 %v6799_v10, %v6551_v16  ;;  %v5938_v45 = vpop.f32.mrb[141].mxu1 }
 0x6b2   : > { %v5939_v30 = vadd.f32 %v6798_v39, %v5938_v45 }
 0x6b3   : > { %6027 = vst.msk [vmem:[%s12661_s8 + $0x98] sm:$0xff] %vm6007_vm0, %v5944_v35  ;;  %v5743_v56 = vpop.f32.mrb[84].mxu0 }
 0x6b4   : > { %6026 = vst.msk [vmem:[%s12661_s8 + $0x90] sm:$0xff] %vm6007_vm0, %v5939_v30  ;;  %v6554_v61 = vpop.f32.mrb[142].mxu1  ;;  %v5745_v17 = vpop.f32.mrb[85].mxu0  ;;  %v6804_v20 = vadd.f32 %v12651_v32, %v5743_v56 }
 0x6b5   : > { %v5954_v13 = vadd.f32 %v6801_v57, %v6554_v61  ;;  %v5948_v47 = vpop.f32.mrb[143].mxu1 }
 0x6b6   : > { %v5949_v27 = vadd.f32 %v6800_v51, %v5948_v47 }
 0x6b7   : > { %6029 = vst.msk [vmem:[%s12661_s8 + $0xa8] sm:$0xff] %vm6007_vm0, %v5954_v13  ;;  %v5748_v36 = vpop.f32.mrb[86].mxu0 }
 0x6b8   : > { %6028 = vst.msk [vmem:[%s12661_s8 + $0xa0] sm:$0xff] %vm6007_vm0, %v5949_v27  ;;  %v6557_v2 = vpop.f32.mrb[144].mxu1  ;;  %v5750_v22 = vpop.f32.mrb[87].mxu0  ;;  %v6805_v48 = vadd.f32 %v12651_v32, %v5748_v36 }
 0x6b9   : > { %v5964_v31 = vadd.f32 %v6803_v23, %v6557_v2  ;;  %v5958_v33 = vpop.f32.mrb[145].mxu1 }
 0x6ba   : > { %v5959_v15 = vadd.f32 %v6802_v8, %v5958_v33 }
 0x6bb   : > { %6031 = vst.msk [vmem:[%s12661_s8 + $0xb8] sm:$0xff] %vm6007_vm0, %v5964_v31  ;;  %v5753_v49 = vpop.f32.mrb[88].mxu0 }
 0x6bc   : > { %6030 = vst.msk [vmem:[%s12661_s8 + $0xb0] sm:$0xff] %vm6007_vm0, %v5959_v15  ;;  %v6560_v34 = vpop.f32.mrb[146].mxu1  ;;  %v5755_v3 = vpop.f32.mrb[89].mxu0  ;;  %v6806_v62 = vadd.f32 %v12651_v32, %v5753_v49 }
 0x6bd   : > { %v5974_v1 = vadd.f32 %v6805_v48, %v6560_v34  ;;  %v5968_v63 = vpop.f32.mrb[147].mxu1 }
 0x6be   : > { %v5969_v38 = vadd.f32 %v6804_v20, %v5968_v63 }
 0x6bf   : > { %6033 = vst.msk [vmem:[%s12661_s8 + $0xc8] sm:$0xff] %vm6007_vm0, %v5974_v1  ;;  %v5758_v54 = vpop.f32.mrb[90].mxu0 }
 0x6c0   : > { %6032 = vst.msk [vmem:[%s12661_s8 + $0xc0] sm:$0xff] %vm6007_vm0, %v5969_v38  ;;  %v6563_v52 = vpop.f32.mrb[148].mxu1  ;;  %v5759_v29 = vadd.f32 %v5758_v54, %v5534_v43  ;;  %v5760_v50 = vpop.f32.mrb[91].mxu0 }
 0x6c1   : > { %v5978_v11 = vpop.f32.mrb[149].mxu1 }
 0x6c2   : > { %v5979_v59 = vadd.f32 %v6806_v62, %v5978_v11  ;;  %v5984_v7 = vadd.f32 %v6563_v52, %v5759_v29 }
 0x6c3   : > { %v5763_v6 = vpop.f32.mrb[92].mxu0 }
 0x6c4   : > { %6034 = vst.msk [vmem:[%s12661_s8 + $0xd0] sm:$0xff] %vm6007_vm0, %v5979_v59  ;;  %v6566_v53 = vpop.f32.mrb[150].mxu1  ;;  %6035 = vst.msk [vmem:[%s12661_s8 + $0xd8] sm:$0xff] %vm6007_vm0, %v5984_v7  ;;  %v5764_v60 = vadd.f32 %v5763_v6, %v5539_v4  ;;  %v5765_v46 = vpop.f32.mrb[93].mxu0 }
 0x6c5   : > { %v5988_v19 = vpop.f32.mrb[151].mxu1 }
 0x6c6   : > { %v5989_v28 = vadd.f32 %v5988_v19, %v5764_v60 }
 0x6c7   : > { %v5768_v55 = vpop.f32.mrb[94].mxu0 }
 0x6c8   : > { %v6569_v58 = vpop.f32.mrb[152].mxu1  ;;  %6036 = vst.msk [vmem:[%s12661_s8 + $0xe0] sm:$0xff] %vm6007_vm0, %v5989_v28  ;;  %v5769_v25 = vadd.f32 %v5768_v55, %v5544_v0  ;;  %v5770_v42 = vpop.f32.mrb[95].mxu0 }
 0x6c9   : > { %v5998_v21 = vpop.f32.mrb[153].mxu1 }
 0x6ca   : > { %v5994_v5 = vadd.f32 %v6566_v53, %v5769_v25 }
 0x6cb   : > { %v5773_v44 = vpop.f32.mrb[96].mxu0 }
 0x6cc   : > { %6037 = vst.msk [vmem:[%s12661_s8 + $0xe8] sm:$0xff] %vm6007_vm0, %v5994_v5  ;;  %v5774_v18 = vadd.f32 %v5773_v44, %v5549_v24  ;;  %v5775_v14 = vpop.f32.mrb[97].mxu0 }
 0x6ce   : > { %v5999_v40 = vadd.f32 %v5998_v21, %v5774_v18 }
 0x6cf   : > { %v5778_v10 = vpop.f32.mrb[98].mxu0 }
 0x6d0   : > { %6038 = vst.msk [vmem:[%s12661_s8 + $0xf0] sm:$0xff] %vm6007_vm0, %v5999_v40  ;;  %v5779_v39 = vadd.f32 %v5778_v10, %v5554_v26  ;;  %v5780_v16 = vpop.f32.mrb[99].mxu0 }
 0x6d2   : > { %v6004_v9 = vadd.f32 %v6569_v58, %v5779_v39 }
 0x6d4   : > { %6039 = vst.msk [vmem:[%s12661_s8 + $0xf8] sm:$0xff] %vm6007_vm0, %v6004_v9 }
 0x6d5 PF: > { %s17_s26 = sadd.s32 1, %s7764_s26   ;;  %s13276_s24 = smov %s7760_s25 }
 0x6d6   : > { %p14_p5 = scmp.ge.s32.totalorder %s17_s26, 4   ;;  %s13277_s25 = smov %s13279_s27 }
 0x6d8   :  { %16 = sbr.rel (!%p14_p5) target bundleno = 2 (0x2), region = 89 }

</bundles_post_ra>
